<compile_context>
chip_gen: v7x
topology: tpu7x:2x2x1
jax: 0.10.0
libtpu: 0.0.40
codegen_flags: <defaults>
</compile_context>

<pallas_src>
import numpy as np

import jax
import jax.numpy as jnp
from jax import lax
from jax.experimental import pallas as pl
from jax.experimental.pallas import tpu as pltpu


# ---------------------------------------------------------------------------
# Fused forward kernel (one grid step == one image)
# ---------------------------------------------------------------------------
def _net_kernel(x_ref, w1_ref, b1_ref, w2_ref, b2_ref, w3_ref, b3_ref,
                wf1_ref, bf1_ref, wf2_ref, bf2_ref, o_ref):
    f32 = jnp.float32
    bf16 = jnp.bfloat16

    def conv_rows(inp_bf16, w_ref, b_ref):
        # conv as KH accumulated matmuls over row-shifted lane-dense (H, W*Cin) slabs.
        kh_n = w_ref.shape[0]
        out_rows = inp_bf16.shape[0] - kh_n + 1
        acc = jnp.zeros((out_rows, w_ref.shape[2]), f32)
        for kh in range(kh_n):
            acc += jnp.dot(inp_bf16[kh:kh + out_rows, :], w_ref[kh],
                           preferred_element_type=f32)
        return acc + b_ref[...]

    def pool2x2(z):
        # columns were emitted parity-major ([even ow | odd ow]) -> column pool is one max;
        # row pool = exact 0/1 selection matmuls (avoids strided slices / reshapes).
        half = z.shape[1] // 2
        cp = jnp.maximum(z[:, :half], z[:, half:])
        in_rows = z.shape[0]
        out_rows = in_rows // 2
        r = lax.broadcasted_iota(jnp.int32, (out_rows, in_rows), 0)
        c = lax.broadcasted_iota(jnp.int32, (out_rows, in_rows), 1)
        sel_even = (c == 2 * r).astype(bf16)
        sel_odd = (c == 2 * r + 1).astype(bf16)
        cpb = cp.astype(bf16)
        return jnp.maximum(jnp.dot(sel_even, cpb, preferred_element_type=f32),
                           jnp.dot(sel_odd, cpb, preferred_element_type=f32))

    x = x_ref[0]                                            # (28, 28) bf16

    # conv1 (1->32) + ReLU          -> (24, 24*32)
    h1 = jnp.maximum(conv_rows(x, w1_ref, b1_ref), 0.0)
    # TODO(synk): F.dropout(p=0.5) is identity here (eval-mode); no training-mode masking.

    # conv2 (32->32) -> maxpool 2x2 -> ReLU   -> (10, 10*32)
    h2 = conv_rows(h1.astype(bf16), w2_ref, b2_ref)         # (20, 20*32)
    p2 = jnp.maximum(pool2x2(h2), 0.0)

    # conv3 (32->64) -> maxpool 2x2 -> ReLU   -> (3, 3*64)
    h3 = conv_rows(p2.astype(bf16), w3_ref, b3_ref)         # (6, 6*64)
    p3 = jnp.maximum(pool2x2(h3), 0.0).astype(bf16)

    # fc1 (576->1024) + ReLU, accumulated over the 3 spatial rows (no flatten/reshape needed)
    z1 = jnp.zeros((1, wf1_ref.shape[2]), f32)
    for h in range(wf1_ref.shape[0]):
        z1 += jnp.dot(p3[h:h + 1, :], wf1_ref[h], preferred_element_type=f32)
    a1 = jnp.maximum(z1 + bf1_ref[...], 0.0).astype(bf16)   # (1, 1024)

    # fc2 (1024->10) + log_softmax
    z2 = jnp.dot(a1, wf2_ref[...], preferred_element_type=f32) + bf2_ref[...]   # (1, 10)
    m = jnp.max(z2, axis=1, keepdims=True)
    lse = jnp.log(jnp.sum(jnp.exp(z2 - m), axis=1, keepdims=True))
    o_ref[0] = (z2 - m) - lse


def _resident_spec(shape):
    # whole array, same block for every grid step (VMEM-resident weights / biases)
    return pl.BlockSpec(shape, lambda b, _n=len(shape): (0,) * _n)


@jax.jit
def forward(kp, x_nchw):
    assert x_nchw.shape[1:] == (1, 28, 28)
    n = x_nchw.shape[0]
    x = x_nchw.reshape(n, 28, 28).astype(jnp.bfloat16)      # rows = H, lanes = W (Cin = 1)

    weights = (kp["w1"], kp["b1"], kp["w2"], kp["b2"], kp["w3"], kp["b3"],
               kp["wf1"], kp["bf1"], kp["wf2"], kp["bf2"])
    in_specs = [pl.BlockSpec((1, 28, 28), lambda b: (b, 0, 0))]
    in_specs += [_resident_spec(w.shape) for w in weights]

    out = pl.pallas_call(
        _net_kernel,
        out_shape=jax.ShapeDtypeStruct((n, 1, 10), jnp.float32),
        grid=(n,),
        in_specs=in_specs,
        out_specs=pl.BlockSpec((1, 1, 10), lambda b: (b, 0, 0)),
        compiler_params=pltpu.CompilerParams(
            dimension_semantics=("parallel",),
            vmem_limit_bytes=32 * 1024 * 1024),
    )(x, *weights)
    return out.reshape(n, 10)


# ---------------------------------------------------------------------------
# Host-side parameter preparation (torch-layout params -> kernel-ready weights)
# ---------------------------------------------------------------------------
def _expand_conv(w, w_in, parity):
    """w: (Cout, Cin, KH, KW) torch layout -> (KH, W_in*Cin, OW*Cout) banded matrices.

    Row index = wi*Cin + ci; column index = ow*Cout + co (parity=False) or
    (ow%2)*(OW//2)*Cout + (ow//2)*Cout + co (parity=True, so a 2x2 pool's column max is a
    single lane-slice max inside the kernel)."""
    w = np.asarray(w, np.float32)
    cout, cin, kh_n, kw_n = w.shape
    ow_n = w_in - kw_n + 1
    out = np.zeros((kh_n, w_in * cin, ow_n * cout), np.float32)
    for kh in range(kh_n):
        for ow in range(ow_n):
            if parity:
                col0 = (ow % 2) * (ow_n // 2) * cout + (ow // 2) * cout
            else:
                col0 = ow * cout
            for kw in range(kw_n):
                wi = ow + kw
                out[kh, wi * cin:(wi + 1) * cin, col0:col0 + cout] += w[:, :, kh, kw].T
    return out


def prepare_params(p):
    # conv weights -> banded per-kh matrices (bf16), biases tiled to lane-dense rows (f32).
    w1 = _expand_conv(p["conv1_w"], 28, parity=False)       # (5, 28, 768)
    w2 = _expand_conv(p["conv2_w"], 24, parity=True)        # (5, 768, 640)
    w3 = _expand_conv(p["conv3_w"], 10, parity=True)        # (5, 320, 384)
    # fc1: torch flatten index is c*9 + h*3 + w (NCHW view); kernel rows are (h, w*64+c).
    wf1 = (np.asarray(p["fc1_w"], np.float32)
           .reshape(1024, 64, 3, 3).transpose(2, 3, 1, 0).reshape(3, 192, 1024))
    wf2 = np.asarray(p["fc2_w"], np.float32).T              # (1024, 10)
    return dict(
        w1=jnp.asarray(w1, jnp.bfloat16),
        b1=jnp.asarray(np.tile(np.asarray(p["conv1_b"], np.float32), 24)[None, :]),
        w2=jnp.asarray(w2, jnp.bfloat16),
        b2=jnp.asarray(np.tile(np.asarray(p["conv2_b"], np.float32), 20)[None, :]),
        w3=jnp.asarray(w3, jnp.bfloat16),
        b3=jnp.asarray(np.tile(np.asarray(p["conv3_b"], np.float32), 6)[None, :]),
        wf1=jnp.asarray(wf1, jnp.bfloat16),
        bf1=jnp.asarray(np.asarray(p["fc1_b"], np.float32)[None, :]),
        wf2=jnp.asarray(wf2, jnp.bfloat16),
        bf2=jnp.asarray(np.asarray(p["fc2_b"], np.float32)[None, :]),
    )


def init_params(key):
    # torch-default-like init: U(-1/sqrt(fan_in), 1/sqrt(fan_in)) for weights and biases.
    ks = jax.random.split(key, 10)

    def u(k, shape, fan_in):
        b = 1.0 / np.sqrt(fan_in)
        return jax.random.uniform(k, shape, jnp.float32, -b, b)

    return dict(
        conv1_w=u(ks[0], (32, 1, 5, 5), 25),    conv1_b=u(ks[1], (32,), 25),
        conv2_w=u(ks[2], (32, 32, 5, 5), 800),  conv2_b=u(ks[3], (32,), 800),
        conv3_w=u(ks[4], (64, 32, 5, 5), 800),  conv3_b=u(ks[5], (64,), 800),
        fc1_w=u(ks[6], (1024, 576), 576),       fc1_b=u(ks[7], (1024,), 576),
        fc2_w=u(ks[8], (10, 1024), 1024),       fc2_b=u(ks[9], (10,), 1024),
    )


# ---------------------------------------------------------------------------
# Pure-JAX f32 reference of the torch forward (for validation)
# ---------------------------------------------------------------------------
def reference_forward(p, x_nchw):
    x = x_nchw.astype(jnp.float32)

    def conv(h, w, b):
        y = lax.conv_general_dilated(h, w, window_strides=(1, 1), padding="VALID",
                                     dimension_numbers=("NCHW", "OIHW", "NCHW"))
        return y + b.reshape(1, -1, 1, 1)

    def pool(h):
        return lax.reduce_window(h, -jnp.inf, lax.max, (1, 1, 2, 2), (1, 1, 2, 2), "VALID")

    h = jax.nn.relu(conv(x, p["conv1_w"], p["conv1_b"]))
    h = jax.nn.relu(pool(conv(h, p["conv2_w"], p["conv2_b"])))
    h = jax.nn.relu(pool(conv(h, p["conv3_w"], p["conv3_b"])))
    h = h.reshape(h.shape[0], -1)                              # NCHW flatten == torch .view
    h = jax.nn.relu(h @ p["fc1_w"].T + p["fc1_b"])
    z = h @ p["fc2_w"].T + p["fc2_b"]
    return jax.nn.log_softmax(z, axis=1)


if __name__ == "__main__":
    key = jax.random.PRNGKey(0)
    kp_key, x_key = jax.random.split(key)
    params = init_params(kp_key)
    kparams = prepare_params(params)

    x = jax.random.normal(x_key, (2, 1, 28, 28), jnp.float32)   # NCHW, batch=2, 28x28

    out = jax.block_until_ready(forward(kparams, x))
    assert out.shape == (2, 10)
    # rows are valid log-probabilities (log_softmax computed exactly in f32)
    assert jnp.allclose(jnp.sum(jnp.exp(out), axis=1), 1.0, atol=1e-3)
    # matches a pure-JAX f32 reference of the torch forward (bf16-MXU tolerance)
    ref = reference_forward(params, x)
    assert float(jnp.max(jnp.abs(out - ref))) < 1e-1
    print("KERNEL_OK")
</pallas_src>

<mosaic_0001>
module attributes {stable_mosaic.version = 11 : i64} {
  func.func @_net_kernel(%arg0: i32, %arg1: memref<1x28x28xbf16, #tpu.memory_space<vmem>>, %arg2: memref<5x28x768xbf16, #tpu.memory_space<vmem>>, %arg3: memref<1x768xf32, #tpu.memory_space<vmem>>, %arg4: memref<5x768x640xbf16, #tpu.memory_space<vmem>>, %arg5: memref<1x640xf32, #tpu.memory_space<vmem>>, %arg6: memref<5x320x384xbf16, #tpu.memory_space<vmem>>, %arg7: memref<1x384xf32, #tpu.memory_space<vmem>>, %arg8: memref<3x192x1024xbf16, #tpu.memory_space<vmem>>, %arg9: memref<1x1024xf32, #tpu.memory_space<vmem>>, %arg10: memref<1024x10xbf16, #tpu.memory_space<vmem>>, %arg11: memref<1x10xf32, #tpu.memory_space<vmem>>, %arg12: memref<1x1x10xf32, #tpu.memory_space<vmem>>) attributes {dimension_semantics = [#tpu.dimension_semantics<parallel>], iteration_bounds = array<i64: 2>, scalar_prefetch = 0 : i64, scratch_operands = 0 : i64, tpu.core_type = #tpu.core_type<tc>, window_params = [{transform_indices = @transform_0, window_bounds = array<i64: 1, 28, 28>}, {pipeline_mode = #tpu.pipeline_mode<synchronous>, transform_indices = @transform_1, window_bounds = array<i64: 5, 28, 768>}, {pipeline_mode = #tpu.pipeline_mode<synchronous>, transform_indices = @transform_2, window_bounds = array<i64: 1, 768>}, {pipeline_mode = #tpu.pipeline_mode<synchronous>, transform_indices = @transform_3, window_bounds = array<i64: 5, 768, 640>}, {pipeline_mode = #tpu.pipeline_mode<synchronous>, transform_indices = @transform_4, window_bounds = array<i64: 1, 640>}, {pipeline_mode = #tpu.pipeline_mode<synchronous>, transform_indices = @transform_5, window_bounds = array<i64: 5, 320, 384>}, {pipeline_mode = #tpu.pipeline_mode<synchronous>, transform_indices = @transform_6, window_bounds = array<i64: 1, 384>}, {pipeline_mode = #tpu.pipeline_mode<synchronous>, transform_indices = @transform_7, window_bounds = array<i64: 3, 192, 1024>}, {pipeline_mode = #tpu.pipeline_mode<synchronous>, transform_indices = @transform_8, window_bounds = array<i64: 1, 1024>}, {pipeline_mode = #tpu.pipeline_mode<synchronous>, transform_indices = @transform_9, window_bounds = array<i64: 1024, 10>}, {pipeline_mode = #tpu.pipeline_mode<synchronous>, transform_indices = @transform_10, window_bounds = array<i64: 1, 10>}, {transform_indices = @transform_11, window_bounds = array<i64: 1, 1, 10>}]} {
    %c0 = arith.constant 0 : index
    %c0_0 = arith.constant 0 : index
    %c0_1 = arith.constant 0 : index
    %0 = vector.load %arg1[%c0, %c0_0, %c0_1] : memref<1x28x28xbf16, #tpu.memory_space<vmem>>, vector<1x28x28xbf16>
    %1 = vector.shape_cast %0 : vector<1x28x28xbf16> to vector<28x28xbf16>
    %cst = arith.constant 0.000000e+00 : f32
    %2 = vector.broadcast %cst : f32 to vector<24x768xf32>
    %3 = vector.extract_strided_slice %1 {offsets = [0, 0], sizes = [24, 28], strides = [1, 1]} : vector<28x28xbf16> to vector<24x28xbf16>
    %c0_2 = arith.constant 0 : index
    %c0_3 = arith.constant 0 : index
    %c0_4 = arith.constant 0 : index
    %4 = vector.load %arg2[%c0_2, %c0_3, %c0_4] : memref<5x28x768xbf16, #tpu.memory_space<vmem>>, vector<1x28x768xbf16>
    %5 = vector.shape_cast %4 : vector<1x28x768xbf16> to vector<28x768xbf16>
    %cst_5 = arith.constant dense<0.000000e+00> : vector<24x768xf32>
    %6 = tpu.matmul %3, %5, %cst_5 {dimension_numbers = #tpu.dot_dimension_numbers<[1], [0], [0], [1], [0, 0, 1, 1], [], []>} : vector<24x28xbf16>, vector<28x768xbf16>, vector<24x768xf32> -> vector<24x768xf32>
    %7 = arith.addf %2, %6 : vector<24x768xf32>
    %8 = vector.extract_strided_slice %1 {offsets = [1, 0], sizes = [24, 28], strides = [1, 1]} : vector<28x28xbf16> to vector<24x28xbf16>
    %c1 = arith.constant 1 : index
    %c0_6 = arith.constant 0 : index
    %c0_7 = arith.constant 0 : index
    %9 = vector.load %arg2[%c1, %c0_6, %c0_7] : memref<5x28x768xbf16, #tpu.memory_space<vmem>>, vector<1x28x768xbf16>
    %10 = vector.shape_cast %9 : vector<1x28x768xbf16> to vector<28x768xbf16>
    %cst_8 = arith.constant dense<0.000000e+00> : vector<24x768xf32>
    %11 = tpu.matmul %8, %10, %cst_8 {dimension_numbers = #tpu.dot_dimension_numbers<[1], [0], [0], [1], [0, 0, 1, 1], [], []>} : vector<24x28xbf16>, vector<28x768xbf16>, vector<24x768xf32> -> vector<24x768xf32>
    %12 = arith.addf %7, %11 : vector<24x768xf32>
    %13 = vector.extract_strided_slice %1 {offsets = [2, 0], sizes = [24, 28], strides = [1, 1]} : vector<28x28xbf16> to vector<24x28xbf16>
    %c2 = arith.constant 2 : index
    %c0_9 = arith.constant 0 : index
    %c0_10 = arith.constant 0 : index
    %14 = vector.load %arg2[%c2, %c0_9, %c0_10] : memref<5x28x768xbf16, #tpu.memory_space<vmem>>, vector<1x28x768xbf16>
    %15 = vector.shape_cast %14 : vector<1x28x768xbf16> to vector<28x768xbf16>
    %cst_11 = arith.constant dense<0.000000e+00> : vector<24x768xf32>
    %16 = tpu.matmul %13, %15, %cst_11 {dimension_numbers = #tpu.dot_dimension_numbers<[1], [0], [0], [1], [0, 0, 1, 1], [], []>} : vector<24x28xbf16>, vector<28x768xbf16>, vector<24x768xf32> -> vector<24x768xf32>
    %17 = arith.addf %12, %16 : vector<24x768xf32>
    %18 = vector.extract_strided_slice %1 {offsets = [3, 0], sizes = [24, 28], strides = [1, 1]} : vector<28x28xbf16> to vector<24x28xbf16>
    %c3 = arith.constant 3 : index
    %c0_12 = arith.constant 0 : index
    %c0_13 = arith.constant 0 : index
    %19 = vector.load %arg2[%c3, %c0_12, %c0_13] : memref<5x28x768xbf16, #tpu.memory_space<vmem>>, vector<1x28x768xbf16>
    %20 = vector.shape_cast %19 : vector<1x28x768xbf16> to vector<28x768xbf16>
    %cst_14 = arith.constant dense<0.000000e+00> : vector<24x768xf32>
    %21 = tpu.matmul %18, %20, %cst_14 {dimension_numbers = #tpu.dot_dimension_numbers<[1], [0], [0], [1], [0, 0, 1, 1], [], []>} : vector<24x28xbf16>, vector<28x768xbf16>, vector<24x768xf32> -> vector<24x768xf32>
    %22 = arith.addf %17, %21 : vector<24x768xf32>
    %23 = vector.extract_strided_slice %1 {offsets = [4, 0], sizes = [24, 28], strides = [1, 1]} : vector<28x28xbf16> to vector<24x28xbf16>
    %c4 = arith.constant 4 : index
    %c0_15 = arith.constant 0 : index
    %c0_16 = arith.constant 0 : index
    %24 = vector.load %arg2[%c4, %c0_15, %c0_16] : memref<5x28x768xbf16, #tpu.memory_space<vmem>>, vector<1x28x768xbf16>
    %25 = vector.shape_cast %24 : vector<1x28x768xbf16> to vector<28x768xbf16>
    %cst_17 = arith.constant dense<0.000000e+00> : vector<24x768xf32>
    %26 = tpu.matmul %23, %25, %cst_17 {dimension_numbers = #tpu.dot_dimension_numbers<[1], [0], [0], [1], [0, 0, 1, 1], [], []>} : vector<24x28xbf16>, vector<28x768xbf16>, vector<24x768xf32> -> vector<24x768xf32>
    %27 = arith.addf %22, %26 : vector<24x768xf32>
    %c0_18 = arith.constant 0 : index
    %c0_19 = arith.constant 0 : index
    %28 = vector.load %arg3[%c0_18, %c0_19] : memref<1x768xf32, #tpu.memory_space<vmem>>, vector<1x768xf32>
    %29 = vector.broadcast %28 : vector<1x768xf32> to vector<24x768xf32>
    %30 = arith.addf %27, %29 : vector<24x768xf32>
    %cst_20 = arith.constant 0.000000e+00 : f32
    %31 = vector.broadcast %cst_20 : f32 to vector<24x768xf32>
    %32 = arith.maximumf %30, %31 : vector<24x768xf32>
    %33 = arith.truncf %32 : vector<24x768xf32> to vector<24x768xbf16>
    %cst_21 = arith.constant 0.000000e+00 : f32
    %34 = vector.broadcast %cst_21 : f32 to vector<20x640xf32>
    %35 = vector.extract_strided_slice %33 {offsets = [0, 0], sizes = [20, 768], strides = [1, 1]} : vector<24x768xbf16> to vector<20x768xbf16>
    %c0_22 = arith.constant 0 : index
    %c0_23 = arith.constant 0 : index
    %c0_24 = arith.constant 0 : index
    %36 = vector.load %arg4[%c0_22, %c0_23, %c0_24] : memref<5x768x640xbf16, #tpu.memory_space<vmem>>, vector<1x768x640xbf16>
    %37 = vector.shape_cast %36 : vector<1x768x640xbf16> to vector<768x640xbf16>
    %cst_25 = arith.constant dense<0.000000e+00> : vector<20x640xf32>
    %38 = tpu.matmul %35, %37, %cst_25 {dimension_numbers = #tpu.dot_dimension_numbers<[1], [0], [0], [1], [0, 0, 1, 1], [], []>} : vector<20x768xbf16>, vector<768x640xbf16>, vector<20x640xf32> -> vector<20x640xf32>
    %39 = arith.addf %34, %38 : vector<20x640xf32>
    %40 = vector.extract_strided_slice %33 {offsets = [1, 0], sizes = [20, 768], strides = [1, 1]} : vector<24x768xbf16> to vector<20x768xbf16>
    %c1_26 = arith.constant 1 : index
    %c0_27 = arith.constant 0 : index
    %c0_28 = arith.constant 0 : index
    %41 = vector.load %arg4[%c1_26, %c0_27, %c0_28] : memref<5x768x640xbf16, #tpu.memory_space<vmem>>, vector<1x768x640xbf16>
    %42 = vector.shape_cast %41 : vector<1x768x640xbf16> to vector<768x640xbf16>
    %cst_29 = arith.constant dense<0.000000e+00> : vector<20x640xf32>
    %43 = tpu.matmul %40, %42, %cst_29 {dimension_numbers = #tpu.dot_dimension_numbers<[1], [0], [0], [1], [0, 0, 1, 1], [], []>} : vector<20x768xbf16>, vector<768x640xbf16>, vector<20x640xf32> -> vector<20x640xf32>
    %44 = arith.addf %39, %43 : vector<20x640xf32>
    %45 = vector.extract_strided_slice %33 {offsets = [2, 0], sizes = [20, 768], strides = [1, 1]} : vector<24x768xbf16> to vector<20x768xbf16>
    %c2_30 = arith.constant 2 : index
    %c0_31 = arith.constant 0 : index
    %c0_32 = arith.constant 0 : index
    %46 = vector.load %arg4[%c2_30, %c0_31, %c0_32] : memref<5x768x640xbf16, #tpu.memory_space<vmem>>, vector<1x768x640xbf16>
    %47 = vector.shape_cast %46 : vector<1x768x640xbf16> to vector<768x640xbf16>
    %cst_33 = arith.constant dense<0.000000e+00> : vector<20x640xf32>
    %48 = tpu.matmul %45, %47, %cst_33 {dimension_numbers = #tpu.dot_dimension_numbers<[1], [0], [0], [1], [0, 0, 1, 1], [], []>} : vector<20x768xbf16>, vector<768x640xbf16>, vector<20x640xf32> -> vector<20x640xf32>
    %49 = arith.addf %44, %48 : vector<20x640xf32>
    %50 = vector.extract_strided_slice %33 {offsets = [3, 0], sizes = [20, 768], strides = [1, 1]} : vector<24x768xbf16> to vector<20x768xbf16>
    %c3_34 = arith.constant 3 : index
    %c0_35 = arith.constant 0 : index
    %c0_36 = arith.constant 0 : index
    %51 = vector.load %arg4[%c3_34, %c0_35, %c0_36] : memref<5x768x640xbf16, #tpu.memory_space<vmem>>, vector<1x768x640xbf16>
    %52 = vector.shape_cast %51 : vector<1x768x640xbf16> to vector<768x640xbf16>
    %cst_37 = arith.constant dense<0.000000e+00> : vector<20x640xf32>
    %53 = tpu.matmul %50, %52, %cst_37 {dimension_numbers = #tpu.dot_dimension_numbers<[1], [0], [0], [1], [0, 0, 1, 1], [], []>} : vector<20x768xbf16>, vector<768x640xbf16>, vector<20x640xf32> -> vector<20x640xf32>
    %54 = arith.addf %49, %53 : vector<20x640xf32>
    %55 = vector.extract_strided_slice %33 {offsets = [4, 0], sizes = [20, 768], strides = [1, 1]} : vector<24x768xbf16> to vector<20x768xbf16>
    %c4_38 = arith.constant 4 : index
    %c0_39 = arith.constant 0 : index
    %c0_40 = arith.constant 0 : index
    %56 = vector.load %arg4[%c4_38, %c0_39, %c0_40] : memref<5x768x640xbf16, #tpu.memory_space<vmem>>, vector<1x768x640xbf16>
    %57 = vector.shape_cast %56 : vector<1x768x640xbf16> to vector<768x640xbf16>
    %cst_41 = arith.constant dense<0.000000e+00> : vector<20x640xf32>
    %58 = tpu.matmul %55, %57, %cst_41 {dimension_numbers = #tpu.dot_dimension_numbers<[1], [0], [0], [1], [0, 0, 1, 1], [], []>} : vector<20x768xbf16>, vector<768x640xbf16>, vector<20x640xf32> -> vector<20x640xf32>
    %59 = arith.addf %54, %58 : vector<20x640xf32>
    %c0_42 = arith.constant 0 : index
    %c0_43 = arith.constant 0 : index
    %60 = vector.load %arg5[%c0_42, %c0_43] : memref<1x640xf32, #tpu.memory_space<vmem>>, vector<1x640xf32>
    %61 = vector.broadcast %60 : vector<1x640xf32> to vector<20x640xf32>
    %62 = arith.addf %59, %61 : vector<20x640xf32>
    %63 = vector.extract_strided_slice %62 {offsets = [0, 0], sizes = [20, 320], strides = [1, 1]} : vector<20x640xf32> to vector<20x320xf32>
    %64 = vector.extract_strided_slice %62 {offsets = [0, 320], sizes = [20, 320], strides = [1, 1]} : vector<20x640xf32> to vector<20x320xf32>
    %65 = arith.maximumf %63, %64 : vector<20x320xf32>
    %66 = tpu.iota {dimensions = array<i32: 0>} : vector<10x20xi32>
    %67 = tpu.iota {dimensions = array<i32: 1>} : vector<10x20xi32>
    %c2_i32 = arith.constant 2 : i32
    %68 = vector.broadcast %c2_i32 : i32 to vector<10x20xi32>
    %69 = arith.muli %68, %66 : vector<10x20xi32>
    %70 = arith.cmpi eq, %67, %69 : vector<10x20xi32>
    %71 = arith.extui %70 : vector<10x20xi1> to vector<10x20xi32>
    %72 = arith.sitofp %71 : vector<10x20xi32> to vector<10x20xf32>
    %73 = arith.truncf %72 : vector<10x20xf32> to vector<10x20xbf16>
    %c2_i32_44 = arith.constant 2 : i32
    %74 = vector.broadcast %c2_i32_44 : i32 to vector<10x20xi32>
    %75 = arith.muli %74, %66 : vector<10x20xi32>
    %c1_i32 = arith.constant 1 : i32
    %76 = vector.broadcast %c1_i32 : i32 to vector<10x20xi32>
    %77 = arith.addi %75, %76 : vector<10x20xi32>
    %78 = arith.cmpi eq, %67, %77 : vector<10x20xi32>
    %79 = arith.extui %78 : vector<10x20xi1> to vector<10x20xi32>
    %80 = arith.sitofp %79 : vector<10x20xi32> to vector<10x20xf32>
    %81 = arith.truncf %80 : vector<10x20xf32> to vector<10x20xbf16>
    %82 = arith.truncf %65 : vector<20x320xf32> to vector<20x320xbf16>
    %cst_45 = arith.constant dense<0.000000e+00> : vector<10x320xf32>
    %83 = tpu.matmul %73, %82, %cst_45 {dimension_numbers = #tpu.dot_dimension_numbers<[1], [0], [0], [1], [0, 0, 1, 1], [], []>} : vector<10x20xbf16>, vector<20x320xbf16>, vector<10x320xf32> -> vector<10x320xf32>
    %cst_46 = arith.constant dense<0.000000e+00> : vector<10x320xf32>
    %84 = tpu.matmul %81, %82, %cst_46 {dimension_numbers = #tpu.dot_dimension_numbers<[1], [0], [0], [1], [0, 0, 1, 1], [], []>} : vector<10x20xbf16>, vector<20x320xbf16>, vector<10x320xf32> -> vector<10x320xf32>
    %85 = arith.maximumf %83, %84 : vector<10x320xf32>
    %cst_47 = arith.constant 0.000000e+00 : f32
    %86 = vector.broadcast %cst_47 : f32 to vector<10x320xf32>
    %87 = arith.maximumf %85, %86 : vector<10x320xf32>
    %88 = arith.truncf %87 : vector<10x320xf32> to vector<10x320xbf16>
    %cst_48 = arith.constant 0.000000e+00 : f32
    %89 = vector.broadcast %cst_48 : f32 to vector<6x384xf32>
    %90 = vector.extract_strided_slice %88 {offsets = [0, 0], sizes = [6, 320], strides = [1, 1]} : vector<10x320xbf16> to vector<6x320xbf16>
    %c0_49 = arith.constant 0 : index
    %c0_50 = arith.constant 0 : index
    %c0_51 = arith.constant 0 : index
    %91 = vector.load %arg6[%c0_49, %c0_50, %c0_51] : memref<5x320x384xbf16, #tpu.memory_space<vmem>>, vector<1x320x384xbf16>
    %92 = vector.shape_cast %91 : vector<1x320x384xbf16> to vector<320x384xbf16>
    %cst_52 = arith.constant dense<0.000000e+00> : vector<6x384xf32>
    %93 = tpu.matmul %90, %92, %cst_52 {dimension_numbers = #tpu.dot_dimension_numbers<[1], [0], [0], [1], [0, 0, 1, 1], [], []>} : vector<6x320xbf16>, vector<320x384xbf16>, vector<6x384xf32> -> vector<6x384xf32>
    %94 = arith.addf %89, %93 : vector<6x384xf32>
    %95 = vector.extract_strided_slice %88 {offsets = [1, 0], sizes = [6, 320], strides = [1, 1]} : vector<10x320xbf16> to vector<6x320xbf16>
    %c1_53 = arith.constant 1 : index
    %c0_54 = arith.constant 0 : index
    %c0_55 = arith.constant 0 : index
    %96 = vector.load %arg6[%c1_53, %c0_54, %c0_55] : memref<5x320x384xbf16, #tpu.memory_space<vmem>>, vector<1x320x384xbf16>
    %97 = vector.shape_cast %96 : vector<1x320x384xbf16> to vector<320x384xbf16>
    %cst_56 = arith.constant dense<0.000000e+00> : vector<6x384xf32>
    %98 = tpu.matmul %95, %97, %cst_56 {dimension_numbers = #tpu.dot_dimension_numbers<[1], [0], [0], [1], [0, 0, 1, 1], [], []>} : vector<6x320xbf16>, vector<320x384xbf16>, vector<6x384xf32> -> vector<6x384xf32>
    %99 = arith.addf %94, %98 : vector<6x384xf32>
    %100 = vector.extract_strided_slice %88 {offsets = [2, 0], sizes = [6, 320], strides = [1, 1]} : vector<10x320xbf16> to vector<6x320xbf16>
    %c2_57 = arith.constant 2 : index
    %c0_58 = arith.constant 0 : index
    %c0_59 = arith.constant 0 : index
    %101 = vector.load %arg6[%c2_57, %c0_58, %c0_59] : memref<5x320x384xbf16, #tpu.memory_space<vmem>>, vector<1x320x384xbf16>
    %102 = vector.shape_cast %101 : vector<1x320x384xbf16> to vector<320x384xbf16>
    %cst_60 = arith.constant dense<0.000000e+00> : vector<6x384xf32>
    %103 = tpu.matmul %100, %102, %cst_60 {dimension_numbers = #tpu.dot_dimension_numbers<[1], [0], [0], [1], [0, 0, 1, 1], [], []>} : vector<6x320xbf16>, vector<320x384xbf16>, vector<6x384xf32> -> vector<6x384xf32>
    %104 = arith.addf %99, %103 : vector<6x384xf32>
    %105 = vector.extract_strided_slice %88 {offsets = [3, 0], sizes = [6, 320], strides = [1, 1]} : vector<10x320xbf16> to vector<6x320xbf16>
    %c3_61 = arith.constant 3 : index
    %c0_62 = arith.constant 0 : index
    %c0_63 = arith.constant 0 : index
    %106 = vector.load %arg6[%c3_61, %c0_62, %c0_63] : memref<5x320x384xbf16, #tpu.memory_space<vmem>>, vector<1x320x384xbf16>
    %107 = vector.shape_cast %106 : vector<1x320x384xbf16> to vector<320x384xbf16>
    %cst_64 = arith.constant dense<0.000000e+00> : vector<6x384xf32>
    %108 = tpu.matmul %105, %107, %cst_64 {dimension_numbers = #tpu.dot_dimension_numbers<[1], [0], [0], [1], [0, 0, 1, 1], [], []>} : vector<6x320xbf16>, vector<320x384xbf16>, vector<6x384xf32> -> vector<6x384xf32>
    %109 = arith.addf %104, %108 : vector<6x384xf32>
    %110 = vector.extract_strided_slice %88 {offsets = [4, 0], sizes = [6, 320], strides = [1, 1]} : vector<10x320xbf16> to vector<6x320xbf16>
    %c4_65 = arith.constant 4 : index
    %c0_66 = arith.constant 0 : index
    %c0_67 = arith.constant 0 : index
    %111 = vector.load %arg6[%c4_65, %c0_66, %c0_67] : memref<5x320x384xbf16, #tpu.memory_space<vmem>>, vector<1x320x384xbf16>
    %112 = vector.shape_cast %111 : vector<1x320x384xbf16> to vector<320x384xbf16>
    %cst_68 = arith.constant dense<0.000000e+00> : vector<6x384xf32>
    %113 = tpu.matmul %110, %112, %cst_68 {dimension_numbers = #tpu.dot_dimension_numbers<[1], [0], [0], [1], [0, 0, 1, 1], [], []>} : vector<6x320xbf16>, vector<320x384xbf16>, vector<6x384xf32> -> vector<6x384xf32>
    %114 = arith.addf %109, %113 : vector<6x384xf32>
    %c0_69 = arith.constant 0 : index
    %c0_70 = arith.constant 0 : index
    %115 = vector.load %arg7[%c0_69, %c0_70] : memref<1x384xf32, #tpu.memory_space<vmem>>, vector<1x384xf32>
    %116 = vector.broadcast %115 : vector<1x384xf32> to vector<6x384xf32>
    %117 = arith.addf %114, %116 : vector<6x384xf32>
    %118 = vector.extract_strided_slice %117 {offsets = [0, 0], sizes = [6, 192], strides = [1, 1]} : vector<6x384xf32> to vector<6x192xf32>
    %119 = vector.extract_strided_slice %117 {offsets = [0, 192], sizes = [6, 192], strides = [1, 1]} : vector<6x384xf32> to vector<6x192xf32>
    %120 = arith.maximumf %118, %119 : vector<6x192xf32>
    %121 = tpu.iota {dimensions = array<i32: 0>} : vector<3x6xi32>
    %122 = tpu.iota {dimensions = array<i32: 1>} : vector<3x6xi32>
    %c2_i32_71 = arith.constant 2 : i32
    %123 = vector.broadcast %c2_i32_71 : i32 to vector<3x6xi32>
    %124 = arith.muli %123, %121 : vector<3x6xi32>
    %125 = arith.cmpi eq, %122, %124 : vector<3x6xi32>
    %126 = arith.extui %125 : vector<3x6xi1> to vector<3x6xi32>
    %127 = arith.sitofp %126 : vector<3x6xi32> to vector<3x6xf32>
    %128 = arith.truncf %127 : vector<3x6xf32> to vector<3x6xbf16>
    %c2_i32_72 = arith.constant 2 : i32
    %129 = vector.broadcast %c2_i32_72 : i32 to vector<3x6xi32>
    %130 = arith.muli %129, %121 : vector<3x6xi32>
    %c1_i32_73 = arith.constant 1 : i32
    %131 = vector.broadcast %c1_i32_73 : i32 to vector<3x6xi32>
    %132 = arith.addi %130, %131 : vector<3x6xi32>
    %133 = arith.cmpi eq, %122, %132 : vector<3x6xi32>
    %134 = arith.extui %133 : vector<3x6xi1> to vector<3x6xi32>
    %135 = arith.sitofp %134 : vector<3x6xi32> to vector<3x6xf32>
    %136 = arith.truncf %135 : vector<3x6xf32> to vector<3x6xbf16>
    %137 = arith.truncf %120 : vector<6x192xf32> to vector<6x192xbf16>
    %cst_74 = arith.constant dense<0.000000e+00> : vector<3x192xf32>
    %138 = tpu.matmul %128, %137, %cst_74 {dimension_numbers = #tpu.dot_dimension_numbers<[1], [0], [0], [1], [0, 0, 1, 1], [], []>} : vector<3x6xbf16>, vector<6x192xbf16>, vector<3x192xf32> -> vector<3x192xf32>
    %cst_75 = arith.constant dense<0.000000e+00> : vector<3x192xf32>
    %139 = tpu.matmul %136, %137, %cst_75 {dimension_numbers = #tpu.dot_dimension_numbers<[1], [0], [0], [1], [0, 0, 1, 1], [], []>} : vector<3x6xbf16>, vector<6x192xbf16>, vector<3x192xf32> -> vector<3x192xf32>
    %140 = arith.maximumf %138, %139 : vector<3x192xf32>
    %cst_76 = arith.constant 0.000000e+00 : f32
    %141 = vector.broadcast %cst_76 : f32 to vector<3x192xf32>
    %142 = arith.maximumf %140, %141 : vector<3x192xf32>
    %143 = arith.truncf %142 : vector<3x192xf32> to vector<3x192xbf16>
    %cst_77 = arith.constant 0.000000e+00 : f32
    %144 = vector.broadcast %cst_77 : f32 to vector<1x1024xf32>
    %145 = vector.extract_strided_slice %143 {offsets = [0, 0], sizes = [1, 192], strides = [1, 1]} : vector<3x192xbf16> to vector<1x192xbf16>
    %c0_78 = arith.constant 0 : index
    %c0_79 = arith.constant 0 : index
    %c0_80 = arith.constant 0 : index
    %146 = vector.load %arg8[%c0_78, %c0_79, %c0_80] : memref<3x192x1024xbf16, #tpu.memory_space<vmem>>, vector<1x192x1024xbf16>
    %147 = vector.shape_cast %146 : vector<1x192x1024xbf16> to vector<192x1024xbf16>
    %cst_81 = arith.constant dense<0.000000e+00> : vector<1x1024xf32>
    %148 = tpu.matmul %145, %147, %cst_81 {dimension_numbers = #tpu.dot_dimension_numbers<[1], [0], [0], [1], [0, 0, 1, 1], [], []>} : vector<1x192xbf16>, vector<192x1024xbf16>, vector<1x1024xf32> -> vector<1x1024xf32>
    %149 = arith.addf %144, %148 : vector<1x1024xf32>
    %150 = vector.extract_strided_slice %143 {offsets = [1, 0], sizes = [1, 192], strides = [1, 1]} : vector<3x192xbf16> to vector<1x192xbf16>
    %c1_82 = arith.constant 1 : index
    %c0_83 = arith.constant 0 : index
    %c0_84 = arith.constant 0 : index
    %151 = vector.load %arg8[%c1_82, %c0_83, %c0_84] : memref<3x192x1024xbf16, #tpu.memory_space<vmem>>, vector<1x192x1024xbf16>
    %152 = vector.shape_cast %151 : vector<1x192x1024xbf16> to vector<192x1024xbf16>
    %cst_85 = arith.constant dense<0.000000e+00> : vector<1x1024xf32>
    %153 = tpu.matmul %150, %152, %cst_85 {dimension_numbers = #tpu.dot_dimension_numbers<[1], [0], [0], [1], [0, 0, 1, 1], [], []>} : vector<1x192xbf16>, vector<192x1024xbf16>, vector<1x1024xf32> -> vector<1x1024xf32>
    %154 = arith.addf %149, %153 : vector<1x1024xf32>
    %155 = vector.extract_strided_slice %143 {offsets = [2, 0], sizes = [1, 192], strides = [1, 1]} : vector<3x192xbf16> to vector<1x192xbf16>
    %c2_86 = arith.constant 2 : index
    %c0_87 = arith.constant 0 : index
    %c0_88 = arith.constant 0 : index
    %156 = vector.load %arg8[%c2_86, %c0_87, %c0_88] : memref<3x192x1024xbf16, #tpu.memory_space<vmem>>, vector<1x192x1024xbf16>
    %157 = vector.shape_cast %156 : vector<1x192x1024xbf16> to vector<192x1024xbf16>
    %cst_89 = arith.constant dense<0.000000e+00> : vector<1x1024xf32>
    %158 = tpu.matmul %155, %157, %cst_89 {dimension_numbers = #tpu.dot_dimension_numbers<[1], [0], [0], [1], [0, 0, 1, 1], [], []>} : vector<1x192xbf16>, vector<192x1024xbf16>, vector<1x1024xf32> -> vector<1x1024xf32>
    %159 = arith.addf %154, %158 : vector<1x1024xf32>
    %c0_90 = arith.constant 0 : index
    %c0_91 = arith.constant 0 : index
    %160 = vector.load %arg9[%c0_90, %c0_91] : memref<1x1024xf32, #tpu.memory_space<vmem>>, vector<1x1024xf32>
    %161 = arith.addf %159, %160 : vector<1x1024xf32>
    %cst_92 = arith.constant 0.000000e+00 : f32
    %162 = vector.broadcast %cst_92 : f32 to vector<1x1024xf32>
    %163 = arith.maximumf %161, %162 : vector<1x1024xf32>
    %164 = arith.truncf %163 : vector<1x1024xf32> to vector<1x1024xbf16>
    %c0_93 = arith.constant 0 : index
    %c0_94 = arith.constant 0 : index
    %165 = vector.load %arg10[%c0_93, %c0_94] : memref<1024x10xbf16, #tpu.memory_space<vmem>>, vector<1024x10xbf16>
    %cst_95 = arith.constant dense<0.000000e+00> : vector<1x10xf32>
    %166 = tpu.matmul %164, %165, %cst_95 {dimension_numbers = #tpu.dot_dimension_numbers<[1], [0], [0], [1], [0, 0, 1, 1], [], []>} : vector<1x1024xbf16>, vector<1024x10xbf16>, vector<1x10xf32> -> vector<1x10xf32>
    %c0_96 = arith.constant 0 : index
    %c0_97 = arith.constant 0 : index
    %167 = vector.load %arg11[%c0_96, %c0_97] : memref<1x10xf32, #tpu.memory_space<vmem>>, vector<1x10xf32>
    %168 = arith.addf %166, %167 : vector<1x10xf32>
    %cst_98 = arith.constant dense<0xFF800000> : vector<1xf32>
    %169 = vector.multi_reduction <maximumf>, %168, %cst_98 [1] : vector<1x10xf32> to vector<1xf32>
    %170 = vector.shape_cast %169 : vector<1xf32> to vector<1x1xf32>
    %171 = vector.broadcast %170 : vector<1x1xf32> to vector<1x10xf32>
    %172 = arith.subf %168, %171 : vector<1x10xf32>
    %173 = math.exp %172 : vector<1x10xf32>
    %cst_99 = arith.constant dense<0.000000e+00> : vector<1xf32>
    %174 = vector.multi_reduction <add>, %173, %cst_99 [1] : vector<1x10xf32> to vector<1xf32>
    %175 = vector.shape_cast %174 : vector<1xf32> to vector<1x1xf32>
    %176 = math.log %175 : vector<1x1xf32>
    %177 = vector.broadcast %170 : vector<1x1xf32> to vector<1x10xf32>
    %178 = arith.subf %168, %177 : vector<1x10xf32>
    %179 = vector.broadcast %176 : vector<1x1xf32> to vector<1x10xf32>
    %180 = arith.subf %178, %179 : vector<1x10xf32>
    %c0_100 = arith.constant 0 : index
    %c0_101 = arith.constant 0 : index
    %c0_102 = arith.constant 0 : index
    %181 = vector.load %arg12[%c0_100, %c0_101, %c0_102] : memref<1x1x10xf32, #tpu.memory_space<vmem>>, vector<1x1x10xf32>
    %182 = vector.shape_cast %181 : vector<1x1x10xf32> to vector<1x10xf32>
    %183 = vector.shape_cast %180 : vector<1x10xf32> to vector<1x1x10xf32>
    tpu.vector_store %arg12[%c0_100, %c0_101, %c0_102], %183 {strides = array<i32>} : memref<1x1x10xf32, #tpu.memory_space<vmem>>, vector<1x1x10xf32>,
    return
  }
  func.func @transform_0(%arg0: i32) -> (i32, i32, i32) {
    %c0_i32 = arith.constant 0 : i32
    %c0_i32_0 = arith.constant 0 : i32
    %c0_i32_1 = arith.constant 0 : i32
    return %arg0, %c0_i32, %c0_i32_0 : i32, i32, i32
  }
  func.func @transform_1(%arg0: i32) -> (i32, i32, i32) {
    %c0_i32 = arith.constant 0 : i32
    %c0_i32_0 = arith.constant 0 : i32
    %c0_i32_1 = arith.constant 0 : i32
    %c0_i32_2 = arith.constant 0 : i32
    return %c0_i32, %c0_i32_0, %c0_i32_1 : i32, i32, i32
  }
  func.func @transform_2(%arg0: i32) -> (i32, i32) {
    %c0_i32 = arith.constant 0 : i32
    %c0_i32_0 = arith.constant 0 : i32
    %c0_i32_1 = arith.constant 0 : i32
    return %c0_i32, %c0_i32_0 : i32, i32
  }
  func.func @transform_3(%arg0: i32) -> (i32, i32, i32) {
    %c0_i32 = arith.constant 0 : i32
    %c0_i32_0 = arith.constant 0 : i32
    %c0_i32_1 = arith.constant 0 : i32
    %c0_i32_2 = arith.constant 0 : i32
    return %c0_i32, %c0_i32_0, %c0_i32_1 : i32, i32, i32
  }
  func.func @transform_4(%arg0: i32) -> (i32, i32) {
    %c0_i32 = arith.constant 0 : i32
    %c0_i32_0 = arith.constant 0 : i32
    %c0_i32_1 = arith.constant 0 : i32
    return %c0_i32, %c0_i32_0 : i32, i32
  }
  func.func @transform_5(%arg0: i32) -> (i32, i32, i32) {
    %c0_i32 = arith.constant 0 : i32
    %c0_i32_0 = arith.constant 0 : i32
    %c0_i32_1 = arith.constant 0 : i32
    %c0_i32_2 = arith.constant 0 : i32
    return %c0_i32, %c0_i32_0, %c0_i32_1 : i32, i32, i32
  }
  func.func @transform_6(%arg0: i32) -> (i32, i32) {
    %c0_i32 = arith.constant 0 : i32
    %c0_i32_0 = arith.constant 0 : i32
    %c0_i32_1 = arith.constant 0 : i32
    return %c0_i32, %c0_i32_0 : i32, i32
  }
  func.func @transform_7(%arg0: i32) -> (i32, i32, i32) {
    %c0_i32 = arith.constant 0 : i32
    %c0_i32_0 = arith.constant 0 : i32
    %c0_i32_1 = arith.constant 0 : i32
    %c0_i32_2 = arith.constant 0 : i32
    return %c0_i32, %c0_i32_0, %c0_i32_1 : i32, i32, i32
  }
  func.func @transform_8(%arg0: i32) -> (i32, i32) {
    %c0_i32 = arith.constant 0 : i32
    %c0_i32_0 = arith.constant 0 : i32
    %c0_i32_1 = arith.constant 0 : i32
    return %c0_i32, %c0_i32_0 : i32, i32
  }
  func.func @transform_9(%arg0: i32) -> (i32, i32) {
    %c0_i32 = arith.constant 0 : i32
    %c0_i32_0 = arith.constant 0 : i32
    %c0_i32_1 = arith.constant 0 : i32
    return %c0_i32, %c0_i32_0 : i32, i32
  }
  func.func @transform_10(%arg0: i32) -> (i32, i32) {
    %c0_i32 = arith.constant 0 : i32
    %c0_i32_0 = arith.constant 0 : i32
    %c0_i32_1 = arith.constant 0 : i32
    return %c0_i32, %c0_i32_0 : i32, i32
  }
  func.func @transform_11(%arg0: i32) -> (i32, i32, i32) {
    %c0_i32 = arith.constant 0 : i32
    %c0_i32_0 = arith.constant 0 : i32
    %c0_i32_1 = arith.constant 0 : i32
    return %arg0, %c0_i32, %c0_i32_0 : i32, i32, i32
  }
}

</mosaic_0001>

<bundles_post_ra>
// kernel: forward.1
= control target key start
LH: loop header
LB: loop body
LE: loop exit
PB: predicated region body
PF: predicated region fallthrough
CT: control target
= control target key end

     0   :  { %s26154_s0 = inlined_call_operand.vmem [shape: bf16[2,28,28], index: 0, kind: input, shape index: {}]   ;;  %s26155_s1 = inlined_call_operand.hbm [shape: bf16[5,28,768], index: 1, kind: input, shape index: {}]   ;;  %s26156_s2 = inlined_call_operand.hbm [shape: f32[1,768], index: 2, kind: input, shape index: {}]   ;;  %s26157_s3 = inlined_call_operand.hbm [shape: bf16[5,768,640], index: 3, kind: input, shape index: {}]   ;;  %s26158_s4 = inlined_call_operand.hbm [shape: f32[1,640], index: 4, kind: input, shape index: {}]   ;;  %s26159_s5 = inlined_call_operand.hbm [shape: bf16[5,320,384], index: 5, kind: input, shape index: {}]   ;;  %s26160_s6 = inlined_call_operand.hbm [shape: f32[1,384], index: 6, kind: input, shape index: {}]   ;;  %s26161_s7 = inlined_call_operand.hbm [shape: bf16[3,192,1024], index: 7, kind: input, shape index: {}]   ;;  %s26162_s8 = inlined_call_operand.hbm [shape: f32[1,1024], index: 8, kind: input, shape index: {}]   ;;  %s26163_s9 = inlined_call_operand.vmem [shape: bf16[1024,10], index: 9, kind: input, shape index: {}]   ;;  %s26164_s10 = inlined_call_operand.hbm [shape: f32[1,10], index: 10, kind: input, shape index: {}]   ;;  %s26165_s11 = inlined_call_operand.hbm [shape: f32[2,1,10], index: 11, kind: output, shape index: {}]  }
   0x1   :  { %26202 = sst [smem:[#allocation39_spill]] %s26156_s2 }
   0x2   :  { %26203 = sst [smem:[#allocation40_spill]] %s26158_s4 }
   0x3   :  { %16 = vsyncpa [#allocation3], 0 }
   0x4   :  { %17 = vsyncpa [#allocation6], 0 }
   0x5   :  { %18 = vsyncpa [#allocation9], 0 }
   0x6   :  { %19 = vsyncpa [#allocation12], 0 }
   0x7   :  { %20 = vsyncpa [#allocation15], 0 }
   0x8   :  { %21 = vsyncpa [#allocation4], 0 }
   0x9   :  { %23 = vsyncpa [#allocation4 + $0x1], 0  ;;  %s24352_s17 = smov 0   ;;  %s24354_s18 = smov 0  }
   0xa   :  { %s24356_s19 = smov 0   ;;  %s24358_s20 = smov 0  }
   0xb LB: > { %26204 = sst [smem:[#allocation24_spill]] %s24256_s17  ;;  %s24373_s21 = sadd.s32 4294967295, %s24268_s20   ;;  %s24268_s20 = sphi %s24358_s20, %s26270_s20   ;;  %s24264_s19 = sphi %s24356_s19, %s26275_s19   ;;  %s24260_s18 = sphi %s24354_s18, %s26274_s18   ;;  %s24256_s17 = sphi %s24352_s17, %s26273_s17  }
   0xc   : > { %26205 = sst [smem:[#allocation25_spill]] %s24264_s19  ;;  %s18617_s22 = sadd.s32 4294967294, %s24268_s20  }
   0xd   : > { %s24377_s23 = sadd.s32 1, %s24268_s20   ;;  %s272_s24 = sadd.s32 1, %s24264_s19 }
   0xe   : > { %26206 = sst [smem:[#allocation26_spill]] %s24377_s23  ;;  %s269_s25 = ssub.s32 %s24268_s20, %s24377_s23 }
   0xf   : > { %p282_p0 = scmp.ne.s32.totalorder %s24264_s19, %s24260_s18  ;;  %p270_p1 = scmp.eq.s32.totalorder %s269_s25, 0 }
  0x10   : > { %p283_p2 = scmp.eq.s32.totalorder %s24373_s21, 1  ;;  %p288_p3 = scmp.ne.s32.totalorder %s24260_s18, %s24256_s17 }
  0x11   : > { %p289_p4 = scmp.eq.s32.totalorder %s18617_s22, 1  ;;  %p18618_p7 = scmp.ge.s32.totalorder %s24268_s20, 1 }
  0x12   : > { %s24388_s26 = scalar_select %p270_p1, %s24264_s19, %s272_s24  }
  0x13   : > { %p24390_p5 = por %p283_p2, %p282_p0  ;;  %p24394_p6 = por %p289_p4, %p288_p3 }
  0x14   : > { %26207 = sst [smem:[#allocation27_spill]] %s24388_s26  ;;  %p296_p8 = scmp.lt.s32.totalorder %s24268_s20, 3 }
  0x15   : > { %s26208_s27 = scalar_select %p24390_p5, 1, 0 }
  0x16   : > { %s26209_s28 = scalar_select %p24394_p6, 1, 0 }
  0x17   : > { %p26169_p9 = scmp.eq.s32.totalorder %s24373_s21, 0  ;;  %p24401_p10 = pnand %p18618_p7, %p296_p8 }
  0x18   : > { %26210 = sst [smem:[#allocation28_spill]] %s26209_s28  ;;  %s24270_s30 = smov [#allocation5]  }
  0x19   : > { %s26211_s29 = scalar_select %p24401_p10, 1, 0 }
  0x1a   : > { %s322_s12 = sshll.u32 %s24270_s30, 4  ;;  %p21564_p11 = pneg %p24401_p10  ;;  %s323_s12 = int_to_ptr.vmem [resolvable:$true] %s322_s12 }
  0x1b   : > { %s24271_s13 = smov [#allocation8]   ;;  %s24272_s16 = smov [#allocation11]  }
  0x1c   : > { %s346_s14 = sshll.u32 %s24271_s13, 4  ;;  %p24409_p12 = pnand %p26169_p9, %p21564_p11  ;;  %s24413_s14 = int_to_ptr.vmem [resolvable:$true] %s346_s14 }
  0x1d   : > { %s370_s22 = sshll.u32 %s24272_s16, 4  ;;  %s26213_s2 = sld [smem:[#allocation39_spill]]  ;;  %s24415_s22 = int_to_ptr.vmem [resolvable:$true] %s370_s22 }
  0x1e   : > { %p24425_p0 = pneg %p24409_p12 }
  0x23   : > { %s23934_s30 = scalar_lea.hbm %s26213_s2, 96 }
  0x24   : > { %p23935_p13 = scmp.ne.s32.totalorder %s26213_s2, %s23934_s30  ;;  %p23941_p3 = scmp.lt.u32.totalorder %s23934_s30, %s26213_s2 }
  0x26   : > { %p23937_p1 = pnand %p24425_p0, %p23935_p13 }
  0x28   : > { %p23938_p2 = pneg %p23937_p1 }
  0x2a   : > { %p23943_p4 = pnand %p23941_p3, %p23938_p2 }
  0x2c   : > { %23946 = shalt.err (!%p23943_p4)
}
  0x2d   : > { %s23947_s24 = scalar_lea.vmem %s323_s12, 96  ;;  %p23955_p9 = scmp.lt.s32.totalorder %s323_s12, %s323_s12 }
  0x2e   : > { %p23948_p7 = scmp.ne.s32.totalorder %s323_s12, %s23947_s24  ;;  %p23956_p6 = scmp.lt.s32.totalorder %s23947_s24, %s23947_s24 }
  0x30   : > { %p23950_p8 = pnand %p23948_p7, %p24425_p0  ;;  %p23957_p5 = por %p23956_p6, %p23955_p9 }
  0x32   : > { %p23951_p11 = pneg %p23950_p8 }
  0x34   : > { %p23958_p10 = pnand %p23957_p5, %p23951_p11 }
  0x36   : > { %23961 = shalt.err (!%p23958_p10)
}
  0x37   : > { %21570 = dma.hbm_to_vmem [thread:$0]  (!%p24409_p12), %s26213_s2, 96, %s323_s12, [#allocation6]  }
  0x38   : > { %s26215_s4 = sld [smem:[#allocation40_spill]] }
  0x3e   : > { %s23962_s30 = scalar_lea.hbm %s26215_s4, 80 }
  0x3f   : > { %p23963_p13 = scmp.ne.s32.totalorder %s26215_s4, %s23962_s30  ;;  %p23969_p5 = scmp.lt.u32.totalorder %s23962_s30, %s26215_s4 }
  0x41   : > { %p23965_p1 = pnand %p23963_p13, %p24425_p0 }
  0x43   : > { %p23966_p6 = pneg %p23965_p1 }
  0x45   : > { %p23971_p9 = pnand %p23969_p5, %p23966_p6 }
  0x47   : > { %23974 = shalt.err (!%p23971_p9)
}
  0x48   : > { %s23975_s12 = scalar_lea.vmem %s24413_s14, 80  ;;  %s23982_s28 = scalar_lea.vmem %s24413_s14, 96 }
  0x49   : > { %p23976_p10 = scmp.ne.s32.totalorder %s24413_s14, %s23975_s12  ;;  %p23983_p4 = scmp.lt.s32.totalorder %s24413_s14, %s24413_s14 }
  0x4a   : > { %p23984_p7 = scmp.lt.s32.totalorder %s23982_s28, %s23975_s12 }
  0x4b   : > { %p23978_p2 = pnand %p23976_p10, %p24425_p0 }
  0x4c   : > { %p23985_p8 = por %p23984_p7, %p23983_p4 }
  0x4d   : > { %p23979_p3 = pneg %p23978_p2 }
  0x4f   : > { %p23986_p11 = pnand %p23985_p8, %p23979_p3 }
  0x51   : > { %23989 = shalt.err (!%p23986_p11)
}
  0x52   : > { %21576 = dma.hbm_to_vmem [thread:$0]  (!%p24409_p12), %s26215_s4, 80, %s24413_s14, [#allocation9]  }
  0x53   : > { %s23990_s25 = scalar_lea.hbm %s26160_s6, 48 }
  0x54   : > { %p23991_p13 = scmp.ne.s32.totalorder %s26160_s6, %s23990_s25  ;;  %p23997_p5 = scmp.lt.u32.totalorder %s23990_s25, %s26160_s6 }
  0x56   : > { %p23993_p1 = pnand %p23991_p13, %p24425_p0 }
  0x58   : > { %p23994_p6 = pneg %p23993_p1 }
  0x5a   : > { %p23999_p9 = pnand %p23997_p5, %p23994_p6 }
  0x5c   : > { %24002 = shalt.err (!%p23999_p9)
}
  0x5d   : > { %s24003_s14 = scalar_lea.vmem %s24415_s22, 48  ;;  %s24010_s28 = scalar_lea.vmem %s24415_s22, 64 }
  0x5e   : > { %p24004_p10 = scmp.ne.s32.totalorder %s24415_s22, %s24003_s14  ;;  %p24011_p4 = scmp.lt.s32.totalorder %s24415_s22, %s24415_s22 }
  0x5f   : > { %p24012_p7 = scmp.lt.s32.totalorder %s24010_s28, %s24003_s14 }
  0x60   : > { %p24006_p2 = pnand %p24004_p10, %p24425_p0 }
  0x61   : > { %p24013_p8 = por %p24012_p7, %p24011_p4 }
  0x62   : > { %p24007_p3 = pneg %p24006_p2 }
  0x64   : > { %p24014_p11 = pnand %p24013_p8, %p24007_p3 }
  0x66   : > { %24017 = shalt.err (!%p24014_p11)
}
  0x67   : > { %21582 = dma.hbm_to_vmem [thread:$0]  (!%p24409_p12), %s26160_s6, 48, %s24415_s22, [#allocation12]  }
  0x68   : > { %s24273_s26 = smov [#allocation14]   ;;  %s24274_s25 = smov [#allocation2]  }
  0x69   : > { %s394_s23 = sshll.u32 %s24273_s26, 4  ;;  %s308_s30 = sshll.u32 %s24274_s25, 4  ;;  %s395_s23 = int_to_ptr.vmem [resolvable:$true] %s394_s23  ;;  %s309_s30 = int_to_ptr.vmem [resolvable:$true] %s308_s30 }
  0x6a   : > { %s24018_s12 = scalar_lea.hbm %s26162_s8, 128 }
  0x6b   : > { %p24019_p13 = scmp.ne.s32.totalorder %s26162_s8, %s24018_s12  ;;  %p24025_p5 = scmp.lt.u32.totalorder %s24018_s12, %s26162_s8 }
  0x6d   : > { %p24021_p1 = pnand %p24019_p13, %p24425_p0 }
  0x6f   : > { %p24022_p6 = pneg %p24021_p1 }
  0x71   : > { %p24027_p9 = pnand %p24025_p5, %p24022_p6 }
  0x73   : > { %24030 = shalt.err (!%p24027_p9)
}
  0x74   : > { %s24031_s22 = scalar_lea.vmem %s395_s23, 128  ;;  %p24039_p4 = scmp.lt.s32.totalorder %s395_s23, %s395_s23 }
  0x75   : > { %p24032_p10 = scmp.ne.s32.totalorder %s395_s23, %s24031_s22  ;;  %p24040_p7 = scmp.lt.s32.totalorder %s24031_s22, %s24031_s22 }
  0x77   : > { %p24034_p2 = pnand %p24032_p10, %p24425_p0  ;;  %p24041_p8 = por %p24040_p7, %p24039_p4 }
  0x79   : > { %p24035_p3 = pneg %p24034_p2 }
  0x7b   : > { %p24042_p11 = pnand %p24041_p8, %p24035_p3 }
  0x7d   : > { %24045 = shalt.err (!%p24042_p11)
}
  0x7e   : > { %21588 = dma.hbm_to_vmem [thread:$0]  (!%p24409_p12), %s26162_s8, 128, %s395_s23, [#allocation15]  }
  0x7f   : > { %s24046_s16 = scalar_lea.hbm %s26155_s1, 7680 }
  0x80   : > { %p24047_p13 = scmp.ne.s32.totalorder %s26155_s1, %s24046_s16  ;;  %p24053_p5 = scmp.lt.u32.totalorder %s24046_s16, %s26155_s1 }
  0x82   : > { %p24049_p1 = pnand %p24047_p13, %p24425_p0 }
  0x84   : > { %p24050_p6 = pneg %p24049_p1 }
  0x86   : > { %p24055_p9 = pnand %p24053_p5, %p24050_p6 }
  0x88   : > { %24058 = shalt.err (!%p24055_p9)
}
  0x89   : > { %s24059_s17 = scalar_lea.vmem %s309_s30, 7680  ;;  %p24067_p4 = scmp.lt.s32.totalorder %s309_s30, %s309_s30 }
  0x8a   : > { %p24060_p10 = scmp.ne.s32.totalorder %s309_s30, %s24059_s17  ;;  %p24068_p7 = scmp.lt.s32.totalorder %s24059_s17, %s24059_s17 }
  0x8c   : > { %p24062_p2 = pnand %p24060_p10, %p24425_p0  ;;  %p24069_p8 = por %p24068_p7, %p24067_p4 }
  0x8e   : > { %p24063_p3 = pneg %p24062_p2 }
  0x90   : > { %p24070_p11 = pnand %p24069_p8, %p24063_p3 }
  0x92   : > { %24073 = shalt.err (!%p24070_p11)
}
  0x93   : > { %s24275_s23 = smov 384   ;;  %s24276_s22 = smov 24  }
  0x94   : > { %21567 = dma.hbm_to_vmem [thread:$0]  (!%p24409_p12), %s26155_s1, 7680, %s309_s30, [#allocation3], %s24275_s23, %s24275_s23, %s24276_s22  }
  0x95   : > { %s24277_s2 = smov [#allocation7]   ;;  %s24074_s12 = scalar_lea.hbm %s26157_s3, 153600 }
  0x96   : > { %s332_s25 = sshll.u32 %s24277_s2, 4  ;;  %p24075_p13 = scmp.ne.s32.totalorder %s26157_s3, %s24074_s12  ;;  %s333_s25 = int_to_ptr.vmem [resolvable:$true] %s332_s25 }
  0x97   : > { %p24081_p5 = scmp.lt.u32.totalorder %s24074_s12, %s26157_s3 }
  0x98   : > { %p24077_p1 = pnand %p24075_p13, %p24425_p0 }
  0x9a   : > { %p24078_p6 = pneg %p24077_p1 }
  0x9c   : > { %p24083_p9 = pnand %p24081_p5, %p24078_p6 }
  0x9e   : > { %24086 = shalt.err (!%p24083_p9)
}
  0x9f   : > { %s24087_s30 = scalar_lea.vmem %s333_s25, 153600  ;;  %p24095_p4 = scmp.lt.s32.totalorder %s333_s25, %s333_s25 }
  0xa0   : > { %p24088_p10 = scmp.ne.s32.totalorder %s333_s25, %s24087_s30  ;;  %p24096_p7 = scmp.lt.s32.totalorder %s24087_s30, %s24087_s30 }
  0xa2   : > { %p24090_p2 = pnand %p24088_p10, %p24425_p0  ;;  %p24097_p8 = por %p24096_p7, %p24095_p4 }
  0xa4   : > { %p24091_p3 = pneg %p24090_p2 }
  0xa6   : > { %p24098_p11 = pnand %p24097_p8, %p24091_p3 }
  0xa8   : > { %24101 = shalt.err (!%p24098_p11)
}
  0xa9   : > { %s24278_s23 = smov 320   ;;  %s24279_s22 = smov 20  }
  0xaa   : > { %21573 = dma.hbm_to_vmem [thread:$0]  (!%p24409_p12), %s26157_s3, 153600, %s333_s25, [#allocation6], %s24278_s23, %s24278_s23, %s24279_s22  }
  0xab   : > { %s24280_s26 = smov [#allocation10]   ;;  %s24102_s12 = scalar_lea.hbm %s26159_s5, 38400 }
  0xac   : > { %s356_s2 = sshll.u32 %s24280_s26, 4  ;;  %p24103_p13 = scmp.ne.s32.totalorder %s26159_s5, %s24102_s12  ;;  %s357_s2 = int_to_ptr.vmem [resolvable:$true] %s356_s2 }
  0xad   : > { %p24109_p5 = scmp.lt.u32.totalorder %s24102_s12, %s26159_s5 }
  0xae   : > { %p24105_p1 = pnand %p24103_p13, %p24425_p0 }
  0xb0   : > { %p24106_p6 = pneg %p24105_p1 }
  0xb2   : > { %p24111_p9 = pnand %p24109_p5, %p24106_p6 }
  0xb4   : > { %24114 = shalt.err (!%p24111_p9)
}
  0xb5   : > { %s24115_s25 = scalar_lea.vmem %s357_s2, 38400  ;;  %p24123_p4 = scmp.lt.s32.totalorder %s357_s2, %s357_s2 }
  0xb6   : > { %p24116_p10 = scmp.ne.s32.totalorder %s357_s2, %s24115_s25  ;;  %p24124_p7 = scmp.lt.s32.totalorder %s24115_s25, %s24115_s25 }
  0xb8   : > { %p24118_p2 = pnand %p24116_p10, %p24425_p0  ;;  %p24125_p8 = por %p24124_p7, %p24123_p4 }
  0xba   : > { %p24119_p3 = pneg %p24118_p2 }
  0xbc   : > { %p24126_p11 = pnand %p24125_p8, %p24119_p3 }
  0xbe   : > { %24129 = shalt.err (!%p24126_p11)
}
  0xbf   : > { %s24281_s23 = smov 192   ;;  %s24282_s22 = smov 12  }
  0xc0   : > { %21579 = dma.hbm_to_vmem [thread:$0]  (!%p24409_p12), %s26159_s5, 38400, %s357_s2, [#allocation9], %s24281_s23, %s24281_s23, %s24282_s22  }
  0xc1   : > { %s24283_s26 = smov [#allocation13]   ;;  %s24130_s14 = scalar_lea.hbm %s26161_s7, 36864 }
  0xc2   : > { %s380_s16 = sshll.u32 %s24283_s26, 4  ;;  %p24131_p13 = scmp.ne.s32.totalorder %s26161_s7, %s24130_s14  ;;  %s381_s16 = int_to_ptr.vmem [resolvable:$true] %s380_s16 }
  0xc3   : > { %p24137_p5 = scmp.lt.u32.totalorder %s24130_s14, %s26161_s7 }
  0xc4   : > { %p24133_p1 = pnand %p24131_p13, %p24425_p0 }
  0xc6   : > { %p24134_p6 = pneg %p24133_p1 }
  0xc8   : > { %p24139_p9 = pnand %p24137_p5, %p24134_p6 }
  0xca   : > { %24142 = shalt.err (!%p24139_p9)
}
  0xcb   : > { %s24143_s2 = scalar_lea.vmem %s381_s16, 36864  ;;  %p24151_p4 = scmp.lt.s32.totalorder %s381_s16, %s381_s16 }
  0xcc   : > { %p24144_p10 = scmp.ne.s32.totalorder %s381_s16, %s24143_s2  ;;  %p24152_p7 = scmp.lt.s32.totalorder %s24143_s2, %s24143_s2 }
  0xce   : > { %p24146_p2 = pnand %p24144_p10, %p24425_p0  ;;  %p24153_p8 = por %p24152_p7, %p24151_p4 }
  0xd0   : > { %p24147_p3 = pneg %p24146_p2 }
  0xd2   : > { %p24154_p11 = pnand %p24153_p8, %p24147_p3 }
  0xd4   : > { %24157 = shalt.err (!%p24154_p11)
}
  0xd5   : > { %s24284_s23 = smov 512   ;;  %s24285_s22 = smov 32  }
  0xd6   : > { %21585 = dma.hbm_to_vmem [thread:$0]  (!%p24409_p12), %s26161_s7, 36864, %s381_s16, [#allocation12], %s24284_s23, %s24284_s23, %s24285_s22  }
  0xd7   : > { %s24286_s26 = smov [#allocation16]   ;;  %s24158_s28 = scalar_lea.hbm %s26164_s10, 16 }
  0xd8   : > { %s408_s24 = sshll.u32 %s24286_s26, 4  ;;  %p24159_p13 = scmp.ne.s32.totalorder %s26164_s10, %s24158_s28  ;;  %s409_s24 = int_to_ptr.vmem [resolvable:$true] %s408_s24 }
  0xd9   : > { %p24165_p5 = scmp.lt.u32.totalorder %s24158_s28, %s26164_s10 }
  0xda   : > { %p24161_p1 = pnand %p24159_p13, %p24425_p0 }
  0xdc   : > { %p24162_p6 = pneg %p24161_p1 }
  0xde   : > { %p24167_p9 = pnand %p24165_p5, %p24162_p6 }
  0xe0   : > { %24170 = shalt.err (!%p24167_p9)
}
  0xe1   : > { %s24171_s16 = scalar_lea.vmem %s409_s24, 16  ;;  %s24178_s23 = scalar_lea.vmem %s409_s24, 32 }
  0xe2   : > { %p24172_p10 = scmp.ne.s32.totalorder %s409_s24, %s24171_s16  ;;  %p24179_p4 = scmp.lt.s32.totalorder %s409_s24, %s409_s24 }
  0xe3   : > { %p24180_p7 = scmp.lt.s32.totalorder %s24178_s23, %s24171_s16 }
  0xe4   : > { %p24174_p2 = pnand %p24172_p10, %p24425_p0 }
  0xe5   : > { %p24181_p8 = por %p24180_p7, %p24179_p4 }
  0xe6   : > { %p24175_p3 = pneg %p24174_p2 }
  0xe8   : > { %p24182_p11 = pnand %p24181_p8, %p24175_p3 }
  0xea   : > { %24185 = shalt.err (!%p24182_p11)
}
  0xeb   : > { %21591 = dma.hbm_to_vmem [thread:$0]  (!%p24409_p12), %s26164_s10, 16, %s409_s24, [#allocation15]  }
  0xec   : > { %p26216_p13 = scmp.ne.s32.totalorder %s26211_s29, 0 }
  0xee   : > { %429 = sbr.rel (%p26216_p13) target bundleno = 4307 (0x10d3), region = 64 }
  0xf5   : > { %p26217_p1 = scmp.eq.s32.totalorder %s24373_s21, 0 }
  0xf7   : > { %24231 = dma.done.wait (%p26217_p1), [#allocation3], 7680   ;;  %p26218_p0 = pmov %p26217_p1 }
  0xf9   : > { %24233 = vsyncadd (%p26218_p0), [#allocation3], 4294959616  ;;  %p26219_p6 = pmov %p26218_p0 }
  0xfa   : > { %p26220_p5 = pmov %p26218_p0 }
  0xfb   : > { %24235 = dma.done.wait (%p26219_p6), [#allocation6], 153696  }
  0xfc   : > { %24237 = vsyncadd (%p26220_p5), [#allocation6], 4294813600  ;;  %p26221_p9 = pmov %p26218_p0 }
  0xfd   : > { %p26222_p12 = pmov %p26218_p0 }
  0xfe   : > { %24239 = dma.done.wait (%p26221_p9), [#allocation9], 38480  }
  0xff   : > { %24241 = vsyncadd (%p26222_p12), [#allocation9], 4294928816  ;;  %p26223_p10 = pmov %p26218_p0 }
 0x100   : > { %p26224_p2 = pmov %p26218_p0 }
 0x101   : > { %24243 = dma.done.wait (%p26223_p10), [#allocation12], 36912  }
 0x102   : > { %24245 = vsyncadd (%p26224_p2), [#allocation12], 4294930384  ;;  %p26225_p3 = pmov %p26218_p0 }
 0x103   : > { %p26226_p4 = pmov %p26218_p0 }
 0x104   : > { %24247 = dma.done.wait (%p26225_p3), [#allocation15], 144  }
 0x105   : > { %24249 = vsyncadd (%p26226_p4), [#allocation15], 4294967152  ;;  %p500_p7 = scmp.lt.s32.totalorder %s24373_s21, 1  ;;  %v26176_v0 = vmov 0   ;;  %v21693_v1 = vld [vmem:[#allocation2 + $0x64] ss:$24 sps:$4 sm:$0xff]  }
 0x106   : > { %673 = vmatprep.mubr.bf16.mxu0 %v26176_v0  ;;  %724 = vmatprep.mubr.bf16.mxu1 %v26176_v0  ;;  %v21695_v2 = vld [vmem:[#allocation2 + $0x60] ss:$24 sps:$4 sm:$0xff]   ;;  %vm622_vm0 = vcmask 1045504   ;;  %v21696_v3 = vld [vmem:[#allocation2 + $0x94] ss:$24 sps:$4 sm:$0x3f]  }
 0x107   : > { %s501_s29 = scalar_select %p500_p7, %s24373_s21, 1  ;;  %641 = vmatprep.subr.bf16.mxu0 %v21693_v1  ;;  %v21698_v4 = vld [vmem:[#allocation2 + $0x90] ss:$24 sps:$4 sm:$0x3f]   ;;  %v21703_v10 = vld [vmem:[#allocation2 + $0x74] ss:$24 sps:$4 sm:$0xff]  }
 0x108   : > { %642 = vmatpush1.bf16.msra.mxu0 %v21695_v2  ;;  %v624_v6 = vsel %vm622_vm0, %v21698_v4, 0  ;;  %vm545_vm1 = vsmask.f32 7424  ;;  %vm615_vm2 = vcmask 228352   ;;  %v21701_v17 = vld [vmem:[#allocation2 + $0x70] ss:$24 sps:$4 sm:$0xff]  }
 0x109   : > { %s20640_s15 = sshll.u32 %s501_s29, 4  ;;  %18655 = vmatprep.subr.msk.bf16.mxu0 %vm622_vm0, %v21696_v3  ;;  %v21704_v18 = vld [vmem:[#allocation2 + $0xa4] ss:$24 sps:$4 sm:$0x3f]   ;;  %v21722_v25 = vld [vmem:[#allocation2 + $0x68] ss:$24 sps:$4 sm:$0xff]  }
 0x10a   : > { %s504_s26 = scalar_lea.vmem %s26154_s0, %s20640_s15  ;;  %v21706_v19 = vld [vmem:[#allocation2 + $0xa0] ss:$24 sps:$4 sm:$0x3f]   ;;  %v21719_v22 = vld [vmem:[#allocation2 + $0x6c] ss:$24 sps:$4 sm:$0xff]   ;;  %vm1038_vm3 = vcmask 1046528  }
 0x10b   : > { %v24626_v5 = vld [vmem:[%s504_s26 + $0x8] sm:$0xf]  ;;  %v509_v7 = vld [vmem:[%s504_s26 + $0xc] sm:$0x3]  ;;  %v24630_v8 = vld [vmem:[%s504_s26] sm:$0xff]   ;;  %v636_v23 = vsel %vm622_vm0, %v21706_v19, 0  ;;  %692 = vmatprep.subr.bf16.mxu1 %v21719_v22 }
 0x10c   : > { %v24633_v9 = vcombine.low %v24626_v5, %v509_v7  ;;  %v547_v11 = vshrl.u32 %v24630_v8, 16  ;;  %v549_v12 = vshll.u32 %v24630_v8, 16  ;;  %644 = vmatpush1.bf16.msra.mxu0 %v624_v6  ;;  %v21709_v24 = vld [vmem:[#allocation2 + $0x4] ss:$24 sps:$4 sm:$0xff]   ;;  %693 = vmatpush1.bf16.msra.mxu1 %v21722_v25  ;;  %v21731_v31 = vld [vmem:[#allocation2 + $0x8] ss:$24 sps:$4 sm:$0xff]   ;;  %v18664_v50 = vcombine.low %v24626_v5, %v24626_v5 }
 0x10d   : > { %743 = vmatprep.subr.bf16.mxu0 %v21703_v10  ;;  %v21723_v26 = vld [vmem:[#allocation2 + $0x9c] ss:$24 sps:$4 sm:$0x3f]   ;;  %v21725_v28 = vld [vmem:[#allocation2 + $0x98] ss:$24 sps:$4 sm:$0x3f]  }
 0x10e   : > { %v554_v13 = vshll.u32 %v24633_v9, 16  ;;  %v551_v14 = vrot.slane %v549_v12, 1  ;;  %v558_v21 = vshrl.u32 %v24633_v9, 16  ;;  %18658 = vmatprep.subr.msk.bf16.mxu1 %vm622_vm0, %v21723_v26  ;;  %v630_v29 = vsel %vm622_vm0, %v21725_v28, 0  ;;  %v21733_v30 = vld [vmem:[#allocation2 + $0xc] ss:$24 sps:$4 sm:$0xff]  }
 0x10f   : > { %v21735_v32 = vld [vmem:[#allocation2 + $0x3c] ss:$24 sps:$4 sm:$0x3f]   ;;  %v21737_v33 = vld [vmem:[#allocation2 + $0x38] ss:$24 sps:$4 sm:$0x3f]  }
 0x110   : > { %v556_v15 = vrot.slane %v554_v13, 1  ;;  %v552_v16 = vor.u32 %v551_v14, %v547_v11  ;;  %695 = vmatpush1.bf16.msra.mxu1 %v630_v29  ;;  %v21707_v34 = vld [vmem:[#allocation2] ss:$24 sps:$4 sm:$0xff]   ;;  %v21710_v35 = vld [vmem:[#allocation2 + $0x34] ss:$24 sps:$4 sm:$0x3f]  }
 0x111   : > { %923 = vmatprep.subr.bf16.mxu1 %v21733_v30  ;;  %v21712_v36 = vld [vmem:[#allocation2 + $0x30] ss:$24 sps:$4 sm:$0x3f]   ;;  %v861_v37 = vsel %vm622_vm0, %v21737_v33, 0  ;;  %v21745_v38 = vld [vmem:[#allocation2 + $0xcc] ss:$24 sps:$4 sm:$0xff]  }
 0x112   : > { %v557_v20 = vsel %vm545_vm1, %v552_v16, %v556_v15  ;;  %v560_v27 = vor.u32 %v558_v21, %v556_v15  ;;  %v855_v39 = vsel %vm622_vm0, %v21712_v36, 0  ;;  %v21716_v40 = vld [vmem:[#allocation2 + $0x14] ss:$24 sps:$4 sm:$0xff]   ;;  %v21743_v41 = vld [vmem:[#allocation2 + $0xc8] ss:$24 sps:$4 sm:$0xff]   ;;  %v1039_v52 = vrot.slane %v24630_v8, 1 }
 0x113   : > { %18656 = vmatmul.mubr.msk.bf16.vlgmr.msra.gmra.mrb[0].mxu0 %vm615_vm2, %v557_v20  ;;  %18659 = vmatmul.mubr.msk.bf16.vlgmr.msra.gmra.mrb[0].mxu1 %vm615_vm2, %v557_v20  ;;  %v21747_v42 = vld [vmem:[#allocation2 + $0xfc] ss:$24 sps:$4 sm:$0x3f]   ;;  %v21749_v43 = vld [vmem:[#allocation2 + $0xf8] ss:$24 sps:$4 sm:$0x3f]  }
 0x114   : > { %683 = vmatprep.mubr.bf16.mxu0 %v26176_v0  ;;  %744 = vmatpush1.bf16.msra.mxu0 %v21701_v17  ;;  %v21714_v44 = vld [vmem:[#allocation2 + $0x10] ss:$24 sps:$4 sm:$0xff]   ;;  %v21717_v45 = vld [vmem:[#allocation2 + $0x44] ss:$24 sps:$4 sm:$0x3f]   ;;  %v1109_v47 = vsel %vm622_vm0, %v21749_v43, 0 }
 0x115   : > { %18661 = vmatprep.subr.msk.bf16.mxu0 %vm622_vm0, %v21704_v18  ;;  %734 = vmatprep.mubr.bf16.mxu1 %v26176_v0  ;;  %v21721_v46 = vld [vmem:[#allocation2 + $0x40] ss:$24 sps:$4 sm:$0x3f]   ;;  %v21758_v48 = vld [vmem:[#allocation2 + $0x12c] ss:$24 sps:$4 sm:$0xff]   ;;  %v24684_v53 = vrot.slane %v24633_v9, 1 }
 0x116   : > { %924 = vmatpush1.bf16.msra.mxu1 %v21731_v31  ;;  %v21728_v49 = vld [vmem:[#allocation2 + $0xc4] ss:$24 sps:$4 sm:$0xff]   ;;  %v867_v51 = vsel %vm622_vm0, %v21721_v46, 0  ;;  %v21756_v54 = vld [vmem:[#allocation2 + $0x128] ss:$24 sps:$4 sm:$0xff]   ;;  %v1305_v1 = vrot.slane %v547_v11, 1 }
 0x117   : > { %18680 = vmatprep.subr.msk.bf16.mxu1 %vm622_vm0, %v21735_v32  ;;  %v21759_v55 = vld [vmem:[#allocation2 + $0x15c] ss:$24 sps:$4 sm:$0x3f]   ;;  %v21761_v56 = vld [vmem:[#allocation2 + $0x158] ss:$24 sps:$4 sm:$0x3f]   ;;  %v24690_v57 = vsel %vm1038_vm3, %v1039_v52, %v24684_v53 }
 0x118   : > { %746 = vmatpush1.bf16.msra.mxu0 %v636_v23  ;;  %v21726_v58 = vld [vmem:[#allocation2 + $0xc0] ss:$24 sps:$4 sm:$0xff]   ;;  %v21729_v59 = vld [vmem:[#allocation2 + $0xf4] ss:$24 sps:$4 sm:$0x3f]   ;;  %v1379_v62 = vsel %vm622_vm0, %v21761_v56, 0 }
 0x119   : > { %872 = vmatprep.subr.bf16.mxu0 %v21709_v24  ;;  %v21734_v60 = vld [vmem:[#allocation2 + $0xf0] ss:$24 sps:$4 sm:$0x3f]   ;;  %v21770_v61 = vld [vmem:[#allocation2 + $0x18c] ss:$24 sps:$4 sm:$0xff]   ;;  %v1306_v2 = vrot.slane %v549_v12, 2 }
 0x11a   : > { %926 = vmatpush1.bf16.msra.mxu1 %v861_v37  ;;  %v21740_v63 = vld [vmem:[#allocation2 + $0xd4] ss:$24 sps:$4 sm:$0xff]   ;;  %v1309_v3 = vrot.slane %v554_v13, 2  ;;  %v1308_v4 = vrot.slane %v558_v21, 1  ;;  %v1103_v5 = vsel %vm622_vm0, %v21734_v60, 0  ;;  %v1576_v21 = vrot.slane %v24633_v9, 2 }
 0x11b   : > { %18657 = vmatmul.mubr.msk.bf16.gmra.mrb[4].mxu0 %vm615_vm2, %v560_v27  ;;  %1171 = vmatprep.subr.bf16.mxu1 %v21745_v38  ;;  %v1307_v7 = vor.u32 %v1306_v2, %v1305_v1  ;;  %v21768_v10 = vld [vmem:[#allocation2 + $0x188] ss:$24 sps:$4 sm:$0xff]   ;;  %vm1304_vm4 = vsmask.f32 6400  ;;  %v21752_v18 = vld [vmem:[#allocation2 + $0x124] ss:$24 sps:$4 sm:$0xff]  }
 0x11c   : > { %775 = vmatprep.mubr.bf16.mxu0 %v26176_v0  ;;  %18660 = vmatmul.mubr.msk.bf16.gmra.mrb[4].mxu1 %vm615_vm2, %v560_v27  ;;  %v24713_v6 = vor.u32 %v1309_v3, %v1308_v4  ;;  %v21771_v11 = vld [vmem:[#allocation2 + $0x1bc] ss:$24 sps:$4 sm:$0x3f]   ;;  %v21773_v12 = vld [vmem:[#allocation2 + $0x1b8] ss:$24 sps:$4 sm:$0x3f]  }
 0x11d   : > { %955 = vmatprep.mubr.bf16.mxu1 %v26176_v0  ;;  %v21738_v14 = vld [vmem:[#allocation2 + $0xd0] ss:$24 sps:$4 sm:$0xff]   ;;  %v21741_v15 = vld [vmem:[#allocation2 + $0x104] ss:$24 sps:$4 sm:$0x3f]   ;;  %v1645_v17 = vsel %vm622_vm0, %v21773_v12, 0 }
 0x11e   : > { %v1311_v13 = vsel %vm1304_vm4, %v1307_v7, %v24713_v6  ;;  %v21746_v16 = vld [vmem:[#allocation2 + $0x100] ss:$24 sps:$4 sm:$0x3f]   ;;  %v21753_v24 = vld [vmem:[#allocation2 + $0x154] ss:$24 sps:$4 sm:$0x3f]  }
 0x11f   : > { %v1115_v19 = vsel %vm622_vm0, %v21746_v16, 0  ;;  %v21750_v23 = vld [vmem:[#allocation2 + $0x120] ss:$24 sps:$4 sm:$0xff]   ;;  %v21755_v25 = vld [vmem:[#allocation2 + $0x150] ss:$24 sps:$4 sm:$0x3f]  }
 0x120   : > { %v1373_v9 = vsel %vm622_vm0, %v21755_v25, 0  ;;  %v21762_v26 = vld [vmem:[#allocation2 + $0x130] ss:$24 sps:$4 sm:$0xff]   ;;  %v21767_v28 = vld [vmem:[#allocation2 + $0x160] ss:$24 sps:$4 sm:$0x3f]  }
 0x121   : > { %v21776_v29 = vld [vmem:[#allocation2 + $0x184] ss:$24 sps:$4 sm:$0xff]   ;;  %v1385_v30 = vsel %vm622_vm0, %v21767_v28, 0  ;;  %v21774_v31 = vld [vmem:[#allocation2 + $0x180] ss:$24 sps:$4 sm:$0xff]   ;;  %s24288_s24 = smov 64  }
 0x122   : > { %v21777_v32 = vld [vmem:[#allocation2 + $0x1b4] ss:$24 sps:$4 sm:$0x3f]   ;;  %v21779_v33 = vld [vmem:[#allocation2 + $0x1b0] ss:$24 sps:$4 sm:$0x3f]  }
 0x123   : > { %18662 = vmatmul.mubr.msk.bf16.vlgmr.msra.gmra.mrb[8].mxu0 %vm615_vm2, %v557_v20  ;;  %v1575_v20 = vrot.slane %v24630_v8, 2  ;;  %v21780_v36 = vld [vmem:[#allocation2 + $0x190] ss:$24 sps:$4 sm:$0xff]   ;;  %v21783_v37 = vld [vmem:[#allocation2 + $0x1c4] ss:$24 sps:$4 sm:$0x3f]  }
 0x124   : > { %785 = vmatprep.mubr.bf16.mxu0 %v26176_v0  ;;  %873 = vmatpush1.bf16.msra.mxu0 %v21707_v34  ;;  %v21782_v34 = vld [vmem:[#allocation2 + $0x194] ss:$24 sps:$4 sm:$0xff]   ;;  %v21785_v38 = vld [vmem:[#allocation2 + $0x1c0] ss:$24 sps:$4 sm:$0x3f]   ;;  %vm24290_vm5 = vmmov 0  }
 0x125   : > { %18677 = vmatprep.subr.msk.bf16.mxu0 %vm622_vm0, %v21710_v35  ;;  %18681 = vmatmul.mubr.msk.bf16.vlgmr.msra.gmra.mrb[0].mxu1 %vm615_vm2, %v24630_v8  ;;  %v1577_v22 = vsel %vm622_vm0, %v1575_v20, %v1576_v21  ;;  %v1639_v35 = vsel %vm622_vm0, %v21779_v33, 0  ;;  %v21791_v43 = vld [vmem:[#allocation7 + $0x78c] ss:$20 sps:$4 sm:$0xff]   ;;  %v21792_v46 = vld [vmem:[#allocation7 + $0x7a8] ss:$20 sps:$4 sm:$0xff]   ;;  %vm12183_vm6 = vcmask 523264  }
 0x126   : > { %965 = vmatprep.mubr.bf16.mxu1 %v26176_v0  ;;  %1172 = vmatpush1.bf16.msra.mxu1 %v21743_v41  ;;  %v21788_v41 = vld [vmem:[#allocation7 + $0x784] ss:$20 sps:$4 sm:$0xff]   ;;  %v21806_v52 = vld [vmem:[#allocation7 + $0x7fc] ss:$20 sps:$4 sm:$0xff]   ;;  %v21818_v60 = vld [vmem:[#allocation7 + $0x84c] ss:$20 sps:$4 sm:$0xff]  }
 0x127   : > { %18701 = vmatprep.subr.msk.bf16.mxu1 %vm622_vm0, %v21747_v42  ;;  %v21789_v42 = vld [vmem:[#allocation7 + $0x788] ss:$20 sps:$4 sm:$0xff]   ;;  %v21812_v56 = vld [vmem:[#allocation7 + $0x824] ss:$20 sps:$4 sm:$0xff]   ;;  %v21839_v12 = vld [vmem:[#allocation7 + $0x8cc] ss:$20 sps:$4 sm:$0xff]  }
 0x128   : > { %875 = vmatpush1.bf16.msra.mxu0 %v855_v39  ;;  %v1651_v39 = vsel %vm622_vm0, %v21785_v38, 0  ;;  %v21824_v1 = vld [vmem:[#allocation7 + $0x874] ss:$20 sps:$4 sm:$0xff]   ;;  %v21822_v2 = vld [vmem:[#allocation7 + $0x870] ss:$20 sps:$4 sm:$0xff]   ;;  %vm12241_vm11 = vcmask 1041408  }
 0x129   : > { %974 = vmatprep.subr.bf16.mxu0 %v21716_v40  ;;  %v21786_v40 = vld [vmem:[#allocation7 + $0x780] ss:$20 sps:$4 sm:$0xff]   ;;  %v21825_v3 = vld [vmem:[#allocation7 + $0x878] ss:$20 sps:$4 sm:$0xff]   ;;  %v21827_v4 = vld [vmem:[#allocation7 + $0x87c] ss:$20 sps:$4 sm:$0xff]  }
 0x12a   : > { %1174 = vmatpush1.bf16.msra.mxu1 %v1109_v47  ;;  %v21795_v47 = vld [vmem:[#allocation7 + $0x7b0] ss:$20 sps:$4 sm:$0xff]   ;;  %v21828_v7 = vld [vmem:[#allocation7 + $0x898] ss:$20 sps:$4 sm:$0xff]   ;;  %v21845_v16 = vld [vmem:[#allocation7 + $0x8f4] ss:$20 sps:$4 sm:$0xff]  }
 0x12b   : > { %18663 = vmatmul.mubr.msk.bf16.gmra.mrb[12].mxu0 %vm615_vm2, %v560_v27  ;;  %1441 = vmatprep.subr.bf16.mxu1 %v21758_v48  ;;  %v21765_v27 = vld [vmem:[#allocation2 + $0x164] ss:$24 sps:$4 sm:$0x3f]   ;;  %v21852_v25 = vld [vmem:[#allocation7 + $0x938] ss:$20 sps:$4 sm:$0xff]   ;;  %vm12237_vm12 = vcmask 162816  }
 0x12c   : > { %904 = vmatprep.mubr.bf16.mxu0 %v26176_v0  ;;  %v21800_v48 = vld [vmem:[#allocation7 + $0x7d4] ss:$20 sps:$4 sm:$0xff]   ;;  %v21875_v38 = vld [vmem:[#allocation7 + $0x9bc] ss:$20 sps:$4 sm:$0xff]   ;;  %vm15360_vm13 = vcmask 1042432   ;;  %vm15356_vm14 = vcmask 48128  }
 0x12d   : > { %18682 = vmatmul.mubr.msk.bf16.gmra.mrb[8].mxu1 %vm615_vm2, %v18664_v50  ;;  %v21848_v20 = vld [vmem:[#allocation7 + $0x914] ss:$20 sps:$4 sm:$0xff]   ;;  %vm18447_vm15 = vcmask 73728   ;;  %s498_s22 = sand.u32 1, %s24260_s18   ;;  %s20637_s4 = sshll.u32 %s24373_s21, 4 }
 0x12e   : > { %1203 = vmatprep.mubr.bf16.mxu1 %v26176_v0  ;;  %v21861_v28 = vld [vmem:[#allocation7 + $0x968] ss:$20 sps:$4 sm:$0xff]   ;;  %s499_s29 = scalar_lea.vmem [#allocation17], %s498_s22  ;;  %s26111_s26 = scalar_lea.hbm %s26165_s11, %s20637_s4 }
 0x12f   : > { %s18474_s15 = sshll.u32 %s499_s29, 4  ;;  %p26266_p11 = scmp.ne.s32.totalorder %s26208_s27, 0  ;;  %s26113_s15 = int_to_ptr.vmem [resolvable:$true] %s18474_s15 }
 0x130   : > { %s24186_s12 = scalar_lea.vmem %s26113_s15, 16  ;;  %s24291_s21 = smov [#allocation17]  }
 0x131   : > { %p24187_p8 = scmp.ne.s32.totalorder %s26113_s15, %s24186_s12  ;;  %s24190_s14 = sshll.u32 %s24291_s21, 4  ;;  %s24191_s14 = int_to_ptr.vmem [resolvable:$false] %s24190_s14 }
 0x132   : > { %s24192_s28 = scalar_lea.vmem %s24191_s14, 32  ;;  %p24193_p0 = scmp.lt.s32.totalorder %s26113_s15, %s24191_s14 }
 0x133   : > { %18678 = vmatmul.mubr.msk.bf16.vlgmr.msra.gmra.mrb[0].mxu0 %vm615_vm2, %v24630_v8  ;;  %p24188_p13 = pnand %p24187_p8, %p26266_p11  ;;  %p24194_p6 = scmp.lt.s32.totalorder %s24192_s28, %s24186_s12 }
 0x134   : > { %914 = vmatprep.mubr.bf16.mxu0 %v26176_v0  ;;  %975 = vmatpush1.bf16.msra.mxu0 %v21714_v44  ;;  %v21794_v44 = vld [vmem:[#allocation7 + $0x7ac] ss:$20 sps:$4 sm:$0xff]  }
 0x135   : > { %18683 = vmatprep.subr.msk.bf16.mxu0 %vm622_vm0, %v21717_v45  ;;  %18702 = vmatmul.mubr.msk.bf16.vlgmr.msra.gmra.mrb[0].mxu1 %vm615_vm2, %v24690_v57  ;;  %v21797_v45 = vld [vmem:[#allocation7 + $0x7b4] ss:$20 sps:$4 sm:$0xff]   ;;  %p24189_p1 = pneg %p24188_p13  ;;  %p24195_p5 = por %p24194_p6, %p24193_p0 }
 0x136   : > { %1213 = vmatprep.mubr.bf16.mxu1 %v26176_v0  ;;  %1442 = vmatpush1.bf16.msra.mxu1 %v21756_v54  ;;  %v21804_v54 = vld [vmem:[#allocation7 + $0x7f8] ss:$20 sps:$4 sm:$0xff]  }
 0x137   : > { %18722 = vmatprep.subr.msk.bf16.mxu1 %vm622_vm0, %v21759_v55  ;;  %v21807_v55 = vld [vmem:[#allocation7 + $0x800] ss:$20 sps:$4 sm:$0xff]   ;;  %p24196_p9 = pnand %p24195_p5, %p24189_p1 }
 0x138   : > { %977 = vmatpush1.bf16.msra.mxu0 %v867_v51  ;;  %v21803_v51 = vld [vmem:[#allocation7 + $0x7dc] ss:$20 sps:$4 sm:$0xff]  }
 0x139   : > { %1120 = vmatprep.subr.bf16.mxu0 %v21728_v49  ;;  %v21798_v49 = vld [vmem:[#allocation7 + $0x7d0] ss:$20 sps:$4 sm:$0xff]  }
 0x13a   : > { %1444 = vmatpush1.bf16.msra.mxu1 %v1379_v62  ;;  %v21816_v62 = vld [vmem:[#allocation7 + $0x848] ss:$20 sps:$4 sm:$0xff]  }
 0x13b   : > { %18679 = vmatmul.mubr.msk.bf16.gmra.mrb[16].mxu0 %vm615_vm2, %v18664_v50  ;;  %1707 = vmatprep.subr.bf16.mxu1 %v21770_v61  ;;  %v21821_v61 = vld [vmem:[#allocation7 + $0x854] ss:$20 sps:$4 sm:$0xff]  }
 0x13c   : > { %1006 = vmatprep.mubr.bf16.mxu0 %v26176_v0 }
 0x13d   : > { %18703 = vmatmul.mubr.msk.bf16.gmra.mrb[12].mxu1 %vm615_vm2, %v24684_v53 }
 0x13e   : > { %1473 = vmatprep.mubr.bf16.mxu1 %v26176_v0 }
 0x143   : > { %18684 = vmatmul.mubr.msk.bf16.vlgmr.msra.gmra.mrb[8].mxu0 %vm615_vm2, %v24630_v8  ;;  %v21764_v8 = vld [vmem:[#allocation2 + $0x134] ss:$24 sps:$4 sm:$0xff]  }
 0x144   : > { %1016 = vmatprep.mubr.bf16.mxu0 %v26176_v0  ;;  %1121 = vmatpush1.bf16.msra.mxu0 %v21726_v58  ;;  %v21810_v58 = vld [vmem:[#allocation7 + $0x820] ss:$20 sps:$4 sm:$0xff]  }
 0x145   : > { %18698 = vmatprep.subr.msk.bf16.mxu0 %vm622_vm0, %v21729_v59  ;;  %18723 = vmatmul.mubr.msk.bf16.vlgmr.msra.gmra.mrb[0].mxu1 %vm615_vm2, %v1311_v13  ;;  %v21813_v59 = vld [vmem:[#allocation7 + $0x828] ss:$20 sps:$4 sm:$0xff]  }
 0x146   : > { %1483 = vmatprep.mubr.bf16.mxu1 %v26176_v0  ;;  %1708 = vmatpush1.bf16.msra.mxu1 %v21768_v10  ;;  %v21831_v10 = vld [vmem:[#allocation7 + $0x8a0] ss:$20 sps:$4 sm:$0xff]  }
 0x147   : > { %18743 = vmatprep.subr.msk.bf16.mxu1 %vm622_vm0, %v21771_v11  ;;  %v21836_v11 = vld [vmem:[#allocation7 + $0x8c4] ss:$20 sps:$4 sm:$0xff]  }
 0x148   : > { %1123 = vmatpush1.bf16.msra.mxu0 %v1103_v5  ;;  %v21830_v5 = vld [vmem:[#allocation7 + $0x89c] ss:$20 sps:$4 sm:$0xff]  }
 0x149   : > { %1222 = vmatprep.subr.bf16.mxu0 %v21740_v63  ;;  %v21819_v63 = vld [vmem:[#allocation7 + $0x850] ss:$20 sps:$4 sm:$0xff]  }
 0x14a   : > { %1710 = vmatpush1.bf16.msra.mxu1 %v1645_v17  ;;  %v21840_v17 = vld [vmem:[#allocation7 + $0x8e8] ss:$20 sps:$4 sm:$0xff]  }
 0x14b   : > { %18685 = vmatmul.mubr.msk.bf16.gmra.mrb[20].mxu0 %vm615_vm2, %v18664_v50  ;;  %3834 = vmatprep.subr.bf16.mxu1 %v21788_v41  ;;  %v21801_v50 = vld [vmem:[#allocation7 + $0x7d8] ss:$20 sps:$4 sm:$0xff]   ;;  %v21878_v41 = vld [vmem:[#allocation7 + $0x9dc] ss:$20 sps:$4 sm:$0xff]  }
 0x14c   : > { %1152 = vmatprep.mubr.bf16.mxu0 %v26176_v0 }
 0x14d   : > { %18724 = vmatmul.mubr.msk.bf16.gmra.mrb[16].mxu1 %vm615_vm2, %v24713_v6 }
 0x14e   : > { %1739 = vmatprep.mubr.bf16.mxu1 %v26176_v0 }
 0x153   : > { %18699 = vmatmul.mubr.msk.bf16.vlgmr.msra.gmra.mrb[0].mxu0 %vm615_vm2, %v24690_v57 }
 0x154   : > { %1162 = vmatprep.mubr.bf16.mxu0 %v26176_v0  ;;  %1223 = vmatpush1.bf16.msra.mxu0 %v21738_v14  ;;  %v21837_v14 = vld [vmem:[#allocation7 + $0x8c8] ss:$20 sps:$4 sm:$0xff]  }
 0x155   : > { %18704 = vmatprep.subr.msk.bf16.mxu0 %vm622_vm0, %v21741_v15  ;;  %18744 = vmatmul.mubr.msk.bf16.vlgmr.msra.gmra.mrb[0].mxu1 %vm615_vm2, %v1577_v22  ;;  %v21842_v15 = vld [vmem:[#allocation7 + $0x8ec] ss:$20 sps:$4 sm:$0xff]  }
 0x156   : > { %1749 = vmatprep.mubr.bf16.mxu1 %v26176_v0  ;;  %3835 = vmatpush1.bf16.msra.mxu1 %v21786_v40  ;;  %v21873_v40 = vld [vmem:[#allocation7 + $0x9b8] ss:$20 sps:$4 sm:$0xff]  }
 0x157   : > { %3836 = vmatprep.subr.bf16.mxu1 %v21794_v44  ;;  %v21879_v44 = vld [vmem:[#allocation7 + $0x9e0] ss:$20 sps:$4 sm:$0xff]  }
 0x158   : > { %1225 = vmatpush1.bf16.msra.mxu0 %v1115_v19  ;;  %v21846_v19 = vld [vmem:[#allocation7 + $0x910] ss:$20 sps:$4 sm:$0xff]  }
 0x159   : > { %1390 = vmatprep.subr.bf16.mxu0 %v21752_v18  ;;  %v21843_v18 = vld [vmem:[#allocation7 + $0x8f0] ss:$20 sps:$4 sm:$0xff]  }
 0x15a   : > { %3837 = vmatpush1.bf16.msra.mxu1 %v21792_v46 }
 0x15b   : > { %18700 = vmatmul.mubr.msk.bf16.gmra.mrb[24].mxu0 %vm615_vm2, %v24684_v53  ;;  %3838 = vmatprep.subr.bf16.mxu1 %v21800_v48  ;;  %v21884_v48 = vld [vmem:[#allocation7 + $0xa04] ss:$20 sps:$4 sm:$0xff]  }
 0x15c   : > { %1254 = vmatprep.mubr.bf16.mxu0 %v26176_v0 }
 0x15d   : > { %18745 = vmatmul.mubr.msk.bf16.gmra.mrb[20].mxu1 %vm615_vm2, %v1576_v21 }
 0x15e   : > { %3839 = vmatpush1.bf16.msra.mxu1 %v21798_v49  ;;  %v21887_v49 = vld [vmem:[#allocation7 + $0xa0c] ss:$20 sps:$4 sm:$0xff]  }
 0x15f   : > { %3840 = vmatprep.subr.bf16.mxu1 %v21806_v52 }
 0x162   : > { %3841 = vmatpush1.bf16.msra.mxu1 %v21804_v54 }
 0x163   : > { %18705 = vmatmul.mubr.msk.bf16.vlgmr.msra.gmra.mrb[8].mxu0 %vm615_vm2, %v24690_v57  ;;  %v21815_v57 = vld [vmem:[#allocation7 + $0x82c] ss:$20 sps:$4 sm:$0xff]   ;;  %3842 = vmatprep.subr.bf16.mxu1 %v21812_v56 }
 0x164   : > { %1264 = vmatprep.mubr.bf16.mxu0 %v26176_v0  ;;  %1391 = vmatpush1.bf16.msra.mxu0 %v21750_v23  ;;  %v21854_v23 = vld [vmem:[#allocation7 + $0x93c] ss:$20 sps:$4 sm:$0xff]  }
 0x165   : > { %18719 = vmatprep.subr.msk.bf16.mxu0 %vm622_vm0, %v21753_v24  ;;  %v21857_v24 = vld [vmem:[#allocation7 + $0x944] ss:$20 sps:$4 sm:$0xff]  }
 0x166   : > { %3843 = vmatpush1.bf16.msra.mxu1 %v21810_v58 }
 0x167   : > { %3844 = vmatprep.subr.bf16.mxu1 %v21818_v60 }
 0x168   : > { %1393 = vmatpush1.bf16.msra.mxu0 %v1373_v9  ;;  %v21860_v9 = vld [vmem:[#allocation7 + $0x964] ss:$20 sps:$4 sm:$0xff]  }
 0x169   : > { %1492 = vmatprep.subr.bf16.mxu0 %v21764_v8  ;;  %v21855_v8 = vld [vmem:[#allocation7 + $0x940] ss:$20 sps:$4 sm:$0xff]  }
 0x16a   : > { %3845 = vmatpush1.bf16.msra.mxu1 %v21816_v62 }
 0x16b   : > { %18706 = vmatmul.mubr.msk.bf16.gmra.mrb[28].mxu0 %vm615_vm2, %v24684_v53  ;;  %v21809_v53 = vld [vmem:[#allocation7 + $0x804] ss:$20 sps:$4 sm:$0xff]   ;;  %3846 = vmatprep.subr.bf16.mxu1 %v21824_v1 }
 0x16c   : > { %1422 = vmatprep.mubr.bf16.mxu0 %v26176_v0 }
 0x16e   : > { %3847 = vmatpush1.bf16.msra.mxu1 %v21822_v2 }
 0x16f   : > { %3848 = vmatprep.subr.bf16.mxu1 %v21830_v5 }
 0x172   : > { %3849 = vmatpush1.bf16.msra.mxu1 %v21828_v7 }
 0x173   : > { %18720 = vmatmul.mubr.msk.bf16.vlgmr.msra.gmra.mrb[0].mxu0 %vm615_vm2, %v1311_v13  ;;  %3850 = vmatprep.subr.bf16.mxu1 %v21836_v11 }
 0x174   : > { %1432 = vmatprep.mubr.bf16.mxu0 %v26176_v0  ;;  %1493 = vmatpush1.bf16.msra.mxu0 %v21762_v26  ;;  %v21863_v26 = vld [vmem:[#allocation7 + $0x96c] ss:$20 sps:$4 sm:$0xff]  }
 0x175   : > { %18725 = vmatprep.subr.msk.bf16.mxu0 %vm622_vm0, %v21765_v27  ;;  %v21858_v27 = vld [vmem:[#allocation7 + $0x960] ss:$20 sps:$4 sm:$0xff]  }
 0x178   : > { %1495 = vmatpush1.bf16.msra.mxu0 %v1385_v30 }
 0x179   : > { %1656 = vmatprep.subr.bf16.mxu0 %v21776_v29 }
 0x17b   : > { %18721 = vmatmul.mubr.msk.bf16.gmra.mrb[32].mxu0 %vm615_vm2, %v24713_v6 }
 0x17c   : > { %1524 = vmatprep.mubr.bf16.mxu0 %v26176_v0 }
 0x183   : > { %18726 = vmatmul.mubr.msk.bf16.vlgmr.msra.gmra.mrb[8].mxu0 %vm615_vm2, %v1311_v13  ;;  %v21834_v13 = vld [vmem:[#allocation7 + $0x8c0] ss:$20 sps:$4 sm:$0xff]  }
 0x184   : > { %1534 = vmatprep.mubr.bf16.mxu0 %v26176_v0  ;;  %1657 = vmatpush1.bf16.msra.mxu0 %v21774_v31  ;;  %v21866_v31 = vld [vmem:[#allocation7 + $0x98c] ss:$20 sps:$4 sm:$0xff]  }
 0x185   : > { %18740 = vmatprep.subr.msk.bf16.mxu0 %vm622_vm0, %v21777_v32  ;;  %3851 = vmatpush1.bf16.msra.mxu1 %v21834_v13  ;;  %v21869_v32 = vld [vmem:[#allocation7 + $0x994] ss:$20 sps:$4 sm:$0xff]  }
 0x186   : > { %3852 = vmatprep.subr.bf16.mxu1 %v21842_v15 }
 0x188   : > { %1659 = vmatpush1.bf16.msra.mxu0 %v1639_v35  ;;  %v21867_v35 = vld [vmem:[#allocation7 + $0x990] ss:$20 sps:$4 sm:$0xff]  }
 0x189   : > { %1758 = vmatprep.subr.bf16.mxu0 %v21782_v34  ;;  %3853 = vmatpush1.bf16.msra.mxu1 %v21840_v17  ;;  %v21864_v34 = vld [vmem:[#allocation7 + $0x988] ss:$20 sps:$4 sm:$0xff]  }
 0x18a   : > { %3854 = vmatprep.subr.bf16.mxu1 %v21848_v20 }
 0x18b   : > { %18727 = vmatmul.mubr.msk.bf16.gmra.mrb[36].mxu0 %vm615_vm2, %v24713_v6  ;;  %v21833_v6 = vld [vmem:[#allocation7 + $0x8a4] ss:$20 sps:$4 sm:$0xff]  }
 0x18c   : > { %1688 = vmatprep.mubr.bf16.mxu0 %v26176_v0 }
 0x18d   : > { %3855 = vmatpush1.bf16.msra.mxu1 %v21846_v19 }
 0x18e   : > { %3856 = vmatprep.subr.bf16.mxu1 %v21854_v23 }
 0x191   : > { %3857 = vmatpush1.bf16.msra.mxu1 %v21852_v25 }
 0x192   : > { %3858 = vmatprep.subr.bf16.mxu1 %v21860_v9 }
 0x193   : > { %18741 = vmatmul.mubr.msk.bf16.vlgmr.msra.gmra.mrb[0].mxu0 %vm615_vm2, %v1577_v22 }
 0x194   : > { %1698 = vmatprep.mubr.bf16.mxu0 %v26176_v0  ;;  %1759 = vmatpush1.bf16.msra.mxu0 %v21780_v36 }
 0x195   : > { %18746 = vmatprep.subr.msk.bf16.mxu0 %vm622_vm0, %v21783_v37  ;;  %3859 = vmatpush1.bf16.msra.mxu1 %v21858_v27  ;;  %v21872_v37 = vld [vmem:[#allocation7 + $0x9b4] ss:$20 sps:$4 sm:$0xff]  }
 0x196   : > { %3860 = vmatprep.subr.bf16.mxu1 %v21866_v31 }
 0x198   : > { %1761 = vmatpush1.bf16.msra.mxu0 %v1651_v39  ;;  %v21870_v39 = vld [vmem:[#allocation7 + $0x9b0] ss:$20 sps:$4 sm:$0xff]  }
 0x199   : > { %3987 = vmatprep.subr.bf16.mxu0 %v21791_v43  ;;  %3861 = vmatpush1.bf16.msra.mxu1 %v21864_v34  ;;  %v21876_v43 = vld [vmem:[#allocation7 + $0x9d8] ss:$20 sps:$4 sm:$0xff]  }
 0x19a   : > { %3862 = vmatprep.subr.bf16.mxu1 %v21872_v37 }
 0x19b   : > { %18742 = vmatmul.mubr.msk.bf16.gmra.mrb[40].mxu0 %vm615_vm2, %v1576_v21 }
 0x19c   : > { %1790 = vmatprep.mubr.bf16.mxu0 %v26176_v0 }
 0x19d   : > { %3863 = vmatpush1.bf16.msra.mxu1 %v21870_v39 }
 0x19e   : > { %3864 = vmatprep.subr.bf16.mxu1 %v21878_v41 }
 0x1a1   : > { %3865 = vmatpush1.bf16.msra.mxu1 %v21876_v43 }
 0x1a2   : > { %3885 = vmatprep.subr.bf16.mxu1 %v21884_v48 }
 0x1a3   : > { %18747 = vmatmul.mubr.msk.bf16.vlgmr.msra.gmra.mrb[8].mxu0 %vm615_vm2, %v1577_v22  ;;  %v21851_v22 = vld [vmem:[#allocation7 + $0x91c] ss:$20 sps:$4 sm:$0xff]  }
 0x1a4   : > { %1800 = vmatprep.mubr.bf16.mxu0 %v26176_v0  ;;  %3988 = vmatpush1.bf16.msra.mxu0 %v21789_v42  ;;  %v21881_v42 = vld [vmem:[#allocation7 + $0x9e4] ss:$20 sps:$4 sm:$0xff]  }
 0x1a5   : > { %3989 = vmatprep.subr.bf16.mxu0 %v21797_v45 }
 0x1a8   : > { %3990 = vmatpush1.bf16.msra.mxu0 %v21795_v47 }
 0x1a9   : > { %3991 = vmatprep.subr.bf16.mxu0 %v21803_v51 }
 0x1ab   : > { %18748 = vmatmul.mubr.msk.bf16.gmra.mrb[44].mxu0 %vm615_vm2, %v1576_v21  ;;  %v21849_v21 = vld [vmem:[#allocation7 + $0x918] ss:$20 sps:$4 sm:$0xff]  }
 0x1ac   : > { %3992 = vmatpush1.bf16.msra.mxu0 %v21801_v50 }
 0x1ad   : > { %3993 = vmatprep.subr.bf16.mxu0 %v21809_v53 }
 0x1b0   : > { %3994 = vmatpush1.bf16.msra.mxu0 %v21807_v55 }
 0x1b1   : > { %3995 = vmatprep.subr.bf16.mxu0 %v21815_v57 }
 0x1b4   : > { %3996 = vmatpush1.bf16.msra.mxu0 %v21813_v59 }
 0x1b5   : > { %3997 = vmatprep.subr.bf16.mxu0 %v21821_v61 }
 0x1b8   : > { %3998 = vmatpush1.bf16.msra.mxu0 %v21819_v63 }
 0x1b9   : > { %3999 = vmatprep.subr.bf16.mxu0 %v21827_v4 }
 0x1bc   : > { %4000 = vmatpush1.bf16.msra.mxu0 %v21825_v3 }
 0x1bd   : > { %4001 = vmatprep.subr.bf16.mxu0 %v21833_v6 }
 0x1c0   : > { %4002 = vmatpush1.bf16.msra.mxu0 %v21831_v10 }
 0x1c1   : > { %4003 = vmatprep.subr.bf16.mxu0 %v21839_v12 }
 0x1c4   : > { %4004 = vmatpush1.bf16.msra.mxu0 %v21837_v14 }
 0x1c5   : > { %4005 = vmatprep.subr.bf16.mxu0 %v21845_v16 }
 0x1c8   : > { %4006 = vmatpush1.bf16.msra.mxu0 %v21843_v18  ;;  %v26175_v18 = vlaneseq }
 0x1c9   : > { %4007 = vmatprep.subr.bf16.mxu0 %v21851_v22 }
 0x1ca   : > { %v24772_v19 = vshrl.u32 %v26175_v18, 7  ;;  %v21893_v18 = vld [vmem:[#allocation7 + $0xa34] ss:$20 sps:$4 sm:$0xff]  }
 0x1cc   : > { %4008 = vmatpush1.bf16.msra.mxu0 %v21849_v21  ;;  %26227 = vst [vmem:[#allocation29_spill] sm:$0xff] %v24772_v19  ;;  %v24775_v23 = vsub.s32 2, %v24772_v19  ;;  %v24780_v9 = vsub.s32 3, %v24772_v19 }
 0x1cd   : > { %4009 = vmatprep.subr.bf16.mxu0 %v21857_v24 }
 0x1ce   : > { %26228 = vst [vmem:[#allocation30_spill] sm:$0xff] %v24775_v23  ;;  %26229 = vst [vmem:[#allocation31_spill] sm:$0xff] %v24780_v9 }
 0x1d0   : > { %4010 = vmatpush1.bf16.msra.mxu0 %v21855_v8  ;;  %v24777_v8 = vld [vmem:[#allocation5] sm:$0x3f] }
 0x1d1   : > { %4011 = vmatprep.subr.bf16.mxu0 %v21863_v26  ;;  %v1844_v31 = vrot.slane %v24777_v8, %v24780_v9  ;;  %v22667_v9 = vld [vmem:[#allocation7 + $0x159c] ss:$20 sps:$4 sm:$0xff]  }
 0x1d4   : > { %4012 = vmatpush1.bf16.msra.mxu0 %v21861_v28  ;;  %v1840_v28 = vrot.slane %v24777_v8, %v24775_v23 }
 0x1d5   : > { %4013 = vmatprep.subr.bf16.mxu0 %v21869_v32 }
 0x1d8   : > { %4014 = vmatpush1.bf16.msra.mxu0 %v21867_v35 }
 0x1d9   : > { %4015 = vmatprep.subr.bf16.mxu0 %v21875_v38 }
 0x1dc   : > { %4016 = vmatpush1.bf16.msra.mxu0 %v21873_v40 }
 0x1dd   : > { %4017 = vmatprep.subr.bf16.mxu0 %v21881_v42 }
 0x1e0   : > { %4018 = vmatpush1.bf16.msra.mxu0 %v21879_v44 }
 0x1e1   : > { %4038 = vmatprep.subr.bf16.mxu0 %v21887_v49 }
 0x1ee   : > { %v685_v29 = vpop.f32.mrb[4].mxu0 }
 0x1ef   : > { %v687_v30 = vpop.f32.mrb[5].mxu0  ;;  %v736_v45 = vpop.f32.mrb[4].mxu1 }
 0x1f0   : > { %v689_v33 = vpop.f32.mrb[6].mxu0  ;;  %v738_v46 = vpop.f32.mrb[5].mxu1 }
 0x1f1   : > { %v690_v36 = vpop.f32.mrb[7].mxu0  ;;  %v740_v47 = vpop.f32.mrb[6].mxu1 }
 0x1f2   : > { %v741_v50 = vpop.f32.mrb[7].mxu1 }
 0x1fe   : > { %v787_v51 = vpop.f32.mrb[12].mxu0 }
 0x1ff   : > { %v789_v52 = vpop.f32.mrb[13].mxu0 }
 0x200   : > { %v791_v53 = vpop.f32.mrb[14].mxu0  ;;  %v967_v55 = vpop.f32.mrb[8].mxu1 }
 0x201   : > { %v792_v54 = vpop.f32.mrb[15].mxu0  ;;  %v968_v56 = vadd.f32 %v967_v55, %v736_v45  ;;  %v969_v57 = vpop.f32.mrb[9].mxu1 }
 0x202   : > { %v970_v58 = vadd.f32 %v969_v57, %v738_v46  ;;  %v971_v59 = vpop.f32.mrb[10].mxu1 }
 0x203   : > { %v972_v60 = vpop.f32.mrb[11].mxu1 }
 0x20e   : > { %v916_v61 = vpop.f32.mrb[16].mxu0 }
 0x20f   : > { %v917_v62 = vadd.f32 %v916_v61, %v685_v29  ;;  %v918_v63 = vpop.f32.mrb[17].mxu0 }
 0x210   : > { %v919_v1 = vadd.f32 %v918_v63, %v687_v30  ;;  %v920_v2 = vpop.f32.mrb[18].mxu0  ;;  %v1215_v4 = vpop.f32.mrb[12].mxu1 }
 0x211   : > { %v921_v3 = vpop.f32.mrb[19].mxu0  ;;  %v1287_v5 = vadd.f32 %v1215_v4, %v968_v56  ;;  %v1217_v6 = vpop.f32.mrb[13].mxu1 }
 0x212   : > { %v1288_v7 = vadd.f32 %v1217_v6, %v970_v58  ;;  %v1219_v10 = vpop.f32.mrb[14].mxu1  ;;  %v21914_v3 = vld [vmem:[#allocation7 + $0xacc] ss:$20 sps:$4 sm:$0xff]  }
 0x213   : > { %v1220_v11 = vpop.f32.mrb[15].mxu1 }
 0x21e   : > { %v1018_v12 = vpop.f32.mrb[20].mxu0 }
 0x21f   : > { %v1019_v13 = vadd.f32 %v1018_v12, %v787_v51  ;;  %v1020_v14 = vpop.f32.mrb[21].mxu0 }
 0x220   : > { %v1021_v15 = vadd.f32 %v1020_v14, %v789_v52  ;;  %v1022_v16 = vpop.f32.mrb[22].mxu0  ;;  %v1485_v20 = vpop.f32.mrb[16].mxu1 }
 0x221   : > { %v1023_v17 = vpop.f32.mrb[23].mxu0  ;;  %v1557_v21 = vadd.f32 %v1485_v20, %v1287_v5  ;;  %v1487_v22 = vpop.f32.mrb[17].mxu1 }
 0x222   : > { %v1558_v24 = vadd.f32 %v1487_v22, %v1288_v7  ;;  %v1489_v25 = vpop.f32.mrb[18].mxu1 }
 0x223   : > { %v1490_v26 = vpop.f32.mrb[19].mxu1 }
 0x228   : > { %v1741_v35 = vpop.f32.mrb[0].mxu1 }
 0x229   : > { %v1861_v36 = vadd.f32 %v1840_v28, %v1741_v35  ;;  %v1743_v37 = vpop.f32.mrb[1].mxu1 }
 0x22a   : > { %v1862_v38 = vadd.f32 %v1844_v31, %v1743_v37  ;;  %v1745_v39 = vpop.f32.mrb[2].mxu1 }
 0x22b   : > { %v1879_v40 = vmax.f32 %v1861_v36, 0.0  ;;  %v1867_v41 = vadd.f32 %v1840_v28, %v1745_v39  ;;  %v1747_v42 = vpop.f32.mrb[3].mxu1 }
 0x22c   : > { %v1880_v43 = vmax.f32 %v1862_v38, 0.0  ;;  %v1868_v44 = vadd.f32 %v1844_v31, %v1747_v42 }
 0x22d   : > { %v1885_v45 = vmax.f32 %v1867_v41, 0.0 }
 0x22e   : > { %v1164_v27 = vpop.f32.mrb[24].mxu0  ;;  %v1886_v46 = vmax.f32 %v1868_v44, 0.0 }
 0x22f   : > { %v1285_v29 = vadd.f32 %v1164_v27, %v917_v62  ;;  %v1166_v30 = vpop.f32.mrb[25].mxu0  ;;  %v24786_v47 = vpack.c.bf16 %v1885_v45, %v1879_v40  ;;  %v24837_v40 = vsub.s32 0, %v24772_v19 }
 0x230   : > { %v1286_v32 = vadd.f32 %v1166_v30, %v919_v1  ;;  %v1168_v33 = vpop.f32.mrb[26].mxu0  ;;  %v24788_v48 = vpack.c.bf16 %v1886_v46, %v1880_v43  ;;  %v1751_v49 = vpop.f32.mrb[20].mxu1  ;;  %v24842_v43 = vsub.s32 1, %v24772_v19 }
 0x231   : > { %v1169_v34 = vpop.f32.mrb[27].mxu0  ;;  %v1823_v50 = vadd.f32 %v1751_v49, %v1557_v21  ;;  %v1753_v51 = vpop.f32.mrb[21].mxu1  ;;  %v2511_v22 = vshll.u32 %v24786_v47, 16  ;;  %26231 = vst [vmem:[#allocation33_spill] sm:$0xff] %v24837_v40 }
 0x232   : > { %v1824_v52 = vadd.f32 %v1753_v51, %v1558_v24  ;;  %v2521_v53 = vshrl.u32 %v24788_v48, 16  ;;  %v2523_v54 = vshll.u32 %v24788_v48, 16  ;;  %v1755_v55 = vpop.f32.mrb[22].mxu1  ;;  %26232 = vst [vmem:[#allocation34_spill] sm:$0xff] %v24842_v43 }
 0x233   : > { %v1873_v56 = vadd.f32 %v1840_v28, %v1823_v50  ;;  %v1756_v57 = vpop.f32.mrb[23].mxu1  ;;  %v24830_v27 = vrot.slane %v2511_v22, 2 }
 0x234   : > { %v1874_v58 = vadd.f32 %v1844_v31, %v1824_v52  ;;  %v24794_v59 = vrot.slane %v2521_v53, 1  ;;  %v24798_v60 = vrot.slane %v2523_v54, 2 }
 0x235   : > { %v1891_v62 = vmax.f32 %v1873_v56, 0.0 }
 0x236   : > { %v1892_v2 = vmax.f32 %v1874_v58, 0.0 }
 0x237   : > { %v24802_v6 = vpack.c.bf16 %v1891_v62, %v1891_v62 }
 0x238   : > { %v24804_v10 = vpack.c.bf16 %v1892_v2, %v1892_v2 }
 0x239   : > { %26230 = vst [vmem:[#allocation32_spill] sm:$0xff] %v24802_v6  ;;  %v2516_v11 = vshll.u32 %v24802_v6, 16  ;;  %v26181_v12 = vshrl.u32 %v24802_v6, 16 }
 0x23a   : > { %v2528_v14 = vshll.u32 %v24804_v10, 16  ;;  %v2565_v16 = vshrl.u32 %v24804_v10, 16 }
 0x23b   : > { %v8332_v17 = vrot.slane %v26181_v12, 1  ;;  %v21915_v12 = vld [vmem:[#allocation7 + $0xad0] ss:$20 sps:$4 sm:$0xff]  }
 0x23c   : > { %v8340_v20 = vrot.slane %v2528_v14, 2  ;;  %v8339_v21 = vrot.slane %v2565_v16, 1 }
 0x23e   : > { %v1266_v61 = vpop.f32.mrb[28].mxu0  ;;  %v24822_v25 = vor.u32 %v8340_v20, %v8339_v21  ;;  %v26174_v20 = vsub.s32 5, %v24772_v19 }
 0x23f   : > { %v1289_v63 = vadd.f32 %v1266_v61, %v1019_v13  ;;  %v1268_v1 = vpop.f32.mrb[29].mxu0  ;;  %v2509_v13 = vshrl.u32 %v24786_v47, 16 }
 0x240   : > { %v1290_v4 = vadd.f32 %v1268_v1, %v1021_v15  ;;  %v1270_v5 = vpop.f32.mrb[30].mxu0  ;;  %v8333_v15 = vrot.slane %v2516_v11, 2 }
 0x241   : > { %v1271_v7 = vpop.f32.mrb[31].mxu0  ;;  %v24826_v26 = vrot.slane %v2509_v13, 1 }
 0x242   : > { %v24820_v24 = vor.u32 %v8333_v15, %v8332_v17  ;;  %v24853_v7 = vsub.s32 4, %v24772_v19  ;;  %v22635_v19 = vld [vmem:[#allocation7 + $0x14d0] ss:$20 sps:$4 sm:$0xff]  }
 0x244   : > { %26233 = vst [vmem:[#allocation35_spill] sm:$0xff] %v24853_v7 }
 0x24e   : > { %v1434_v30 = vpop.f32.mrb[32].mxu0 }
 0x24f   : > { %v1555_v31 = vadd.f32 %v1434_v30, %v1285_v29  ;;  %v1436_v33 = vpop.f32.mrb[33].mxu0  ;;  %v1832_v29 = vrot.slane %v24777_v8, %v24837_v40  ;;  %v22563_v40 = vld [vmem:[#allocation7 + $0x12f0] ss:$20 sps:$4 sm:$0xff]  }
 0x250   : > { %v1556_v34 = vadd.f32 %v1436_v33, %v1286_v32  ;;  %v1438_v35 = vpop.f32.mrb[34].mxu0  ;;  %v1836_v32 = vrot.slane %v24777_v8, %v24842_v43 }
 0x251   : > { %v1439_v36 = vpop.f32.mrb[35].mxu0 }
 0x25e   : > { %v1536_v37 = vpop.f32.mrb[36].mxu0 }
 0x25f   : > { %v24834_v38 = vadd.f32 %v1536_v37, %v1289_v63  ;;  %v1538_v39 = vpop.f32.mrb[37].mxu0 }
 0x260   : > { %v24839_v41 = vadd.f32 %v1538_v39, %v1290_v4  ;;  %v1540_v42 = vpop.f32.mrb[38].mxu0  ;;  %v1848_v39 = vrot.slane %v24777_v8, %v24853_v7  ;;  %v22643_v7 = vld [vmem:[#allocation7 + $0x14fc] ss:$20 sps:$4 sm:$0xff]  }
 0x261   : > { %v1541_v44 = vpop.f32.mrb[39].mxu0  ;;  %v24863_v42 = vrot.slane %v24777_v8, %v26174_v20  ;;  %v21890_v20 = vld [vmem:[#allocation7 + $0xa2c] ss:$20 sps:$4 sm:$0xff]  }
 0x266   : > { %v1690_v45 = vpop.f32.mrb[0].mxu0 }
 0x267   : > { %v1859_v46 = vadd.f32 %v1832_v29, %v1690_v45  ;;  %v1692_v49 = vpop.f32.mrb[1].mxu0 }
 0x268   : > { %v1860_v50 = vadd.f32 %v1836_v32, %v1692_v49  ;;  %v1694_v51 = vpop.f32.mrb[2].mxu0 }
 0x269   : > { %v1865_v52 = vadd.f32 %v1832_v29, %v1694_v51  ;;  %v1696_v55 = vpop.f32.mrb[3].mxu0  ;;  %v1877_v56 = vmax.f32 %v1859_v46, 0.0 }
 0x26a   : > { %v1866_v57 = vadd.f32 %v1836_v32, %v1696_v55  ;;  %v1878_v61 = vmax.f32 %v1860_v50, 0.0 }
 0x26b   : > { %v1883_v58 = vmax.f32 %v1865_v52, 0.0 }
 0x26c   : > { %v1884_v62 = vmax.f32 %v1866_v57, 0.0 }
 0x26d   : > { %v24848_v63 = vpack.c.bf16 %v1883_v58, %v1877_v56 }
 0x26e   : > { %v24850_v1 = vpack.c.bf16 %v1884_v62, %v1878_v61  ;;  %v1700_v2 = vpop.f32.mrb[40].mxu0 }
 0x26f   : > { %v1821_v4 = vadd.f32 %v1700_v2, %v1555_v31  ;;  %v1702_v5 = vpop.f32.mrb[41].mxu0  ;;  %v2487_v35 = vshll.u32 %v24848_v63, 16 }
 0x270   : > { %v1822_v17 = vadd.f32 %v1702_v5, %v1556_v34  ;;  %v1704_v15 = vpop.f32.mrb[42].mxu0  ;;  %v2499_v33 = vshll.u32 %v24850_v1, 16  ;;  %v2497_v51 = vshrl.u32 %v24850_v1, 16 }
 0x271   : > { %v1871_v21 = vadd.f32 %v1832_v29, %v1821_v4  ;;  %v1705_v30 = vpop.f32.mrb[43].mxu0  ;;  %v2485_v29 = vshrl.u32 %v24848_v63, 16  ;;  %v21882_v4 = vld [vmem:[#allocation7 + $0xa00] ss:$20 sps:$4 sm:$0xff]  }
 0x272   : > { %v1872_v36 = vadd.f32 %v1836_v32, %v1822_v17  ;;  %v2501_v44 = vrot.slane %v2499_v33, 1  ;;  %v2489_v32 = vrot.slane %v2487_v35, 1 }
 0x273   : > { %v1889_v37 = vmax.f32 %v1871_v21, 0.0 }
 0x274   : > { %v1890_v31 = vmax.f32 %v1872_v36, 0.0  ;;  %v2502_v2 = vor.u32 %v2501_v44, %v2497_v51  ;;  %v2490_v5 = vor.u32 %v2489_v32, %v2485_v29  ;;  %v21885_v36 = vld [vmem:[#allocation7 + $0xa08] ss:$20 sps:$4 sm:$0xff]  }
 0x275   : > { %v24865_v34 = vpack.c.bf16 %v1889_v37, %v1889_v37 }
 0x276   : > { %v24872_v45 = vpack.c.bf16 %v1890_v31, %v1890_v31  ;;  %v1792_v46 = vpop.f32.mrb[8].mxu0 }
 0x277   : > { %v1863_v49 = vadd.f32 %v1848_v39, %v1792_v46  ;;  %v1794_v50 = vpop.f32.mrb[9].mxu0  ;;  %v2492_v8 = vshll.u32 %v24865_v34, 16  ;;  %v2556_v52 = vshrl.u32 %v24865_v34, 16 }
 0x278   : > { %v1864_v55 = vadd.f32 %v24863_v42, %v1794_v50  ;;  %v1796_v56 = vpop.f32.mrb[10].mxu0  ;;  %v2504_v57 = vshll.u32 %v24872_v45, 16  ;;  %v2559_v58 = vshrl.u32 %v24872_v45, 16 }
 0x279   : > { %v1869_v61 = vadd.f32 %v1848_v39, %v1796_v56  ;;  %v1798_v62 = vpop.f32.mrb[11].mxu0  ;;  %v2494_v17 = vrot.slane %v2492_v8, 1  ;;  %v8318_v37 = vrot.slane %v2556_v52, 1  ;;  %v1881_v31 = vmax.f32 %v1863_v49, 0.0 }
 0x27a   : > { %v1870_v15 = vadd.f32 %v24863_v42, %v1798_v62  ;;  %v2506_v21 = vrot.slane %v2504_v57, 1  ;;  %v8326_v30 = vrot.slane %v2504_v57, 2  ;;  %v1882_v46 = vmax.f32 %v1864_v55, 0.0 }
 0x27b   : > { %v1887_v50 = vmax.f32 %v1869_v61, 0.0  ;;  %v8325_v56 = vrot.slane %v2559_v58, 1  ;;  %v8319_v28 = vrot.slane %v2492_v8, 2  ;;  %v24897_v49 = vsel %vm545_vm1, %v2490_v5, %v2494_v17 }
 0x27c   : > { %v1888_v44 = vmax.f32 %v1870_v15, 0.0  ;;  %v24888_v0 = vsel %vm545_vm1, %v2502_v2, %v2506_v21  ;;  %v24890_v32 = vor.u32 %v2559_v58, %v2506_v21  ;;  %v2525_v8 = vrot.slane %v2523_v54, 1  ;;  %v21888_v15 = vld [vmem:[#allocation7 + $0xa28] ss:$20 sps:$4 sm:$0xff]   ;;  %v21891_v21 = vld [vmem:[#allocation7 + $0xa30] ss:$20 sps:$4 sm:$0xff]  }
 0x27d   : > { %v24892_v62 = vpack.c.bf16 %v1887_v50, %v1881_v31  ;;  %3866 = vmatprep.mubr.bf16.mxu1 %v24888_v0  ;;  %4019 = vmatprep.mubr.bf16.mxu0 %v24888_v0  ;;  %v24903_v61 = vor.u32 %v8319_v28, %v8318_v37  ;;  %v24907_v58 = vor.u32 %v8326_v30, %v8325_v56  ;;  %v21896_v28 = vld [vmem:[#allocation7 + $0xa54] ss:$20 sps:$4 sm:$0xff]   ;;  %v21899_v37 = vld [vmem:[#allocation7 + $0xa5c] ss:$20 sps:$4 sm:$0xff]  }
 0x27e   : > { %v24899_v55 = vpack.c.bf16 %v1888_v44, %v1882_v46  ;;  %v1802_v57 = vpop.f32.mrb[44].mxu0  ;;  %3867 = vmatmul.mubr.bf16.vlgmr.msra.gmra.mrb[24].mxu1 %v24897_v49  ;;  %4020 = vmatmul.mubr.bf16.vlgmr.msra.gmra.mrb[48].mxu0 %v24897_v49  ;;  %v21894_v54 = vld [vmem:[#allocation7 + $0xa50] ss:$20 sps:$4 sm:$0xff]  }
 0x27f   : > { %26234 = vst [vmem:[#allocation36_spill] sm:$0xff] %v24892_v62  ;;  %v1825_v2 = vadd.f32 %v1802_v57, %v24834_v38  ;;  %3886 = vmatpush1.bf16.msra.mxu1 %v21882_v4  ;;  %4039 = vmatpush1.bf16.msra.mxu0 %v21885_v36  ;;  %v1804_v5 = vpop.f32.mrb[45].mxu0  ;;  %v21897_v4 = vld [vmem:[#allocation7 + $0xa58] ss:$20 sps:$4 sm:$0xff]   ;;  %v2526_v36 = vor.u32 %v2525_v8, %v2521_v53  ;;  %v24927_v53 = vrot.slane %v2497_v51, 1 }
 0x280   : > { %26235 = vst [vmem:[#allocation37_spill] sm:$0xff] %v24899_v55  ;;  %v1826_v31 = vadd.f32 %v1804_v5, %v24839_v41  ;;  %3876 = vmatprep.mubr.bf16.mxu1 %v24890_v32  ;;  %4029 = vmatprep.mubr.bf16.mxu0 %v24890_v32  ;;  %v1806_v46 = vpop.f32.mrb[46].mxu0  ;;  %v24918_v41 = vrot.slane %v2528_v14, 1  ;;  %v26180_v56 = vshrl.u32 %v24899_v55, 16  ;;  %v24931_v14 = vrot.slane %v2499_v33, 2 }
 0x281   : > { %v1875_v50 = vadd.f32 %v1848_v39, %v1825_v2  ;;  %3887 = vmatprep.subr.bf16.mxu1 %v21890_v20  ;;  %4040 = vmatprep.subr.bf16.mxu0 %v21893_v18  ;;  %v1807_v30 = vpop.f32.mrb[47].mxu0  ;;  %v21902_v39 = vld [vmem:[#allocation7 + $0xa7c] ss:$20 sps:$4 sm:$0xff]   ;;  %v21905_v20 = vld [vmem:[#allocation7 + $0xa84] ss:$20 sps:$4 sm:$0xff]   ;;  %v2547_v2 = vshll.u32 %v24899_v55, 16 }
 0x282   : > { %v1876_v38 = vadd.f32 %v24863_v42, %v1826_v31  ;;  %v24923_v42 = vor.u32 %v2556_v52, %v2494_v17  ;;  %v21900_v8 = vld [vmem:[#allocation7 + $0xa78] ss:$20 sps:$4 sm:$0xff]   ;;  %v24938_v5 = vrot.slane %v2485_v29, 1  ;;  %v24942_v52 = vrot.slane %v2487_v35, 2  ;;  %v21903_v51 = vld [vmem:[#allocation7 + $0xa80] ss:$20 sps:$4 sm:$0xff]  }
 0x283   : > { %v1893_v44 = vmax.f32 %v1875_v50, 0.0  ;;  %3888 = vmatpush1.bf16.msra.mxu1 %v21888_v15  ;;  %4041 = vmatpush1.bf16.msra.mxu0 %v21891_v21  ;;  %v24950_v33 = vsel %vm545_vm1, %v2526_v36, %v24918_v41  ;;  %v21908_v15 = vld [vmem:[#allocation7 + $0xaa4] ss:$20 sps:$4 sm:$0xff]   ;;  %v21911_v21 = vld [vmem:[#allocation7 + $0xaac] ss:$20 sps:$4 sm:$0xff]   ;;  %v26183_v35 = vshrl.u32 %v24892_v62, 16 }
 0x284   : > { %v1894_v18 = vmax.f32 %v1876_v38, 0.0  ;;  %3889 = vmatprep.subr.bf16.mxu1 %v21896_v28  ;;  %4042 = vmatprep.subr.bf16.mxu0 %v21899_v37  ;;  %v26184_v50 = vshll.u32 %v24892_v62, 16  ;;  %v21906_v30 = vld [vmem:[#allocation7 + $0xaa0] ss:$20 sps:$4 sm:$0xff]   ;;  %v24970_v36 = vrot.slane %v26180_v56, 1 }
 0x285   : > { %v24933_v57 = vpack.c.bf16 %v1893_v44, %v1893_v44  ;;  %v24974_v44 = vrot.slane %v2547_v2, 2  ;;  %v21917_v37 = vld [vmem:[#allocation7 + $0xad4] ss:$20 sps:$4 sm:$0xff]  }
 0x286   : > { %v24944_v17 = vpack.c.bf16 %v1894_v18, %v1894_v18  ;;  %3877 = vmatmul.mubr.bf16.gmra.mrb[28].mxu1 %v24923_v42  ;;  %4030 = vmatmul.mubr.bf16.gmra.mrb[52].mxu0 %v24923_v42  ;;  %v21909_v18 = vld [vmem:[#allocation7 + $0xaa8] ss:$20 sps:$4 sm:$0xff]  }
 0x287   : > { %3890 = vmatpush1.bf16.msra.mxu1 %v21894_v54  ;;  %4043 = vmatpush1.bf16.msra.mxu0 %v21897_v4  ;;  %v26179_v31 = vshll.u32 %v24933_v57, 16  ;;  %v26178_v28 = vshrl.u32 %v24933_v57, 16  ;;  %v21912_v56 = vld [vmem:[#allocation7 + $0xac8] ss:$20 sps:$4 sm:$0xff]  }
 0x288   : > { %26236 = vst [vmem:[#allocation38_spill] sm:$0xff] %v24944_v17  ;;  %3917 = vmatprep.mubr.bf16.mxu1 %v24950_v33  ;;  %4070 = vmatprep.mubr.bf16.mxu0 %v24950_v33  ;;  %v26185_v46 = vshll.u32 %v24944_v17, 16  ;;  %v26182_v54 = vshrl.u32 %v24944_v17, 16 }
 0x289   : > { %3891 = vmatprep.subr.bf16.mxu1 %v21902_v39  ;;  %4044 = vmatprep.subr.bf16.mxu0 %v21905_v20  ;;  %v8346_v38 = vrot.slane %v26178_v28, 1  ;;  %v8347_v4 = vrot.slane %v26179_v31, 2  ;;  %v24984_v28 = vrot.slane %v26183_v35, 1  ;;  %v24988_v31 = vrot.slane %v26184_v50, 2  ;;  %v21926_v35 = vld [vmem:[#allocation7 + $0xb1c] ss:$20 sps:$4 sm:$0xff]  }
 0x28a   : > { %v8354_v39 = vrot.slane %v26185_v46, 2  ;;  %v8353_v20 = vrot.slane %v26182_v54, 1  ;;  %v21920_v54 = vld [vmem:[#allocation7 + $0xaf4] ss:$20 sps:$4 sm:$0xff]   ;;  %v21929_v50 = vld [vmem:[#allocation7 + $0xb24] ss:$20 sps:$4 sm:$0xff]  }
 0x28b   : > { %3892 = vmatpush1.bf16.msra.mxu1 %v21900_v8  ;;  %4045 = vmatpush1.bf16.msra.mxu0 %v21903_v51  ;;  %v24980_v29 = vor.u32 %v8347_v4, %v8346_v38  ;;  %v21923_v38 = vld [vmem:[#allocation7 + $0xafc] ss:$20 sps:$4 sm:$0xff]   ;;  %v21924_v8 = vld [vmem:[#allocation7 + $0xb18] ss:$20 sps:$4 sm:$0xff]  }
 0x28c   : > { %3893 = vmatprep.subr.bf16.mxu1 %v21908_v15  ;;  %4046 = vmatprep.subr.bf16.mxu0 %v21911_v21  ;;  %v24992_v51 = vor.u32 %v8354_v39, %v8353_v20  ;;  %v21918_v15 = vld [vmem:[#allocation7 + $0xaf0] ss:$20 sps:$4 sm:$0xff]   ;;  %v21921_v21 = vld [vmem:[#allocation7 + $0xaf8] ss:$20 sps:$4 sm:$0xff]   ;;  %v21927_v39 = vld [vmem:[#allocation7 + $0xb20] ss:$20 sps:$4 sm:$0xff]  }
 0x28d   : > { %v21932_v20 = vld [vmem:[#allocation7 + $0xb44] ss:$20 sps:$4 sm:$0xff]   ;;  %v21935_v46 = vld [vmem:[#allocation7 + $0xb4c] ss:$20 sps:$4 sm:$0xff]  }
 0x28e   : > { %v21983_v4 = vld [vmem:[#allocation7 + $0xc8c] ss:$20 sps:$4 sm:$0xff]  }
 0x28f   : > { %3894 = vmatpush1.bf16.msra.mxu1 %v21906_v30  ;;  %4047 = vmatpush1.bf16.msra.mxu0 %v21909_v18  ;;  %v21930_v30 = vld [vmem:[#allocation7 + $0xb40] ss:$20 sps:$4 sm:$0xff]   ;;  %v21933_v18 = vld [vmem:[#allocation7 + $0xb48] ss:$20 sps:$4 sm:$0xff]  }
 0x290   : > { %3895 = vmatprep.subr.bf16.mxu1 %v21914_v3  ;;  %4048 = vmatprep.subr.bf16.mxu0 %v21917_v37  ;;  %v21938_v3 = vld [vmem:[#allocation7 + $0xb6c] ss:$20 sps:$4 sm:$0xff]   ;;  %v21941_v37 = vld [vmem:[#allocation7 + $0xb74] ss:$20 sps:$4 sm:$0xff]  }
 0x293   : > { %3896 = vmatpush1.bf16.msra.mxu1 %v21912_v56  ;;  %4049 = vmatpush1.bf16.msra.mxu0 %v21915_v12  ;;  %v21936_v56 = vld [vmem:[#allocation7 + $0xb68] ss:$20 sps:$4 sm:$0xff]   ;;  %v21939_v12 = vld [vmem:[#allocation7 + $0xb70] ss:$20 sps:$4 sm:$0xff]  }
 0x294   : > { %3897 = vmatprep.subr.bf16.mxu1 %v21920_v54  ;;  %4050 = vmatprep.subr.bf16.mxu0 %v21923_v38  ;;  %v21944_v54 = vld [vmem:[#allocation7 + $0xb94] ss:$20 sps:$4 sm:$0xff]   ;;  %v21947_v38 = vld [vmem:[#allocation7 + $0xb9c] ss:$20 sps:$4 sm:$0xff]  }
 0x297   : > { %3898 = vmatpush1.bf16.msra.mxu1 %v21918_v15  ;;  %4051 = vmatpush1.bf16.msra.mxu0 %v21921_v21  ;;  %v21942_v15 = vld [vmem:[#allocation7 + $0xb90] ss:$20 sps:$4 sm:$0xff]   ;;  %v21945_v21 = vld [vmem:[#allocation7 + $0xb98] ss:$20 sps:$4 sm:$0xff]  }
 0x298   : > { %3899 = vmatprep.subr.bf16.mxu1 %v21926_v35  ;;  %4052 = vmatprep.subr.bf16.mxu0 %v21929_v50  ;;  %v21950_v35 = vld [vmem:[#allocation7 + $0xbbc] ss:$20 sps:$4 sm:$0xff]   ;;  %v21953_v50 = vld [vmem:[#allocation7 + $0xbc4] ss:$20 sps:$4 sm:$0xff]  }
 0x29b   : > { %3900 = vmatpush1.bf16.msra.mxu1 %v21924_v8  ;;  %4053 = vmatpush1.bf16.msra.mxu0 %v21927_v39  ;;  %v21948_v8 = vld [vmem:[#allocation7 + $0xbb8] ss:$20 sps:$4 sm:$0xff]   ;;  %v21951_v39 = vld [vmem:[#allocation7 + $0xbc0] ss:$20 sps:$4 sm:$0xff]  }
 0x29c   : > { %3901 = vmatprep.subr.bf16.mxu1 %v21932_v20  ;;  %4054 = vmatprep.subr.bf16.mxu0 %v21935_v46  ;;  %v21956_v46 = vld [vmem:[#allocation7 + $0xbe4] ss:$20 sps:$4 sm:$0xff]   ;;  %v21959_v20 = vld [vmem:[#allocation7 + $0xbec] ss:$20 sps:$4 sm:$0xff]  }
 0x29f   : > { %3902 = vmatpush1.bf16.msra.mxu1 %v21930_v30  ;;  %4055 = vmatpush1.bf16.msra.mxu0 %v21933_v18  ;;  %v21954_v30 = vld [vmem:[#allocation7 + $0xbe0] ss:$20 sps:$4 sm:$0xff]   ;;  %v21957_v18 = vld [vmem:[#allocation7 + $0xbe8] ss:$20 sps:$4 sm:$0xff]  }
 0x2a0   : > { %3903 = vmatprep.subr.bf16.mxu1 %v21938_v3  ;;  %4056 = vmatprep.subr.bf16.mxu0 %v21941_v37  ;;  %v21962_v3 = vld [vmem:[#allocation7 + $0xc0c] ss:$20 sps:$4 sm:$0xff]   ;;  %v21965_v37 = vld [vmem:[#allocation7 + $0xc14] ss:$20 sps:$4 sm:$0xff]  }
 0x2a3   : > { %3904 = vmatpush1.bf16.msra.mxu1 %v21936_v56  ;;  %4057 = vmatpush1.bf16.msra.mxu0 %v21939_v12  ;;  %v21960_v56 = vld [vmem:[#allocation7 + $0xc08] ss:$20 sps:$4 sm:$0xff]   ;;  %v21963_v12 = vld [vmem:[#allocation7 + $0xc10] ss:$20 sps:$4 sm:$0xff]  }
 0x2a4   : > { %3905 = vmatprep.subr.bf16.mxu1 %v21944_v54  ;;  %4058 = vmatprep.subr.bf16.mxu0 %v21947_v38  ;;  %v21968_v54 = vld [vmem:[#allocation7 + $0xc34] ss:$20 sps:$4 sm:$0xff]   ;;  %v21971_v38 = vld [vmem:[#allocation7 + $0xc3c] ss:$20 sps:$4 sm:$0xff]  }
 0x2a7   : > { %3906 = vmatpush1.bf16.msra.mxu1 %v21942_v15  ;;  %4059 = vmatpush1.bf16.msra.mxu0 %v21945_v21  ;;  %v21966_v15 = vld [vmem:[#allocation7 + $0xc30] ss:$20 sps:$4 sm:$0xff]   ;;  %v21969_v21 = vld [vmem:[#allocation7 + $0xc38] ss:$20 sps:$4 sm:$0xff]  }
 0x2a8   : > { %3907 = vmatprep.subr.bf16.mxu1 %v21950_v35  ;;  %4060 = vmatprep.subr.bf16.mxu0 %v21953_v50  ;;  %v21974_v35 = vld [vmem:[#allocation7 + $0xc5c] ss:$20 sps:$4 sm:$0xff]   ;;  %v21977_v50 = vld [vmem:[#allocation7 + $0xc64] ss:$20 sps:$4 sm:$0xff]  }
 0x2ab   : > { %3908 = vmatpush1.bf16.msra.mxu1 %v21948_v8  ;;  %4061 = vmatpush1.bf16.msra.mxu0 %v21951_v39  ;;  %v21972_v8 = vld [vmem:[#allocation7 + $0xc58] ss:$20 sps:$4 sm:$0xff]   ;;  %v21975_v39 = vld [vmem:[#allocation7 + $0xc60] ss:$20 sps:$4 sm:$0xff]  }
 0x2ac   : > { %3909 = vmatprep.subr.bf16.mxu1 %v21956_v46  ;;  %4062 = vmatprep.subr.bf16.mxu0 %v21959_v20  ;;  %v2513_v46 = vrot.slane %v2511_v22, 1  ;;  %v21980_v20 = vld [vmem:[#allocation7 + $0xc84] ss:$20 sps:$4 sm:$0xff]  }
 0x2af   : > { %3910 = vmatpush1.bf16.msra.mxu1 %v21954_v30  ;;  %4063 = vmatpush1.bf16.msra.mxu0 %v21957_v18  ;;  %v2514_v30 = vor.u32 %v2513_v46, %v2509_v13  ;;  %v2518_v18 = vrot.slane %v2516_v11, 1  ;;  %v21984_v11 = vld [vmem:[#allocation7 + $0xca8] ss:$20 sps:$4 sm:$0xff]   ;;  %v21987_v13 = vld [vmem:[#allocation7 + $0xcb0] ss:$20 sps:$4 sm:$0xff]  }
 0x2b0   : > { %3911 = vmatprep.subr.bf16.mxu1 %v21962_v3  ;;  %4064 = vmatprep.subr.bf16.mxu0 %v21965_v37  ;;  %v21978_v3 = vld [vmem:[#allocation7 + $0xc80] ss:$20 sps:$4 sm:$0xff]   ;;  %v21981_v37 = vld [vmem:[#allocation7 + $0xc88] ss:$20 sps:$4 sm:$0xff]  }
 0x2b1   : > { %v25003_v22 = vsel %vm545_vm1, %v2514_v30, %v2518_v18 }
 0x2b3   : > { %3912 = vmatpush1.bf16.msra.mxu1 %v21960_v56  ;;  %4065 = vmatpush1.bf16.msra.mxu0 %v21963_v12  ;;  %v21986_v56 = vld [vmem:[#allocation7 + $0xcac] ss:$20 sps:$4 sm:$0xff]   ;;  %v21989_v12 = vld [vmem:[#allocation7 + $0xcb4] ss:$20 sps:$4 sm:$0xff]  }
 0x2b4   : > { %3913 = vmatprep.subr.bf16.mxu1 %v21968_v54  ;;  %4066 = vmatprep.subr.bf16.mxu0 %v21971_v38  ;;  %v25008_v54 = vor.u32 %v2565_v16, %v24918_v41  ;;  %v21992_v38 = vld [vmem:[#allocation7 + $0xcd4] ss:$20 sps:$4 sm:$0xff]   ;;  %v21990_v16 = vld [vmem:[#allocation7 + $0xcd0] ss:$20 sps:$4 sm:$0xff]   ;;  %v21993_v41 = vld [vmem:[#allocation7 + $0xcd8] ss:$20 sps:$4 sm:$0xff]  }
 0x2b7   : > { %3914 = vmatpush1.bf16.msra.mxu1 %v21966_v15  ;;  %4067 = vmatpush1.bf16.msra.mxu0 %v21969_v21  ;;  %v21995_v15 = vld [vmem:[#allocation7 + $0xcdc] ss:$20 sps:$4 sm:$0xff]   ;;  %v26237_v21 = vshll.u32 %v24944_v17, 16 }
 0x2b8   : > { %3915 = vmatprep.subr.bf16.mxu1 %v21974_v35  ;;  %4068 = vmatprep.subr.bf16.mxu0 %v21977_v50  ;;  %v21998_v50 = vld [vmem:[#allocation7 + $0xcfc] ss:$20 sps:$4 sm:$0xff]  }
 0x2b9   : > { %v25018_v35 = vrot.slane %v26237_v21, 1  ;;  %v22019_v21 = vld [vmem:[#allocation7 + $0xd7c] ss:$20 sps:$4 sm:$0xff]  }
 0x2bb   : > { %3916 = vmatpush1.bf16.msra.mxu1 %v21972_v8  ;;  %4069 = vmatpush1.bf16.msra.mxu0 %v21975_v39  ;;  %v22001_v8 = vld [vmem:[#allocation7 + $0xd04] ss:$20 sps:$4 sm:$0xff]   ;;  %v26238_v39 = vshrl.u32 %v24802_v6, 16 }
 0x2bc   : > { %3936 = vmatprep.subr.bf16.mxu1 %v21980_v20  ;;  %4089 = vmatprep.subr.bf16.mxu0 %v21983_v4  ;;  %v2549_v4 = vrot.slane %v2547_v2, 1  ;;  %v26239_v20 = vshrl.u32 %v24899_v55, 16 }
 0x2bd   : > { %v25022_v46 = vor.u32 %v26238_v39, %v2518_v18  ;;  %v22004_v18 = vld [vmem:[#allocation7 + $0xd24] ss:$20 sps:$4 sm:$0xff]  }
 0x2be   : > { %3918 = vmatmul.mubr.bf16.vlgmr.msra.gmra.mrb[24].mxu1 %v25003_v22  ;;  %4071 = vmatmul.mubr.bf16.vlgmr.msra.gmra.mrb[48].mxu0 %v25003_v22  ;;  %v2550_v2 = vor.u32 %v2549_v4, %v26239_v20  ;;  %v22011_v4 = vld [vmem:[#allocation7 + $0xd50] ss:$20 sps:$4 sm:$0xff]   ;;  %v22017_v39 = vld [vmem:[#allocation7 + $0xd78] ss:$20 sps:$4 sm:$0xff]  }
 0x2bf   : > { %3927 = vmatprep.mubr.bf16.mxu1 %v25008_v54  ;;  %3937 = vmatpush1.bf16.msra.mxu1 %v21978_v3  ;;  %v21996_v3 = vld [vmem:[#allocation7 + $0xcf8] ss:$20 sps:$4 sm:$0xff]  }
 0x2c0   : > { %4080 = vmatprep.mubr.bf16.mxu0 %v25008_v54  ;;  %4090 = vmatpush1.bf16.msra.mxu0 %v21981_v37  ;;  %v25030_v30 = vsel %vm545_vm1, %v2550_v2, %v25018_v35  ;;  %v21999_v37 = vld [vmem:[#allocation7 + $0xd00] ss:$20 sps:$4 sm:$0xff]   ;;  %v22020_v20 = vld [vmem:[#allocation7 + $0xd98] ss:$20 sps:$4 sm:$0xff]  }
 0x2c1   : > { %3938 = vmatprep.subr.bf16.mxu1 %v21986_v56  ;;  %4091 = vmatprep.subr.bf16.mxu0 %v21989_v12  ;;  %v22007_v56 = vld [vmem:[#allocation7 + $0xd2c] ss:$20 sps:$4 sm:$0xff]  }
 0x2c2   : > { %v22002_v12 = vld [vmem:[#allocation7 + $0xd20] ss:$20 sps:$4 sm:$0xff]  }
 0x2c3   : > { %3939 = vmatpush1.bf16.msra.mxu1 %v21984_v11  ;;  %v22005_v11 = vld [vmem:[#allocation7 + $0xd28] ss:$20 sps:$4 sm:$0xff]   ;;  %v22023_v2 = vld [vmem:[#allocation7 + $0xda0] ss:$20 sps:$4 sm:$0xff]  }
 0x2c4   : > { %4092 = vmatpush1.bf16.msra.mxu0 %v21987_v13  ;;  %3940 = vmatprep.subr.bf16.mxu1 %v21992_v38  ;;  %v22010_v13 = vld [vmem:[#allocation7 + $0xd4c] ss:$20 sps:$4 sm:$0xff]   ;;  %v22013_v38 = vld [vmem:[#allocation7 + $0xd54] ss:$20 sps:$4 sm:$0xff]  }
 0x2c5   : > { %4093 = vmatprep.subr.bf16.mxu0 %v21995_v15  ;;  %v22008_v15 = vld [vmem:[#allocation7 + $0xd48] ss:$20 sps:$4 sm:$0xff]  }
 0x2c6   : > { %3928 = vmatmul.mubr.bf16.gmra.mrb[32].mxu1 %v25022_v46  ;;  %4081 = vmatmul.mubr.bf16.gmra.mrb[56].mxu0 %v25022_v46 }
 0x2c7   : > { %3941 = vmatpush1.bf16.msra.mxu1 %v21990_v16  ;;  %3968 = vmatprep.mubr.bf16.mxu1 %v25030_v30  ;;  %v22016_v16 = vld [vmem:[#allocation7 + $0xd74] ss:$20 sps:$4 sm:$0xff]  }
 0x2c8   : > { %4094 = vmatpush1.bf16.msra.mxu0 %v21993_v41  ;;  %4121 = vmatprep.mubr.bf16.mxu0 %v25030_v30  ;;  %v22014_v41 = vld [vmem:[#allocation7 + $0xd70] ss:$20 sps:$4 sm:$0xff]  }
 0x2c9   : > { %3942 = vmatprep.subr.bf16.mxu1 %v21998_v50  ;;  %4095 = vmatprep.subr.bf16.mxu0 %v22001_v8  ;;  %v22022_v50 = vld [vmem:[#allocation7 + $0xd9c] ss:$20 sps:$4 sm:$0xff]   ;;  %v22025_v8 = vld [vmem:[#allocation7 + $0xda4] ss:$20 sps:$4 sm:$0xff]  }
 0x2cb   : > { %3943 = vmatpush1.bf16.msra.mxu1 %v21996_v3  ;;  %v22028_v3 = vld [vmem:[#allocation7 + $0xdc4] ss:$20 sps:$4 sm:$0xff]  }
 0x2cc   : > { %4096 = vmatpush1.bf16.msra.mxu0 %v21999_v37  ;;  %3944 = vmatprep.subr.bf16.mxu1 %v22004_v18  ;;  %v22031_v37 = vld [vmem:[#allocation7 + $0xdcc] ss:$20 sps:$4 sm:$0xff]  }
 0x2cd   : > { %4097 = vmatprep.subr.bf16.mxu0 %v22007_v56  ;;  %v22026_v18 = vld [vmem:[#allocation7 + $0xdc0] ss:$20 sps:$4 sm:$0xff]   ;;  %v22029_v56 = vld [vmem:[#allocation7 + $0xdc8] ss:$20 sps:$4 sm:$0xff]  }
 0x2cf   : > { %3945 = vmatpush1.bf16.msra.mxu1 %v22002_v12  ;;  %v22034_v12 = vld [vmem:[#allocation7 + $0xdec] ss:$20 sps:$4 sm:$0xff]  }
 0x2d0   : > { %4098 = vmatpush1.bf16.msra.mxu0 %v22005_v11  ;;  %3946 = vmatprep.subr.bf16.mxu1 %v22010_v13  ;;  %v22037_v11 = vld [vmem:[#allocation7 + $0xdf4] ss:$20 sps:$4 sm:$0xff]  }
 0x2d1   : > { %4099 = vmatprep.subr.bf16.mxu0 %v22013_v38  ;;  %v22032_v13 = vld [vmem:[#allocation7 + $0xde8] ss:$20 sps:$4 sm:$0xff]   ;;  %v22035_v38 = vld [vmem:[#allocation7 + $0xdf0] ss:$20 sps:$4 sm:$0xff]  }
 0x2d3   : > { %3947 = vmatpush1.bf16.msra.mxu1 %v22008_v15  ;;  %v22040_v15 = vld [vmem:[#allocation7 + $0xe14] ss:$20 sps:$4 sm:$0xff]  }
 0x2d4   : > { %4100 = vmatpush1.bf16.msra.mxu0 %v22011_v4  ;;  %3948 = vmatprep.subr.bf16.mxu1 %v22016_v16  ;;  %v22043_v4 = vld [vmem:[#allocation7 + $0xe1c] ss:$20 sps:$4 sm:$0xff]  }
 0x2d5   : > { %4101 = vmatprep.subr.bf16.mxu0 %v22019_v21  ;;  %v22038_v16 = vld [vmem:[#allocation7 + $0xe10] ss:$20 sps:$4 sm:$0xff]   ;;  %v22041_v21 = vld [vmem:[#allocation7 + $0xe18] ss:$20 sps:$4 sm:$0xff]  }
 0x2d7   : > { %3949 = vmatpush1.bf16.msra.mxu1 %v22014_v41  ;;  %v22046_v41 = vld [vmem:[#allocation7 + $0xe3c] ss:$20 sps:$4 sm:$0xff]  }
 0x2d8   : > { %4102 = vmatpush1.bf16.msra.mxu0 %v22017_v39  ;;  %3950 = vmatprep.subr.bf16.mxu1 %v22022_v50  ;;  %v22049_v39 = vld [vmem:[#allocation7 + $0xe44] ss:$20 sps:$4 sm:$0xff]  }
 0x2d9   : > { %4103 = vmatprep.subr.bf16.mxu0 %v22025_v8  ;;  %v22044_v50 = vld [vmem:[#allocation7 + $0xe38] ss:$20 sps:$4 sm:$0xff]   ;;  %v22047_v8 = vld [vmem:[#allocation7 + $0xe40] ss:$20 sps:$4 sm:$0xff]  }
 0x2db   : > { %3951 = vmatpush1.bf16.msra.mxu1 %v22020_v20  ;;  %v22052_v20 = vld [vmem:[#allocation7 + $0xe64] ss:$20 sps:$4 sm:$0xff]  }
 0x2dc   : > { %4104 = vmatpush1.bf16.msra.mxu0 %v22023_v2  ;;  %3952 = vmatprep.subr.bf16.mxu1 %v22028_v3  ;;  %v22055_v2 = vld [vmem:[#allocation7 + $0xe6c] ss:$20 sps:$4 sm:$0xff]  }
 0x2dd   : > { %4105 = vmatprep.subr.bf16.mxu0 %v22031_v37  ;;  %v22050_v3 = vld [vmem:[#allocation7 + $0xe60] ss:$20 sps:$4 sm:$0xff]   ;;  %v22053_v37 = vld [vmem:[#allocation7 + $0xe68] ss:$20 sps:$4 sm:$0xff]  }
 0x2df   : > { %3953 = vmatpush1.bf16.msra.mxu1 %v22026_v18  ;;  %v22058_v18 = vld [vmem:[#allocation7 + $0xe8c] ss:$20 sps:$4 sm:$0xff]  }
 0x2e0   : > { %4106 = vmatpush1.bf16.msra.mxu0 %v22029_v56  ;;  %3954 = vmatprep.subr.bf16.mxu1 %v22034_v12  ;;  %v22061_v56 = vld [vmem:[#allocation7 + $0xe94] ss:$20 sps:$4 sm:$0xff]  }
 0x2e1   : > { %4107 = vmatprep.subr.bf16.mxu0 %v22037_v11  ;;  %v22056_v12 = vld [vmem:[#allocation7 + $0xe88] ss:$20 sps:$4 sm:$0xff]   ;;  %v22059_v11 = vld [vmem:[#allocation7 + $0xe90] ss:$20 sps:$4 sm:$0xff]  }
 0x2e3   : > { %3955 = vmatpush1.bf16.msra.mxu1 %v22032_v13  ;;  %v22064_v13 = vld [vmem:[#allocation7 + $0xeb4] ss:$20 sps:$4 sm:$0xff]  }
 0x2e4   : > { %4108 = vmatpush1.bf16.msra.mxu0 %v22035_v38  ;;  %3956 = vmatprep.subr.bf16.mxu1 %v22040_v15  ;;  %v22067_v38 = vld [vmem:[#allocation7 + $0xebc] ss:$20 sps:$4 sm:$0xff]  }
 0x2e5   : > { %4109 = vmatprep.subr.bf16.mxu0 %v22043_v4  ;;  %v22062_v15 = vld [vmem:[#allocation7 + $0xeb0] ss:$20 sps:$4 sm:$0xff]   ;;  %v22065_v4 = vld [vmem:[#allocation7 + $0xeb8] ss:$20 sps:$4 sm:$0xff]  }
 0x2e7   : > { %3957 = vmatpush1.bf16.msra.mxu1 %v22038_v16  ;;  %v22070_v16 = vld [vmem:[#allocation7 + $0xedc] ss:$20 sps:$4 sm:$0xff]  }
 0x2e8   : > { %4110 = vmatpush1.bf16.msra.mxu0 %v22041_v21  ;;  %3958 = vmatprep.subr.bf16.mxu1 %v22046_v41  ;;  %v22073_v21 = vld [vmem:[#allocation7 + $0xee4] ss:$20 sps:$4 sm:$0xff]  }
 0x2e9   : > { %4111 = vmatprep.subr.bf16.mxu0 %v22049_v39  ;;  %v22068_v41 = vld [vmem:[#allocation7 + $0xed8] ss:$20 sps:$4 sm:$0xff]   ;;  %v22071_v39 = vld [vmem:[#allocation7 + $0xee0] ss:$20 sps:$4 sm:$0xff]  }
 0x2eb   : > { %3959 = vmatpush1.bf16.msra.mxu1 %v22044_v50  ;;  %v22074_v50 = vld [vmem:[#allocation7 + $0x8d0] ss:$20 sps:$4 sm:$0xff]  }
 0x2ec   : > { %4112 = vmatpush1.bf16.msra.mxu0 %v22047_v8  ;;  %3960 = vmatprep.subr.bf16.mxu1 %v22052_v20  ;;  %v26240_v8 = vshll.u32 %v24892_v62, 16 }
 0x2ed   : > { %4113 = vmatprep.subr.bf16.mxu0 %v22055_v2  ;;  %v22077_v2 = vld [vmem:[#allocation7 + $0xc] ss:$20 sps:$4 sm:$0xff]  }
 0x2ee   : > { %v2537_v20 = vrot.slane %v26240_v8, 1  ;;  %v22085_v8 = vld [vmem:[#allocation7 + $0x58] ss:$20 sps:$4 sm:$0xff]  }
 0x2ef   : > { %3961 = vmatpush1.bf16.msra.mxu1 %v22050_v3  ;;  %v26241_v3 = vshll.u32 %v24933_v57, 16 }
 0x2f0   : > { %4114 = vmatpush1.bf16.msra.mxu0 %v22053_v37  ;;  %3962 = vmatprep.subr.bf16.mxu1 %v22058_v18  ;;  %v22078_v18 = vld [vmem:[#allocation7 + $0x790] ss:$20 sps:$4 sm:$0xff]  }
 0x2f1   : > { %4115 = vmatprep.subr.bf16.mxu0 %v22061_v56  ;;  %v2542_v37 = vrot.slane %v26241_v3, 1  ;;  %v26242_v56 = vshrl.u32 %v24892_v62, 16 }
 0x2f3   : > { %3963 = vmatpush1.bf16.msra.mxu1 %v22056_v12  ;;  %v2538_v12 = vor.u32 %v2537_v20, %v26242_v56  ;;  %v22089_v20 = vld [vmem:[#allocation7 + $0x948] ss:$20 sps:$4 sm:$0xff]   ;;  %v22092_v56 = vld [vmem:[#allocation7 + $0x84] ss:$20 sps:$4 sm:$0xff]  }
 0x2f4   : > { %4116 = vmatpush1.bf16.msra.mxu0 %v22059_v11  ;;  %3964 = vmatprep.subr.bf16.mxu1 %v22064_v13  ;;  %v22075_v11 = vld [vmem:[#allocation7 + $0x8] ss:$20 sps:$4 sm:$0xff]   ;;  %v22079_v13 = vld [vmem:[#allocation7 + $0x8f8] ss:$20 sps:$4 sm:$0xff]  }
 0x2f5   : > { %4117 = vmatprep.subr.bf16.mxu0 %v22067_v38  ;;  %v25041_v38 = vsel %vm545_vm1, %v2538_v12, %v2542_v37  ;;  %v22093_v12 = vld [vmem:[#allocation7 + $0x808] ss:$20 sps:$4 sm:$0xff]  }
 0x2f7   : > { %3965 = vmatpush1.bf16.msra.mxu1 %v22062_v15  ;;  %v26243_v15 = vshrl.u32 %v24944_v17, 16 }
 0x2f8   : > { %4118 = vmatpush1.bf16.msra.mxu0 %v22065_v4  ;;  %3966 = vmatprep.subr.bf16.mxu1 %v22070_v16  ;;  %v22082_v16 = vld [vmem:[#allocation7 + $0x34] ss:$20 sps:$4 sm:$0xff]  }
 0x2f9   : > { %4119 = vmatprep.subr.bf16.mxu0 %v22073_v21  ;;  %v25046_v4 = vor.u32 %v26243_v15, %v25018_v35  ;;  %v22080_v21 = vld [vmem:[#allocation7 + $0x30] ss:$20 sps:$4 sm:$0xff]   ;;  %v22088_v35 = vld [vmem:[#allocation7 + $0x7e0] ss:$20 sps:$4 sm:$0xff]  }
 0x2fa   : > { %v22098_v15 = vld [vmem:[#allocation7 + $0x830] ss:$20 sps:$4 sm:$0xff]  }
 0x2fb   : > { %3967 = vmatpush1.bf16.msra.mxu1 %v22068_v41  ;;  %v22083_v41 = vld [vmem:[#allocation7 + $0x7b8] ss:$20 sps:$4 sm:$0xff]  }
 0x2fc   : > { %4120 = vmatpush1.bf16.msra.mxu0 %v22071_v39  ;;  %20641 = vmatprep.subr.bf16.mxu1 %v22074_v50  ;;  %v22084_v39 = vld [vmem:[#allocation7 + $0x920] ss:$20 sps:$4 sm:$0xff]   ;;  %v22087_v50 = vld [vmem:[#allocation7 + $0x5c] ss:$20 sps:$4 sm:$0xff]  }
 0x2fd   : > { %5685 = vmatprep.subr.bf16.mxu0 %v22077_v2  ;;  %v26244_v2 = vshrl.u32 %v24933_v57, 16 }
 0x2fe   : > { %3969 = vmatmul.mubr.bf16.vlgmr.msra.gmra.mrb[24].mxu1 %v25041_v38 }
 0x2ff   : > { %4122 = vmatmul.mubr.bf16.vlgmr.msra.gmra.mrb[48].mxu0 %v25041_v38  ;;  %3978 = vmatprep.mubr.bf16.mxu1 %v25046_v4  ;;  %v25054_v3 = vor.u32 %v26244_v2, %v2542_v37  ;;  %v22097_v37 = vld [vmem:[#allocation7 + $0xac] ss:$20 sps:$4 sm:$0xff]   ;;  %v22112_v2 = vld [vmem:[#allocation7 + $0x124] ss:$20 sps:$4 sm:$0xff]  }
 0x300   : > { %4131 = vmatprep.mubr.bf16.mxu0 %v25046_v4  ;;  %20642 = vmatpush3.bf16.msra.mxu1 %v22078_v18  ;;  %v22090_v18 = vld [vmem:[#allocation7 + $0x80] ss:$20 sps:$4 sm:$0xff]  }
 0x301   : > { %5686 = vmatpush1.bf16.msra.mxu0 %v22075_v11  ;;  %20643 = vmatprep.subr.bf16.mxu1 %v22079_v13  ;;  %v22094_v11 = vld [vmem:[#allocation7 + $0x970] ss:$20 sps:$4 sm:$0xff]   ;;  %v22095_v13 = vld [vmem:[#allocation7 + $0xa8] ss:$20 sps:$4 sm:$0xff]  }
 0x302   : > { %5687 = vmatprep.subr.bf16.mxu0 %v22082_v16  ;;  %v22099_v16 = vld [vmem:[#allocation7 + $0x998] ss:$20 sps:$4 sm:$0xff]  }
 0x304   : > { %20644 = vmatpush3.bf16.msra.mxu1 %v22083_v41  ;;  %v22103_v41 = vld [vmem:[#allocation7 + $0x858] ss:$20 sps:$4 sm:$0xff]  }
 0x305   : > { %5688 = vmatpush1.bf16.msra.mxu0 %v22080_v21  ;;  %20645 = vmatprep.subr.bf16.mxu1 %v22084_v39  ;;  %v22102_v21 = vld [vmem:[#allocation7 + $0xd4] ss:$20 sps:$4 sm:$0xff]  }
 0x306   : > { %3979 = vmatmul.mubr.bf16.gmra.mrb[36].mxu1 %v25054_v3  ;;  %5689 = vmatprep.subr.bf16.mxu0 %v22087_v50  ;;  %v22104_v39 = vld [vmem:[#allocation7 + $0x9c0] ss:$20 sps:$4 sm:$0xff]   ;;  %v22107_v50 = vld [vmem:[#allocation7 + $0xfc] ss:$20 sps:$4 sm:$0xff]  }
 0x307   : > { %4132 = vmatmul.mubr.bf16.gmra.mrb[60].mxu0 %v25054_v3  ;;  %4172 = vmatprep.mubr.bf16.mxu1 %v24888_v0  ;;  %v22100_v0 = vld [vmem:[#allocation7 + $0xd0] ss:$20 sps:$4 sm:$0xff]  }
 0x308   : > { %20646 = vmatpush3.bf16.msra.mxu1 %v22088_v35  ;;  %5717 = vmatprep.mubr.bf16.mxu0 %v24850_v1  ;;  %v22105_v35 = vld [vmem:[#allocation7 + $0xf8] ss:$20 sps:$4 sm:$0xff]  }
 0x309   : > { %5690 = vmatpush1.bf16.msra.mxu0 %v22085_v8  ;;  %20647 = vmatprep.subr.bf16.mxu1 %v22089_v20  ;;  %v22108_v8 = vld [vmem:[#allocation7 + $0x880] ss:$20 sps:$4 sm:$0xff]   ;;  %v22109_v20 = vld [vmem:[#allocation7 + $0x9e8] ss:$20 sps:$4 sm:$0xff]  }
 0x30a   : > { %5691 = vmatprep.subr.bf16.mxu0 %v22092_v56  ;;  %v22113_v56 = vld [vmem:[#allocation7 + $0x8a8] ss:$20 sps:$4 sm:$0xff]  }
 0x30c   : > { %20648 = vmatpush3.bf16.msra.mxu1 %v22093_v12  ;;  %v22114_v12 = vld [vmem:[#allocation7 + $0xb50] ss:$20 sps:$4 sm:$0xff]  }
 0x30d   : > { %5692 = vmatpush1.bf16.msra.mxu0 %v22090_v18  ;;  %20649 = vmatprep.subr.bf16.mxu1 %v22094_v11  ;;  %v22110_v18 = vld [vmem:[#allocation7 + $0x120] ss:$20 sps:$4 sm:$0xff]  }
 0x30e   : > { %5693 = vmatprep.subr.bf16.mxu0 %v22097_v37  ;;  %v22117_v11 = vld [vmem:[#allocation7 + $0x14c] ss:$20 sps:$4 sm:$0xff]   ;;  %v22115_v37 = vld [vmem:[#allocation7 + $0x148] ss:$20 sps:$4 sm:$0xff]  }
 0x310   : > { %20650 = vmatpush3.bf16.msra.mxu1 %v22098_v15  ;;  %v22119_v15 = vld [vmem:[#allocation7 + $0xb78] ss:$20 sps:$4 sm:$0xff]  }
 0x311   : > { %5694 = vmatpush1.bf16.msra.mxu0 %v22095_v13  ;;  %20651 = vmatprep.subr.bf16.mxu1 %v22099_v16  ;;  %v22118_v13 = vld [vmem:[#allocation7 + $0xa10] ss:$20 sps:$4 sm:$0xff]   ;;  %v22122_v16 = vld [vmem:[#allocation7 + $0x174] ss:$20 sps:$4 sm:$0xff]  }
 0x312   : > { %5695 = vmatprep.subr.bf16.mxu0 %v22102_v21  ;;  %v22120_v21 = vld [vmem:[#allocation7 + $0x170] ss:$20 sps:$4 sm:$0xff]  }
 0x314   : > { %20652 = vmatpush3.bf16.msra.mxu1 %v22103_v41  ;;  %v22123_v41 = vld [vmem:[#allocation7 + $0xa38] ss:$20 sps:$4 sm:$0xff]  }
 0x315   : > { %5696 = vmatpush1.bf16.msra.mxu0 %v22100_v0  ;;  %20653 = vmatprep.subr.bf16.mxu1 %v22104_v39  ;;  %v22124_v0 = vld [vmem:[#allocation7 + $0xba0] ss:$20 sps:$4 sm:$0xff]   ;;  %v22127_v39 = vld [vmem:[#allocation7 + $0x19c] ss:$20 sps:$4 sm:$0xff]  }
 0x316   : > { %5697 = vmatprep.subr.bf16.mxu0 %v22107_v50  ;;  %v22128_v50 = vld [vmem:[#allocation7 + $0xa60] ss:$20 sps:$4 sm:$0xff]  }
 0x318   : > { %20654 = vmatpush3.bf16.msra.mxu1 %v22108_v8  ;;  %v22125_v8 = vld [vmem:[#allocation7 + $0x198] ss:$20 sps:$4 sm:$0xff]  }
 0x319   : > { %5698 = vmatpush1.bf16.msra.mxu0 %v22105_v35  ;;  %20655 = vmatprep.subr.bf16.mxu1 %v22109_v20  ;;  %v22129_v35 = vld [vmem:[#allocation7 + $0xbc8] ss:$20 sps:$4 sm:$0xff]   ;;  %v22132_v20 = vld [vmem:[#allocation7 + $0x1c4] ss:$20 sps:$4 sm:$0xff]  }
 0x31a   : > { %5699 = vmatprep.subr.bf16.mxu0 %v22112_v2  ;;  %v22134_v2 = vld [vmem:[#allocation7 + $0xbf0] ss:$20 sps:$4 sm:$0xff]  }
 0x31c   : > { %20656 = vmatpush3.bf16.msra.mxu1 %v22113_v56  ;;  %v22137_v56 = vld [vmem:[#allocation7 + $0x1ec] ss:$20 sps:$4 sm:$0xff]  }
 0x31d   : > { %5700 = vmatpush1.bf16.msra.mxu0 %v22110_v18  ;;  %20669 = vmatprep.subr.bf16.mxu1 %v22114_v12  ;;  %v22138_v18 = vld [vmem:[#allocation7 + $0xab0] ss:$20 sps:$4 sm:$0xff]   ;;  %v22135_v12 = vld [vmem:[#allocation7 + $0x1e8] ss:$20 sps:$4 sm:$0xff]  }
 0x31e   : > { %5701 = vmatprep.subr.bf16.mxu0 %v22117_v11  ;;  %v22139_v11 = vld [vmem:[#allocation7 + $0xc18] ss:$20 sps:$4 sm:$0xff]  }
 0x31f   : > { %4173 = vmatmul.mubr.bf16.vlgmr.msra.gmra.mrb[40].mxu1 %v24897_v49  ;;  %v22130_v49 = vld [vmem:[#allocation7 + $0x1c0] ss:$20 sps:$4 sm:$0xff]  }
 0x320   : > { %4180 = vmatprep.mubr.bf16.mxu1 %v24890_v32  ;;  %20670 = vmatpush3.bf16.msra.mxu1 %v22118_v13  ;;  %v22133_v32 = vld [vmem:[#allocation7 + $0xa88] ss:$20 sps:$4 sm:$0xff]   ;;  %v22143_v13 = vld [vmem:[#allocation7 + $0xad8] ss:$20 sps:$4 sm:$0xff]  }
 0x321   : > { %5702 = vmatpush1.bf16.msra.mxu0 %v22115_v37  ;;  %20671 = vmatprep.subr.bf16.mxu1 %v22119_v15  ;;  %v22142_v37 = vld [vmem:[#allocation7 + $0x214] ss:$20 sps:$4 sm:$0xff]  }
 0x322   : > { %5703 = vmatprep.subr.bf16.mxu0 %v22122_v16  ;;  %v22144_v15 = vld [vmem:[#allocation7 + $0xc40] ss:$20 sps:$4 sm:$0xff]  }
 0x323   : > { %v22148_v16 = vld [vmem:[#allocation7 + $0xb00] ss:$20 sps:$4 sm:$0xff]  }
 0x324   : > { %20672 = vmatpush3.bf16.msra.mxu1 %v22123_v41  ;;  %v22149_v41 = vld [vmem:[#allocation7 + $0xc68] ss:$20 sps:$4 sm:$0xff]  }
 0x325   : > { %5704 = vmatpush1.bf16.msra.mxu0 %v22120_v21  ;;  %20673 = vmatprep.subr.bf16.mxu1 %v22124_v0  ;;  %v22145_v21 = vld [vmem:[#allocation7 + $0x238] ss:$20 sps:$4 sm:$0xff]  }
 0x326   : > { %5705 = vmatprep.subr.bf16.mxu0 %v22127_v39  ;;  %v22152_v0 = vld [vmem:[#allocation7 + $0x264] ss:$20 sps:$4 sm:$0xff]   ;;  %v22153_v39 = vld [vmem:[#allocation7 + $0xb28] ss:$20 sps:$4 sm:$0xff]  }
 0x327   : > { %4181 = vmatmul.mubr.bf16.gmra.mrb[44].mxu1 %v24923_v42  ;;  %v22140_v42 = vld [vmem:[#allocation7 + $0x210] ss:$20 sps:$4 sm:$0xff]  }
 0x328   : > { %20674 = vmatpush3.bf16.msra.mxu1 %v22128_v50  ;;  %4220 = vmatprep.mubr.bf16.mxu1 %v24950_v33  ;;  %v22147_v33 = vld [vmem:[#allocation7 + $0x23c] ss:$20 sps:$4 sm:$0xff]   ;;  %v22150_v50 = vld [vmem:[#allocation7 + $0x260] ss:$20 sps:$4 sm:$0xff]  }
 0x329   : > { %5706 = vmatpush1.bf16.msra.mxu0 %v22125_v8  ;;  %20675 = vmatprep.subr.bf16.mxu1 %v22129_v35  ;;  %v22154_v8 = vld [vmem:[#allocation7 + $0xdd0] ss:$20 sps:$4 sm:$0xff]   ;;  %v22157_v35 = vld [vmem:[#allocation7 + $0x28c] ss:$20 sps:$4 sm:$0xff]  }
 0x32a   : > { %5707 = vmatprep.subr.bf16.mxu0 %v22132_v20  ;;  %v22158_v20 = vld [vmem:[#allocation7 + $0xc90] ss:$20 sps:$4 sm:$0xff]  }
 0x32c   : > { %20676 = vmatpush3.bf16.msra.mxu1 %v22133_v32  ;;  %v22159_v32 = vld [vmem:[#allocation7 + $0xdf8] ss:$20 sps:$4 sm:$0xff]  }
 0x32d   : > { %5708 = vmatpush1.bf16.msra.mxu0 %v22130_v49  ;;  %20677 = vmatprep.subr.bf16.mxu1 %v22134_v2  ;;  %v22155_v49 = vld [vmem:[#allocation7 + $0x288] ss:$20 sps:$4 sm:$0xff]  }
 0x32e   : > { %5709 = vmatprep.subr.bf16.mxu0 %v22137_v56  ;;  %v22162_v2 = vld [vmem:[#allocation7 + $0x2b4] ss:$20 sps:$4 sm:$0xff]   ;;  %v22163_v56 = vld [vmem:[#allocation7 + $0xcb8] ss:$20 sps:$4 sm:$0xff]  }
 0x330   : > { %20678 = vmatpush3.bf16.msra.mxu1 %v22138_v18  ;;  %v22160_v18 = vld [vmem:[#allocation7 + $0x2b0] ss:$20 sps:$4 sm:$0xff]  }
 0x331   : > { %5710 = vmatpush1.bf16.msra.mxu0 %v22135_v12  ;;  %20679 = vmatprep.subr.bf16.mxu1 %v22139_v11  ;;  %v22164_v12 = vld [vmem:[#allocation7 + $0xe20] ss:$20 sps:$4 sm:$0xff]   ;;  %v22167_v11 = vld [vmem:[#allocation7 + $0x2dc] ss:$20 sps:$4 sm:$0xff]  }
 0x332   : > { %5711 = vmatprep.subr.bf16.mxu0 %v22142_v37  ;;  %v22168_v37 = vld [vmem:[#allocation7 + $0xce0] ss:$20 sps:$4 sm:$0xff]  }
 0x334   : > { %20680 = vmatpush3.bf16.msra.mxu1 %v22143_v13  ;;  %v22169_v13 = vld [vmem:[#allocation7 + $0xe48] ss:$20 sps:$4 sm:$0xff]  }
 0x335   : > { %5712 = vmatpush1.bf16.msra.mxu0 %v22140_v42  ;;  %20681 = vmatprep.subr.bf16.mxu1 %v22144_v15  ;;  %v22173_v42 = vld [vmem:[#allocation7 + $0xd08] ss:$20 sps:$4 sm:$0xff]   ;;  %v22170_v15 = vld [vmem:[#allocation7 + $0x300] ss:$20 sps:$4 sm:$0xff]  }
 0x336   : > { %5713 = vmatprep.subr.bf16.mxu0 %v22147_v33  ;;  %v22174_v33 = vld [vmem:[#allocation7 + $0xe70] ss:$20 sps:$4 sm:$0xff]  }
 0x338   : > { %20682 = vmatpush3.bf16.msra.mxu1 %v22148_v16  ;;  %v22177_v16 = vld [vmem:[#allocation7 + $0x32c] ss:$20 sps:$4 sm:$0xff]  }
 0x339   : > { %5714 = vmatpush1.bf16.msra.mxu0 %v22145_v21  ;;  %20683 = vmatprep.subr.bf16.mxu1 %v22149_v41  ;;  %v22178_v21 = vld [vmem:[#allocation7 + $0xd30] ss:$20 sps:$4 sm:$0xff]   ;;  %v22179_v41 = vld [vmem:[#allocation7 + $0xe98] ss:$20 sps:$4 sm:$0xff]  }
 0x33a   : > { %5715 = vmatprep.subr.bf16.mxu0 %v22152_v0  ;;  %v22182_v0 = vld [vmem:[#allocation7 + $0x354] ss:$20 sps:$4 sm:$0xff]  }
 0x33c   : > { %20684 = vmatpush3.bf16.msra.mxu1 %v22153_v39  ;;  %v22183_v39 = vld [vmem:[#allocation7 + $0xd58] ss:$20 sps:$4 sm:$0xff]  }
 0x33d   : > { %5716 = vmatpush1.bf16.msra.mxu0 %v22150_v50  ;;  %20697 = vmatprep.subr.bf16.mxu1 %v22154_v8  ;;  %v22184_v50 = vld [vmem:[#allocation7 + $0xec0] ss:$20 sps:$4 sm:$0xff]   ;;  %v22187_v8 = vld [vmem:[#allocation7 + $0x37c] ss:$20 sps:$4 sm:$0xff]  }
 0x33e   : > { %5736 = vmatprep.subr.bf16.mxu0 %v22157_v35  ;;  %v22188_v35 = vld [vmem:[#allocation7 + $0xd80] ss:$20 sps:$4 sm:$0xff]  }
 0x33f   : > { %4221 = vmatmul.mubr.bf16.vlgmr.msra.gmra.mrb[48].mxu1 %v25003_v22  ;;  %v22165_v22 = vld [vmem:[#allocation7 + $0x2d8] ss:$20 sps:$4 sm:$0xff]  }
 0x340   : > { %5718 = vmatmul.mubr.bf16.vlgmr.msra.gmra.mrb[48].mxu0 %v24848_v63  ;;  %4228 = vmatprep.mubr.bf16.mxu1 %v25008_v54  ;;  %v22172_v54 = vld [vmem:[#allocation7 + $0x304] ss:$20 sps:$4 sm:$0xff]  }
 0x341   : > { %20698 = vmatpush3.bf16.msra.mxu1 %v22158_v20  ;;  %5727 = vmatprep.mubr.bf16.mxu0 %v24872_v45  ;;  %v22185_v20 = vld [vmem:[#allocation7 + $0x378] ss:$20 sps:$4 sm:$0xff]  }
 0x342   : > { %5737 = vmatpush1.bf16.msra.mxu0 %v22155_v49  ;;  %20699 = vmatprep.subr.bf16.mxu1 %v22159_v32  ;;  %v22189_v49 = vld [vmem:[#allocation7 + $0xee8] ss:$20 sps:$4 sm:$0xff]   ;;  %v22192_v32 = vld [vmem:[#allocation7 + $0x3a4] ss:$20 sps:$4 sm:$0xff]  }
 0x343   : > { %5738 = vmatprep.subr.bf16.mxu0 %v22162_v2  ;;  %v22193_v2 = vld [vmem:[#allocation7 + $0xda8] ss:$20 sps:$4 sm:$0xff]  }
 0x345   : > { %20700 = vmatpush3.bf16.msra.mxu1 %v22163_v56  ;;  %v22190_v56 = vld [vmem:[#allocation7 + $0x3a0] ss:$20 sps:$4 sm:$0xff]  }
 0x346   : > { %5739 = vmatpush1.bf16.msra.mxu0 %v22160_v18  ;;  %20701 = vmatprep.subr.bf16.mxu1 %v22164_v12  ;;  %v22196_v18 = vld [vmem:[#allocation7 + $0x4] ss:$20 sps:$4 sm:$0xff]  }
 0x347   : > { %4229 = vmatmul.mubr.bf16.gmra.mrb[52].mxu1 %v25022_v46  ;;  %5740 = vmatprep.subr.bf16.mxu0 %v22167_v11  ;;  %v22175_v46 = vld [vmem:[#allocation7 + $0x328] ss:$20 sps:$4 sm:$0xff]  }
 0x348   : > { %5728 = vmatmul.mubr.bf16.gmra.mrb[64].mxu0 %v24865_v34  ;;  %4268 = vmatprep.mubr.bf16.mxu1 %v25030_v30  ;;  %v22180_v30 = vld [vmem:[#allocation7 + $0x350] ss:$20 sps:$4 sm:$0xff]  }
 0x349   : > { %20702 = vmatpush3.bf16.msra.mxu1 %v22168_v37  ;;  %5768 = vmatprep.mubr.bf16.mxu0 %v24788_v48 }
 0x34a   : > { %5741 = vmatpush1.bf16.msra.mxu0 %v22165_v22  ;;  %20703 = vmatprep.subr.bf16.mxu1 %v22169_v13 }
 0x34b   : > { %5742 = vmatprep.subr.bf16.mxu0 %v22172_v54 }
 0x34d   : > { %20704 = vmatpush3.bf16.msra.mxu1 %v22173_v42  ;;  %v22194_v42 = vld [vmem:[#allocation7] ss:$20 sps:$4 sm:$0xff]  }
 0x34e   : > { %5743 = vmatpush1.bf16.msra.mxu0 %v22170_v15  ;;  %20705 = vmatprep.subr.bf16.mxu1 %v22174_v33  ;;  %v22199_v15 = vld [vmem:[#allocation7 + $0x3cc] ss:$20 sps:$4 sm:$0xff]  }
 0x34f   : > { %5744 = vmatprep.subr.bf16.mxu0 %v22177_v16 }
 0x351   : > { %20706 = vmatpush3.bf16.msra.mxu1 %v22178_v21  ;;  %v22197_v21 = vld [vmem:[#allocation7 + $0x3c8] ss:$20 sps:$4 sm:$0xff]  }
 0x352   : > { %5745 = vmatpush1.bf16.msra.mxu0 %v22175_v46  ;;  %20707 = vmatprep.subr.bf16.mxu1 %v22179_v41  ;;  %v22202_v46 = vld [vmem:[#allocation7 + $0x2c] ss:$20 sps:$4 sm:$0xff]   ;;  %v22200_v41 = vld [vmem:[#allocation7 + $0x28] ss:$20 sps:$4 sm:$0xff]  }
 0x353   : > { %5746 = vmatprep.subr.bf16.mxu0 %v22182_v0  ;;  %v22205_v0 = vld [vmem:[#allocation7 + $0x3f4] ss:$20 sps:$4 sm:$0xff]  }
 0x355   : > { %20708 = vmatpush3.bf16.msra.mxu1 %v22183_v39  ;;  %v22203_v39 = vld [vmem:[#allocation7 + $0x3f0] ss:$20 sps:$4 sm:$0xff]  }
 0x356   : > { %5747 = vmatpush1.bf16.msra.mxu0 %v22180_v30  ;;  %20709 = vmatprep.subr.bf16.mxu1 %v22184_v50  ;;  %v22208_v30 = vld [vmem:[#allocation7 + $0x54] ss:$20 sps:$4 sm:$0xff]   ;;  %v22206_v50 = vld [vmem:[#allocation7 + $0x50] ss:$20 sps:$4 sm:$0xff]  }
 0x357   : > { %5748 = vmatprep.subr.bf16.mxu0 %v22187_v8  ;;  %v22211_v8 = vld [vmem:[#allocation7 + $0x41c] ss:$20 sps:$4 sm:$0xff]  }
 0x359   : > { %20710 = vmatpush3.bf16.msra.mxu1 %v22188_v35  ;;  %v25072_v12 = vpop.f32.mrb[28].mxu1  ;;  %v25074_v11 = vpop.f32.mrb[52].mxu0  ;;  %v22209_v35 = vld [vmem:[#allocation7 + $0x418] ss:$20 sps:$4 sm:$0xff]  }
 0x35a   : > { %5749 = vmatpush1.bf16.msra.mxu0 %v22185_v20  ;;  %20711 = vmatprep.subr.bf16.mxu1 %v22189_v49  ;;  %v25076_v37 = vpop.f32.mrb[29].mxu1  ;;  %v25078_v22 = vpop.f32.mrb[53].mxu0  ;;  %v22214_v20 = vld [vmem:[#allocation7 + $0x7c] ss:$20 sps:$4 sm:$0xff]   ;;  %v22217_v49 = vld [vmem:[#allocation7 + $0x444] ss:$20 sps:$4 sm:$0xff]  }
 0x35b   : > { %5750 = vmatprep.subr.bf16.mxu0 %v22192_v32  ;;  %v3882_v13 = vpop.f32.mrb[30].mxu1  ;;  %v4035_v54 = vpop.f32.mrb[54].mxu0  ;;  %v22215_v32 = vld [vmem:[#allocation7 + $0x440] ss:$20 sps:$4 sm:$0xff]  }
 0x35c   : > { %v3883_v33 = vpop.f32.mrb[31].mxu1  ;;  %v4036_v16 = vpop.f32.mrb[55].mxu0  ;;  %v22226_v13 = vld [vmem:[#allocation7 + $0xcc] ss:$20 sps:$4 sm:$0xff]   ;;  %v22224_v54 = vld [vmem:[#allocation7 + $0xc8] ss:$20 sps:$4 sm:$0xff]  }
 0x35d   : > { %20712 = vmatpush3.bf16.msra.mxu1 %v22193_v2  ;;  %v22218_v2 = vld [vmem:[#allocation7 + $0xa0] ss:$20 sps:$4 sm:$0xff]   ;;  %v22235_v33 = vld [vmem:[#allocation7 + $0x4bc] ss:$20 sps:$4 sm:$0xff]  }
 0x35e   : > { %5751 = vmatpush1.bf16.msra.mxu0 %v22190_v56  ;;  %5532 = vmatprep.subr.bf16.mxu1 %v22196_v18  ;;  %v22223_v56 = vld [vmem:[#allocation7 + $0x46c] ss:$20 sps:$4 sm:$0xff]   ;;  %v22221_v18 = vld [vmem:[#allocation7 + $0x468] ss:$20 sps:$4 sm:$0xff]   ;;  %v22230_v16 = vld [vmem:[#allocation7 + $0xf0] ss:$20 sps:$4 sm:$0xff]  }
 0x35f   : > { %5752 = vmatprep.subr.bf16.mxu0 %v22199_v15  ;;  %v22232_v15 = vld [vmem:[#allocation7 + $0xf4] ss:$20 sps:$4 sm:$0xff]  }
 0x360   : > { %4269 = vmatmul.mubr.bf16.vlgmr.msra.gmra.mrb[56].mxu1 %v25041_v38  ;;  %v22212_v38 = vld [vmem:[#allocation7 + $0x78] ss:$20 sps:$4 sm:$0xff]  }
 0x361   : > { %4276 = vmatprep.mubr.bf16.mxu1 %v25046_v4  ;;  %5533 = vmatpush1.bf16.msra.mxu1 %v22194_v42  ;;  %v22220_v4 = vld [vmem:[#allocation7 + $0xa4] ss:$20 sps:$4 sm:$0xff]   ;;  %v22229_v42 = vld [vmem:[#allocation7 + $0x494] ss:$20 sps:$4 sm:$0xff]  }
 0x362   : > { %5753 = vmatpush1.bf16.msra.mxu0 %v22197_v21  ;;  %5534 = vmatprep.subr.bf16.mxu1 %v22202_v46  ;;  %v22233_v21 = vld [vmem:[#allocation7 + $0x4b8] ss:$20 sps:$4 sm:$0xff]   ;;  %v22238_v46 = vld [vmem:[#allocation7 + $0x11c] ss:$20 sps:$4 sm:$0xff]  }
 0x363   : > { %5754 = vmatprep.subr.bf16.mxu0 %v22205_v0  ;;  %v22241_v0 = vld [vmem:[#allocation7 + $0x4e4] ss:$20 sps:$4 sm:$0xff]  }
 0x365   : > { %5535 = vmatpush1.bf16.msra.mxu1 %v22200_v41  ;;  %v22236_v41 = vld [vmem:[#allocation7 + $0x118] ss:$20 sps:$4 sm:$0xff]  }
 0x366   : > { %5755 = vmatpush1.bf16.msra.mxu0 %v22203_v39  ;;  %5536 = vmatprep.subr.bf16.mxu1 %v22208_v30  ;;  %v22239_v39 = vld [vmem:[#allocation7 + $0x4e0] ss:$20 sps:$4 sm:$0xff]   ;;  %v22244_v30 = vld [vmem:[#allocation7 + $0x144] ss:$20 sps:$4 sm:$0xff]  }
 0x367   : > { %5756 = vmatprep.subr.bf16.mxu0 %v22211_v8  ;;  %v22242_v8 = vld [vmem:[#allocation7 + $0x140] ss:$20 sps:$4 sm:$0xff]  }
 0x368   : > { %4277 = vmatmul.mubr.bf16.gmra.mrb[60].mxu1 %v25054_v3  ;;  %v22227_v3 = vld [vmem:[#allocation7 + $0x490] ss:$20 sps:$4 sm:$0xff]  }
 0x369   : > { %5537 = vmatpush1.bf16.msra.mxu1 %v22206_v50  ;;  %5564 = vmatprep.mubr.bf16.mxu1 %v24850_v1  ;;  %v22247_v50 = vld [vmem:[#allocation7 + $0x50c] ss:$20 sps:$4 sm:$0xff]  }
 0x36a   : > { %5757 = vmatpush1.bf16.msra.mxu0 %v22209_v35  ;;  %5538 = vmatprep.subr.bf16.mxu1 %v22214_v20  ;;  %v22245_v35 = vld [vmem:[#allocation7 + $0x508] ss:$20 sps:$4 sm:$0xff]  }
 0x36b   : > { %5758 = vmatprep.subr.bf16.mxu0 %v22217_v49  ;;  %v22248_v20 = vld [vmem:[#allocation7 + $0x168] ss:$20 sps:$4 sm:$0xff]   ;;  %v22250_v49 = vld [vmem:[#allocation7 + $0x16c] ss:$20 sps:$4 sm:$0xff]  }
 0x36d   : > { %5539 = vmatpush1.bf16.msra.mxu1 %v22212_v38  ;;  %v22253_v38 = vld [vmem:[#allocation7 + $0x534] ss:$20 sps:$4 sm:$0xff]  }
 0x36e   : > { %5759 = vmatpush1.bf16.msra.mxu0 %v22215_v32  ;;  %5540 = vmatprep.subr.bf16.mxu1 %v22220_v4  ;;  %v22251_v32 = vld [vmem:[#allocation7 + $0x530] ss:$20 sps:$4 sm:$0xff]   ;;  %v22256_v4 = vld [vmem:[#allocation7 + $0x194] ss:$20 sps:$4 sm:$0xff]  }
 0x36f   : > { %5760 = vmatprep.subr.bf16.mxu0 %v22223_v56  ;;  %v22254_v56 = vld [vmem:[#allocation7 + $0x190] ss:$20 sps:$4 sm:$0xff]  }
 0x371   : > { %5541 = vmatpush1.bf16.msra.mxu1 %v22218_v2  ;;  %v22259_v2 = vld [vmem:[#allocation7 + $0x55c] ss:$20 sps:$4 sm:$0xff]  }
 0x372   : > { %5761 = vmatpush1.bf16.msra.mxu0 %v22221_v18  ;;  %5542 = vmatprep.subr.bf16.mxu1 %v22226_v13  ;;  %v22257_v18 = vld [vmem:[#allocation7 + $0x558] ss:$20 sps:$4 sm:$0xff]  }
 0x373   : > { %5762 = vmatprep.subr.bf16.mxu0 %v22229_v42  ;;  %v22260_v13 = vld [vmem:[#allocation7 + $0x1b8] ss:$20 sps:$4 sm:$0xff]  }
 0x374   : > { %v22265_v42 = vld [vmem:[#allocation7 + $0x584] ss:$20 sps:$4 sm:$0xff]  }
 0x375   : > { %5543 = vmatpush1.bf16.msra.mxu1 %v22224_v54  ;;  %v22262_v54 = vld [vmem:[#allocation7 + $0x1bc] ss:$20 sps:$4 sm:$0xff]  }
 0x376   : > { %5763 = vmatpush1.bf16.msra.mxu0 %v22227_v3  ;;  %5544 = vmatprep.subr.bf16.mxu1 %v22232_v15  ;;  %v22263_v3 = vld [vmem:[#allocation7 + $0x580] ss:$20 sps:$4 sm:$0xff]   ;;  %v22268_v15 = vld [vmem:[#allocation7 + $0x1e4] ss:$20 sps:$4 sm:$0xff]  }
 0x377   : > { %5764 = vmatprep.subr.bf16.mxu0 %v22235_v33  ;;  %v22266_v33 = vld [vmem:[#allocation7 + $0x1e0] ss:$20 sps:$4 sm:$0xff]  }
 0x379   : > { %5545 = vmatpush1.bf16.msra.mxu1 %v22230_v16  ;;  %v22271_v16 = vld [vmem:[#allocation7 + $0x5ac] ss:$20 sps:$4 sm:$0xff]  }
 0x37a   : > { %5765 = vmatpush1.bf16.msra.mxu0 %v22233_v21  ;;  %5546 = vmatprep.subr.bf16.mxu1 %v22238_v46  ;;  %v22269_v21 = vld [vmem:[#allocation7 + $0x5a8] ss:$20 sps:$4 sm:$0xff]   ;;  %v22274_v46 = vld [vmem:[#allocation7 + $0x20c] ss:$20 sps:$4 sm:$0xff]  }
 0x37b   : > { %5766 = vmatprep.subr.bf16.mxu0 %v22241_v0  ;;  %v22277_v0 = vld [vmem:[#allocation7 + $0x5d4] ss:$20 sps:$4 sm:$0xff]  }
 0x37d   : > { %5547 = vmatpush1.bf16.msra.mxu1 %v22236_v41  ;;  %v22272_v41 = vld [vmem:[#allocation7 + $0x208] ss:$20 sps:$4 sm:$0xff]  }
 0x37e   : > { %5767 = vmatpush1.bf16.msra.mxu0 %v22239_v39  ;;  %5548 = vmatprep.subr.bf16.mxu1 %v22244_v30  ;;  %v22275_v39 = vld [vmem:[#allocation7 + $0x5d0] ss:$20 sps:$4 sm:$0xff]   ;;  %v22280_v30 = vld [vmem:[#allocation7 + $0x234] ss:$20 sps:$4 sm:$0xff]  }
 0x37f   : > { %5787 = vmatprep.subr.bf16.mxu0 %v22247_v50  ;;  %v22283_v50 = vld [vmem:[#allocation7 + $0x5fc] ss:$20 sps:$4 sm:$0xff]  }
 0x381   : > { %5769 = vmatmul.mubr.bf16.vlgmr.msra.gmra.mrb[48].mxu0 %v24786_v47  ;;  %5549 = vmatpush1.bf16.msra.mxu1 %v22242_v8  ;;  %v22278_v8 = vld [vmem:[#allocation7 + $0x230] ss:$20 sps:$4 sm:$0xff]  }
 0x382   : > { %5778 = vmatprep.mubr.bf16.mxu0 %v24804_v10  ;;  %5788 = vmatpush1.bf16.msra.mxu0 %v22245_v35  ;;  %v22281_v35 = vld [vmem:[#allocation7 + $0x5f8] ss:$20 sps:$4 sm:$0xff]  }
 0x383   : > { %5550 = vmatprep.subr.bf16.mxu1 %v22250_v49  ;;  %5789 = vmatprep.subr.bf16.mxu0 %v22253_v38  ;;  %v22289_v49 = vld [vmem:[#allocation7 + $0x624] ss:$20 sps:$4 sm:$0xff]  }
 0x384   : > { %v22284_v38 = vld [vmem:[#allocation7 + $0x258] ss:$20 sps:$4 sm:$0xff]  }
 0x385   : > { %5551 = vmatpush1.bf16.msra.mxu1 %v22248_v20  ;;  %v22286_v20 = vld [vmem:[#allocation7 + $0x25c] ss:$20 sps:$4 sm:$0xff]  }
 0x386   : > { %5790 = vmatpush1.bf16.msra.mxu0 %v22251_v32  ;;  %5552 = vmatprep.subr.bf16.mxu1 %v22256_v4  ;;  %v22287_v32 = vld [vmem:[#allocation7 + $0x620] ss:$20 sps:$4 sm:$0xff]   ;;  %v22292_v4 = vld [vmem:[#allocation7 + $0x284] ss:$20 sps:$4 sm:$0xff]  }
 0x387   : > { %5791 = vmatprep.subr.bf16.mxu0 %v22259_v2 }
 0x389   : > { %5779 = vmatmul.mubr.bf16.gmra.mrb[68].mxu0 %v24802_v6  ;;  %5553 = vmatpush1.bf16.msra.mxu1 %v22254_v56 }
 0x38a   : > { %5792 = vmatpush1.bf16.msra.mxu0 %v22257_v18  ;;  %5819 = vmatprep.mubr.bf16.mxu0 %v24899_v55  ;;  %v22295_v18 = vld [vmem:[#allocation7 + $0x64c] ss:$20 sps:$4 sm:$0xff]  }
 0x38b   : > { %5554 = vmatprep.subr.bf16.mxu1 %v22262_v54  ;;  %5793 = vmatprep.subr.bf16.mxu0 %v22265_v42 }
 0x38d   : > { %5555 = vmatpush1.bf16.msra.mxu1 %v22260_v13 }
 0x38e   : > { %5794 = vmatpush1.bf16.msra.mxu0 %v22263_v3  ;;  %5556 = vmatprep.subr.bf16.mxu1 %v22268_v15 }
 0x38f   : > { %5795 = vmatprep.subr.bf16.mxu0 %v22271_v16 }
 0x391   : > { %5557 = vmatpush1.bf16.msra.mxu1 %v22266_v33 }
 0x392   : > { %5796 = vmatpush1.bf16.msra.mxu0 %v22269_v21  ;;  %5558 = vmatprep.subr.bf16.mxu1 %v22274_v46 }
 0x393   : > { %5797 = vmatprep.subr.bf16.mxu0 %v22277_v0  ;;  %v22290_v0 = vld [vmem:[#allocation7 + $0x280] ss:$20 sps:$4 sm:$0xff]  }
 0x395   : > { %5559 = vmatpush1.bf16.msra.mxu1 %v22272_v41 }
 0x396   : > { %5798 = vmatpush1.bf16.msra.mxu0 %v22275_v39  ;;  %5560 = vmatprep.subr.bf16.mxu1 %v22280_v30  ;;  %v22298_v39 = vld [vmem:[#allocation7 + $0x2ac] ss:$20 sps:$4 sm:$0xff]   ;;  %v22304_v30 = vld [vmem:[#allocation7 + $0x2d4] ss:$20 sps:$4 sm:$0xff]  }
 0x397   : > { %5799 = vmatprep.subr.bf16.mxu0 %v22283_v50  ;;  %v22302_v50 = vld [vmem:[#allocation7 + $0x2d0] ss:$20 sps:$4 sm:$0xff]  }
 0x399   : > { %5561 = vmatpush1.bf16.msra.mxu1 %v22278_v8  ;;  %v3929_v2 = vpop.f32.mrb[32].mxu1  ;;  %v4082_v56 = vpop.f32.mrb[56].mxu0  ;;  %v22307_v8 = vld [vmem:[#allocation7 + $0x69c] ss:$20 sps:$4 sm:$0xff]  }
 0x39a   : > { %5800 = vmatpush1.bf16.msra.mxu0 %v22281_v35  ;;  %v25089_v13 = vadd.f32 %v3929_v2, %v25072_v12  ;;  %v25092_v54 = vadd.f32 %v4082_v56, %v25074_v11  ;;  %v3931_v42 = vpop.f32.mrb[33].mxu1  ;;  %v4084_v3 = vpop.f32.mrb[57].mxu0  ;;  %5562 = vmatprep.subr.bf16.mxu1 %v22286_v20  ;;  %v22293_v12 = vld [vmem:[#allocation7 + $0x648] ss:$20 sps:$4 sm:$0xff]   ;;  %v22305_v35 = vld [vmem:[#allocation7 + $0x698] ss:$20 sps:$4 sm:$0xff]  }
 0x39b   : > { %v25095_v15 = vadd.f32 %v3931_v42, %v25076_v37  ;;  %v25098_v33 = vadd.f32 %v4084_v3, %v25078_v22  ;;  %5801 = vmatprep.subr.bf16.mxu0 %v22289_v49  ;;  %v3933_v16 = vpop.f32.mrb[34].mxu1  ;;  %v4086_v21 = vpop.f32.mrb[58].mxu0  ;;  %v22301_v11 = vld [vmem:[#allocation7 + $0x674] ss:$20 sps:$4 sm:$0xff]   ;;  %v22299_v22 = vld [vmem:[#allocation7 + $0x670] ss:$20 sps:$4 sm:$0xff]  }
 0x39c   : > { %v3934_v46 = vpop.f32.mrb[35].mxu1  ;;  %v4087_v41 = vpop.f32.mrb[59].mxu0  ;;  %v22296_v37 = vld [vmem:[#allocation7 + $0x2a8] ss:$20 sps:$4 sm:$0xff]   ;;  %v22313_v49 = vld [vmem:[#allocation7 + $0x6c4] ss:$20 sps:$4 sm:$0xff]  }
 0x39d   : > { %5563 = vmatpush1.bf16.msra.mxu1 %v22284_v38  ;;  %v22310_v20 = vld [vmem:[#allocation7 + $0x2fc] ss:$20 sps:$4 sm:$0xff]   ;;  %v22308_v38 = vld [vmem:[#allocation7 + $0x2f8] ss:$20 sps:$4 sm:$0xff]   ;;  %v22314_v2 = vld [vmem:[#allocation7 + $0x320] ss:$20 sps:$4 sm:$0xff]  }
 0x39e   : > { %5802 = vmatpush1.bf16.msra.mxu0 %v22287_v32  ;;  %5583 = vmatprep.subr.bf16.mxu1 %v22292_v4  ;;  %v22311_v32 = vld [vmem:[#allocation7 + $0x6c0] ss:$20 sps:$4 sm:$0xff]   ;;  %v22316_v4 = vld [vmem:[#allocation7 + $0x324] ss:$20 sps:$4 sm:$0xff]   ;;  %v22320_v3 = vld [vmem:[#allocation7 + $0x348] ss:$20 sps:$4 sm:$0xff]  }
 0x39f   : > { %5803 = vmatprep.subr.bf16.mxu0 %v22295_v18  ;;  %v22319_v56 = vld [vmem:[#allocation7 + $0x6ec] ss:$20 sps:$4 sm:$0xff]   ;;  %v22317_v18 = vld [vmem:[#allocation7 + $0x6e8] ss:$20 sps:$4 sm:$0xff]   ;;  %v22323_v21 = vld [vmem:[#allocation7 + $0x710] ss:$20 sps:$4 sm:$0xff]  }
 0x3a0   : > { %5565 = vmatmul.mubr.bf16.vlgmr.msra.gmra.mrb[24].mxu1 %v24848_v63  ;;  %v22322_v42 = vld [vmem:[#allocation7 + $0x34c] ss:$20 sps:$4 sm:$0xff]   ;;  %v22325_v16 = vld [vmem:[#allocation7 + $0x714] ss:$20 sps:$4 sm:$0xff]   ;;  %v22331_v41 = vld [vmem:[#allocation7 + $0x73c] ss:$20 sps:$4 sm:$0xff]  }
 0x3a1   : > { %5574 = vmatprep.mubr.bf16.mxu1 %v24872_v45  ;;  %5584 = vmatpush1.bf16.msra.mxu1 %v22290_v0  ;;  %v22328_v46 = vld [vmem:[#allocation7 + $0x374] ss:$20 sps:$4 sm:$0xff]   ;;  %v22326_v0 = vld [vmem:[#allocation7 + $0x370] ss:$20 sps:$4 sm:$0xff]  }
 0x3a2   : > { %5804 = vmatpush1.bf16.msra.mxu0 %v22293_v12  ;;  %5585 = vmatprep.subr.bf16.mxu1 %v22298_v39  ;;  %v22329_v12 = vld [vmem:[#allocation7 + $0x738] ss:$20 sps:$4 sm:$0xff]   ;;  %v22334_v39 = vld [vmem:[#allocation7 + $0x39c] ss:$20 sps:$4 sm:$0xff]  }
 0x3a3   : > { %5805 = vmatprep.subr.bf16.mxu0 %v22301_v11  ;;  %v22337_v11 = vld [vmem:[#allocation7 + $0x764] ss:$20 sps:$4 sm:$0xff]  }
 0x3a5   : > { %5586 = vmatpush1.bf16.msra.mxu1 %v22296_v37  ;;  %v22332_v37 = vld [vmem:[#allocation7 + $0x398] ss:$20 sps:$4 sm:$0xff]  }
 0x3a6   : > { %5806 = vmatpush1.bf16.msra.mxu0 %v22299_v22  ;;  %5587 = vmatprep.subr.bf16.mxu1 %v22304_v30  ;;  %v22335_v22 = vld [vmem:[#allocation7 + $0x760] ss:$20 sps:$4 sm:$0xff]   ;;  %v22340_v30 = vld [vmem:[#allocation7 + $0x3c4] ss:$20 sps:$4 sm:$0xff]  }
 0x3a7   : > { %5807 = vmatprep.subr.bf16.mxu0 %v22307_v8  ;;  %v22338_v8 = vld [vmem:[#allocation7 + $0x3c0] ss:$20 sps:$4 sm:$0xff]  }
 0x3a8   : > { %5575 = vmatmul.mubr.bf16.gmra.mrb[64].mxu1 %v24865_v34 }
 0x3a9   : > { %5588 = vmatpush1.bf16.msra.mxu1 %v22302_v50  ;;  %5615 = vmatprep.mubr.bf16.mxu1 %v24788_v48  ;;  %v22341_v50 = vld [vmem:[#allocation7 + $0x150] ss:$20 sps:$4 sm:$0xff]  }
 0x3aa   : > { %5808 = vmatpush1.bf16.msra.mxu0 %v22305_v35  ;;  %5589 = vmatprep.subr.bf16.mxu1 %v22310_v20  ;;  %v22342_v35 = vld [vmem:[#allocation7 + $0x10] ss:$20 sps:$4 sm:$0xff]   ;;  %v22345_v20 = vld [vmem:[#allocation7 + $0x3ec] ss:$20 sps:$4 sm:$0xff]  }
 0x3ab   : > { %5809 = vmatprep.subr.bf16.mxu0 %v22313_v49  ;;  %v22346_v49 = vld [vmem:[#allocation7 + $0x178] ss:$20 sps:$4 sm:$0xff]  }
 0x3ad   : > { %5590 = vmatpush1.bf16.msra.mxu1 %v22308_v38  ;;  %v22343_v38 = vld [vmem:[#allocation7 + $0x3e8] ss:$20 sps:$4 sm:$0xff]  }
 0x3ae   : > { %5810 = vmatpush1.bf16.msra.mxu0 %v22311_v32  ;;  %5591 = vmatprep.subr.bf16.mxu1 %v22316_v4  ;;  %v22347_v32 = vld [vmem:[#allocation7 + $0x38] ss:$20 sps:$4 sm:$0xff]   ;;  %v22350_v4 = vld [vmem:[#allocation7 + $0x414] ss:$20 sps:$4 sm:$0xff]  }
 0x3af   : > { %5811 = vmatprep.subr.bf16.mxu0 %v22319_v56  ;;  %v22348_v56 = vld [vmem:[#allocation7 + $0x410] ss:$20 sps:$4 sm:$0xff]  }
 0x3b1   : > { %5592 = vmatpush1.bf16.msra.mxu1 %v22314_v2  ;;  %v22351_v2 = vld [vmem:[#allocation7 + $0x1a0] ss:$20 sps:$4 sm:$0xff]  }
 0x3b2   : > { %5812 = vmatpush1.bf16.msra.mxu0 %v22317_v18  ;;  %5593 = vmatprep.subr.bf16.mxu1 %v22322_v42  ;;  %v22352_v18 = vld [vmem:[#allocation7 + $0x60] ss:$20 sps:$4 sm:$0xff]   ;;  %v22355_v42 = vld [vmem:[#allocation7 + $0x43c] ss:$20 sps:$4 sm:$0xff]  }
 0x3b3   : > { %5813 = vmatprep.subr.bf16.mxu0 %v22325_v16  ;;  %v22353_v16 = vld [vmem:[#allocation7 + $0x438] ss:$20 sps:$4 sm:$0xff]  }
 0x3b5   : > { %5594 = vmatpush1.bf16.msra.mxu1 %v22320_v3  ;;  %v22356_v3 = vld [vmem:[#allocation7 + $0x1c8] ss:$20 sps:$4 sm:$0xff]  }
 0x3b6   : > { %5814 = vmatpush1.bf16.msra.mxu0 %v22323_v21  ;;  %5595 = vmatprep.subr.bf16.mxu1 %v22328_v46  ;;  %v22357_v21 = vld [vmem:[#allocation7 + $0x88] ss:$20 sps:$4 sm:$0xff]   ;;  %v22360_v46 = vld [vmem:[#allocation7 + $0x464] ss:$20 sps:$4 sm:$0xff]  }
 0x3b7   : > { %5815 = vmatprep.subr.bf16.mxu0 %v22331_v41  ;;  %v22361_v41 = vld [vmem:[#allocation7 + $0x1f0] ss:$20 sps:$4 sm:$0xff]  }
 0x3b9   : > { %5596 = vmatpush1.bf16.msra.mxu1 %v22326_v0  ;;  %v22358_v0 = vld [vmem:[#allocation7 + $0x460] ss:$20 sps:$4 sm:$0xff]  }
 0x3ba   : > { %5816 = vmatpush1.bf16.msra.mxu0 %v22329_v12  ;;  %5597 = vmatprep.subr.bf16.mxu1 %v22334_v39  ;;  %v22362_v12 = vld [vmem:[#allocation7 + $0xb0] ss:$20 sps:$4 sm:$0xff]   ;;  %v22365_v39 = vld [vmem:[#allocation7 + $0x48c] ss:$20 sps:$4 sm:$0xff]  }
 0x3bb   : > { %5817 = vmatprep.subr.bf16.mxu0 %v22337_v11  ;;  %v22366_v11 = vld [vmem:[#allocation7 + $0x218] ss:$20 sps:$4 sm:$0xff]  }
 0x3bd   : > { %5598 = vmatpush1.bf16.msra.mxu1 %v22332_v37  ;;  %v22363_v37 = vld [vmem:[#allocation7 + $0x488] ss:$20 sps:$4 sm:$0xff]  }
 0x3be   : > { %5818 = vmatpush1.bf16.msra.mxu0 %v22335_v22  ;;  %5599 = vmatprep.subr.bf16.mxu1 %v22340_v30  ;;  %v22367_v22 = vld [vmem:[#allocation7 + $0xd8] ss:$20 sps:$4 sm:$0xff]   ;;  %v22370_v30 = vld [vmem:[#allocation7 + $0x4b4] ss:$20 sps:$4 sm:$0xff]  }
 0x3bf   : > { %20725 = vmatprep.subr.bf16.mxu0 %v22341_v50  ;;  %v22371_v50 = vld [vmem:[#allocation7 + $0x240] ss:$20 sps:$4 sm:$0xff]  }
 0x3c1   : > { %5820 = vmatmul.mubr.bf16.vlgmr.msra.gmra.mrb[48].mxu0 %v24892_v62  ;;  %5600 = vmatpush1.bf16.msra.mxu1 %v22338_v8  ;;  %v22368_v8 = vld [vmem:[#allocation7 + $0x4b0] ss:$20 sps:$4 sm:$0xff]  }
 0x3c2   : > { %5829 = vmatprep.mubr.bf16.mxu0 %v24944_v17  ;;  %20726 = vmatpush3.bf16.msra.mxu0 %v22342_v35  ;;  %v22372_v35 = vld [vmem:[#allocation7 + $0x100] ss:$20 sps:$4 sm:$0xff]  }
 0x3c3   : > { %5601 = vmatprep.subr.bf16.mxu1 %v22345_v20  ;;  %20727 = vmatprep.subr.bf16.mxu0 %v22346_v49  ;;  %v22375_v20 = vld [vmem:[#allocation7 + $0x4dc] ss:$20 sps:$4 sm:$0xff]  }
 0x3c4   : > { %v22376_v49 = vld [vmem:[#allocation7 + $0x268] ss:$20 sps:$4 sm:$0xff]  }
 0x3c5   : > { %5602 = vmatpush1.bf16.msra.mxu1 %v22343_v38  ;;  %v22373_v38 = vld [vmem:[#allocation7 + $0x4d8] ss:$20 sps:$4 sm:$0xff]  }
 0x3c6   : > { %20728 = vmatpush3.bf16.msra.mxu0 %v22347_v32  ;;  %5603 = vmatprep.subr.bf16.mxu1 %v22350_v4  ;;  %v22377_v32 = vld [vmem:[#allocation7 + $0x128] ss:$20 sps:$4 sm:$0xff]   ;;  %v22380_v4 = vld [vmem:[#allocation7 + $0x504] ss:$20 sps:$4 sm:$0xff]  }
 0x3c7   : > { %20729 = vmatprep.subr.bf16.mxu0 %v22351_v2 }
 0x3c9   : > { %5830 = vmatmul.mubr.bf16.gmra.mrb[72].mxu0 %v24933_v57  ;;  %5604 = vmatpush1.bf16.msra.mxu1 %v22348_v56  ;;  %v22381_v56 = vld [vmem:[#allocation7 + $0x650] ss:$20 sps:$4 sm:$0xff]  }
 0x3ca   : > { %20730 = vmatpush3.bf16.msra.mxu0 %v22352_v18  ;;  %5870 = vmatprep.mubr.bf16.mxu0 %v24850_v1 }
 0x3cb   : > { %5605 = vmatprep.subr.bf16.mxu1 %v22355_v42  ;;  %20731 = vmatprep.subr.bf16.mxu0 %v22356_v3 }
 0x3cd   : > { %5606 = vmatpush1.bf16.msra.mxu1 %v22353_v16 }
 0x3ce   : > { %20732 = vmatpush3.bf16.msra.mxu0 %v22357_v21  ;;  %5607 = vmatprep.subr.bf16.mxu1 %v22360_v46 }
 0x3cf   : > { %20733 = vmatprep.subr.bf16.mxu0 %v22361_v41 }
 0x3d1   : > { %5608 = vmatpush1.bf16.msra.mxu1 %v22358_v0 }
 0x3d2   : > { %20734 = vmatpush3.bf16.msra.mxu0 %v22362_v12  ;;  %5609 = vmatprep.subr.bf16.mxu1 %v22365_v39 }
 0x3d3   : > { %20735 = vmatprep.subr.bf16.mxu0 %v22366_v11  ;;  %v22378_v11 = vld [vmem:[#allocation7 + $0x500] ss:$20 sps:$4 sm:$0xff]  }
 0x3d5   : > { %5610 = vmatpush1.bf16.msra.mxu1 %v22363_v37  ;;  %v22382_v37 = vld [vmem:[#allocation7 + $0x510] ss:$20 sps:$4 sm:$0xff]  }
 0x3d6   : > { %20736 = vmatpush3.bf16.msra.mxu0 %v22367_v22  ;;  %5611 = vmatprep.subr.bf16.mxu1 %v22370_v30  ;;  %v22385_v22 = vld [vmem:[#allocation7 + $0x52c] ss:$20 sps:$4 sm:$0xff]   ;;  %v22390_v30 = vld [vmem:[#allocation7 + $0x554] ss:$20 sps:$4 sm:$0xff]  }
 0x3d7   : > { %20737 = vmatprep.subr.bf16.mxu0 %v22371_v50  ;;  %v22388_v50 = vld [vmem:[#allocation7 + $0x550] ss:$20 sps:$4 sm:$0xff]  }
 0x3d9   : > { %5612 = vmatpush1.bf16.msra.mxu1 %v22368_v8  ;;  %v3980_v2 = vpop.f32.mrb[36].mxu1  ;;  %v22391_v8 = vld [vmem:[#allocation7 + $0x6a0] ss:$20 sps:$4 sm:$0xff]  }
 0x3da   : > { %20738 = vmatpush3.bf16.msra.mxu0 %v22372_v35  ;;  %v25109_v18 = vadd.f32 %v3980_v2, %v25089_v13  ;;  %v4133_v42 = vpop.f32.mrb[60].mxu0  ;;  %v3982_v3 = vpop.f32.mrb[37].mxu1  ;;  %5613 = vmatprep.subr.bf16.mxu1 %v22375_v20  ;;  %v22392_v35 = vld [vmem:[#allocation7 + $0x560] ss:$20 sps:$4 sm:$0xff]   ;;  %v22395_v20 = vld [vmem:[#allocation7 + $0x57c] ss:$20 sps:$4 sm:$0xff]  }
 0x3db   : > { %v25112_v16 = vadd.f32 %v4133_v42, %v25092_v54  ;;  %v25115_v21 = vadd.f32 %v3982_v3, %v25095_v15  ;;  %v4135_v46 = vpop.f32.mrb[61].mxu0  ;;  %20739 = vmatprep.subr.bf16.mxu0 %v22376_v49  ;;  %v3984_v41 = vpop.f32.mrb[38].mxu1  ;;  %v22383_v54 = vld [vmem:[#allocation7 + $0x528] ss:$20 sps:$4 sm:$0xff]   ;;  %v22386_v15 = vld [vmem:[#allocation7 + $0x678] ss:$20 sps:$4 sm:$0xff]  }
 0x3dc   : > { %v25118_v0 = vadd.f32 %v4135_v46, %v25098_v33  ;;  %v4137_v12 = vpop.f32.mrb[62].mxu0  ;;  %v3985_v39 = vpop.f32.mrb[39].mxu1  ;;  %v22387_v33 = vld [vmem:[#allocation7 + $0x538] ss:$20 sps:$4 sm:$0xff]   ;;  %v22398_v2 = vld [vmem:[#allocation7 + $0x5a0] ss:$20 sps:$4 sm:$0xff]  }
 0x3dd   : > { %5614 = vmatpush1.bf16.msra.mxu1 %v22373_v38  ;;  %v4138_v13 = vpop.f32.mrb[63].mxu0  ;;  %v22393_v49 = vld [vmem:[#allocation7 + $0x578] ss:$20 sps:$4 sm:$0xff]   ;;  %v22396_v38 = vld [vmem:[#allocation7 + $0x6c8] ss:$20 sps:$4 sm:$0xff]  }
 0x3de   : > { %20740 = vmatpush3.bf16.msra.mxu0 %v22377_v32  ;;  %5634 = vmatprep.subr.bf16.mxu1 %v22380_v4  ;;  %v22397_v32 = vld [vmem:[#allocation7 + $0x588] ss:$20 sps:$4 sm:$0xff]   ;;  %v22400_v4 = vld [vmem:[#allocation7 + $0x5a4] ss:$20 sps:$4 sm:$0xff]   ;;  %v22405_v3 = vld [vmem:[#allocation7 + $0x5cc] ss:$20 sps:$4 sm:$0xff]  }
 0x3df   : > { %20781 = vmatprep.subr.bf16.mxu0 %v22381_v56  ;;  %v22401_v56 = vld [vmem:[#allocation7 + $0x6f0] ss:$20 sps:$4 sm:$0xff]   ;;  %v22403_v46 = vld [vmem:[#allocation7 + $0x5c8] ss:$20 sps:$4 sm:$0xff]   ;;  %v22406_v41 = vld [vmem:[#allocation7 + $0x718] ss:$20 sps:$4 sm:$0xff]  }
 0x3e0   : > { %5616 = vmatmul.mubr.bf16.vlgmr.msra.gmra.mrb[24].mxu1 %v24786_v47  ;;  %v22402_v42 = vld [vmem:[#allocation7 + $0x5b0] ss:$20 sps:$4 sm:$0xff]   ;;  %v22407_v12 = vld [vmem:[#allocation7 + $0x5d8] ss:$20 sps:$4 sm:$0xff]   ;;  %v22410_v39 = vld [vmem:[#allocation7 + $0x5f4] ss:$20 sps:$4 sm:$0xff]  }
 0x3e1   : > { %5871 = vmatmul.mubr.bf16.vlgmr.msra.gmra.mrb[76].mxu0 %v24848_v63  ;;  %5625 = vmatprep.mubr.bf16.mxu1 %v24804_v10 }
 0x3e2   : > { %5635 = vmatpush1.bf16.msra.mxu1 %v22378_v11  ;;  %5878 = vmatprep.mubr.bf16.mxu0 %v24872_v45 }
 0x3e3   : > { %20782 = vmatpush3.bf16.msra.mxu0 %v22382_v37  ;;  %5636 = vmatprep.subr.bf16.mxu1 %v22385_v22 }
 0x3e4   : > { %20783 = vmatprep.subr.bf16.mxu0 %v22386_v15  ;;  %v22411_v15 = vld [vmem:[#allocation7 + $0x740] ss:$20 sps:$4 sm:$0xff]  }
 0x3e6   : > { %5637 = vmatpush1.bf16.msra.mxu1 %v22383_v54  ;;  %v22408_v54 = vld [vmem:[#allocation7 + $0x5f0] ss:$20 sps:$4 sm:$0xff]  }
 0x3e7   : > { %20784 = vmatpush3.bf16.msra.mxu0 %v22387_v33  ;;  %5638 = vmatprep.subr.bf16.mxu1 %v22390_v30  ;;  %v22412_v30 = vld [vmem:[#allocation7 + $0x600] ss:$20 sps:$4 sm:$0xff]  }
 0x3e8   : > { %5626 = vmatmul.mubr.bf16.gmra.mrb[68].mxu1 %v24802_v6  ;;  %20785 = vmatprep.subr.bf16.mxu0 %v22391_v8 }
 0x3e9   : > { %5879 = vmatmul.mubr.bf16.gmra.mrb[80].mxu0 %v24865_v34  ;;  %5666 = vmatprep.mubr.bf16.mxu1 %v24899_v55 }
 0x3ea   : > { %5639 = vmatpush1.bf16.msra.mxu1 %v22388_v50  ;;  %5966 = vmatprep.mubr.bf16.mxu0 %v24899_v55  ;;  %v22415_v50 = vld [vmem:[#allocation7 + $0x61c] ss:$20 sps:$4 sm:$0xff]  }
 0x3eb   : > { %20786 = vmatpush3.bf16.msra.mxu0 %v22392_v35  ;;  %5640 = vmatprep.subr.bf16.mxu1 %v22395_v20  ;;  %v22413_v35 = vld [vmem:[#allocation7 + $0x618] ss:$20 sps:$4 sm:$0xff]   ;;  %v22416_v20 = vld [vmem:[#allocation7 + $0x768] ss:$20 sps:$4 sm:$0xff]  }
 0x3ec   : > { %20787 = vmatprep.subr.bf16.mxu0 %v22396_v38  ;;  %v22420_v38 = vld [vmem:[#allocation7 + $0x644] ss:$20 sps:$4 sm:$0xff]  }
 0x3ee   : > { %5641 = vmatpush1.bf16.msra.mxu1 %v22393_v49  ;;  %v22417_v49 = vld [vmem:[#allocation7 + $0x628] ss:$20 sps:$4 sm:$0xff]  }
 0x3ef   : > { %20788 = vmatpush3.bf16.msra.mxu0 %v22397_v32  ;;  %5642 = vmatprep.subr.bf16.mxu1 %v22400_v4  ;;  %v22423_v4 = vld [vmem:[#allocation7 + $0xf0c] ss:$20 sps:$4 sm:$0xff]  }
 0x3f0   : > { %20789 = vmatprep.subr.bf16.mxu0 %v22401_v56 }
 0x3f2   : > { %5643 = vmatpush1.bf16.msra.mxu1 %v22398_v2  ;;  %v20657_v13 = vpop.f32.mrb[40].mxu1 }
 0x3f3   : > { %20790 = vmatpush3.bf16.msra.mxu0 %v22402_v42  ;;  %v20658_v11 = vpop.f32.mrb[41].mxu1  ;;  %5644 = vmatprep.subr.bf16.mxu1 %v22405_v3 }
 0x3f4   : > { %v25128_v37 = vadd.f32 %v20658_v11, %v20657_v13  ;;  %20791 = vmatprep.subr.bf16.mxu0 %v22406_v41  ;;  %v20660_v22 = vpop.f32.mrb[42].mxu1  ;;  %v22421_v41 = vld [vmem:[#allocation7 + $0xf08] ss:$20 sps:$4 sm:$0xff]   ;;  %v22427_v11 = vld [vmem:[#allocation7 + $0xf30] ss:$20 sps:$4 sm:$0xff]  }
 0x3f5   : > { %v20661_v33 = vpop.f32.mrb[43].mxu1  ;;  %v22424_v13 = vld [vmem:[#allocation7 + $0x668] ss:$20 sps:$4 sm:$0xff]  }
 0x3f6   : > { %5645 = vmatpush1.bf16.msra.mxu1 %v22403_v46  ;;  %v25130_v8 = vadd.f32 %v20661_v33, %v20660_v22  ;;  %v22418_v46 = vld [vmem:[#allocation7 + $0x640] ss:$20 sps:$4 sm:$0xff]   ;;  %v22433_v33 = vld [vmem:[#allocation7 + $0xf58] ss:$20 sps:$4 sm:$0xff]  }
 0x3f7   : > { %20792 = vmatpush3.bf16.msra.mxu0 %v22407_v12  ;;  %5646 = vmatprep.subr.bf16.mxu1 %v22410_v39  ;;  %v22426_v12 = vld [vmem:[#allocation7 + $0x66c] ss:$20 sps:$4 sm:$0xff]   ;;  %v22429_v39 = vld [vmem:[#allocation7 + $0xf34] ss:$20 sps:$4 sm:$0xff]  }
 0x3f8   : > { %20793 = vmatprep.subr.bf16.mxu0 %v22411_v15  ;;  %v22432_v22 = vld [vmem:[#allocation7 + $0x694] ss:$20 sps:$4 sm:$0xff]   ;;  %v22430_v15 = vld [vmem:[#allocation7 + $0x690] ss:$20 sps:$4 sm:$0xff]  }
 0x3fa   : > { %5647 = vmatpush1.bf16.msra.mxu1 %v22408_v54  ;;  %v20663_v32 = vpop.f32.mrb[44].mxu1  ;;  %v22435_v54 = vld [vmem:[#allocation7 + $0xf5c] ss:$20 sps:$4 sm:$0xff]  }
 0x3fb   : > { %20794 = vmatpush3.bf16.msra.mxu0 %v22412_v30  ;;  %v20664_v2 = vpop.f32.mrb[45].mxu1  ;;  %5648 = vmatprep.subr.bf16.mxu1 %v22415_v50  ;;  %v25137_v30 = vrot.slane %v24872_v45, 1  ;;  %v22438_v50 = vld [vmem:[#allocation7 + $0x6bc] ss:$20 sps:$4 sm:$0xff]  }
 0x3fc   : > { %v25132_v56 = vadd.f32 %v20664_v2, %v20663_v32  ;;  %20795 = vmatprep.subr.bf16.mxu0 %v22416_v20  ;;  %v20666_v42 = vpop.f32.mrb[46].mxu1  ;;  %v6286_v20 = vrot.slane %v24850_v1, 1  ;;  %v22439_v32 = vld [vmem:[#allocation7 + $0xf80] ss:$20 sps:$4 sm:$0xff]  }
 0x3fd   : > { %v20667_v3 = vpop.f32.mrb[47].mxu1  ;;  %v22447_v2 = vld [vmem:[#allocation7 + $0xfac] ss:$20 sps:$4 sm:$0xff]  }
 0x3fe   : > { %5649 = vmatpush1.bf16.msra.mxu1 %v22413_v35  ;;  %v22441_v35 = vld [vmem:[#allocation7 + $0xf84] ss:$20 sps:$4 sm:$0xff]   ;;  %v22442_v42 = vld [vmem:[#allocation7 + $0x6e0] ss:$20 sps:$4 sm:$0xff]   ;;  %v22445_v3 = vld [vmem:[#allocation7 + $0xfa8] ss:$20 sps:$4 sm:$0xff]  }
 0x3ff   : > { %20796 = vmatpush3.bf16.msra.mxu0 %v22417_v49  ;;  %5650 = vmatprep.subr.bf16.mxu1 %v22420_v38  ;;  %v25143_v49 = vsel %vm1038_vm3, %v6286_v20, %v25137_v30  ;;  %v22436_v38 = vld [vmem:[#allocation7 + $0x6b8] ss:$20 sps:$4 sm:$0xff]  }
 0x400   : > { %7714 = vmatprep.subr.bf16.mxu0 %v22423_v4  ;;  %v22444_v4 = vld [vmem:[#allocation7 + $0x6e4] ss:$20 sps:$4 sm:$0xff]  }
 0x401   : > { %v22457_v20 = vld [vmem:[#allocation7 + $0xff8] ss:$20 sps:$4 sm:$0xff]  }
 0x402   : > { %5967 = vmatmul.mubr.bf16.vlgmr.msra.gmra.mrb[84].mxu0 %v24892_v62  ;;  %5651 = vmatpush1.bf16.msra.mxu1 %v22418_v46  ;;  %v22450_v46 = vld [vmem:[#allocation7 + $0x70c] ss:$20 sps:$4 sm:$0xff]  }
 0x403   : > { %5974 = vmatprep.mubr.bf16.mxu0 %v24944_v17  ;;  %7715 = vmatpush1.bf16.msra.mxu0 %v22421_v41  ;;  %v22453_v41 = vld [vmem:[#allocation7 + $0xfd4] ss:$20 sps:$4 sm:$0xff]  }
 0x404   : > { %5652 = vmatprep.subr.bf16.mxu1 %v22426_v12  ;;  %7716 = vmatprep.subr.bf16.mxu0 %v22429_v39  ;;  %v22448_v12 = vld [vmem:[#allocation7 + $0x708] ss:$20 sps:$4 sm:$0xff]   ;;  %v22451_v39 = vld [vmem:[#allocation7 + $0xfd0] ss:$20 sps:$4 sm:$0xff]  }
 0x406   : > { %5653 = vmatpush1.bf16.msra.mxu1 %v22424_v13  ;;  %v22456_v13 = vld [vmem:[#allocation7 + $0x734] ss:$20 sps:$4 sm:$0xff]  }
 0x407   : > { %7717 = vmatpush1.bf16.msra.mxu0 %v22427_v11  ;;  %5654 = vmatprep.subr.bf16.mxu1 %v22432_v22  ;;  %v22459_v22 = vld [vmem:[#allocation7 + $0xffc] ss:$20 sps:$4 sm:$0xff]  }
 0x408   : > { %7718 = vmatprep.subr.bf16.mxu0 %v22435_v54 }
 0x40a   : > { %5975 = vmatmul.mubr.bf16.gmra.mrb[88].mxu0 %v24933_v57  ;;  %5655 = vmatpush1.bf16.msra.mxu1 %v22430_v15 }
 0x40b   : > { %7719 = vmatpush1.bf16.msra.mxu0 %v22433_v33  ;;  %7746 = vmatprep.mubr.bf16.mxu0 %v25143_v49 }
 0x40c   : > { %5656 = vmatprep.subr.bf16.mxu1 %v22438_v50  ;;  %7720 = vmatprep.subr.bf16.mxu0 %v22441_v35  ;;  %v22454_v35 = vld [vmem:[#allocation7 + $0x730] ss:$20 sps:$4 sm:$0xff]  }
 0x40e   : > { %5657 = vmatpush1.bf16.msra.mxu1 %v22436_v38 }
 0x40f   : > { %7721 = vmatpush1.bf16.msra.mxu0 %v22439_v32  ;;  %5658 = vmatprep.subr.bf16.mxu1 %v22444_v4  ;;  %v22462_v4 = vld [vmem:[#allocation7 + $0x75c] ss:$20 sps:$4 sm:$0xff]  }
 0x410   : > { %7722 = vmatprep.subr.bf16.mxu0 %v22447_v2  ;;  %v22465_v2 = vld [vmem:[#allocation7 + $0x1024] ss:$20 sps:$4 sm:$0xff]  }
 0x412   : > { %5659 = vmatpush1.bf16.msra.mxu1 %v22442_v42  ;;  %v20685_v11 = vpop.f32.mrb[48].mxu1 }
 0x413   : > { %7723 = vmatpush1.bf16.msra.mxu0 %v22445_v3  ;;  %v20686_v54 = vpop.f32.mrb[49].mxu1  ;;  %5660 = vmatprep.subr.bf16.mxu1 %v22450_v46  ;;  %v22460_v3 = vld [vmem:[#allocation7 + $0x758] ss:$20 sps:$4 sm:$0xff]   ;;  %v22463_v46 = vld [vmem:[#allocation7 + $0x1020] ss:$20 sps:$4 sm:$0xff]  }
 0x414   : > { %v20687_v15 = vadd.f32 %v20686_v54, %v20685_v11  ;;  %7724 = vmatprep.subr.bf16.mxu0 %v22453_v41  ;;  %v20688_v33 = vpop.f32.mrb[50].mxu1  ;;  %v22466_v41 = vld [vmem:[#allocation7 + $0x3d0] ss:$20 sps:$4 sm:$0xff]   ;;  %v22469_v54 = vld [vmem:[#allocation7 + $0x104c] ss:$20 sps:$4 sm:$0xff]  }
 0x415   : > { %v20689_v50 = vpop.f32.mrb[51].mxu1 }
 0x416   : > { %v25147_v38 = vadd.f32 %v20687_v15, %v25128_v37  ;;  %5661 = vmatpush1.bf16.msra.mxu1 %v22448_v12  ;;  %v20690_v32 = vadd.f32 %v20689_v50, %v20688_v33 }
 0x417   : > { %7725 = vmatpush1.bf16.msra.mxu0 %v22451_v39  ;;  %5662 = vmatprep.subr.bf16.mxu1 %v22456_v13 }
 0x418   : > { %v25150_v42 = vadd.f32 %v20690_v32, %v25130_v8  ;;  %7726 = vmatprep.subr.bf16.mxu0 %v22459_v22  ;;  %v22470_v32 = vld [vmem:[#allocation7 + $0x290] ss:$20 sps:$4 sm:$0xff]  }
 0x41a   : > { %5663 = vmatpush1.bf16.msra.mxu1 %v22454_v35  ;;  %v20691_v11 = vpop.f32.mrb[52].mxu1 }
 0x41b   : > { %7727 = vmatpush1.bf16.msra.mxu0 %v22457_v20  ;;  %v5729_v43 = vpop.f32.mrb[64].mxu0  ;;  %v20692_v37 = vpop.f32.mrb[53].mxu1  ;;  %5664 = vmatprep.subr.bf16.mxu1 %v22462_v4  ;;  %v22467_v20 = vld [vmem:[#allocation7 + $0x1048] ss:$20 sps:$4 sm:$0xff]   ;;  %v22472_v4 = vld [vmem:[#allocation7 + $0x1070] ss:$20 sps:$4 sm:$0xff]  }
 0x41c   : > { %v25153_v12 = vadd.f32 %v5729_v43, %v25112_v16  ;;  %v20693_v15 = vadd.f32 %v20692_v37, %v20691_v11  ;;  %v5731_v39 = vpop.f32.mrb[65].mxu0  ;;  %7728 = vmatprep.subr.bf16.mxu0 %v22465_v2  ;;  %v20694_v13 = vpop.f32.mrb[54].mxu1  ;;  %v22471_v43 = vld [vmem:[#allocation7 + $0x3f8] ss:$20 sps:$4 sm:$0xff]   ;;  %v22474_v16 = vld [vmem:[#allocation7 + $0x1074] ss:$20 sps:$4 sm:$0xff]  }
 0x41d   : > { %v25156_v8 = vadd.f32 %v5731_v39, %v25118_v0  ;;  %v5733_v22 = vpop.f32.mrb[66].mxu0  ;;  %v20695_v33 = vpop.f32.mrb[55].mxu1  ;;  %v22475_v2 = vld [vmem:[#allocation7 + $0x2b8] ss:$20 sps:$4 sm:$0xff]   ;;  %v22476_v0 = vld [vmem:[#allocation7 + $0x420] ss:$20 sps:$4 sm:$0xff]  }
 0x41e   : > { %v25159_v50 = vadd.f32 %v20693_v15, %v25132_v56  ;;  %5665 = vmatpush1.bf16.msra.mxu1 %v22460_v3  ;;  %v5734_v35 = vpop.f32.mrb[67].mxu0  ;;  %v22479_v11 = vld [vmem:[#allocation7 + $0x109c] ss:$20 sps:$4 sm:$0xff]   ;;  %v22477_v56 = vld [vmem:[#allocation7 + $0x1098] ss:$20 sps:$4 sm:$0xff]  }
 0x41f   : > { %7729 = vmatpush1.bf16.msra.mxu0 %v22463_v46  ;;  %20753 = vmatprep.subr.bf16.mxu1 %v22466_v41  ;;  %v22480_v3 = vld [vmem:[#allocation7 + $0x2e0] ss:$20 sps:$4 sm:$0xff]   ;;  %v22481_v37 = vld [vmem:[#allocation7 + $0x448] ss:$20 sps:$4 sm:$0xff]   ;;  %v22484_v46 = vld [vmem:[#allocation7 + $0x10c4] ss:$20 sps:$4 sm:$0xff]  }
 0x420   : > { %7730 = vmatprep.subr.bf16.mxu0 %v22469_v54  ;;  %v22482_v41 = vld [vmem:[#allocation7 + $0x10c0] ss:$20 sps:$4 sm:$0xff]   ;;  %v22485_v54 = vld [vmem:[#allocation7 + $0x308] ss:$20 sps:$4 sm:$0xff]   ;;  %v22486_v15 = vld [vmem:[#allocation7 + $0x470] ss:$20 sps:$4 sm:$0xff]  }
 0x421   : > { %5667 = vmatmul.mubr.bf16.vlgmr.msra.gmra.mrb[24].mxu1 %v24892_v62  ;;  %v22489_v39 = vld [vmem:[#allocation7 + $0x10ec] ss:$20 sps:$4 sm:$0xff]   ;;  %v22487_v13 = vld [vmem:[#allocation7 + $0x10e8] ss:$20 sps:$4 sm:$0xff]   ;;  %v22490_v22 = vld [vmem:[#allocation7 + $0x330] ss:$20 sps:$4 sm:$0xff]  }
 0x422   : > { %5676 = vmatprep.mubr.bf16.mxu1 %v24944_v17  ;;  %20754 = vmatpush3.bf16.msra.mxu1 %v22470_v32  ;;  %v22491_v33 = vld [vmem:[#allocation7 + $0x498] ss:$20 sps:$4 sm:$0xff]   ;;  %v22494_v35 = vld [vmem:[#allocation7 + $0x1114] ss:$20 sps:$4 sm:$0xff]  }
 0x423   : > { %7731 = vmatpush1.bf16.msra.mxu0 %v22467_v20  ;;  %20755 = vmatprep.subr.bf16.mxu1 %v22471_v43  ;;  %v22492_v20 = vld [vmem:[#allocation7 + $0x1110] ss:$20 sps:$4 sm:$0xff]   ;;  %v22495_v32 = vld [vmem:[#allocation7 + $0x358] ss:$20 sps:$4 sm:$0xff]   ;;  %v22496_v43 = vld [vmem:[#allocation7 + $0x4c0] ss:$20 sps:$4 sm:$0xff]  }
 0x424   : > { %7732 = vmatprep.subr.bf16.mxu0 %v22474_v16  ;;  %v22499_v16 = vld [vmem:[#allocation7 + $0x113c] ss:$20 sps:$4 sm:$0xff]  }
 0x426   : > { %20756 = vmatpush3.bf16.msra.mxu1 %v22475_v2 }
 0x427   : > { %7733 = vmatpush1.bf16.msra.mxu0 %v22472_v4  ;;  %20757 = vmatprep.subr.bf16.mxu1 %v22476_v0 }
 0x428   : > { %7734 = vmatprep.subr.bf16.mxu0 %v22479_v11 }
 0x429   : > { %5677 = vmatmul.mubr.bf16.gmra.mrb[72].mxu1 %v24933_v57 }
 0x42a   : > { %20758 = vmatpush3.bf16.msra.mxu1 %v22480_v3  ;;  %5918 = vmatprep.mubr.bf16.mxu1 %v24788_v48  ;;  %v22497_v3 = vld [vmem:[#allocation7 + $0x1138] ss:$20 sps:$4 sm:$0xff]  }
 0x42b   : > { %7735 = vmatpush1.bf16.msra.mxu0 %v22477_v56  ;;  %20759 = vmatprep.subr.bf16.mxu1 %v22481_v37  ;;  %v22500_v37 = vld [vmem:[#allocation7 + $0x380] ss:$20 sps:$4 sm:$0xff]  }
 0x42c   : > { %7736 = vmatprep.subr.bf16.mxu0 %v22484_v46 }
 0x42e   : > { %20760 = vmatpush3.bf16.msra.mxu1 %v22485_v54  ;;  %v22501_v54 = vld [vmem:[#allocation7 + $0x4e8] ss:$20 sps:$4 sm:$0xff]  }
 0x42f   : > { %7737 = vmatpush1.bf16.msra.mxu0 %v22482_v41  ;;  %20761 = vmatprep.subr.bf16.mxu1 %v22486_v15  ;;  %v22504_v15 = vld [vmem:[#allocation7 + $0x1164] ss:$20 sps:$4 sm:$0xff]  }
 0x430   : > { %7738 = vmatprep.subr.bf16.mxu0 %v22489_v39  ;;  %v6283_v39 = vrot.slane %v24848_v63, 1 }
 0x432   : > { %20762 = vmatpush3.bf16.msra.mxu1 %v22490_v22  ;;  %v22502_v22 = vld [vmem:[#allocation7 + $0x1160] ss:$20 sps:$4 sm:$0xff]  }
 0x433   : > { %7739 = vmatpush1.bf16.msra.mxu0 %v22487_v13  ;;  %v20713_v4 = vpop.f32.mrb[56].mxu1  ;;  %20763 = vmatprep.subr.bf16.mxu1 %v22491_v33  ;;  %v22505_v33 = vld [vmem:[#allocation7 + $0x3a8] ss:$20 sps:$4 sm:$0xff]  }
 0x434   : > { %v20714_v2 = vpop.f32.mrb[57].mxu1  ;;  %7740 = vmatprep.subr.bf16.mxu0 %v22494_v35  ;;  %v22508_v35 = vld [vmem:[#allocation7 + $0xf04] ss:$20 sps:$4 sm:$0xff]  }
 0x435   : > { %v20715_v0 = vadd.f32 %v20714_v2, %v20713_v4  ;;  %v20716_v11 = vpop.f32.mrb[58].mxu1 }
 0x436   : > { %20764 = vmatpush3.bf16.msra.mxu1 %v22495_v32  ;;  %v20717_v56 = vpop.f32.mrb[59].mxu1 }
 0x437   : > { %v25166_v46 = vadd.f32 %v20715_v0, %v25147_v38  ;;  %7741 = vmatpush1.bf16.msra.mxu0 %v22492_v20  ;;  %v20718_v41 = vadd.f32 %v20717_v56, %v20716_v11  ;;  %20765 = vmatprep.subr.bf16.mxu1 %v22496_v43  ;;  %v25173_v38 = vrot.slane %v24865_v34, 1  ;;  %v22511_v20 = vld [vmem:[#allocation7 + $0x118c] ss:$20 sps:$4 sm:$0xff]  }
 0x438   : > { %7742 = vmatprep.subr.bf16.mxu0 %v22499_v16  ;;  %v22506_v0 = vld [vmem:[#allocation7 + $0xf00] ss:$20 sps:$4 sm:$0xff]  }
 0x439   : > { %v25170_v13 = vadd.f32 %v20718_v41, %v25150_v42  ;;  %v22509_v42 = vld [vmem:[#allocation7 + $0x1188] ss:$20 sps:$4 sm:$0xff]   ;;  %v22514_v56 = vld [vmem:[#allocation7 + $0xf2c] ss:$20 sps:$4 sm:$0xff]  }
 0x43a   : > { %20766 = vmatpush3.bf16.msra.mxu1 %v22500_v37  ;;  %v25181_v37 = vsel %vm1038_vm3, %v6283_v39, %v25173_v38  ;;  %v22512_v41 = vld [vmem:[#allocation7 + $0xf28] ss:$20 sps:$4 sm:$0xff]   ;;  %v22518_v39 = vld [vmem:[#allocation7 + $0xf50] ss:$20 sps:$4 sm:$0xff]  }
 0x43b   : > { %7743 = vmatpush1.bf16.msra.mxu0 %v22497_v3  ;;  %v20719_v32 = vpop.f32.mrb[60].mxu1  ;;  %20767 = vmatprep.subr.bf16.mxu1 %v22501_v54  ;;  %v22517_v3 = vld [vmem:[#allocation7 + $0x11b4] ss:$20 sps:$4 sm:$0xff]   ;;  %v22515_v54 = vld [vmem:[#allocation7 + $0x11b0] ss:$20 sps:$4 sm:$0xff]  }
 0x43c   : > { %v20720_v43 = vpop.f32.mrb[61].mxu1  ;;  %7744 = vmatprep.subr.bf16.mxu0 %v22504_v15  ;;  %v22523_v15 = vld [vmem:[#allocation7 + $0x11dc] ss:$20 sps:$4 sm:$0xff]  }
 0x43d   : > { %v20721_v4 = vadd.f32 %v20720_v43, %v20719_v32  ;;  %v20722_v16 = vpop.f32.mrb[62].mxu1  ;;  %v22526_v32 = vld [vmem:[#allocation7 + $0xf7c] ss:$20 sps:$4 sm:$0xff]  }
 0x43e   : > { %20768 = vmatpush3.bf16.msra.mxu1 %v22505_v33  ;;  %v20723_v2 = vpop.f32.mrb[63].mxu1  ;;  %v25188_v33 = vrot.slane %v24804_v10, 1  ;;  %v22527_v16 = vld [vmem:[#allocation7 + $0x1200] ss:$20 sps:$4 sm:$0xff]  }
 0x43f   : > { %v25176_v11 = vadd.f32 %v20721_v4, %v25159_v50  ;;  %7745 = vmatpush1.bf16.msra.mxu0 %v22502_v22  ;;  %7561 = vmatprep.subr.bf16.mxu1 %v22508_v35  ;;  %v22520_v50 = vld [vmem:[#allocation7 + $0xf54] ss:$20 sps:$4 sm:$0xff]   ;;  %v6292_v22 = vrot.slane %v24788_v48, 1  ;;  %v22521_v35 = vld [vmem:[#allocation7 + $0x11d8] ss:$20 sps:$4 sm:$0xff]  }
 0x440   : > { %7765 = vmatprep.subr.bf16.mxu0 %v22511_v20  ;;  %v22529_v20 = vld [vmem:[#allocation7 + $0x1204] ss:$20 sps:$4 sm:$0xff]  }
 0x441   : > { %5919 = vmatmul.mubr.bf16.vlgmr.msra.gmra.mrb[76].mxu1 %v24786_v47  ;;  %v25195_v43 = vsel %vm1038_vm3, %v6292_v22, %v25188_v33  ;;  %v22524_v4 = vld [vmem:[#allocation7 + $0xf78] ss:$20 sps:$4 sm:$0xff]   ;;  %v22547_v22 = vld [vmem:[#allocation7 + $0x127c] ss:$20 sps:$4 sm:$0xff]  }
 0x442   : > { %7747 = vmatmul.mubr.bf16.vlgmr.msra.gmra.mrb[48].mxu0 %v25181_v37  ;;  %5926 = vmatprep.mubr.bf16.mxu1 %v24804_v10  ;;  %v22532_v2 = vld [vmem:[#allocation7 + $0xfa4] ss:$20 sps:$4 sm:$0xff]  }
 0x443   : > { %7562 = vmatpush1.bf16.msra.mxu1 %v22506_v0  ;;  %7756 = vmatprep.mubr.bf16.mxu0 %v25137_v30  ;;  %v22535_v0 = vld [vmem:[#allocation7 + $0x122c] ss:$20 sps:$4 sm:$0xff]  }
 0x444   : > { %7766 = vmatpush1.bf16.msra.mxu0 %v22509_v42  ;;  %7563 = vmatprep.subr.bf16.mxu1 %v22514_v56  ;;  %v22530_v42 = vld [vmem:[#allocation7 + $0xfa0] ss:$20 sps:$4 sm:$0xff]   ;;  %v22533_v56 = vld [vmem:[#allocation7 + $0x1228] ss:$20 sps:$4 sm:$0xff]  }
 0x445   : > { %7767 = vmatprep.subr.bf16.mxu0 %v22517_v3  ;;  %v22538_v3 = vld [vmem:[#allocation7 + $0xfcc] ss:$20 sps:$4 sm:$0xff]  }
 0x447   : > { %7564 = vmatpush1.bf16.msra.mxu1 %v22512_v41  ;;  %v22541_v41 = vld [vmem:[#allocation7 + $0x1254] ss:$20 sps:$4 sm:$0xff]  }
 0x448   : > { %7768 = vmatpush1.bf16.msra.mxu0 %v22515_v54  ;;  %7565 = vmatprep.subr.bf16.mxu1 %v22520_v50  ;;  %v22536_v54 = vld [vmem:[#allocation7 + $0xfc8] ss:$20 sps:$4 sm:$0xff]   ;;  %v22539_v50 = vld [vmem:[#allocation7 + $0x1250] ss:$20 sps:$4 sm:$0xff]  }
 0x449   : > { %5927 = vmatmul.mubr.bf16.gmra.mrb[80].mxu1 %v24802_v6  ;;  %7769 = vmatprep.subr.bf16.mxu0 %v22523_v15  ;;  %v22544_v15 = vld [vmem:[#allocation7 + $0xff4] ss:$20 sps:$4 sm:$0xff]  }
 0x44a   : > { %7757 = vmatmul.mubr.bf16.gmra.mrb[92].mxu0 %v25173_v38  ;;  %7593 = vmatprep.mubr.bf16.mxu1 %v25143_v49 }
 0x44b   : > { %7566 = vmatpush1.bf16.msra.mxu1 %v22518_v39  ;;  %7797 = vmatprep.mubr.bf16.mxu0 %v25195_v43  ;;  %v22542_v39 = vld [vmem:[#allocation7 + $0xff0] ss:$20 sps:$4 sm:$0xff]  }
 0x44c   : > { %7770 = vmatpush1.bf16.msra.mxu0 %v22521_v35  ;;  %7567 = vmatprep.subr.bf16.mxu1 %v22526_v32  ;;  %v22545_v35 = vld [vmem:[#allocation7 + $0x1278] ss:$20 sps:$4 sm:$0xff]   ;;  %v22550_v32 = vld [vmem:[#allocation7 + $0x101c] ss:$20 sps:$4 sm:$0xff]  }
 0x44d   : > { %7771 = vmatprep.subr.bf16.mxu0 %v22529_v20  ;;  %v22553_v20 = vld [vmem:[#allocation7 + $0x12a4] ss:$20 sps:$4 sm:$0xff]  }
 0x44f   : > { %7568 = vmatpush1.bf16.msra.mxu1 %v22524_v4  ;;  %v22548_v4 = vld [vmem:[#allocation7 + $0x1018] ss:$20 sps:$4 sm:$0xff]  }
 0x450   : > { %7772 = vmatpush1.bf16.msra.mxu0 %v22527_v16  ;;  %7569 = vmatprep.subr.bf16.mxu1 %v22532_v2  ;;  %v22551_v16 = vld [vmem:[#allocation7 + $0x12a0] ss:$20 sps:$4 sm:$0xff]   ;;  %v22556_v2 = vld [vmem:[#allocation7 + $0x1044] ss:$20 sps:$4 sm:$0xff]  }
 0x451   : > { %7773 = vmatprep.subr.bf16.mxu0 %v22535_v0 }
 0x453   : > { %7570 = vmatpush1.bf16.msra.mxu1 %v22530_v42  ;;  %v22559_v42 = vld [vmem:[#allocation7 + $0x12cc] ss:$20 sps:$4 sm:$0xff]  }
 0x454   : > { %7774 = vmatpush1.bf16.msra.mxu0 %v22533_v56  ;;  %7571 = vmatprep.subr.bf16.mxu1 %v22538_v3 }
 0x455   : > { %7775 = vmatprep.subr.bf16.mxu0 %v22541_v41 }
 0x457   : > { %7572 = vmatpush1.bf16.msra.mxu1 %v22536_v54 }
 0x458   : > { %7776 = vmatpush1.bf16.msra.mxu0 %v22539_v50  ;;  %7573 = vmatprep.subr.bf16.mxu1 %v22544_v15  ;;  %v22554_v15 = vld [vmem:[#allocation7 + $0x1040] ss:$20 sps:$4 sm:$0xff]  }
 0x459   : > { %7777 = vmatprep.subr.bf16.mxu0 %v22547_v22  ;;  %v22557_v22 = vld [vmem:[#allocation7 + $0x12c8] ss:$20 sps:$4 sm:$0xff]  }
 0x45b   : > { %7574 = vmatpush1.bf16.msra.mxu1 %v22542_v39  ;;  %v22562_v39 = vld [vmem:[#allocation7 + $0x106c] ss:$20 sps:$4 sm:$0xff]  }
 0x45c   : > { %7778 = vmatpush1.bf16.msra.mxu0 %v22545_v35  ;;  %v5780_v0 = vpop.f32.mrb[68].mxu0  ;;  %7575 = vmatprep.subr.bf16.mxu1 %v22550_v32  ;;  %v22565_v35 = vld [vmem:[#allocation7 + $0x12f4] ss:$20 sps:$4 sm:$0xff]  }
 0x45d   : > { %v25199_v56 = vadd.f32 %v5780_v0, %v25153_v12  ;;  %v5782_v3 = vpop.f32.mrb[69].mxu0  ;;  %7779 = vmatprep.subr.bf16.mxu0 %v22553_v20  ;;  %v22560_v32 = vld [vmem:[#allocation7 + $0x1068] ss:$20 sps:$4 sm:$0xff]   ;;  %v22569_v0 = vld [vmem:[#allocation7 + $0x1318] ss:$20 sps:$4 sm:$0xff]  }
 0x45e   : > { %v25202_v41 = vadd.f32 %v5782_v3, %v25156_v8  ;;  %v5784_v54 = vpop.f32.mrb[70].mxu0  ;;  %v22568_v12 = vld [vmem:[#allocation7 + $0x1094] ss:$20 sps:$4 sm:$0xff]   ;;  %v22571_v20 = vld [vmem:[#allocation7 + $0x131c] ss:$20 sps:$4 sm:$0xff]  }
 0x45f   : > { %7576 = vmatpush1.bf16.msra.mxu1 %v22548_v4  ;;  %v5785_v50 = vpop.f32.mrb[71].mxu0  ;;  %v22566_v8 = vld [vmem:[#allocation7 + $0x1090] ss:$20 sps:$4 sm:$0xff]   ;;  %v22583_v54 = vld [vmem:[#allocation7 + $0x136c] ss:$20 sps:$4 sm:$0xff]  }
 0x460   : > { %7780 = vmatpush1.bf16.msra.mxu0 %v22551_v16  ;;  %7577 = vmatprep.subr.bf16.mxu1 %v22556_v2  ;;  %v22574_v4 = vld [vmem:[#allocation7 + $0x10bc] ss:$20 sps:$4 sm:$0xff]   ;;  %v22577_v3 = vld [vmem:[#allocation7 + $0x1344] ss:$20 sps:$4 sm:$0xff]   ;;  %v22575_v2 = vld [vmem:[#allocation7 + $0x1340] ss:$20 sps:$4 sm:$0xff]  }
 0x461   : > { %7781 = vmatprep.subr.bf16.mxu0 %v22559_v42  ;;  %v22572_v16 = vld [vmem:[#allocation7 + $0x10b8] ss:$20 sps:$4 sm:$0xff]   ;;  %v22578_v50 = vld [vmem:[#allocation7 + $0x10e0] ss:$20 sps:$4 sm:$0xff]  }
 0x462   : > { %v22580_v42 = vld [vmem:[#allocation7 + $0x10e4] ss:$20 sps:$4 sm:$0xff]  }
 0x463   : > { %7578 = vmatpush1.bf16.msra.mxu1 %v22554_v15  ;;  %v22581_v15 = vld [vmem:[#allocation7 + $0x1368] ss:$20 sps:$4 sm:$0xff]  }
 0x464   : > { %7782 = vmatpush1.bf16.msra.mxu0 %v22557_v22  ;;  %7579 = vmatprep.subr.bf16.mxu1 %v22562_v39  ;;  %v22586_v22 = vld [vmem:[#allocation7 + $0x110c] ss:$20 sps:$4 sm:$0xff]   ;;  %v22589_v39 = vld [vmem:[#allocation7 + $0x1394] ss:$20 sps:$4 sm:$0xff]  }
 0x465   : > { %7783 = vmatprep.subr.bf16.mxu0 %v22565_v35  ;;  %v22584_v35 = vld [vmem:[#allocation7 + $0x1108] ss:$20 sps:$4 sm:$0xff]  }
 0x467   : > { %7580 = vmatpush1.bf16.msra.mxu1 %v22560_v32  ;;  %v22592_v32 = vld [vmem:[#allocation7 + $0x1134] ss:$20 sps:$4 sm:$0xff]  }
 0x468   : > { %7784 = vmatpush1.bf16.msra.mxu0 %v22563_v40  ;;  %7581 = vmatprep.subr.bf16.mxu1 %v22568_v12  ;;  %v22587_v40 = vld [vmem:[#allocation7 + $0x1390] ss:$20 sps:$4 sm:$0xff]  }
 0x469   : > { %7785 = vmatprep.subr.bf16.mxu0 %v22571_v20  ;;  %v22595_v12 = vld [vmem:[#allocation7 + $0x13bc] ss:$20 sps:$4 sm:$0xff]  }
 0x46a   : > { %v22590_v20 = vld [vmem:[#allocation7 + $0x1130] ss:$20 sps:$4 sm:$0xff]  }
 0x46b   : > { %7582 = vmatpush1.bf16.msra.mxu1 %v22566_v8  ;;  %v22593_v8 = vld [vmem:[#allocation7 + $0x13b8] ss:$20 sps:$4 sm:$0xff]  }
 0x46c   : > { %7786 = vmatpush1.bf16.msra.mxu0 %v22569_v0  ;;  %7583 = vmatprep.subr.bf16.mxu1 %v22574_v4  ;;  %v22598_v0 = vld [vmem:[#allocation7 + $0x115c] ss:$20 sps:$4 sm:$0xff]   ;;  %v22601_v4 = vld [vmem:[#allocation7 + $0x13e4] ss:$20 sps:$4 sm:$0xff]  }
 0x46d   : > { %7787 = vmatprep.subr.bf16.mxu0 %v22577_v3  ;;  %v22596_v3 = vld [vmem:[#allocation7 + $0x1158] ss:$20 sps:$4 sm:$0xff]  }
 0x46f   : > { %7584 = vmatpush1.bf16.msra.mxu1 %v22572_v16  ;;  %v22599_v16 = vld [vmem:[#allocation7 + $0x13e0] ss:$20 sps:$4 sm:$0xff]  }
 0x470   : > { %7788 = vmatpush1.bf16.msra.mxu0 %v22575_v2  ;;  %7585 = vmatprep.subr.bf16.mxu1 %v22580_v42  ;;  %v22604_v2 = vld [vmem:[#allocation7 + $0x1184] ss:$20 sps:$4 sm:$0xff]  }
 0x471   : > { %7789 = vmatprep.subr.bf16.mxu0 %v22583_v54  ;;  %v22607_v54 = vld [vmem:[#allocation7 + $0x140c] ss:$20 sps:$4 sm:$0xff]  }
 0x473   : > { %7586 = vmatpush1.bf16.msra.mxu1 %v22578_v50 }
 0x474   : > { %7790 = vmatpush1.bf16.msra.mxu0 %v22581_v15  ;;  %7587 = vmatprep.subr.bf16.mxu1 %v22586_v22 }
 0x475   : > { %7791 = vmatprep.subr.bf16.mxu0 %v22589_v39 }
 0x477   : > { %7588 = vmatpush1.bf16.msra.mxu1 %v22584_v35 }
 0x478   : > { %7792 = vmatpush1.bf16.msra.mxu0 %v22587_v40  ;;  %7589 = vmatprep.subr.bf16.mxu1 %v22592_v32  ;;  %v22602_v40 = vld [vmem:[#allocation7 + $0x1180] ss:$20 sps:$4 sm:$0xff]   ;;  %v6289_v32 = vrot.slane %v24786_v47, 1 }
 0x479   : > { %7793 = vmatprep.subr.bf16.mxu0 %v22595_v12  ;;  %v25212_v12 = vrot.slane %v24802_v6, 1 }
 0x47b   : > { %7590 = vmatpush1.bf16.msra.mxu1 %v22590_v20  ;;  %v5576_v42 = vpop.f32.mrb[64].mxu1  ;;  %v22605_v20 = vld [vmem:[#allocation7 + $0x1408] ss:$20 sps:$4 sm:$0xff]  }
 0x47c   : > { %7794 = vmatpush1.bf16.msra.mxu0 %v22593_v8  ;;  %v25205_v50 = vadd.f32 %v5576_v42, %v25109_v18  ;;  %v5578_v15 = vpop.f32.mrb[65].mxu1  ;;  %7591 = vmatprep.subr.bf16.mxu1 %v22598_v0  ;;  %v22610_v8 = vld [vmem:[#allocation7 + $0x11ac] ss:$20 sps:$4 sm:$0xff]   ;;  %v22613_v18 = vld [vmem:[#allocation7 + $0x1434] ss:$20 sps:$4 sm:$0xff]   ;;  %v6298_v42 = vrot.slane %v24899_v55, 1 }
 0x47d   : > { %v25208_v22 = vadd.f32 %v5578_v15, %v25115_v21  ;;  %7795 = vmatprep.subr.bf16.mxu0 %v22601_v4  ;;  %v5580_v39 = vpop.f32.mrb[66].mxu1  ;;  %v25217_v21 = vsel %vm1038_vm3, %v6289_v32, %v25212_v12  ;;  %v22608_v0 = vld [vmem:[#allocation7 + $0x11a8] ss:$20 sps:$4 sm:$0xff]   ;;  %v22611_v4 = vld [vmem:[#allocation7 + $0x1430] ss:$20 sps:$4 sm:$0xff]  }
 0x47e   : > { %v5581_v35 = vpop.f32.mrb[67].mxu1  ;;  %v22617_v15 = vld [vmem:[#allocation7 + $0x1458] ss:$20 sps:$4 sm:$0xff]   ;;  %v22622_v39 = vld [vmem:[#allocation7 + $0x11fc] ss:$20 sps:$4 sm:$0xff]  }
 0x47f   : > { %7592 = vmatpush1.bf16.msra.mxu1 %v22596_v3  ;;  %v22616_v3 = vld [vmem:[#allocation7 + $0x11d4] ss:$20 sps:$4 sm:$0xff]   ;;  %v22625_v35 = vld [vmem:[#allocation7 + $0x1484] ss:$20 sps:$4 sm:$0xff]  }
 0x480   : > { %7796 = vmatpush1.bf16.msra.mxu0 %v22599_v16  ;;  %7612 = vmatprep.subr.bf16.mxu1 %v22604_v2  ;;  %v22614_v16 = vld [vmem:[#allocation7 + $0x11d0] ss:$20 sps:$4 sm:$0xff]   ;;  %v22620_v32 = vld [vmem:[#allocation7 + $0x11f8] ss:$20 sps:$4 sm:$0xff]  }
 0x481   : > { %7816 = vmatprep.subr.bf16.mxu0 %v22607_v54  ;;  %v22619_v2 = vld [vmem:[#allocation7 + $0x145c] ss:$20 sps:$4 sm:$0xff]   ;;  %v25224_v54 = vrot.slane %v24944_v17, 1  ;;  %v22689_v17 = vld [vmem:[#allocation7 + $0x1638] ss:$20 sps:$4 sm:$0xff]  }
 0x482   : > { %7594 = vmatmul.mubr.bf16.vlgmr.msra.gmra.mrb[24].mxu1 %v25181_v37  ;;  %v22686_v55 = vld [vmem:[#allocation7 + $0x13b0] ss:$20 sps:$4 sm:$0xff]  }
 0x483   : > { %7798 = vmatmul.mubr.bf16.vlgmr.msra.gmra.mrb[48].mxu0 %v25217_v21  ;;  %7603 = vmatprep.mubr.bf16.mxu1 %v25137_v30 }
 0x484   : > { %7613 = vmatpush1.bf16.msra.mxu1 %v22602_v40  ;;  %7807 = vmatprep.mubr.bf16.mxu0 %v25188_v33  ;;  %v25231_v40 = vsel %vm1038_vm3, %v6298_v42, %v25224_v54  ;;  %v22637_v42 = vld [vmem:[#allocation7 + $0x14d4] ss:$20 sps:$4 sm:$0xff]  }
 0x485   : > { %7817 = vmatpush1.bf16.msra.mxu0 %v22605_v20  ;;  %7614 = vmatprep.subr.bf16.mxu1 %v22610_v8  ;;  %v22623_v20 = vld [vmem:[#allocation7 + $0x1480] ss:$20 sps:$4 sm:$0xff]   ;;  %v22628_v8 = vld [vmem:[#allocation7 + $0x1224] ss:$20 sps:$4 sm:$0xff]  }
 0x486   : > { %7818 = vmatprep.subr.bf16.mxu0 %v22613_v18  ;;  %v22626_v18 = vld [vmem:[#allocation7 + $0x1220] ss:$20 sps:$4 sm:$0xff]  }
 0x488   : > { %7615 = vmatpush1.bf16.msra.mxu1 %v22608_v0  ;;  %v22631_v0 = vld [vmem:[#allocation7 + $0x14ac] ss:$20 sps:$4 sm:$0xff]  }
 0x489   : > { %7819 = vmatpush1.bf16.msra.mxu0 %v22611_v4  ;;  %7616 = vmatprep.subr.bf16.mxu1 %v22616_v3  ;;  %v22629_v4 = vld [vmem:[#allocation7 + $0x14a8] ss:$20 sps:$4 sm:$0xff]   ;;  %v22634_v3 = vld [vmem:[#allocation7 + $0x124c] ss:$20 sps:$4 sm:$0xff]  }
 0x48a   : > { %7604 = vmatmul.mubr.bf16.gmra.mrb[84].mxu1 %v25173_v38  ;;  %7820 = vmatprep.subr.bf16.mxu0 %v22619_v2  ;;  %v22632_v2 = vld [vmem:[#allocation7 + $0x1248] ss:$20 sps:$4 sm:$0xff]  }
 0x48b   : > { %7808 = vmatmul.mubr.bf16.gmra.mrb[96].mxu0 %v25212_v12  ;;  %7644 = vmatprep.mubr.bf16.mxu1 %v25195_v43 }
 0x48c   : > { %7617 = vmatpush1.bf16.msra.mxu1 %v22614_v16  ;;  %7848 = vmatprep.mubr.bf16.mxu0 %v25231_v40  ;;  %v22640_v16 = vld [vmem:[#allocation7 + $0x1274] ss:$20 sps:$4 sm:$0xff]  }
 0x48d   : > { %7821 = vmatpush1.bf16.msra.mxu0 %v22617_v15  ;;  %7618 = vmatprep.subr.bf16.mxu1 %v22622_v39  ;;  %v22638_v15 = vld [vmem:[#allocation7 + $0x1270] ss:$20 sps:$4 sm:$0xff]   ;;  %v22641_v39 = vld [vmem:[#allocation7 + $0x14f8] ss:$20 sps:$4 sm:$0xff]  }
 0x48e   : > { %7822 = vmatprep.subr.bf16.mxu0 %v22625_v35  ;;  %v22646_v35 = vld [vmem:[#allocation7 + $0x129c] ss:$20 sps:$4 sm:$0xff]  }
 0x490   : > { %7619 = vmatpush1.bf16.msra.mxu1 %v22620_v32  ;;  %v22649_v32 = vld [vmem:[#allocation7 + $0x1524] ss:$20 sps:$4 sm:$0xff]  }
 0x491   : > { %7823 = vmatpush1.bf16.msra.mxu0 %v22623_v20  ;;  %7620 = vmatprep.subr.bf16.mxu1 %v22628_v8  ;;  %v22644_v8 = vld [vmem:[#allocation7 + $0x1298] ss:$20 sps:$4 sm:$0xff]  }
 0x492   : > { %7824 = vmatprep.subr.bf16.mxu0 %v22631_v0  ;;  %v22647_v0 = vld [vmem:[#allocation7 + $0x1520] ss:$20 sps:$4 sm:$0xff]  }
 0x494   : > { %7621 = vmatpush1.bf16.msra.mxu1 %v22626_v18 }
 0x495   : > { %7825 = vmatpush1.bf16.msra.mxu0 %v22629_v4  ;;  %7622 = vmatprep.subr.bf16.mxu1 %v22634_v3  ;;  %v22652_v4 = vld [vmem:[#allocation7 + $0x12c4] ss:$20 sps:$4 sm:$0xff]   ;;  %v22655_v3 = vld [vmem:[#allocation7 + $0x154c] ss:$20 sps:$4 sm:$0xff]  }
 0x496   : > { %7826 = vmatprep.subr.bf16.mxu0 %v22637_v42 }
 0x498   : > { %7623 = vmatpush1.bf16.msra.mxu1 %v22632_v2  ;;  %v22650_v2 = vld [vmem:[#allocation7 + $0x12c0] ss:$20 sps:$4 sm:$0xff]  }
 0x499   : > { %7827 = vmatpush1.bf16.msra.mxu0 %v22635_v19  ;;  %7624 = vmatprep.subr.bf16.mxu1 %v22640_v16  ;;  %v22653_v16 = vld [vmem:[#allocation7 + $0x1548] ss:$20 sps:$4 sm:$0xff]  }
 0x49a   : > { %7828 = vmatprep.subr.bf16.mxu0 %v22643_v7 }
 0x49c   : > { %7625 = vmatpush1.bf16.msra.mxu1 %v22638_v15  ;;  %v5831_v20 = vpop.f32.mrb[72].mxu0  ;;  %v22658_v15 = vld [vmem:[#allocation7 + $0x12ec] ss:$20 sps:$4 sm:$0xff]  }
 0x49d   : > { %7829 = vmatpush1.bf16.msra.mxu0 %v22641_v39  ;;  %v25235_v23 = vadd.f32 %v5831_v20, %v25199_v56  ;;  %v5833_v18 = vpop.f32.mrb[73].mxu0  ;;  %7626 = vmatprep.subr.bf16.mxu1 %v22646_v35  ;;  %v22661_v39 = vld [vmem:[#allocation7 + $0x1574] ss:$20 sps:$4 sm:$0xff]   ;;  %v22659_v35 = vld [vmem:[#allocation7 + $0x1570] ss:$20 sps:$4 sm:$0xff]  }
 0x49e   : > { %v25238_v42 = vadd.f32 %v5833_v18, %v25202_v41  ;;  %7830 = vmatprep.subr.bf16.mxu0 %v22649_v32  ;;  %v5835_v19 = vpop.f32.mrb[74].mxu0  ;;  %v22656_v56 = vld [vmem:[#allocation7 + $0x12e8] ss:$20 sps:$4 sm:$0xff]   ;;  %v22662_v41 = vld [vmem:[#allocation7 + $0x1310] ss:$20 sps:$4 sm:$0xff]  }
 0x49f   : > { %v5836_v7 = vpop.f32.mrb[75].mxu0  ;;  %v22664_v20 = vld [vmem:[#allocation7 + $0x1314] ss:$20 sps:$4 sm:$0xff]   ;;  %v22665_v32 = vld [vmem:[#allocation7 + $0x1598] ss:$20 sps:$4 sm:$0xff]  }
 0x4a0   : > { %7627 = vmatpush1.bf16.msra.mxu1 %v22644_v8  ;;  %v22670_v18 = vld [vmem:[#allocation7 + $0x133c] ss:$20 sps:$4 sm:$0xff]   ;;  %v22673_v19 = vld [vmem:[#allocation7 + $0x15c4] ss:$20 sps:$4 sm:$0xff]  }
 0x4a1   : > { %7831 = vmatpush1.bf16.msra.mxu0 %v22647_v0  ;;  %7628 = vmatprep.subr.bf16.mxu1 %v22652_v4  ;;  %v22668_v8 = vld [vmem:[#allocation7 + $0x1338] ss:$20 sps:$4 sm:$0xff]   ;;  %v22671_v0 = vld [vmem:[#allocation7 + $0x15c0] ss:$20 sps:$4 sm:$0xff]   ;;  %v22677_v7 = vld [vmem:[#allocation7 + $0x15e8] ss:$20 sps:$4 sm:$0xff]  }
 0x4a2   : > { %7832 = vmatprep.subr.bf16.mxu0 %v22655_v3  ;;  %v22676_v4 = vld [vmem:[#allocation7 + $0x1364] ss:$20 sps:$4 sm:$0xff]   ;;  %v22679_v3 = vld [vmem:[#allocation7 + $0x15ec] ss:$20 sps:$4 sm:$0xff]  }
 0x4a4   : > { %7629 = vmatpush1.bf16.msra.mxu1 %v22650_v2  ;;  %v22674_v2 = vld [vmem:[#allocation7 + $0x1360] ss:$20 sps:$4 sm:$0xff]  }
 0x4a5   : > { %7833 = vmatpush1.bf16.msra.mxu0 %v22653_v16  ;;  %7630 = vmatprep.subr.bf16.mxu1 %v22658_v15  ;;  %v22682_v16 = vld [vmem:[#allocation7 + $0x138c] ss:$20 sps:$4 sm:$0xff]   ;;  %v22685_v15 = vld [vmem:[#allocation7 + $0x1614] ss:$20 sps:$4 sm:$0xff]  }
 0x4a6   : > { %7834 = vmatprep.subr.bf16.mxu0 %v22661_v39  ;;  %v22680_v39 = vld [vmem:[#allocation7 + $0x1388] ss:$20 sps:$4 sm:$0xff]  }
 0x4a8   : > { %7631 = vmatpush1.bf16.msra.mxu1 %v22656_v56  ;;  %v22683_v56 = vld [vmem:[#allocation7 + $0x1610] ss:$20 sps:$4 sm:$0xff]  }
 0x4a9   : > { %7835 = vmatpush1.bf16.msra.mxu0 %v22659_v35  ;;  %7632 = vmatprep.subr.bf16.mxu1 %v22664_v20  ;;  %v22688_v35 = vld [vmem:[#allocation7 + $0x13b4] ss:$20 sps:$4 sm:$0xff]   ;;  %v22691_v20 = vld [vmem:[#allocation7 + $0x163c] ss:$20 sps:$4 sm:$0xff]  }
 0x4aa   : > { %7836 = vmatprep.subr.bf16.mxu0 %v22667_v9 }
 0x4ac   : > { %7633 = vmatpush1.bf16.msra.mxu1 %v22662_v41 }
 0x4ad   : > { %7837 = vmatpush1.bf16.msra.mxu0 %v22665_v32  ;;  %7634 = vmatprep.subr.bf16.mxu1 %v22670_v18 }
 0x4ae   : > { %7838 = vmatprep.subr.bf16.mxu0 %v22673_v19 }
 0x4b0   : > { %7635 = vmatpush1.bf16.msra.mxu1 %v22668_v8 }
 0x4b1   : > { %7839 = vmatpush1.bf16.msra.mxu0 %v22671_v0  ;;  %7636 = vmatprep.subr.bf16.mxu1 %v22676_v4  ;;  %v22694_v4 = vld [vmem:[#allocation7 + $0x13dc] ss:$20 sps:$4 sm:$0xff]  }
 0x4b2   : > { %7840 = vmatprep.subr.bf16.mxu0 %v22679_v3  ;;  %v22697_v3 = vld [vmem:[#allocation7 + $0x1664] ss:$20 sps:$4 sm:$0xff]  }
 0x4b4   : > { %7637 = vmatpush1.bf16.msra.mxu1 %v22674_v2  ;;  %v20741_v9 = vpop.f32.mrb[76].mxu0 }
 0x4b5   : > { %7841 = vmatpush1.bf16.msra.mxu0 %v22677_v7  ;;  %v20742_v41 = vpop.f32.mrb[77].mxu0  ;;  %7638 = vmatprep.subr.bf16.mxu1 %v22682_v16  ;;  %v22692_v16 = vld [vmem:[#allocation7 + $0x13d8] ss:$20 sps:$4 sm:$0xff]  }
 0x4b6   : > { %v20743_v32 = vadd.f32 %v20742_v41, %v20741_v9  ;;  %7842 = vmatprep.subr.bf16.mxu0 %v22685_v15  ;;  %v20744_v18 = vpop.f32.mrb[78].mxu0  ;;  %v22695_v15 = vld [vmem:[#allocation7 + $0x1660] ss:$20 sps:$4 sm:$0xff]  }
 0x4b7   : > { %v20745_v19 = vpop.f32.mrb[79].mxu0 }
 0x4b8   : > { %v25241_v8 = vadd.f32 %v20743_v32, %v25166_v46  ;;  %7639 = vmatpush1.bf16.msra.mxu1 %v22680_v39  ;;  %v20746_v0 = vadd.f32 %v20745_v19, %v20744_v18  ;;  %v22700_v32 = vld [vmem:[#allocation7 + $0x1404] ss:$20 sps:$4 sm:$0xff]  }
 0x4b9   : > { %7843 = vmatpush1.bf16.msra.mxu0 %v22683_v56  ;;  %7640 = vmatprep.subr.bf16.mxu1 %v22688_v35  ;;  %v22701_v39 = vld [vmem:[#allocation7 + $0x12d0] ss:$20 sps:$4 sm:$0xff]  }
 0x4ba   : > { %v25244_v2 = vadd.f32 %v20746_v0, %v25170_v13  ;;  %7844 = vmatprep.subr.bf16.mxu0 %v22691_v20 }
 0x4bb   : > { %v5627_v7 = vpop.f32.mrb[68].mxu1 }
 0x4bc   : > { %7641 = vmatpush1.bf16.msra.mxu1 %v22686_v55  ;;  %v25247_v9 = vadd.f32 %v5627_v7, %v25205_v50  ;;  %v20747_v41 = vpop.f32.mrb[80].mxu0  ;;  %v5629_v46 = vpop.f32.mrb[69].mxu1  ;;  %v22698_v55 = vld [vmem:[#allocation7 + $0x1400] ss:$20 sps:$4 sm:$0xff]   ;;  %v6295_v50 = vrot.slane %v24892_v62, 1  ;;  %v25254_v7 = vrot.slane %v24933_v57, 1 }
 0x4bd   : > { %7845 = vmatpush1.bf16.msra.mxu0 %v22689_v17  ;;  %v25250_v18 = vadd.f32 %v5629_v46, %v25208_v22  ;;  %v20748_v56 = vpop.f32.mrb[81].mxu0  ;;  %7642 = vmatprep.subr.bf16.mxu1 %v22694_v4  ;;  %v5631_v13 = vpop.f32.mrb[70].mxu1  ;;  %v22702_v17 = vld [vmem:[#allocation7 + $0x1190] ss:$20 sps:$4 sm:$0xff]   ;;  %v22705_v22 = vld [vmem:[#allocation7 + $0x142c] ss:$20 sps:$4 sm:$0xff]  }
 0x4be   : > { %v20749_v35 = vadd.f32 %v20748_v56, %v20747_v41  ;;  %7846 = vmatprep.subr.bf16.mxu0 %v22697_v3  ;;  %v20750_v20 = vpop.f32.mrb[82].mxu0  ;;  %v5632_v19 = vpop.f32.mrb[71].mxu1  ;;  %v22706_v4 = vld [vmem:[#allocation7 + $0x12f8] ss:$20 sps:$4 sm:$0xff]   ;;  %v25262_v3 = vsel %vm1038_vm3, %v6295_v50, %v25254_v7  ;;  %v22708_v41 = vld [vmem:[#allocation7 + $0x1450] ss:$20 sps:$4 sm:$0xff]  }
 0x4bf   : > { %v20751_v0 = vpop.f32.mrb[83].mxu0  ;;  %v22711_v46 = vld [vmem:[#allocation7 + $0x1320] ss:$20 sps:$4 sm:$0xff]   ;;  %v22716_v56 = vld [vmem:[#allocation7 + $0x1348] ss:$20 sps:$4 sm:$0xff]  }
 0x4c0   : > { %v25257_v6 = vadd.f32 %v20749_v35, %v25176_v11  ;;  %7643 = vmatpush1.bf16.msra.mxu1 %v22692_v16  ;;  %v22703_v11 = vld [vmem:[#allocation7 + $0x1428] ss:$20 sps:$4 sm:$0xff]   ;;  %v22707_v16 = vld [vmem:[#allocation7 + $0x11b8] ss:$20 sps:$4 sm:$0xff]   ;;  %v22718_v19 = vld [vmem:[#allocation7 + $0x14a0] ss:$20 sps:$4 sm:$0xff]  }
 0x4c1   : > { %7847 = vmatpush1.bf16.msra.mxu0 %v22695_v15  ;;  %7663 = vmatprep.subr.bf16.mxu1 %v22700_v32  ;;  %v22710_v15 = vld [vmem:[#allocation7 + $0x1454] ss:$20 sps:$4 sm:$0xff]   ;;  %v22713_v13 = vld [vmem:[#allocation7 + $0x1478] ss:$20 sps:$4 sm:$0xff]   ;;  %v22721_v0 = vld [vmem:[#allocation7 + $0x1370] ss:$20 sps:$4 sm:$0xff]  }
 0x4c2   : > { %20837 = vmatprep.subr.bf16.mxu0 %v22701_v39  ;;  %v22712_v32 = vld [vmem:[#allocation7 + $0x11e0] ss:$20 sps:$4 sm:$0xff]   ;;  %v22715_v39 = vld [vmem:[#allocation7 + $0x147c] ss:$20 sps:$4 sm:$0xff]   ;;  %v22720_v20 = vld [vmem:[#allocation7 + $0x14a4] ss:$20 sps:$4 sm:$0xff]  }
 0x4c3   : > { %7645 = vmatmul.mubr.bf16.vlgmr.msra.gmra.mrb[24].mxu1 %v25217_v21  ;;  %v22717_v35 = vld [vmem:[#allocation7 + $0x1208] ss:$20 sps:$4 sm:$0xff]   ;;  %v22725_v50 = vld [vmem:[#allocation7 + $0x14cc] ss:$20 sps:$4 sm:$0xff]  }
 0x4c4   : > { %7849 = vmatmul.mubr.bf16.vlgmr.msra.gmra.mrb[48].mxu0 %v25262_v3  ;;  %7654 = vmatprep.mubr.bf16.mxu1 %v25188_v33  ;;  %v22743_v62 = vld [vmem:[#allocation7 + $0x168c] ss:$20 sps:$4 sm:$0xff]  }
 0x4c5   : > { %7664 = vmatpush1.bf16.msra.mxu1 %v22698_v55  ;;  %7858 = vmatprep.mubr.bf16.mxu0 %v25224_v54  ;;  %v22722_v55 = vld [vmem:[#allocation7 + $0x1230] ss:$20 sps:$4 sm:$0xff]  }
 0x4c6   : > { %20838 = vmatpush3.bf16.msra.mxu0 %v22702_v17  ;;  %7665 = vmatprep.subr.bf16.mxu1 %v22705_v22  ;;  %v22723_v17 = vld [vmem:[#allocation7 + $0x14c8] ss:$20 sps:$4 sm:$0xff]   ;;  %v22726_v22 = vld [vmem:[#allocation7 + $0x1398] ss:$20 sps:$4 sm:$0xff]  }
 0x4c7   : > { %20839 = vmatprep.subr.bf16.mxu0 %v22706_v4  ;;  %v22727_v4 = vld [vmem:[#allocation7 + $0x1258] ss:$20 sps:$4 sm:$0xff]  }
 0x4c9   : > { %7666 = vmatpush1.bf16.msra.mxu1 %v22703_v11  ;;  %v22730_v11 = vld [vmem:[#allocation7 + $0x14f4] ss:$20 sps:$4 sm:$0xff]  }
 0x4ca   : > { %20840 = vmatpush3.bf16.msra.mxu0 %v22707_v16  ;;  %7667 = vmatprep.subr.bf16.mxu1 %v22710_v15 }
 0x4cb   : > { %7655 = vmatmul.mubr.bf16.gmra.mrb[88].mxu1 %v25212_v12  ;;  %20841 = vmatprep.subr.bf16.mxu0 %v22711_v46  ;;  %v22728_v46 = vld [vmem:[#allocation7 + $0x14f0] ss:$20 sps:$4 sm:$0xff]  }
 0x4cc   : > { %7859 = vmatmul.mubr.bf16.gmra.mrb[100].mxu0 %v25254_v7  ;;  %7695 = vmatprep.mubr.bf16.mxu1 %v25231_v40 }
 0x4cd   : > { %7668 = vmatpush1.bf16.msra.mxu1 %v22708_v41  ;;  %7947 = vmatprep.mubr.bf16.mxu0 %v25195_v43 }
 0x4ce   : > { %20842 = vmatpush3.bf16.msra.mxu0 %v22712_v32  ;;  %7669 = vmatprep.subr.bf16.mxu1 %v22715_v39  ;;  %v22731_v32 = vld [vmem:[#allocation7 + $0x13c0] ss:$20 sps:$4 sm:$0xff]  }
 0x4cf   : > { %20843 = vmatprep.subr.bf16.mxu0 %v22716_v56  ;;  %v22732_v56 = vld [vmem:[#allocation7 + $0x1280] ss:$20 sps:$4 sm:$0xff]  }
 0x4d1   : > { %7670 = vmatpush1.bf16.msra.mxu1 %v22713_v13  ;;  %v22735_v13 = vld [vmem:[#allocation7 + $0x151c] ss:$20 sps:$4 sm:$0xff]  }
 0x4d2   : > { %20844 = vmatpush3.bf16.msra.mxu0 %v22717_v35  ;;  %7671 = vmatprep.subr.bf16.mxu1 %v22720_v20  ;;  %v22736_v20 = vld [vmem:[#allocation7 + $0x13e8] ss:$20 sps:$4 sm:$0xff]  }
 0x4d3   : > { %20845 = vmatprep.subr.bf16.mxu0 %v22721_v0 }
 0x4d5   : > { %7672 = vmatpush1.bf16.msra.mxu1 %v22718_v19  ;;  %v20797_v43 = vpop.f32.mrb[84].mxu0  ;;  %v22733_v19 = vld [vmem:[#allocation7 + $0x1518] ss:$20 sps:$4 sm:$0xff]  }
 0x4d6   : > { %20846 = vmatpush3.bf16.msra.mxu0 %v22722_v55  ;;  %v20798_v16 = vpop.f32.mrb[85].mxu0  ;;  %7673 = vmatprep.subr.bf16.mxu1 %v22725_v50  ;;  %v22737_v50 = vld [vmem:[#allocation7 + $0x12a8] ss:$20 sps:$4 sm:$0xff]  }
 0x4d7   : > { %v25271_v15 = vadd.f32 %v20798_v16, %v20797_v43  ;;  %20847 = vmatprep.subr.bf16.mxu0 %v22726_v22  ;;  %v20800_v41 = vpop.f32.mrb[86].mxu0  ;;  %v22740_v22 = vld [vmem:[#allocation7 + $0x1544] ss:$20 sps:$4 sm:$0xff]  }
 0x4d8   : > { %v20801_v39 = vpop.f32.mrb[87].mxu0 }
 0x4d9   : > { %7674 = vmatpush1.bf16.msra.mxu1 %v22723_v17  ;;  %v25273_v35 = vadd.f32 %v20801_v39, %v20800_v41  ;;  %v22738_v41 = vld [vmem:[#allocation7 + $0x1540] ss:$20 sps:$4 sm:$0xff]   ;;  %v22747_v39 = vld [vmem:[#allocation7 + $0x16b0] ss:$20 sps:$4 sm:$0xff]  }
 0x4da   : > { %20848 = vmatpush3.bf16.msra.mxu0 %v22727_v4  ;;  %7675 = vmatprep.subr.bf16.mxu1 %v22730_v11  ;;  %v22741_v4 = vld [vmem:[#allocation7 + $0x1688] ss:$20 sps:$4 sm:$0xff]   ;;  %v22746_v11 = vld [vmem:[#allocation7 + $0x156c] ss:$20 sps:$4 sm:$0xff]  }
 0x4db   : > { %20849 = vmatprep.subr.bf16.mxu0 %v22731_v32  ;;  %v22744_v32 = vld [vmem:[#allocation7 + $0x1568] ss:$20 sps:$4 sm:$0xff]  }
 0x4dd   : > { %7676 = vmatpush1.bf16.msra.mxu1 %v22728_v46  ;;  %v20803_v0 = vpop.f32.mrb[88].mxu0  ;;  %v22749_v46 = vld [vmem:[#allocation7 + $0x16b4] ss:$20 sps:$4 sm:$0xff]  }
 0x4de   : > { %20850 = vmatpush3.bf16.msra.mxu0 %v22732_v56  ;;  %v20804_v55 = vpop.f32.mrb[89].mxu0  ;;  %7677 = vmatprep.subr.bf16.mxu1 %v22735_v13  ;;  %v22752_v56 = vld [vmem:[#allocation7 + $0x1594] ss:$20 sps:$4 sm:$0xff]   ;;  %v22755_v13 = vld [vmem:[#allocation7 + $0x16dc] ss:$20 sps:$4 sm:$0xff]  }
 0x4df   : > { %v25275_v43 = vadd.f32 %v20804_v55, %v20803_v0  ;;  %20851 = vmatprep.subr.bf16.mxu0 %v22736_v20  ;;  %v20806_v16 = vpop.f32.mrb[90].mxu0  ;;  %v22750_v20 = vld [vmem:[#allocation7 + $0x1590] ss:$20 sps:$4 sm:$0xff]   ;;  %v22756_v55 = vld [vmem:[#allocation7 + $0x15b8] ss:$20 sps:$4 sm:$0xff]  }
 0x4e0   : > { %v20807_v17 = vpop.f32.mrb[91].mxu0  ;;  %v22761_v0 = vld [vmem:[#allocation7 + $0x1704] ss:$20 sps:$4 sm:$0xff]   ;;  %v22767_v16 = vld [vmem:[#allocation7 + $0x172c] ss:$20 sps:$4 sm:$0xff]  }
 0x4e1   : > { %7678 = vmatpush1.bf16.msra.mxu1 %v22733_v19  ;;  %v22753_v19 = vld [vmem:[#allocation7 + $0x16d8] ss:$20 sps:$4 sm:$0xff]   ;;  %v22762_v17 = vld [vmem:[#allocation7 + $0x15e0] ss:$20 sps:$4 sm:$0xff]  }
 0x4e2   : > { %20852 = vmatpush3.bf16.msra.mxu0 %v22737_v50  ;;  %7679 = vmatprep.subr.bf16.mxu1 %v22740_v22  ;;  %v22759_v50 = vld [vmem:[#allocation7 + $0x1700] ss:$20 sps:$4 sm:$0xff]   ;;  %v22764_v22 = vld [vmem:[#allocation7 + $0x15e4] ss:$20 sps:$4 sm:$0xff]  }
 0x4e3   : > { %9770 = vmatprep.subr.bf16.mxu0 %v22743_v62  ;;  %v22758_v62 = vld [vmem:[#allocation7 + $0x15bc] ss:$20 sps:$4 sm:$0xff]  }
 0x4e5   : > { %7948 = vmatmul.mubr.bf16.vlgmr.msra.gmra.mrb[104].mxu0 %v25217_v21  ;;  %7680 = vmatpush1.bf16.msra.mxu1 %v22738_v41  ;;  %v22770_v41 = vld [vmem:[#allocation7 + $0x160c] ss:$20 sps:$4 sm:$0xff]  }
 0x4e6   : > { %7955 = vmatprep.mubr.bf16.mxu0 %v25188_v33  ;;  %9771 = vmatpush1.bf16.msra.mxu0 %v22741_v4  ;;  %v26245_v33 = vor.u32 %v24931_v14, %v24927_v53  ;;  %v22773_v53 = vld [vmem:[#allocation7 + $0x1754] ss:$20 sps:$4 sm:$0xff]   ;;  %v22771_v4 = vld [vmem:[#allocation7 + $0x1750] ss:$20 sps:$4 sm:$0xff]  }
 0x4e7   : > { %7681 = vmatprep.subr.bf16.mxu1 %v22746_v11  ;;  %9772 = vmatprep.subr.bf16.mxu0 %v22749_v46  ;;  %v22768_v14 = vld [vmem:[#allocation7 + $0x1608] ss:$20 sps:$4 sm:$0xff]  }
 0x4e8   : > { %v25285_v21 = vsel %vm1304_vm4, %v26245_v33, %v24907_v58  ;;  %v22776_v11 = vld [vmem:[#allocation7 + $0x1634] ss:$20 sps:$4 sm:$0xff]   ;;  %v22779_v46 = vld [vmem:[#allocation7 + $0x177c] ss:$20 sps:$4 sm:$0xff]  }
 0x4e9   : > { %7682 = vmatpush1.bf16.msra.mxu1 %v22744_v32  ;;  %v22774_v32 = vld [vmem:[#allocation7 + $0x1630] ss:$20 sps:$4 sm:$0xff]  }
 0x4ea   : > { %9773 = vmatpush1.bf16.msra.mxu0 %v22747_v39  ;;  %7683 = vmatprep.subr.bf16.mxu1 %v22752_v56  ;;  %v22777_v39 = vld [vmem:[#allocation7 + $0x1778] ss:$20 sps:$4 sm:$0xff]   ;;  %v22782_v56 = vld [vmem:[#allocation7 + $0x165c] ss:$20 sps:$4 sm:$0xff]  }
 0x4eb   : > { %9774 = vmatprep.subr.bf16.mxu0 %v22755_v13  ;;  %v22785_v13 = vld [vmem:[#allocation7 + $0x17a4] ss:$20 sps:$4 sm:$0xff]  }
 0x4ed   : > { %7956 = vmatmul.mubr.bf16.gmra.mrb[108].mxu0 %v25212_v12  ;;  %7684 = vmatpush1.bf16.msra.mxu1 %v22750_v20  ;;  %v22765_v12 = vld [vmem:[#allocation7 + $0x1728] ss:$20 sps:$4 sm:$0xff]  }
 0x4ee   : > { %9775 = vmatpush1.bf16.msra.mxu0 %v22753_v19  ;;  %9802 = vmatprep.mubr.bf16.mxu0 %v25285_v21 }
 0x4ef   : > { %7685 = vmatprep.subr.bf16.mxu1 %v22758_v62  ;;  %9776 = vmatprep.subr.bf16.mxu0 %v22761_v0  ;;  %v22780_v0 = vld [vmem:[#allocation7 + $0x1658] ss:$20 sps:$4 sm:$0xff]  }
 0x4f1   : > { %7686 = vmatpush1.bf16.msra.mxu1 %v22756_v55  ;;  %v22783_v55 = vld [vmem:[#allocation7 + $0x17a0] ss:$20 sps:$4 sm:$0xff]  }
 0x4f2   : > { %9777 = vmatpush1.bf16.msra.mxu0 %v22759_v50  ;;  %7687 = vmatprep.subr.bf16.mxu1 %v22764_v22  ;;  %v22786_v22 = vld [vmem:[#allocation7 + $0x1050] ss:$20 sps:$4 sm:$0xff]  }
 0x4f3   : > { %9778 = vmatprep.subr.bf16.mxu0 %v22767_v16 }
 0x4f5   : > { %7688 = vmatpush1.bf16.msra.mxu1 %v22762_v17  ;;  %v22789_v17 = vld [vmem:[#allocation7 + $0x17cc] ss:$20 sps:$4 sm:$0xff]  }
 0x4f6   : > { %9779 = vmatpush1.bf16.msra.mxu0 %v22765_v12  ;;  %7689 = vmatprep.subr.bf16.mxu1 %v22770_v41  ;;  %v22790_v12 = vld [vmem:[#allocation7 + $0xf10] ss:$20 sps:$4 sm:$0xff]   ;;  %v22787_v41 = vld [vmem:[#allocation7 + $0x17c8] ss:$20 sps:$4 sm:$0xff]  }
 0x4f7   : > { %9780 = vmatprep.subr.bf16.mxu0 %v22773_v53  ;;  %v22794_v53 = vld [vmem:[#allocation7 + $0x17f4] ss:$20 sps:$4 sm:$0xff]  }
 0x4f9   : > { %7690 = vmatpush1.bf16.msra.mxu1 %v22768_v14  ;;  %v22792_v14 = vld [vmem:[#allocation7 + $0x17f0] ss:$20 sps:$4 sm:$0xff]  }
 0x4fa   : > { %9781 = vmatpush1.bf16.msra.mxu0 %v22771_v4  ;;  %7691 = vmatprep.subr.bf16.mxu1 %v22776_v11  ;;  %v22796_v4 = vld [vmem:[#allocation7 + $0x10a0] ss:$20 sps:$4 sm:$0xff]   ;;  %v22799_v11 = vld [vmem:[#allocation7 + $0x181c] ss:$20 sps:$4 sm:$0xff]  }
 0x4fb   : > { %9782 = vmatprep.subr.bf16.mxu0 %v22779_v46  ;;  %v22800_v46 = vld [vmem:[#allocation7 + $0xf60] ss:$20 sps:$4 sm:$0xff]  }
 0x4fc   : > { %v5678_v20 = vpop.f32.mrb[72].mxu1 }
 0x4fd   : > { %7692 = vmatpush1.bf16.msra.mxu1 %v22774_v32  ;;  %v25289_v19 = vadd.f32 %v5678_v20, %v25247_v9  ;;  %v5680_v62 = vpop.f32.mrb[73].mxu1  ;;  %v22791_v9 = vld [vmem:[#allocation7 + $0x1078] ss:$20 sps:$4 sm:$0xff]   ;;  %v22802_v20 = vld [vmem:[#allocation7 + $0x1840] ss:$20 sps:$4 sm:$0xff]  }
 0x4fe   : > { %9783 = vmatpush1.bf16.msra.mxu0 %v22777_v39  ;;  %v25292_v33 = vadd.f32 %v5680_v62, %v25250_v18  ;;  %7693 = vmatprep.subr.bf16.mxu1 %v22782_v56  ;;  %v5682_v50 = vpop.f32.mrb[74].mxu1  ;;  %v22795_v18 = vld [vmem:[#allocation7 + $0xf38] ss:$20 sps:$4 sm:$0xff]   ;;  %v22801_v39 = vld [vmem:[#allocation7 + $0x10c8] ss:$20 sps:$4 sm:$0xff]  }
 0x4ff   : > { %9784 = vmatprep.subr.bf16.mxu0 %v22785_v13  ;;  %v5683_v16 = vpop.f32.mrb[75].mxu1  ;;  %v22797_v32 = vld [vmem:[#allocation7 + $0x1818] ss:$20 sps:$4 sm:$0xff]   ;;  %v22805_v13 = vld [vmem:[#allocation7 + $0xf88] ss:$20 sps:$4 sm:$0xff]  }
 0x500   : > { %v22804_v56 = vld [vmem:[#allocation7 + $0x1844] ss:$20 sps:$4 sm:$0xff]   ;;  %v22807_v50 = vld [vmem:[#allocation7 + $0x1868] ss:$20 sps:$4 sm:$0xff]  }
 0x501   : > { %7694 = vmatpush1.bf16.msra.mxu1 %v22780_v0  ;;  %v22806_v62 = vld [vmem:[#allocation7 + $0x10f0] ss:$20 sps:$4 sm:$0xff]   ;;  %v22809_v0 = vld [vmem:[#allocation7 + $0x186c] ss:$20 sps:$4 sm:$0xff]   ;;  %v22814_v16 = vld [vmem:[#allocation7 + $0x1894] ss:$20 sps:$4 sm:$0xff]  }
 0x502   : > { %9785 = vmatpush1.bf16.msra.mxu0 %v22783_v55  ;;  %20809 = vmatprep.subr.bf16.mxu1 %v22786_v22  ;;  %v22810_v55 = vld [vmem:[#allocation7 + $0xfb0] ss:$20 sps:$4 sm:$0xff]   ;;  %v22811_v22 = vld [vmem:[#allocation7 + $0x1118] ss:$20 sps:$4 sm:$0xff]  }
 0x503   : > { %9786 = vmatprep.subr.bf16.mxu0 %v22789_v17 }
 0x504   : > { %7696 = vmatmul.mubr.bf16.vlgmr.msra.gmra.mrb[24].mxu1 %v25262_v3 }
 0x505   : > { %7705 = vmatprep.mubr.bf16.mxu1 %v25224_v54  ;;  %20810 = vmatpush3.bf16.msra.mxu1 %v22790_v12 }
 0x506   : > { %9787 = vmatpush1.bf16.msra.mxu0 %v22787_v41  ;;  %20811 = vmatprep.subr.bf16.mxu1 %v22791_v9  ;;  %v22815_v41 = vld [vmem:[#allocation7 + $0xfd8] ss:$20 sps:$4 sm:$0xff]   ;;  %v22812_v9 = vld [vmem:[#allocation7 + $0x1890] ss:$20 sps:$4 sm:$0xff]  }
 0x507   : > { %9788 = vmatprep.subr.bf16.mxu0 %v22794_v53 }
 0x509   : > { %20812 = vmatpush3.bf16.msra.mxu1 %v22795_v18  ;;  %v22816_v18 = vld [vmem:[#allocation7 + $0x1140] ss:$20 sps:$4 sm:$0xff]  }
 0x50a   : > { %9789 = vmatpush1.bf16.msra.mxu0 %v22792_v14  ;;  %20813 = vmatprep.subr.bf16.mxu1 %v22796_v4  ;;  %v22819_v4 = vld [vmem:[#allocation7 + $0x18bc] ss:$20 sps:$4 sm:$0xff]  }
 0x50b   : > { %9790 = vmatprep.subr.bf16.mxu0 %v22799_v11 }
 0x50c   : > { %7706 = vmatmul.mubr.bf16.gmra.mrb[92].mxu1 %v25254_v7 }
 0x50d   : > { %20814 = vmatpush3.bf16.msra.mxu1 %v22800_v46  ;;  %7899 = vmatprep.mubr.bf16.mxu1 %v25143_v49 }
 0x50e   : > { %9791 = vmatpush1.bf16.msra.mxu0 %v22797_v32  ;;  %20815 = vmatprep.subr.bf16.mxu1 %v22801_v39  ;;  %v22820_v32 = vld [vmem:[#allocation7 + $0x1000] ss:$20 sps:$4 sm:$0xff]  }
 0x50f   : > { %9792 = vmatprep.subr.bf16.mxu0 %v22804_v56 }
 0x511   : > { %20816 = vmatpush3.bf16.msra.mxu1 %v22805_v13  ;;  %v22817_v13 = vld [vmem:[#allocation7 + $0x18b8] ss:$20 sps:$4 sm:$0xff]  }
 0x512   : > { %9793 = vmatpush1.bf16.msra.mxu0 %v22802_v20  ;;  %20817 = vmatprep.subr.bf16.mxu1 %v22806_v62  ;;  %v22821_v20 = vld [vmem:[#allocation7 + $0x1168] ss:$20 sps:$4 sm:$0xff]   ;;  %v22824_v62 = vld [vmem:[#allocation7 + $0x18e4] ss:$20 sps:$4 sm:$0xff]  }
 0x513   : > { %9794 = vmatprep.subr.bf16.mxu0 %v22809_v0 }
 0x514   : > { %v20769_v17 = vpop.f32.mrb[76].mxu1 }
 0x515   : > { %20818 = vmatpush3.bf16.msra.mxu1 %v22810_v55  ;;  %v20770_v12 = vpop.f32.mrb[77].mxu1 }
 0x516   : > { %9795 = vmatpush1.bf16.msra.mxu0 %v22807_v50  ;;  %v20771_v49 = vadd.f32 %v20770_v12, %v20769_v17  ;;  %20819 = vmatprep.subr.bf16.mxu1 %v22811_v22  ;;  %v20772_v53 = vpop.f32.mrb[78].mxu1  ;;  %v22825_v22 = vld [vmem:[#allocation7 + $0x1028] ss:$20 sps:$4 sm:$0xff]   ;;  %v22826_v12 = vld [vmem:[#allocation7 + $0x1550] ss:$20 sps:$4 sm:$0xff]  }
 0x517   : > { %9796 = vmatprep.subr.bf16.mxu0 %v22814_v16  ;;  %v20773_v14 = vpop.f32.mrb[79].mxu1 }
 0x518   : > { %v5921_v11 = vadd.f32 %v20771_v49, %v25241_v8  ;;  %v20774_v46 = vadd.f32 %v20773_v14, %v20772_v53  ;;  %v22830_v14 = vld [vmem:[#allocation7 + $0x1410] ss:$20 sps:$4 sm:$0xff]  }
 0x519   : > { %20820 = vmatpush3.bf16.msra.mxu1 %v22815_v41 }
 0x51a   : > { %v25300_v39 = vadd.f32 %v25271_v15, %v5921_v11  ;;  %9797 = vmatpush1.bf16.msra.mxu0 %v22812_v9  ;;  %v5924_v56 = vadd.f32 %v20774_v46, %v25244_v2  ;;  %20821 = vmatprep.subr.bf16.mxu1 %v22816_v18  ;;  %v22822_v2 = vld [vmem:[#allocation7 + $0x18e0] ss:$20 sps:$4 sm:$0xff]   ;;  %v22831_v11 = vld [vmem:[#allocation7 + $0x1578] ss:$20 sps:$4 sm:$0xff]   ;;  %v26246_v46 = vor.u32 %v24942_v52, %v24938_v5 }
 0x51b   : > { %9798 = vmatprep.subr.bf16.mxu0 %v22819_v4  ;;  %v22829_v9 = vld [vmem:[#allocation7 + $0x190c] ss:$20 sps:$4 sm:$0xff]   ;;  %v22827_v4 = vld [vmem:[#allocation7 + $0x1908] ss:$20 sps:$4 sm:$0xff]  }
 0x51c   : > { %v25304_v0 = vadd.f32 %v25273_v35, %v5924_v56  ;;  %v20775_v55 = vpop.f32.mrb[80].mxu1  ;;  %v22832_v56 = vld [vmem:[#allocation7 + $0x1930] ss:$20 sps:$4 sm:$0xff]   ;;  %v22840_v5 = vld [vmem:[#allocation7 + $0x1460] ss:$20 sps:$4 sm:$0xff]  }
 0x51d   : > { %20822 = vmatpush3.bf16.msra.mxu1 %v22820_v32  ;;  %v25306_v8 = vpop.f32.mrb[92].mxu0  ;;  %v20776_v50 = vpop.f32.mrb[81].mxu1  ;;  %v25320_v32 = vsel %vm1304_vm4, %v26246_v46, %v24903_v61  ;;  %v22837_v52 = vld [vmem:[#allocation7 + $0x1958] ss:$20 sps:$4 sm:$0xff]  }
 0x51e   : > { %9799 = vmatpush1.bf16.msra.mxu0 %v22817_v13  ;;  %v20777_v15 = vadd.f32 %v20776_v50, %v20775_v55  ;;  %v25308_v16 = vpop.f32.mrb[93].mxu0  ;;  %20823 = vmatprep.subr.bf16.mxu1 %v22821_v20  ;;  %v20778_v17 = vpop.f32.mrb[82].mxu1  ;;  %v22839_v13 = vld [vmem:[#allocation7 + $0x195c] ss:$20 sps:$4 sm:$0xff]   ;;  %v22868_v46 = vld [vmem:[#allocation7 + $0x1684] ss:$20 sps:$4 sm:$0xff]  }
 0x51f   : > { %9800 = vmatprep.subr.bf16.mxu0 %v22824_v62  ;;  %v7762_v41 = vpop.f32.mrb[94].mxu0  ;;  %v20779_v49 = vpop.f32.mrb[83].mxu1  ;;  %v22841_v20 = vld [vmem:[#allocation7 + $0x15c8] ss:$20 sps:$4 sm:$0xff]   ;;  %v26247_v62 = vor.u32 %v24798_v60, %v24794_v59  ;;  %v22851_v17 = vld [vmem:[#allocation7 + $0x1618] ss:$20 sps:$4 sm:$0xff]  }
 0x520   : > { %v5929_v35 = vadd.f32 %v20777_v15, %v25257_v6  ;;  %v7763_v53 = vpop.f32.mrb[95].mxu0  ;;  %v22834_v6 = vld [vmem:[#allocation7 + $0x1934] ss:$20 sps:$4 sm:$0xff]   ;;  %v22849_v15 = vld [vmem:[#allocation7 + $0x19ac] ss:$20 sps:$4 sm:$0xff]  }
 0x521   : > { %20824 = vmatpush3.bf16.msra.mxu1 %v22825_v22  ;;  %v25333_v55 = vsel %vm1304_vm4, %v26247_v62, %v24822_v25  ;;  %v22845_v50 = vld [vmem:[#allocation7 + $0x1488] ss:$20 sps:$4 sm:$0xff]   ;;  %v22846_v22 = vld [vmem:[#allocation7 + $0x15f0] ss:$20 sps:$4 sm:$0xff]   ;;  %v22855_v60 = vld [vmem:[#allocation7 + $0x14d8] ss:$20 sps:$4 sm:$0xff]  }
 0x522   : > { %v25312_v18 = vadd.f32 %v25275_v43, %v5929_v35  ;;  %9801 = vmatpush1.bf16.msra.mxu0 %v22822_v2  ;;  %20865 = vmatprep.subr.bf16.mxu1 %v22826_v12  ;;  %v22835_v43 = vld [vmem:[#allocation7 + $0x1438] ss:$20 sps:$4 sm:$0xff]   ;;  %v22850_v2 = vld [vmem:[#allocation7 + $0x14b0] ss:$20 sps:$4 sm:$0xff]   ;;  %v22854_v59 = vld [vmem:[#allocation7 + $0x19d4] ss:$20 sps:$4 sm:$0xff]  }
 0x523   : > { %9821 = vmatprep.subr.bf16.mxu0 %v22829_v9  ;;  %v22852_v12 = vld [vmem:[#allocation7 + $0x19d0] ss:$20 sps:$4 sm:$0xff]   ;;  %v22856_v41 = vld [vmem:[#allocation7 + $0x1640] ss:$20 sps:$4 sm:$0xff]   ;;  %v22857_v35 = vld [vmem:[#allocation7 + $0x19f8] ss:$20 sps:$4 sm:$0xff]  }
 0x524   : > { %7900 = vmatmul.mubr.bf16.vlgmr.msra.gmra.mrb[96].mxu1 %v25181_v37  ;;  %v22836_v37 = vld [vmem:[#allocation7 + $0x15a0] ss:$20 sps:$4 sm:$0xff]   ;;  %v22859_v49 = vld [vmem:[#allocation7 + $0x19fc] ss:$20 sps:$4 sm:$0xff]  }
 0x525   : > { %9803 = vmatmul.mubr.bf16.vlgmr.msra.gmra.mrb[48].mxu0 %v25320_v32  ;;  %7907 = vmatprep.mubr.bf16.mxu1 %v25137_v30  ;;  %v22844_v30 = vld [vmem:[#allocation7 + $0x1984] ss:$20 sps:$4 sm:$0xff]   ;;  %v22860_v9 = vld [vmem:[#allocation7 + $0x1500] ss:$20 sps:$4 sm:$0xff]   ;;  %v22861_v53 = vld [vmem:[#allocation7 + $0x1668] ss:$20 sps:$4 sm:$0xff]  }
 0x526   : > { %20866 = vmatpush3.bf16.msra.mxu1 %v22830_v14  ;;  %9812 = vmatprep.mubr.bf16.mxu0 %v24907_v58  ;;  %v22864_v14 = vld [vmem:[#allocation7 + $0x1a24] ss:$20 sps:$4 sm:$0xff]  }
 0x527   : > { %9822 = vmatpush1.bf16.msra.mxu0 %v22827_v4  ;;  %20867 = vmatprep.subr.bf16.mxu1 %v22831_v11  ;;  %v22865_v4 = vld [vmem:[#allocation7 + $0x1528] ss:$20 sps:$4 sm:$0xff]   ;;  %v22862_v11 = vld [vmem:[#allocation7 + $0x1a20] ss:$20 sps:$4 sm:$0xff]   ;;  %v22878_v62 = vld [vmem:[#allocation7 + $0x16d0] ss:$20 sps:$4 sm:$0xff]  }
 0x528   : > { %9823 = vmatprep.subr.bf16.mxu0 %v22834_v6  ;;  %v22871_v6 = vld [vmem:[#allocation7 + $0x1a4c] ss:$20 sps:$4 sm:$0xff]  }
 0x52a   : > { %20868 = vmatpush3.bf16.msra.mxu1 %v22835_v43  ;;  %v22866_v43 = vld [vmem:[#allocation7 + $0x1680] ss:$20 sps:$4 sm:$0xff]  }
 0x52b   : > { %9824 = vmatpush1.bf16.msra.mxu0 %v22832_v56  ;;  %20869 = vmatprep.subr.bf16.mxu1 %v22836_v37  ;;  %v22869_v56 = vld [vmem:[#allocation7 + $0x1a48] ss:$20 sps:$4 sm:$0xff]   ;;  %v22874_v37 = vld [vmem:[#allocation7 + $0x16ac] ss:$20 sps:$4 sm:$0xff]  }
 0x52c   : > { %7908 = vmatmul.mubr.bf16.gmra.mrb[100].mxu1 %v25173_v38  ;;  %9825 = vmatprep.subr.bf16.mxu0 %v22839_v13  ;;  %v22842_v38 = vld [vmem:[#allocation7 + $0x1980] ss:$20 sps:$4 sm:$0xff]  }
 0x52d   : > { %9813 = vmatmul.mubr.bf16.gmra.mrb[112].mxu0 %v24903_v61  ;;  %7995 = vmatprep.mubr.bf16.mxu1 %v25231_v40  ;;  %v22847_v40 = vld [vmem:[#allocation7 + $0x19a8] ss:$20 sps:$4 sm:$0xff]  }
 0x52e   : > { %20870 = vmatpush3.bf16.msra.mxu1 %v22840_v5  ;;  %9853 = vmatprep.mubr.bf16.mxu0 %v25333_v55  ;;  %v22877_v13 = vld [vmem:[#allocation7 + $0x1a74] ss:$20 sps:$4 sm:$0xff]  }
 0x52f   : > { %9826 = vmatpush1.bf16.msra.mxu0 %v22837_v52  ;;  %20871 = vmatprep.subr.bf16.mxu1 %v22841_v20  ;;  %v22872_v5 = vld [vmem:[#allocation7 + $0x16a8] ss:$20 sps:$4 sm:$0xff]   ;;  %v22875_v52 = vld [vmem:[#allocation7 + $0x1a70] ss:$20 sps:$4 sm:$0xff]  }
 0x530   : > { %9827 = vmatprep.subr.bf16.mxu0 %v22844_v30  ;;  %v22880_v20 = vld [vmem:[#allocation7 + $0x16d4] ss:$20 sps:$4 sm:$0xff]   ;;  %v22883_v30 = vld [vmem:[#allocation7 + $0x1a9c] ss:$20 sps:$4 sm:$0xff]  }
 0x532   : > { %20872 = vmatpush3.bf16.msra.mxu1 %v22845_v50  ;;  %v22881_v50 = vld [vmem:[#allocation7 + $0x1a98] ss:$20 sps:$4 sm:$0xff]  }
 0x533   : > { %9828 = vmatpush1.bf16.msra.mxu0 %v22842_v38  ;;  %20873 = vmatprep.subr.bf16.mxu1 %v22846_v22  ;;  %v22886_v38 = vld [vmem:[#allocation7 + $0x16fc] ss:$20 sps:$4 sm:$0xff]   ;;  %v22889_v22 = vld [vmem:[#allocation7 + $0x1ac4] ss:$20 sps:$4 sm:$0xff]  }
 0x534   : > { %9829 = vmatprep.subr.bf16.mxu0 %v22849_v15  ;;  %v22892_v15 = vld [vmem:[#allocation7 + $0x1724] ss:$20 sps:$4 sm:$0xff]  }
 0x536   : > { %20874 = vmatpush3.bf16.msra.mxu1 %v22850_v2  ;;  %v22895_v2 = vld [vmem:[#allocation7 + $0x1aec] ss:$20 sps:$4 sm:$0xff]  }
 0x537   : > { %9830 = vmatpush1.bf16.msra.mxu0 %v22847_v40  ;;  %20875 = vmatprep.subr.bf16.mxu1 %v22851_v17  ;;  %v22890_v40 = vld [vmem:[#allocation7 + $0x1720] ss:$20 sps:$4 sm:$0xff]   ;;  %v22893_v17 = vld [vmem:[#allocation7 + $0x1ae8] ss:$20 sps:$4 sm:$0xff]  }
 0x538   : > { %9831 = vmatprep.subr.bf16.mxu0 %v22854_v59  ;;  %v22898_v59 = vld [vmem:[#allocation7 + $0x174c] ss:$20 sps:$4 sm:$0xff]  }
 0x53a   : > { %20876 = vmatpush3.bf16.msra.mxu1 %v22855_v60  ;;  %v22901_v60 = vld [vmem:[#allocation7 + $0x1b14] ss:$20 sps:$4 sm:$0xff]  }
 0x53b   : > { %9832 = vmatpush1.bf16.msra.mxu0 %v22852_v12  ;;  %20877 = vmatprep.subr.bf16.mxu1 %v22856_v41  ;;  %v22899_v12 = vld [vmem:[#allocation7 + $0x1b10] ss:$20 sps:$4 sm:$0xff]   ;;  %v22904_v41 = vld [vmem:[#allocation7 + $0x1774] ss:$20 sps:$4 sm:$0xff]  }
 0x53c   : > { %9833 = vmatprep.subr.bf16.mxu0 %v22859_v49  ;;  %v22907_v49 = vld [vmem:[#allocation7 + $0x1b3c] ss:$20 sps:$4 sm:$0xff]  }
 0x53e   : > { %20878 = vmatpush3.bf16.msra.mxu1 %v22860_v9  ;;  %v22902_v9 = vld [vmem:[#allocation7 + $0x1770] ss:$20 sps:$4 sm:$0xff]  }
 0x53f   : > { %9834 = vmatpush1.bf16.msra.mxu0 %v22857_v35  ;;  %20879 = vmatprep.subr.bf16.mxu1 %v22861_v53  ;;  %v22905_v35 = vld [vmem:[#allocation7 + $0x1b38] ss:$20 sps:$4 sm:$0xff]   ;;  %v22910_v53 = vld [vmem:[#allocation7 + $0x179c] ss:$20 sps:$4 sm:$0xff]  }
 0x540   : > { %9835 = vmatprep.subr.bf16.mxu0 %v22864_v14  ;;  %v22913_v14 = vld [vmem:[#allocation7 + $0x1b64] ss:$20 sps:$4 sm:$0xff]  }
 0x542   : > { %20880 = vmatpush3.bf16.msra.mxu1 %v22865_v4 }
 0x543   : > { %9836 = vmatpush1.bf16.msra.mxu0 %v22862_v11  ;;  %9617 = vmatprep.subr.bf16.mxu1 %v22868_v46 }
 0x544   : > { %9837 = vmatprep.subr.bf16.mxu0 %v22871_v6  ;;  %v22908_v6 = vld [vmem:[#allocation7 + $0x1798] ss:$20 sps:$4 sm:$0xff]  }
 0x545   : > { %7996 = vmatmul.mubr.bf16.vlgmr.msra.gmra.mrb[104].mxu1 %v25262_v3  ;;  %v22887_v3 = vld [vmem:[#allocation7 + $0x1ac0] ss:$20 sps:$4 sm:$0xff]  }
 0x546   : > { %8003 = vmatprep.mubr.bf16.mxu1 %v25224_v54  ;;  %9618 = vmatpush1.bf16.msra.mxu1 %v22866_v43  ;;  %v22884_v54 = vld [vmem:[#allocation7 + $0x16f8] ss:$20 sps:$4 sm:$0xff]  }
 0x547   : > { %9838 = vmatpush1.bf16.msra.mxu0 %v22869_v56  ;;  %9619 = vmatprep.subr.bf16.mxu1 %v22874_v37  ;;  %v22911_v37 = vld [vmem:[#allocation7 + $0x1b60] ss:$20 sps:$4 sm:$0xff]  }
 0x548   : > { %9839 = vmatprep.subr.bf16.mxu0 %v22877_v13 }
 0x54a   : > { %9620 = vmatpush1.bf16.msra.mxu1 %v22872_v5  ;;  %v22916_v5 = vld [vmem:[#allocation7 + $0x17c4] ss:$20 sps:$4 sm:$0xff]  }
 0x54b   : > { %9840 = vmatpush1.bf16.msra.mxu0 %v22875_v52  ;;  %9621 = vmatprep.subr.bf16.mxu1 %v22880_v20 }
 0x54c   : > { %9841 = vmatprep.subr.bf16.mxu0 %v22883_v30 }
 0x54d   : > { %8004 = vmatmul.mubr.bf16.gmra.mrb[108].mxu1 %v25254_v7  ;;  %v22896_v7 = vld [vmem:[#allocation7 + $0x1748] ss:$20 sps:$4 sm:$0xff]  }
 0x54e   : > { %9622 = vmatpush1.bf16.msra.mxu1 %v22878_v62  ;;  %9649 = vmatprep.mubr.bf16.mxu1 %v25285_v21  ;;  %v22919_v62 = vld [vmem:[#allocation7 + $0x1b8c] ss:$20 sps:$4 sm:$0xff]  }
 0x54f   : > { %9842 = vmatpush1.bf16.msra.mxu0 %v22881_v50  ;;  %9623 = vmatprep.subr.bf16.mxu1 %v22886_v38  ;;  %v22914_v38 = vld [vmem:[#allocation7 + $0x17c0] ss:$20 sps:$4 sm:$0xff]  }
 0x550   : > { %9843 = vmatprep.subr.bf16.mxu0 %v22889_v22  ;;  %v22917_v22 = vld [vmem:[#allocation7 + $0x1b88] ss:$20 sps:$4 sm:$0xff]  }
 0x552   : > { %9624 = vmatpush1.bf16.msra.mxu1 %v22884_v54  ;;  %v22925_v54 = vld [vmem:[#allocation7 + $0x1bb4] ss:$20 sps:$4 sm:$0xff]  }
 0x553   : > { %9844 = vmatpush1.bf16.msra.mxu0 %v22887_v3  ;;  %9625 = vmatprep.subr.bf16.mxu1 %v22892_v15  ;;  %v26248_v3 = vor.u32 %v24830_v27, %v24826_v26  ;;  %v22920_v15 = vld [vmem:[#allocation7 + $0x17e8] ss:$20 sps:$4 sm:$0xff]   ;;  %v22929_v26 = vld [vmem:[#allocation7 + $0x1bd8] ss:$20 sps:$4 sm:$0xff]  }
 0x554   : > { %9845 = vmatprep.subr.bf16.mxu0 %v22895_v2  ;;  %v22923_v2 = vld [vmem:[#allocation7 + $0x1bb0] ss:$20 sps:$4 sm:$0xff]  }
 0x555   : > { %v22934_v27 = vld [vmem:[#allocation7 + $0x183c] ss:$20 sps:$4 sm:$0xff]  }
 0x556   : > { %9626 = vmatpush1.bf16.msra.mxu1 %v22890_v40  ;;  %v22928_v40 = vld [vmem:[#allocation7 + $0x1814] ss:$20 sps:$4 sm:$0xff]  }
 0x557   : > { %9846 = vmatpush1.bf16.msra.mxu0 %v22893_v17  ;;  %9627 = vmatprep.subr.bf16.mxu1 %v22898_v59  ;;  %v22931_v17 = vld [vmem:[#allocation7 + $0x1bdc] ss:$20 sps:$4 sm:$0xff]  }
 0x558   : > { %9847 = vmatprep.subr.bf16.mxu0 %v22901_v60  ;;  %v22926_v59 = vld [vmem:[#allocation7 + $0x1810] ss:$20 sps:$4 sm:$0xff]  }
 0x559   : > { %v22937_v60 = vld [vmem:[#allocation7 + $0x1c04] ss:$20 sps:$4 sm:$0xff]  }
 0x55a   : > { %9628 = vmatpush1.bf16.msra.mxu1 %v22896_v7  ;;  %v26249_v7 = vor.u32 %v24974_v44, %v24970_v36  ;;  %v22949_v36 = vld [vmem:[#allocation7 + $0x1c54] ss:$20 sps:$4 sm:$0xff]  }
 0x55b   : > { %9848 = vmatpush1.bf16.msra.mxu0 %v22899_v12  ;;  %9629 = vmatprep.subr.bf16.mxu1 %v22904_v41  ;;  %v22932_v41 = vld [vmem:[#allocation7 + $0x1838] ss:$20 sps:$4 sm:$0xff]   ;;  %v22944_v44 = vld [vmem:[#allocation7 + $0x1888] ss:$20 sps:$4 sm:$0xff]  }
 0x55c   : > { %9849 = vmatprep.subr.bf16.mxu0 %v22907_v49  ;;  %v25365_v12 = vsel %vm1304_vm4, %v26249_v7, %v24992_v51  ;;  %v22935_v49 = vld [vmem:[#allocation7 + $0x1c00] ss:$20 sps:$4 sm:$0xff]   ;;  %v22985_v7 = vld [vmem:[#allocation7 + $0x1d44] ss:$20 sps:$4 sm:$0xff]  }
 0x55d   : > { %v25340_v4 = vpop.f32.mrb[84].mxu1 }
 0x55e   : > { %9630 = vmatpush1.bf16.msra.mxu1 %v22902_v9  ;;  %v7809_v11 = vpop.f32.mrb[96].mxu0  ;;  %v25342_v46 = vpop.f32.mrb[85].mxu1  ;;  %v22940_v9 = vld [vmem:[#allocation7 + $0x1864] ss:$20 sps:$4 sm:$0xff]  }
 0x55f   : > { %9850 = vmatpush1.bf16.msra.mxu0 %v22905_v35  ;;  %v25345_v43 = vadd.f32 %v7809_v11, %v25306_v8  ;;  %v7811_v56 = vpop.f32.mrb[97].mxu0  ;;  %9631 = vmatprep.subr.bf16.mxu1 %v22910_v53  ;;  %v7609_v13 = vpop.f32.mrb[86].mxu1  ;;  %v22922_v8 = vld [vmem:[#allocation7 + $0x17ec] ss:$20 sps:$4 sm:$0xff]  }
 0x560   : > { %v25348_v52 = vadd.f32 %v7811_v56, %v25308_v16  ;;  %9851 = vmatprep.subr.bf16.mxu0 %v22913_v14  ;;  %v7813_v20 = vpop.f32.mrb[98].mxu0  ;;  %v7610_v30 = vpop.f32.mrb[87].mxu1  ;;  %v25355_v16 = vsel %vm1304_vm4, %v26248_v3, %v24820_v24  ;;  %v22943_v35 = vld [vmem:[#allocation7 + $0x1c2c] ss:$20 sps:$4 sm:$0xff]   ;;  %v22941_v14 = vld [vmem:[#allocation7 + $0x1c28] ss:$20 sps:$4 sm:$0xff]  }
 0x561   : > { %v7814_v50 = vpop.f32.mrb[99].mxu0  ;;  %v22938_v53 = vld [vmem:[#allocation7 + $0x1860] ss:$20 sps:$4 sm:$0xff]   ;;  %v22950_v13 = vld [vmem:[#allocation7 + $0x18b0] ss:$20 sps:$4 sm:$0xff]  }
 0x562   : > { %9632 = vmatpush1.bf16.msra.mxu1 %v22908_v6  ;;  %v22946_v11 = vld [vmem:[#allocation7 + $0x188c] ss:$20 sps:$4 sm:$0xff]   ;;  %v22947_v6 = vld [vmem:[#allocation7 + $0x1c50] ss:$20 sps:$4 sm:$0xff]   ;;  %v22952_v56 = vld [vmem:[#allocation7 + $0x18b4] ss:$20 sps:$4 sm:$0xff]  }
 0x563   : > { %9852 = vmatpush1.bf16.msra.mxu0 %v22911_v37  ;;  %9633 = vmatprep.subr.bf16.mxu1 %v22916_v5  ;;  %v22955_v37 = vld [vmem:[#allocation7 + $0x1c7c] ss:$20 sps:$4 sm:$0xff]   ;;  %v22953_v5 = vld [vmem:[#allocation7 + $0x1c78] ss:$20 sps:$4 sm:$0xff]   ;;  %v22959_v50 = vld [vmem:[#allocation7 + $0x1ca0] ss:$20 sps:$4 sm:$0xff]  }
 0x564   : > { %9872 = vmatprep.subr.bf16.mxu0 %v22919_v62  ;;  %v22958_v20 = vld [vmem:[#allocation7 + $0x18dc] ss:$20 sps:$4 sm:$0xff]   ;;  %v22961_v30 = vld [vmem:[#allocation7 + $0x1ca4] ss:$20 sps:$4 sm:$0xff]   ;;  %v22970_v3 = vld [vmem:[#allocation7 + $0x192c] ss:$20 sps:$4 sm:$0xff]  }
 0x565   : > { %v22956_v62 = vld [vmem:[#allocation7 + $0x18d8] ss:$20 sps:$4 sm:$0xff]  }
 0x566   : > { %9854 = vmatmul.mubr.bf16.vlgmr.msra.gmra.mrb[48].mxu0 %v25355_v16  ;;  %9634 = vmatpush1.bf16.msra.mxu1 %v22914_v38  ;;  %v22964_v38 = vld [vmem:[#allocation7 + $0x1904] ss:$20 sps:$4 sm:$0xff]  }
 0x567   : > { %9863 = vmatprep.mubr.bf16.mxu0 %v24822_v25  ;;  %9873 = vmatpush1.bf16.msra.mxu0 %v22917_v22  ;;  %v22967_v22 = vld [vmem:[#allocation7 + $0x1ccc] ss:$20 sps:$4 sm:$0xff]  }
 0x568   : > { %9635 = vmatprep.subr.bf16.mxu1 %v22922_v8  ;;  %9874 = vmatprep.subr.bf16.mxu0 %v22925_v54  ;;  %v22962_v8 = vld [vmem:[#allocation7 + $0x1900] ss:$20 sps:$4 sm:$0xff]   ;;  %v22965_v54 = vld [vmem:[#allocation7 + $0x1cc8] ss:$20 sps:$4 sm:$0xff]  }
 0x56a   : > { %9636 = vmatpush1.bf16.msra.mxu1 %v22920_v15  ;;  %v22973_v15 = vld [vmem:[#allocation7 + $0x1cf4] ss:$20 sps:$4 sm:$0xff]  }
 0x56b   : > { %9875 = vmatpush1.bf16.msra.mxu0 %v22923_v2  ;;  %9637 = vmatprep.subr.bf16.mxu1 %v22928_v40  ;;  %v22968_v2 = vld [vmem:[#allocation7 + $0x1928] ss:$20 sps:$4 sm:$0xff]   ;;  %v22971_v40 = vld [vmem:[#allocation7 + $0x1cf0] ss:$20 sps:$4 sm:$0xff]  }
 0x56c   : > { %9876 = vmatprep.subr.bf16.mxu0 %v22931_v17  ;;  %v22976_v17 = vld [vmem:[#allocation7 + $0x1954] ss:$20 sps:$4 sm:$0xff]  }
 0x56e   : > { %9864 = vmatmul.mubr.bf16.gmra.mrb[116].mxu0 %v24820_v24  ;;  %9638 = vmatpush1.bf16.msra.mxu1 %v22926_v59  ;;  %v22979_v59 = vld [vmem:[#allocation7 + $0x1d1c] ss:$20 sps:$4 sm:$0xff]  }
 0x56f   : > { %9877 = vmatpush1.bf16.msra.mxu0 %v22929_v26  ;;  %9904 = vmatprep.mubr.bf16.mxu0 %v25365_v12  ;;  %v22974_v26 = vld [vmem:[#allocation7 + $0x1950] ss:$20 sps:$4 sm:$0xff]  }
 0x570   : > { %9639 = vmatprep.subr.bf16.mxu1 %v22934_v27  ;;  %9878 = vmatprep.subr.bf16.mxu0 %v22937_v60  ;;  %v22977_v27 = vld [vmem:[#allocation7 + $0x1d18] ss:$20 sps:$4 sm:$0xff]   ;;  %v22982_v60 = vld [vmem:[#allocation7 + $0x197c] ss:$20 sps:$4 sm:$0xff]  }
 0x572   : > { %9640 = vmatpush1.bf16.msra.mxu1 %v22932_v41  ;;  %v22980_v41 = vld [vmem:[#allocation7 + $0x1978] ss:$20 sps:$4 sm:$0xff]  }
 0x573   : > { %9879 = vmatpush1.bf16.msra.mxu0 %v22935_v49  ;;  %9641 = vmatprep.subr.bf16.mxu1 %v22940_v9  ;;  %v22983_v49 = vld [vmem:[#allocation7 + $0x1d40] ss:$20 sps:$4 sm:$0xff]   ;;  %v22988_v9 = vld [vmem:[#allocation7 + $0x19a4] ss:$20 sps:$4 sm:$0xff]  }
 0x574   : > { %9880 = vmatprep.subr.bf16.mxu0 %v22943_v35  ;;  %v22991_v35 = vld [vmem:[#allocation7 + $0x1d6c] ss:$20 sps:$4 sm:$0xff]  }
 0x576   : > { %9642 = vmatpush1.bf16.msra.mxu1 %v22938_v53  ;;  %v22986_v53 = vld [vmem:[#allocation7 + $0x19a0] ss:$20 sps:$4 sm:$0xff]  }
 0x577   : > { %9881 = vmatpush1.bf16.msra.mxu0 %v22941_v14  ;;  %9643 = vmatprep.subr.bf16.mxu1 %v22946_v11  ;;  %v22989_v14 = vld [vmem:[#allocation7 + $0x1d68] ss:$20 sps:$4 sm:$0xff]   ;;  %v22994_v11 = vld [vmem:[#allocation7 + $0x19cc] ss:$20 sps:$4 sm:$0xff]  }
 0x578   : > { %9882 = vmatprep.subr.bf16.mxu0 %v22949_v36  ;;  %v22997_v36 = vld [vmem:[#allocation7 + $0x1d94] ss:$20 sps:$4 sm:$0xff]  }
 0x57a   : > { %9644 = vmatpush1.bf16.msra.mxu1 %v22944_v44  ;;  %v22992_v44 = vld [vmem:[#allocation7 + $0x19c8] ss:$20 sps:$4 sm:$0xff]  }
 0x57b   : > { %9883 = vmatpush1.bf16.msra.mxu0 %v22947_v6  ;;  %9645 = vmatprep.subr.bf16.mxu1 %v22952_v56  ;;  %v22995_v6 = vld [vmem:[#allocation7 + $0x1d90] ss:$20 sps:$4 sm:$0xff]   ;;  %v23000_v56 = vld [vmem:[#allocation7 + $0x19f4] ss:$20 sps:$4 sm:$0xff]  }
 0x57c   : > { %9884 = vmatprep.subr.bf16.mxu0 %v22955_v37  ;;  %v23003_v37 = vld [vmem:[#allocation7 + $0x1dbc] ss:$20 sps:$4 sm:$0xff]  }
 0x57e   : > { %9646 = vmatpush1.bf16.msra.mxu1 %v22950_v13  ;;  %v22998_v13 = vld [vmem:[#allocation7 + $0x19f0] ss:$20 sps:$4 sm:$0xff]  }
 0x57f   : > { %9885 = vmatpush1.bf16.msra.mxu0 %v22953_v5  ;;  %9647 = vmatprep.subr.bf16.mxu1 %v22958_v20  ;;  %v23001_v5 = vld [vmem:[#allocation7 + $0x1db8] ss:$20 sps:$4 sm:$0xff]   ;;  %v23006_v20 = vld [vmem:[#allocation7 + $0x1a1c] ss:$20 sps:$4 sm:$0xff]  }
 0x580   : > { %9886 = vmatprep.subr.bf16.mxu0 %v22961_v30  ;;  %v23009_v30 = vld [vmem:[#allocation7 + $0x1de4] ss:$20 sps:$4 sm:$0xff]  }
 0x582   : > { %9648 = vmatpush1.bf16.msra.mxu1 %v22956_v62 }
 0x583   : > { %9887 = vmatpush1.bf16.msra.mxu0 %v22959_v50  ;;  %9668 = vmatprep.subr.bf16.mxu1 %v22964_v38  ;;  %v23004_v50 = vld [vmem:[#allocation7 + $0x1a18] ss:$20 sps:$4 sm:$0xff]  }
 0x584   : > { %9888 = vmatprep.subr.bf16.mxu0 %v22967_v22 }
 0x585   : > { %9650 = vmatmul.mubr.bf16.vlgmr.msra.gmra.mrb[24].mxu1 %v25320_v32 }
 0x586   : > { %9659 = vmatprep.mubr.bf16.mxu1 %v24907_v58  ;;  %9669 = vmatpush1.bf16.msra.mxu1 %v22962_v8 }
 0x587   : > { %9889 = vmatpush1.bf16.msra.mxu0 %v22965_v54  ;;  %9670 = vmatprep.subr.bf16.mxu1 %v22970_v3  ;;  %v23007_v54 = vld [vmem:[#allocation7 + $0x1de0] ss:$20 sps:$4 sm:$0xff]   ;;  %v23012_v3 = vld [vmem:[#allocation7 + $0x1a44] ss:$20 sps:$4 sm:$0xff]  }
 0x588   : > { %9890 = vmatprep.subr.bf16.mxu0 %v22973_v15 }
 0x58a   : > { %9671 = vmatpush1.bf16.msra.mxu1 %v22968_v2 }
 0x58b   : > { %9891 = vmatpush1.bf16.msra.mxu0 %v22971_v40  ;;  %9672 = vmatprep.subr.bf16.mxu1 %v22976_v17 }
 0x58c   : > { %9892 = vmatprep.subr.bf16.mxu0 %v22979_v59  ;;  %v23013_v59 = vld [vmem:[#allocation7 + $0x17d0] ss:$20 sps:$4 sm:$0xff]  }
 0x58d   : > { %9660 = vmatmul.mubr.bf16.gmra.mrb[112].mxu1 %v24903_v61 }
 0x58e   : > { %9673 = vmatpush1.bf16.msra.mxu1 %v22974_v26  ;;  %9700 = vmatprep.mubr.bf16.mxu1 %v25333_v55 }
 0x58f   : > { %9893 = vmatpush1.bf16.msra.mxu0 %v22977_v27  ;;  %9674 = vmatprep.subr.bf16.mxu1 %v22982_v60 }
 0x590   : > { %9894 = vmatprep.subr.bf16.mxu0 %v22985_v7 }
 0x592   : > { %9675 = vmatpush1.bf16.msra.mxu1 %v22980_v41  ;;  %v23010_v41 = vld [vmem:[#allocation7 + $0x1a40] ss:$20 sps:$4 sm:$0xff]  }
 0x593   : > { %9895 = vmatpush1.bf16.msra.mxu0 %v22983_v49  ;;  %9676 = vmatprep.subr.bf16.mxu1 %v22988_v9  ;;  %v23018_v9 = vld [vmem:[#allocation7 + $0x17f8] ss:$20 sps:$4 sm:$0xff]  }
 0x594   : > { %9896 = vmatprep.subr.bf16.mxu0 %v22991_v35 }
 0x596   : > { %9677 = vmatpush1.bf16.msra.mxu1 %v22986_v53  ;;  %v23022_v53 = vld [vmem:[#allocation7 + $0x1a94] ss:$20 sps:$4 sm:$0xff]  }
 0x597   : > { %9897 = vmatpush1.bf16.msra.mxu0 %v22989_v14  ;;  %9678 = vmatprep.subr.bf16.mxu1 %v22994_v11  ;;  %v23023_v14 = vld [vmem:[#allocation7 + $0x1820] ss:$20 sps:$4 sm:$0xff]   ;;  %v23020_v11 = vld [vmem:[#allocation7 + $0x1a90] ss:$20 sps:$4 sm:$0xff]  }
 0x598   : > { %9898 = vmatprep.subr.bf16.mxu0 %v22997_v36  ;;  %v23028_v36 = vld [vmem:[#allocation7 + $0x1848] ss:$20 sps:$4 sm:$0xff]  }
 0x59a   : > { %9679 = vmatpush1.bf16.msra.mxu1 %v22992_v44  ;;  %v23025_v44 = vld [vmem:[#allocation7 + $0x1ab8] ss:$20 sps:$4 sm:$0xff]  }
 0x59b   : > { %9899 = vmatpush1.bf16.msra.mxu0 %v22995_v6  ;;  %9680 = vmatprep.subr.bf16.mxu1 %v23000_v56  ;;  %v23029_v6 = vld [vmem:[#allocation7 + $0x1708] ss:$20 sps:$4 sm:$0xff]   ;;  %v23032_v56 = vld [vmem:[#allocation7 + $0x1ae4] ss:$20 sps:$4 sm:$0xff]  }
 0x59c   : > { %9900 = vmatprep.subr.bf16.mxu0 %v23003_v37  ;;  %v23033_v37 = vld [vmem:[#allocation7 + $0x1870] ss:$20 sps:$4 sm:$0xff]  }
 0x59e   : > { %9681 = vmatpush1.bf16.msra.mxu1 %v22998_v13  ;;  %v7656_v62 = vpop.f32.mrb[88].mxu1  ;;  %v23030_v13 = vld [vmem:[#allocation7 + $0x1ae0] ss:$20 sps:$4 sm:$0xff]  }
 0x59f   : > { %9901 = vmatpush1.bf16.msra.mxu0 %v23001_v5  ;;  %v25373_v38 = vadd.f32 %v7656_v62, %v25340_v4  ;;  %v7860_v22 = vpop.f32.mrb[100].mxu0  ;;  %v7658_v8 = vpop.f32.mrb[89].mxu1  ;;  %9682 = vmatprep.subr.bf16.mxu1 %v23006_v20  ;;  %v23034_v5 = vld [vmem:[#allocation7 + $0x1730] ss:$20 sps:$4 sm:$0xff]   ;;  %v23037_v20 = vld [vmem:[#allocation7 + $0x1b0c] ss:$20 sps:$4 sm:$0xff]  }
 0x5a0   : > { %v7861_v15 = vadd.f32 %v7860_v22, %v25345_v43  ;;  %v25377_v2 = vadd.f32 %v7658_v8, %v25342_v46  ;;  %v7862_v40 = vpop.f32.mrb[101].mxu0  ;;  %9902 = vmatprep.subr.bf16.mxu0 %v23009_v30  ;;  %v7660_v17 = vpop.f32.mrb[90].mxu1  ;;  %v23014_v46 = vld [vmem:[#allocation7 + $0x1690] ss:$20 sps:$4 sm:$0xff]   ;;  %v23017_v43 = vld [vmem:[#allocation7 + $0x1a6c] ss:$20 sps:$4 sm:$0xff]  }
 0x5a1   : > { %v7863_v26 = vadd.f32 %v7862_v40, %v25348_v52  ;;  %v7864_v27 = vpop.f32.mrb[102].mxu0  ;;  %v7661_v60 = vpop.f32.mrb[91].mxu1  ;;  %v26250_v52 = vor.u32 %v24988_v31, %v24984_v28  ;;  %v23024_v31 = vld [vmem:[#allocation7 + $0x16e0] ss:$20 sps:$4 sm:$0xff]   ;;  %v23027_v28 = vld [vmem:[#allocation7 + $0x1abc] ss:$20 sps:$4 sm:$0xff]  }
 0x5a2   : > { %v25381_v4 = vadd.f32 %v7861_v15, %v25235_v23  ;;  %9683 = vmatpush1.bf16.msra.mxu1 %v23004_v50  ;;  %v7865_v7 = vpop.f32.mrb[103].mxu0  ;;  %v23015_v23 = vld [vmem:[#allocation7 + $0x1a68] ss:$20 sps:$4 sm:$0xff]   ;;  %v23038_v30 = vld [vmem:[#allocation7 + $0x1898] ss:$20 sps:$4 sm:$0xff]  }
 0x5a3   : > { %v25384_v49 = vadd.f32 %v7863_v26, %v25238_v42  ;;  %9903 = vmatpush1.bf16.msra.mxu0 %v23007_v54  ;;  %9684 = vmatprep.subr.bf16.mxu1 %v23012_v3  ;;  %v25391_v35 = vsel %vm1304_vm4, %v26250_v52, %v24980_v29  ;;  %v23019_v42 = vld [vmem:[#allocation7 + $0x16b8] ss:$20 sps:$4 sm:$0xff]   ;;  %v23035_v62 = vld [vmem:[#allocation7 + $0x1b08] ss:$20 sps:$4 sm:$0xff]   ;;  %v23043_v8 = vld [vmem:[#allocation7 + $0x18c0] ss:$20 sps:$4 sm:$0xff]  }
 0x5a4   : > { %20893 = vmatprep.subr.bf16.mxu0 %v23013_v59  ;;  %v23039_v50 = vld [vmem:[#allocation7 + $0x1758] ss:$20 sps:$4 sm:$0xff]   ;;  %v23042_v22 = vld [vmem:[#allocation7 + $0x1b34] ss:$20 sps:$4 sm:$0xff]   ;;  %v23040_v40 = vld [vmem:[#allocation7 + $0x1b30] ss:$20 sps:$4 sm:$0xff]  }
 0x5a5   : > { %v23044_v59 = vld [vmem:[#allocation7 + $0x1780] ss:$20 sps:$4 sm:$0xff]   ;;  %v23047_v26 = vld [vmem:[#allocation7 + $0x1b5c] ss:$20 sps:$4 sm:$0xff]   ;;  %v23045_v7 = vld [vmem:[#allocation7 + $0x1b58] ss:$20 sps:$4 sm:$0xff]  }
 0x5a6   : > { %9905 = vmatmul.mubr.bf16.vlgmr.msra.gmra.mrb[48].mxu0 %v25391_v35  ;;  %9685 = vmatpush1.bf16.msra.mxu1 %v23010_v41  ;;  %v23048_v60 = vld [vmem:[#allocation7 + $0x18e8] ss:$20 sps:$4 sm:$0xff]  }
 0x5a7   : > { %9914 = vmatprep.mubr.bf16.mxu0 %v24992_v51  ;;  %20894 = vmatpush3.bf16.msra.mxu0 %v23014_v46  ;;  %v23049_v41 = vld [vmem:[#allocation7 + $0x17a8] ss:$20 sps:$4 sm:$0xff]   ;;  %v23052_v46 = vld [vmem:[#allocation7 + $0x1b84] ss:$20 sps:$4 sm:$0xff]  }
 0x5a8   : > { %9686 = vmatprep.subr.bf16.mxu1 %v23017_v43  ;;  %20895 = vmatprep.subr.bf16.mxu0 %v23018_v9  ;;  %v23053_v9 = vld [vmem:[#allocation7 + $0x1cd0] ss:$20 sps:$4 sm:$0xff]  }
 0x5aa   : > { %9687 = vmatpush1.bf16.msra.mxu1 %v23015_v23 }
 0x5ab   : > { %20896 = vmatpush3.bf16.msra.mxu0 %v23019_v42  ;;  %9688 = vmatprep.subr.bf16.mxu1 %v23022_v53 }
 0x5ac   : > { %20897 = vmatprep.subr.bf16.mxu0 %v23023_v14  ;;  %v23050_v14 = vld [vmem:[#allocation7 + $0x1b80] ss:$20 sps:$4 sm:$0xff]  }
 0x5ae   : > { %9915 = vmatmul.mubr.bf16.gmra.mrb[120].mxu0 %v24980_v29  ;;  %9689 = vmatpush1.bf16.msra.mxu1 %v23020_v11  ;;  %v23054_v11 = vld [vmem:[#allocation7 + $0x1b90] ss:$20 sps:$4 sm:$0xff]  }
 0x5af   : > { %20898 = vmatpush3.bf16.msra.mxu0 %v23024_v31  ;;  %9955 = vmatprep.mubr.bf16.mxu0 %v25285_v21  ;;  %v23057_v31 = vld [vmem:[#allocation7 + $0x1bac] ss:$20 sps:$4 sm:$0xff]  }
 0x5b0   : > { %9690 = vmatprep.subr.bf16.mxu1 %v23027_v28  ;;  %20899 = vmatprep.subr.bf16.mxu0 %v23028_v36  ;;  %v23058_v28 = vld [vmem:[#allocation7 + $0x1cf8] ss:$20 sps:$4 sm:$0xff]   ;;  %v23055_v36 = vld [vmem:[#allocation7 + $0x1ba8] ss:$20 sps:$4 sm:$0xff]  }
 0x5b2   : > { %9691 = vmatpush1.bf16.msra.mxu1 %v23025_v44  ;;  %v23059_v44 = vld [vmem:[#allocation7 + $0x1bb8] ss:$20 sps:$4 sm:$0xff]  }
 0x5b3   : > { %20900 = vmatpush3.bf16.msra.mxu0 %v23029_v6  ;;  %9692 = vmatprep.subr.bf16.mxu1 %v23032_v56  ;;  %v23062_v6 = vld [vmem:[#allocation7 + $0x1bd4] ss:$20 sps:$4 sm:$0xff]  }
 0x5b4   : > { %20901 = vmatprep.subr.bf16.mxu0 %v23033_v37  ;;  %v23063_v56 = vld [vmem:[#allocation7 + $0x1d20] ss:$20 sps:$4 sm:$0xff]   ;;  %v23060_v37 = vld [vmem:[#allocation7 + $0x1bd0] ss:$20 sps:$4 sm:$0xff]  }
 0x5b6   : > { %9693 = vmatpush1.bf16.msra.mxu1 %v23030_v13  ;;  %v23064_v13 = vld [vmem:[#allocation7 + $0x1be0] ss:$20 sps:$4 sm:$0xff]  }
 0x5b7   : > { %20902 = vmatpush3.bf16.msra.mxu0 %v23034_v5  ;;  %9694 = vmatprep.subr.bf16.mxu1 %v23037_v20  ;;  %v23067_v5 = vld [vmem:[#allocation7 + $0x1bfc] ss:$20 sps:$4 sm:$0xff]  }
 0x5b8   : > { %v20853_v21 = vpop.f32.mrb[104].mxu0  ;;  %20903 = vmatprep.subr.bf16.mxu0 %v23038_v30  ;;  %v23069_v20 = vld [vmem:[#allocation7 + $0x1c08] ss:$20 sps:$4 sm:$0xff]   ;;  %v23072_v30 = vld [vmem:[#allocation7 + $0x1c24] ss:$20 sps:$4 sm:$0xff]  }
 0x5b9   : > { %v20854_v54 = vpop.f32.mrb[105].mxu0 }
 0x5ba   : > { %v25397_v3 = vadd.f32 %v20854_v54, %v20853_v21  ;;  %v20856_v15 = vpop.f32.mrb[106].mxu0  ;;  %9695 = vmatpush1.bf16.msra.mxu1 %v23035_v62  ;;  %v23073_v62 = vld [vmem:[#allocation7 + $0x1d70] ss:$20 sps:$4 sm:$0xff]   ;;  %v23077_v21 = vld [vmem:[#allocation7 + $0x1c4c] ss:$20 sps:$4 sm:$0xff]  }
 0x5bb   : > { %20904 = vmatpush3.bf16.msra.mxu0 %v23039_v50  ;;  %v20857_v17 = vpop.f32.mrb[107].mxu0  ;;  %9696 = vmatprep.subr.bf16.mxu1 %v23042_v22  ;;  %v23070_v50 = vld [vmem:[#allocation7 + $0x1c20] ss:$20 sps:$4 sm:$0xff]   ;;  %v23074_v22 = vld [vmem:[#allocation7 + $0x1c30] ss:$20 sps:$4 sm:$0xff]  }
 0x5bc   : > { %v25399_v27 = vadd.f32 %v20857_v17, %v20856_v15  ;;  %20905 = vmatprep.subr.bf16.mxu0 %v23043_v8  ;;  %v23075_v8 = vld [vmem:[#allocation7 + $0x1c48] ss:$20 sps:$4 sm:$0xff]   ;;  %v23083_v15 = vld [vmem:[#allocation7 + $0x1dc0] ss:$20 sps:$4 sm:$0xff]  }
 0x5bd   : > { %v23082_v54 = vld [vmem:[#allocation7 + $0x1c74] ss:$20 sps:$4 sm:$0xff]  }
 0x5be   : > { %9697 = vmatpush1.bf16.msra.mxu1 %v23040_v40  ;;  %v23080_v40 = vld [vmem:[#allocation7 + $0x1c70] ss:$20 sps:$4 sm:$0xff]   ;;  %v23084_v17 = vld [vmem:[#allocation7 + $0x1c80] ss:$20 sps:$4 sm:$0xff]  }
 0x5bf   : > { %20906 = vmatpush3.bf16.msra.mxu0 %v23044_v59  ;;  %9698 = vmatprep.subr.bf16.mxu1 %v23047_v26  ;;  %v23087_v59 = vld [vmem:[#allocation7 + $0x1c9c] ss:$20 sps:$4 sm:$0xff]  }
 0x5c0   : > { %v20859_v43 = vpop.f32.mrb[108].mxu0  ;;  %20907 = vmatprep.subr.bf16.mxu0 %v23048_v60  ;;  %v23088_v26 = vld [vmem:[#allocation7 + $0x1de8] ss:$20 sps:$4 sm:$0xff]  }
 0x5c1   : > { %v20860_v52 = vpop.f32.mrb[109].mxu0 }
 0x5c2   : > { %v25401_v23 = vadd.f32 %v20860_v52, %v20859_v43  ;;  %v20862_v42 = vpop.f32.mrb[110].mxu0  ;;  %9699 = vmatpush1.bf16.msra.mxu1 %v23045_v7  ;;  %v23085_v7 = vld [vmem:[#allocation7 + $0x1c98] ss:$20 sps:$4 sm:$0xff]   ;;  %v23089_v43 = vld [vmem:[#allocation7 + $0x1ca8] ss:$20 sps:$4 sm:$0xff]  }
 0x5c3   : > { %20908 = vmatpush3.bf16.msra.mxu0 %v23049_v41  ;;  %v20863_v53 = vpop.f32.mrb[111].mxu0  ;;  %9719 = vmatprep.subr.bf16.mxu1 %v23052_v46 }
 0x5c4   : > { %20949 = vmatprep.subr.bf16.mxu0 %v23053_v9  ;;  %v23092_v9 = vld [vmem:[#allocation7 + $0x1cc4] ss:$20 sps:$4 sm:$0xff]   ;;  %v23095_v53 = vld [vmem:[#allocation7 + $0x1e0c] ss:$20 sps:$4 sm:$0xff]  }
 0x5c5   : > { %9701 = vmatmul.mubr.bf16.vlgmr.msra.gmra.mrb[24].mxu1 %v25355_v16 }
 0x5c6   : > { %9956 = vmatmul.mubr.bf16.vlgmr.msra.gmra.mrb[124].mxu0 %v25320_v32  ;;  %9710 = vmatprep.mubr.bf16.mxu1 %v24822_v25  ;;  %v23068_v32 = vld [vmem:[#allocation7 + $0x1d48] ss:$20 sps:$4 sm:$0xff]  }
 0x5c7   : > { %9720 = vmatpush1.bf16.msra.mxu1 %v23050_v14  ;;  %9963 = vmatprep.mubr.bf16.mxu0 %v24907_v58  ;;  %v23065_v58 = vld [vmem:[#allocation7 + $0x1bf8] ss:$20 sps:$4 sm:$0xff]  }
 0x5c8   : > { %20950 = vmatpush3.bf16.msra.mxu0 %v23054_v11  ;;  %9721 = vmatprep.subr.bf16.mxu1 %v23057_v31 }
 0x5c9   : > { %20951 = vmatprep.subr.bf16.mxu0 %v23058_v28  ;;  %v23090_v28 = vld [vmem:[#allocation7 + $0x1cc0] ss:$20 sps:$4 sm:$0xff]  }
 0x5cb   : > { %9722 = vmatpush1.bf16.msra.mxu1 %v23055_v36  ;;  %v23098_v36 = vld [vmem:[#allocation7 + $0x1cec] ss:$20 sps:$4 sm:$0xff]  }
 0x5cc   : > { %20952 = vmatpush3.bf16.msra.mxu0 %v23059_v44  ;;  %9723 = vmatprep.subr.bf16.mxu1 %v23062_v6  ;;  %v23101_v44 = vld [vmem:[#allocation7 + $0x1e34] ss:$20 sps:$4 sm:$0xff]  }
 0x5cd   : > { %9711 = vmatmul.mubr.bf16.gmra.mrb[116].mxu1 %v24820_v24  ;;  %20953 = vmatprep.subr.bf16.mxu0 %v23063_v56  ;;  %v23104_v6 = vld [vmem:[#allocation7 + $0x1d14] ss:$20 sps:$4 sm:$0xff]   ;;  %v23102_v56 = vld [vmem:[#allocation7 + $0x1d10] ss:$20 sps:$4 sm:$0xff]  }
 0x5ce   : > { %9964 = vmatmul.mubr.bf16.gmra.mrb[128].mxu0 %v24903_v61  ;;  %9751 = vmatprep.mubr.bf16.mxu1 %v25365_v12  ;;  %v23078_v61 = vld [vmem:[#allocation7 + $0x1d98] ss:$20 sps:$4 sm:$0xff]  }
 0x5cf   : > { %9724 = vmatpush1.bf16.msra.mxu1 %v23060_v37  ;;  %10051 = vmatprep.mubr.bf16.mxu0 %v25365_v12  ;;  %v23079_v12 = vld [vmem:[#allocation7 + $0x1c58] ss:$20 sps:$4 sm:$0xff]   ;;  %v25422_v37 = vrot.slane %v24872_v45, 2  ;;  %v23111_v45 = vld [vmem:[#allocation7 + $0x1e80] ss:$20 sps:$4 sm:$0xff]  }
 0x5d0   : > { %20954 = vmatpush3.bf16.msra.mxu0 %v23064_v13  ;;  %9725 = vmatprep.subr.bf16.mxu1 %v23067_v5  ;;  %v23105_v13 = vld [vmem:[#allocation7 + $0x1e58] ss:$20 sps:$4 sm:$0xff]   ;;  %v10374_v5 = vrot.slane %v24850_v1, 2  ;;  %v23114_v1 = vld [vmem:[#allocation7 + $0x1d60] ss:$20 sps:$4 sm:$0xff]  }
 0x5d1   : > { %20955 = vmatprep.subr.bf16.mxu0 %v23068_v32  ;;  %v23110_v32 = vld [vmem:[#allocation7 + $0x1d3c] ss:$20 sps:$4 sm:$0xff]  }
 0x5d3   : > { %9726 = vmatpush1.bf16.msra.mxu1 %v23065_v58  ;;  %v23113_v58 = vld [vmem:[#allocation7 + $0x1e84] ss:$20 sps:$4 sm:$0xff]  }
 0x5d4   : > { %20956 = vmatpush3.bf16.msra.mxu0 %v23069_v20  ;;  %9727 = vmatprep.subr.bf16.mxu1 %v23072_v30  ;;  %v25428_v20 = vsel %vm622_vm0, %v10374_v5, %v25422_v37  ;;  %v23108_v30 = vld [vmem:[#allocation7 + $0x1d38] ss:$20 sps:$4 sm:$0xff]   ;;  %v23142_v5 = vld [vmem:[#allocation7 + $0x1910] ss:$20 sps:$4 sm:$0xff]  }
 0x5d5   : > { %20957 = vmatprep.subr.bf16.mxu0 %v23073_v62  ;;  %v23116_v62 = vld [vmem:[#allocation7 + $0x1d64] ss:$20 sps:$4 sm:$0xff]  }
 0x5d7   : > { %9728 = vmatpush1.bf16.msra.mxu1 %v23070_v50  ;;  %v23119_v50 = vld [vmem:[#allocation7 + $0x1eac] ss:$20 sps:$4 sm:$0xff]  }
 0x5d8   : > { %20958 = vmatpush3.bf16.msra.mxu0 %v23074_v22  ;;  %9729 = vmatprep.subr.bf16.mxu1 %v23077_v21  ;;  %v23117_v22 = vld [vmem:[#allocation7 + $0x1ea8] ss:$20 sps:$4 sm:$0xff]   ;;  %v23122_v21 = vld [vmem:[#allocation7 + $0x1d8c] ss:$20 sps:$4 sm:$0xff]  }
 0x5d9   : > { %20959 = vmatprep.subr.bf16.mxu0 %v23078_v61  ;;  %v23125_v61 = vld [vmem:[#allocation7 + $0x1ed4] ss:$20 sps:$4 sm:$0xff]  }
 0x5db   : > { %9730 = vmatpush1.bf16.msra.mxu1 %v23075_v8 }
 0x5dc   : > { %20960 = vmatpush3.bf16.msra.mxu0 %v23079_v12  ;;  %9731 = vmatprep.subr.bf16.mxu1 %v23082_v54  ;;  %v23120_v12 = vld [vmem:[#allocation7 + $0x1d88] ss:$20 sps:$4 sm:$0xff]  }
 0x5dd   : > { %20961 = vmatprep.subr.bf16.mxu0 %v23083_v15  ;;  %v23123_v15 = vld [vmem:[#allocation7 + $0x1ed0] ss:$20 sps:$4 sm:$0xff]  }
 0x5df   : > { %9732 = vmatpush1.bf16.msra.mxu1 %v23080_v40  ;;  %v7707_v60 = vpop.f32.mrb[92].mxu1  ;;  %v23128_v40 = vld [vmem:[#allocation7 + $0x1db4] ss:$20 sps:$4 sm:$0xff]  }
 0x5e0   : > { %20962 = vmatpush3.bf16.msra.mxu0 %v23084_v17  ;;  %v7708_v41 = vadd.f32 %v7707_v60, %v25373_v38  ;;  %v7709_v46 = vpop.f32.mrb[93].mxu1  ;;  %9733 = vmatprep.subr.bf16.mxu1 %v23087_v59  ;;  %v23093_v38 = vld [vmem:[#allocation7 + $0x1e08] ss:$20 sps:$4 sm:$0xff]  }
 0x5e1   : > { %v7710_v52 = vadd.f32 %v7709_v46, %v25377_v2  ;;  %20963 = vmatprep.subr.bf16.mxu0 %v23088_v26  ;;  %v7711_v42 = vpop.f32.mrb[94].mxu1  ;;  %v23096_v2 = vld [vmem:[#allocation7 + $0x1ce8] ss:$20 sps:$4 sm:$0xff]   ;;  %v23126_v46 = vld [vmem:[#allocation7 + $0x1db0] ss:$20 sps:$4 sm:$0xff]  }
 0x5e2   : > { %v25414_v14 = vadd.f32 %v7708_v41, %v25289_v19  ;;  %v7712_v11 = vpop.f32.mrb[95].mxu1  ;;  %v23099_v19 = vld [vmem:[#allocation7 + $0x1e30] ss:$20 sps:$4 sm:$0xff]  }
 0x5e3   : > { %v25417_v31 = vadd.f32 %v7710_v52, %v25292_v33  ;;  %9734 = vmatpush1.bf16.msra.mxu1 %v23085_v7  ;;  %v23107_v33 = vld [vmem:[#allocation7 + $0x1e5c] ss:$20 sps:$4 sm:$0xff]   ;;  %v23137_v42 = vld [vmem:[#allocation7 + $0x1f24] ss:$20 sps:$4 sm:$0xff]  }
 0x5e4   : > { %20964 = vmatpush3.bf16.msra.mxu0 %v23089_v43  ;;  %9735 = vmatprep.subr.bf16.mxu1 %v23092_v9  ;;  %v23131_v26 = vld [vmem:[#allocation7 + $0x1efc] ss:$20 sps:$4 sm:$0xff]   ;;  %v23129_v43 = vld [vmem:[#allocation7 + $0x1ef8] ss:$20 sps:$4 sm:$0xff]  }
 0x5e5   : > { %11802 = vmatprep.subr.bf16.mxu0 %v23095_v53  ;;  %v23134_v9 = vld [vmem:[#allocation7 + $0x1ddc] ss:$20 sps:$4 sm:$0xff]   ;;  %v23132_v11 = vld [vmem:[#allocation7 + $0x1dd8] ss:$20 sps:$4 sm:$0xff]  }
 0x5e7   : > { %10052 = vmatmul.mubr.bf16.vlgmr.msra.gmra.mrb[132].mxu0 %v25391_v35  ;;  %9736 = vmatpush1.bf16.msra.mxu1 %v23090_v28 }
 0x5e8   : > { %10059 = vmatprep.mubr.bf16.mxu0 %v24992_v51  ;;  %11803 = vmatpush1.bf16.msra.mxu0 %v23093_v38  ;;  %v23135_v38 = vld [vmem:[#allocation7 + $0x1f20] ss:$20 sps:$4 sm:$0xff]  }
 0x5e9   : > { %9737 = vmatprep.subr.bf16.mxu1 %v23098_v36  ;;  %11804 = vmatprep.subr.bf16.mxu0 %v23101_v44  ;;  %v23138_v36 = vld [vmem:[#allocation7 + $0x1a50] ss:$20 sps:$4 sm:$0xff]  }
 0x5eb   : > { %9738 = vmatpush1.bf16.msra.mxu1 %v23096_v2 }
 0x5ec   : > { %11805 = vmatpush1.bf16.msra.mxu0 %v23099_v19  ;;  %9739 = vmatprep.subr.bf16.mxu1 %v23104_v6  ;;  %v23141_v6 = vld [vmem:[#allocation7 + $0x1f4c] ss:$20 sps:$4 sm:$0xff]  }
 0x5ed   : > { %11806 = vmatprep.subr.bf16.mxu0 %v23107_v33 }
 0x5ef   : > { %10060 = vmatmul.mubr.bf16.gmra.mrb[136].mxu0 %v24980_v29  ;;  %9740 = vmatpush1.bf16.msra.mxu1 %v23102_v56 }
 0x5f0   : > { %11807 = vmatpush1.bf16.msra.mxu0 %v23105_v13  ;;  %11834 = vmatprep.mubr.bf16.mxu0 %v25428_v20 }
 0x5f1   : > { %9741 = vmatprep.subr.bf16.mxu1 %v23110_v32  ;;  %11808 = vmatprep.subr.bf16.mxu0 %v23113_v58  ;;  %v23139_v32 = vld [vmem:[#allocation7 + $0x1f48] ss:$20 sps:$4 sm:$0xff]   ;;  %v23143_v58 = vld [vmem:[#allocation7 + $0x1a78] ss:$20 sps:$4 sm:$0xff]  }
 0x5f3   : > { %9742 = vmatpush1.bf16.msra.mxu1 %v23108_v30  ;;  %v23146_v30 = vld [vmem:[#allocation7 + $0x1f74] ss:$20 sps:$4 sm:$0xff]  }
 0x5f4   : > { %11809 = vmatpush1.bf16.msra.mxu0 %v23111_v45  ;;  %9743 = vmatprep.subr.bf16.mxu1 %v23116_v62  ;;  %v23147_v45 = vld [vmem:[#allocation7 + $0x1938] ss:$20 sps:$4 sm:$0xff]   ;;  %v23144_v62 = vld [vmem:[#allocation7 + $0x1f70] ss:$20 sps:$4 sm:$0xff]  }
 0x5f5   : > { %11810 = vmatprep.subr.bf16.mxu0 %v23119_v50  ;;  %v23151_v50 = vld [vmem:[#allocation7 + $0x1f9c] ss:$20 sps:$4 sm:$0xff]  }
 0x5f7   : > { %9744 = vmatpush1.bf16.msra.mxu1 %v23114_v1  ;;  %v20825_v8 = vpop.f32.mrb[96].mxu1  ;;  %v23152_v1 = vld [vmem:[#allocation7 + $0x1960] ss:$20 sps:$4 sm:$0xff]  }
 0x5f8   : > { %11811 = vmatpush1.bf16.msra.mxu0 %v23117_v22  ;;  %v20826_v54 = vpop.f32.mrb[97].mxu1  ;;  %9745 = vmatprep.subr.bf16.mxu1 %v23122_v21  ;;  %v23149_v22 = vld [vmem:[#allocation7 + $0x1f98] ss:$20 sps:$4 sm:$0xff]   ;;  %v23153_v21 = vld [vmem:[#allocation7 + $0x1ac8] ss:$20 sps:$4 sm:$0xff]  }
 0x5f9   : > { %v20827_v17 = vadd.f32 %v20826_v54, %v20825_v8  ;;  %11812 = vmatprep.subr.bf16.mxu0 %v23125_v61  ;;  %v20828_v59 = vpop.f32.mrb[98].mxu1  ;;  %v23156_v61 = vld [vmem:[#allocation7 + $0x1fc4] ss:$20 sps:$4 sm:$0xff]  }
 0x5fa   : > { %v20829_v60 = vpop.f32.mrb[99].mxu1  ;;  %v23158_v8 = vld [vmem:[#allocation7 + $0x1af0] ss:$20 sps:$4 sm:$0xff]  }
 0x5fb   : > { %v25432_v7 = vadd.f32 %v25397_v3, %v20827_v17  ;;  %9746 = vmatpush1.bf16.msra.mxu1 %v23120_v12  ;;  %v20830_v41 = vadd.f32 %v20829_v60, %v20828_v59  ;;  %v23161_v12 = vld [vmem:[#allocation7 + $0x1fec] ss:$20 sps:$4 sm:$0xff]   ;;  %v23162_v54 = vld [vmem:[#allocation7 + $0x19b0] ss:$20 sps:$4 sm:$0xff]   ;;  %v23166_v17 = vld [vmem:[#allocation7 + $0x2014] ss:$20 sps:$4 sm:$0xff]  }
 0x5fc   : > { %11813 = vmatpush1.bf16.msra.mxu0 %v23123_v15  ;;  %9747 = vmatprep.subr.bf16.mxu1 %v23128_v40  ;;  %v23159_v15 = vld [vmem:[#allocation7 + $0x1fe8] ss:$20 sps:$4 sm:$0xff]   ;;  %v23163_v40 = vld [vmem:[#allocation7 + $0x1b18] ss:$20 sps:$4 sm:$0xff]  }
 0x5fd   : > { %v25435_v52 = vadd.f32 %v25399_v27, %v20830_v41  ;;  %11814 = vmatprep.subr.bf16.mxu0 %v23131_v26  ;;  %v23168_v26 = vld [vmem:[#allocation7 + $0x1b40] ss:$20 sps:$4 sm:$0xff]   ;;  %v23171_v41 = vld [vmem:[#allocation7 + $0x203c] ss:$20 sps:$4 sm:$0xff]  }
 0x5ff   : > { %9748 = vmatpush1.bf16.msra.mxu1 %v23126_v46  ;;  %v20831_v53 = vpop.f32.mrb[100].mxu1 }
 0x600   : > { %11815 = vmatpush1.bf16.msra.mxu0 %v23129_v43  ;;  %v25437_v28 = vpop.f32.mrb[112].mxu0  ;;  %v20832_v3 = vpop.f32.mrb[101].mxu1  ;;  %9749 = vmatprep.subr.bf16.mxu1 %v23134_v9 }
 0x601   : > { %v20833_v44 = vadd.f32 %v20832_v3, %v20831_v53  ;;  %v25439_v2 = vpop.f32.mrb[113].mxu0  ;;  %11816 = vmatprep.subr.bf16.mxu0 %v23137_v42  ;;  %v20834_v19 = vpop.f32.mrb[102].mxu1  ;;  %v23172_v42 = vld [vmem:[#allocation7 + $0x1a00] ss:$20 sps:$4 sm:$0xff]   ;;  %v23169_v3 = vld [vmem:[#allocation7 + $0x2038] ss:$20 sps:$4 sm:$0xff]  }
 0x602   : > { %v9818_v27 = vpop.f32.mrb[114].mxu0  ;;  %v20835_v33 = vpop.f32.mrb[103].mxu1 }
 0x603   : > { %v25442_v56 = vadd.f32 %v25401_v23, %v20833_v44  ;;  %9750 = vmatpush1.bf16.msra.mxu1 %v23132_v11  ;;  %v9819_v13 = vpop.f32.mrb[115].mxu0  ;;  %v23148_v23 = vld [vmem:[#allocation7 + $0x1aa0] ss:$20 sps:$4 sm:$0xff]  }
 0x604   : > { %11817 = vmatpush1.bf16.msra.mxu0 %v23135_v38  ;;  %20921 = vmatprep.subr.bf16.mxu1 %v23138_v36  ;;  %v23173_v38 = vld [vmem:[#allocation7 + $0x1b68] ss:$20 sps:$4 sm:$0xff]   ;;  %v23176_v36 = vld [vmem:[#allocation7 + $0x2064] ss:$20 sps:$4 sm:$0xff]  }
 0x605   : > { %11818 = vmatprep.subr.bf16.mxu0 %v23141_v6  ;;  %v23177_v6 = vld [vmem:[#allocation7 + $0x1a28] ss:$20 sps:$4 sm:$0xff]   ;;  %v23180_v13 = vld [vmem:[#allocation7 + $0x1e04] ss:$20 sps:$4 sm:$0xff]  }
 0x606   : > { %9752 = vmatmul.mubr.bf16.vlgmr.msra.gmra.mrb[24].mxu1 %v25391_v35  ;;  %v23154_v35 = vld [vmem:[#allocation7 + $0x1fc0] ss:$20 sps:$4 sm:$0xff]  }
 0x607   : > { %9761 = vmatprep.mubr.bf16.mxu1 %v24992_v51  ;;  %20922 = vmatpush3.bf16.msra.mxu1 %v23142_v5  ;;  %v23157_v51 = vld [vmem:[#allocation7 + $0x1988] ss:$20 sps:$4 sm:$0xff]  }
 0x608   : > { %11819 = vmatpush1.bf16.msra.mxu0 %v23139_v32  ;;  %20923 = vmatprep.subr.bf16.mxu1 %v23143_v58  ;;  %v23183_v32 = vld [vmem:[#allocation7 + $0x208c] ss:$20 sps:$4 sm:$0xff]  }
 0x609   : > { %11820 = vmatprep.subr.bf16.mxu0 %v23146_v30 }
 0x60b   : > { %20924 = vmatpush3.bf16.msra.mxu1 %v23147_v45 }
 0x60c   : > { %11821 = vmatpush1.bf16.msra.mxu0 %v23144_v62  ;;  %20925 = vmatprep.subr.bf16.mxu1 %v23148_v23  ;;  %v10371_v62 = vrot.slane %v24848_v63, 2  ;;  %v23181_v23 = vld [vmem:[#allocation7 + $0x2088] ss:$20 sps:$4 sm:$0xff]  }
 0x60d   : > { %11822 = vmatprep.subr.bf16.mxu0 %v23151_v50  ;;  %v23186_v50 = vld [vmem:[#allocation7 + $0x1e2c] ss:$20 sps:$4 sm:$0xff]   ;;  %v23184_v63 = vld [vmem:[#allocation7 + $0x1e28] ss:$20 sps:$4 sm:$0xff]  }
 0x60e   : > { %9762 = vmatmul.mubr.bf16.gmra.mrb[120].mxu1 %v24980_v29  ;;  %v23167_v29 = vld [vmem:[#allocation7 + $0x19d8] ss:$20 sps:$4 sm:$0xff]  }
 0x60f   : > { %20926 = vmatpush3.bf16.msra.mxu1 %v23152_v1  ;;  %10003 = vmatprep.mubr.bf16.mxu1 %v25333_v55  ;;  %v23164_v55 = vld [vmem:[#allocation7 + $0x2010] ss:$20 sps:$4 sm:$0xff]  }
 0x610   : > { %11823 = vmatpush1.bf16.msra.mxu0 %v23149_v22  ;;  %20927 = vmatprep.subr.bf16.mxu1 %v23153_v21  ;;  %v23189_v22 = vld [vmem:[#allocation7 + $0x20b4] ss:$20 sps:$4 sm:$0xff]   ;;  %v23195_v21 = vld [vmem:[#allocation7 + $0x20dc] ss:$20 sps:$4 sm:$0xff]  }
 0x611   : > { %11824 = vmatprep.subr.bf16.mxu0 %v23156_v61  ;;  %v25474_v61 = vrot.slane %v24804_v10, 2  ;;  %v23196_v10 = vld [vmem:[#allocation7 + $0x1e78] ss:$20 sps:$4 sm:$0xff]  }
 0x613   : > { %20928 = vmatpush3.bf16.msra.mxu1 %v23157_v51  ;;  %v23190_v51 = vld [vmem:[#allocation7 + $0x1e50] ss:$20 sps:$4 sm:$0xff]  }
 0x614   : > { %11825 = vmatpush1.bf16.msra.mxu0 %v23154_v35  ;;  %20929 = vmatprep.subr.bf16.mxu1 %v23158_v8  ;;  %v23198_v35 = vld [vmem:[#allocation7 + $0x1e7c] ss:$20 sps:$4 sm:$0xff]   ;;  %v23201_v8 = vld [vmem:[#allocation7 + $0x2104] ss:$20 sps:$4 sm:$0xff]  }
 0x615   : > { %11826 = vmatprep.subr.bf16.mxu0 %v23161_v12  ;;  %v23199_v12 = vld [vmem:[#allocation7 + $0x2100] ss:$20 sps:$4 sm:$0xff]  }
 0x617   : > { %20930 = vmatpush3.bf16.msra.mxu1 %v23162_v54  ;;  %v23204_v54 = vld [vmem:[#allocation7 + $0x1ea4] ss:$20 sps:$4 sm:$0xff]  }
 0x618   : > { %11827 = vmatpush1.bf16.msra.mxu0 %v23159_v15  ;;  %v20881_v59 = vpop.f32.mrb[104].mxu1  ;;  %20931 = vmatprep.subr.bf16.mxu1 %v23163_v40  ;;  %v23202_v15 = vld [vmem:[#allocation7 + $0x1ea0] ss:$20 sps:$4 sm:$0xff]   ;;  %v23205_v40 = vld [vmem:[#allocation7 + $0x2128] ss:$20 sps:$4 sm:$0xff]  }
 0x619   : > { %v20882_v60 = vpop.f32.mrb[105].mxu1  ;;  %11828 = vmatprep.subr.bf16.mxu0 %v23166_v17  ;;  %v23210_v17 = vld [vmem:[#allocation7 + $0x1ecc] ss:$20 sps:$4 sm:$0xff]  }
 0x61a   : > { %v20883_v46 = vadd.f32 %v20882_v60, %v20881_v59  ;;  %v20884_v43 = vpop.f32.mrb[106].mxu1  ;;  %v23208_v59 = vld [vmem:[#allocation7 + $0x1ec8] ss:$20 sps:$4 sm:$0xff]  }
 0x61b   : > { %20932 = vmatpush3.bf16.msra.mxu1 %v23167_v29  ;;  %v20885_v9 = vpop.f32.mrb[107].mxu1  ;;  %v23213_v29 = vld [vmem:[#allocation7 + $0x2154] ss:$20 sps:$4 sm:$0xff]   ;;  %v23219_v60 = vld [vmem:[#allocation7 + $0x217c] ss:$20 sps:$4 sm:$0xff]  }
 0x61c   : > { %v7998_v53 = vadd.f32 %v20883_v46, %v25432_v7  ;;  %11829 = vmatpush1.bf16.msra.mxu0 %v23164_v55  ;;  %v20886_v11 = vadd.f32 %v20885_v9, %v20884_v43  ;;  %20933 = vmatprep.subr.bf16.mxu1 %v23168_v26  ;;  %v23174_v7 = vld [vmem:[#allocation7 + $0x2060] ss:$20 sps:$4 sm:$0xff]   ;;  %v23211_v55 = vld [vmem:[#allocation7 + $0x2150] ss:$20 sps:$4 sm:$0xff]   ;;  %v23217_v46 = vld [vmem:[#allocation7 + $0x2178] ss:$20 sps:$4 sm:$0xff]  }
 0x61d   : > { %11830 = vmatprep.subr.bf16.mxu0 %v23171_v41  ;;  %v23216_v26 = vld [vmem:[#allocation7 + $0x1ef4] ss:$20 sps:$4 sm:$0xff]   ;;  %v23214_v41 = vld [vmem:[#allocation7 + $0x1ef0] ss:$20 sps:$4 sm:$0xff]  }
 0x61e   : > { %v25450_v44 = vadd.f32 %v7998_v53, %v25300_v39  ;;  %v8001_v19 = vadd.f32 %v20886_v11, %v25435_v52  ;;  %v25457_v39 = vrot.slane %v24865_v34, 2  ;;  %v23222_v43 = vld [vmem:[#allocation7 + $0x1f1c] ss:$20 sps:$4 sm:$0xff]   ;;  %v23225_v9 = vld [vmem:[#allocation7 + $0x21a4] ss:$20 sps:$4 sm:$0xff]  }
 0x61f   : > { %20934 = vmatpush3.bf16.msra.mxu1 %v23172_v42  ;;  %v23220_v42 = vld [vmem:[#allocation7 + $0x1f18] ss:$20 sps:$4 sm:$0xff]   ;;  %v23223_v11 = vld [vmem:[#allocation7 + $0x21a0] ss:$20 sps:$4 sm:$0xff]  }
 0x620   : > { %v25454_v27 = vadd.f32 %v8001_v19, %v25304_v0  ;;  %11831 = vmatpush1.bf16.msra.mxu0 %v23169_v3  ;;  %v20887_v33 = vpop.f32.mrb[108].mxu1  ;;  %20935 = vmatprep.subr.bf16.mxu1 %v23173_v38  ;;  %v23178_v0 = vld [vmem:[#allocation7 + $0x1e00] ss:$20 sps:$4 sm:$0xff]   ;;  %v25467_v34 = vsel %vm622_vm0, %v10371_v62, %v25457_v39  ;;  %v23228_v3 = vld [vmem:[#allocation7 + $0x1f44] ss:$20 sps:$4 sm:$0xff]  }
 0x621   : > { %v20888_v5 = vpop.f32.mrb[109].mxu1  ;;  %11832 = vmatprep.subr.bf16.mxu0 %v23176_v36  ;;  %v23231_v19 = vld [vmem:[#allocation7 + $0x21cc] ss:$20 sps:$4 sm:$0xff]   ;;  %v23246_v62 = vld [vmem:[#allocation7 + $0x1fbc] ss:$20 sps:$4 sm:$0xff]  }
 0x622   : > { %v20889_v58 = vadd.f32 %v20888_v5, %v20887_v33  ;;  %v20890_v30 = vpop.f32.mrb[110].mxu1  ;;  %v23229_v5 = vld [vmem:[#allocation7 + $0x21c8] ss:$20 sps:$4 sm:$0xff]  }
 0x623   : > { %20936 = vmatpush3.bf16.msra.mxu1 %v23177_v6  ;;  %v20891_v52 = vpop.f32.mrb[111].mxu1  ;;  %v23232_v30 = vld [vmem:[#allocation7 + $0x1f68] ss:$20 sps:$4 sm:$0xff]  }
 0x624   : > { %v8006_v45 = vadd.f32 %v20889_v58, %v25442_v56  ;;  %11833 = vmatpush1.bf16.msra.mxu0 %v23174_v7  ;;  %11649 = vmatprep.subr.bf16.mxu1 %v23180_v13  ;;  %v23187_v56 = vld [vmem:[#allocation7 + $0x20b0] ss:$20 sps:$4 sm:$0xff]   ;;  %v23226_v13 = vld [vmem:[#allocation7 + $0x1f40] ss:$20 sps:$4 sm:$0xff]  }
 0x625   : > { %11853 = vmatprep.subr.bf16.mxu0 %v23183_v32  ;;  %v23234_v32 = vld [vmem:[#allocation7 + $0x1f6c] ss:$20 sps:$4 sm:$0xff]   ;;  %v23237_v58 = vld [vmem:[#allocation7 + $0x21f4] ss:$20 sps:$4 sm:$0xff]  }
 0x626   : > { %v25462_v1 = vadd.f32 %v8006_v45, %v25312_v18  ;;  %10004 = vmatmul.mubr.bf16.vlgmr.msra.gmra.mrb[124].mxu1 %v25355_v16  ;;  %v23192_v18 = vld [vmem:[#allocation7 + $0x1e54] ss:$20 sps:$4 sm:$0xff]   ;;  %v10380_v16 = vrot.slane %v24788_v48, 2  ;;  %v23243_v45 = vld [vmem:[#allocation7 + $0x221c] ss:$20 sps:$4 sm:$0xff]  }
 0x627   : > { %11835 = vmatmul.mubr.bf16.vlgmr.msra.gmra.mrb[48].mxu0 %v25467_v34  ;;  %10011 = vmatprep.mubr.bf16.mxu1 %v24822_v25  ;;  %v23193_v25 = vld [vmem:[#allocation7 + $0x20d8] ss:$20 sps:$4 sm:$0xff]   ;;  %v23240_v52 = vld [vmem:[#allocation7 + $0x1f94] ss:$20 sps:$4 sm:$0xff]  }
 0x628   : > { %11650 = vmatpush1.bf16.msra.mxu1 %v23178_v0  ;;  %11844 = vmatprep.mubr.bf16.mxu0 %v25422_v37  ;;  %v25481_v48 = vsel %vm622_vm0, %v10380_v16, %v25474_v61  ;;  %v23241_v0 = vld [vmem:[#allocation7 + $0x2218] ss:$20 sps:$4 sm:$0xff]  }
 0x629   : > { %11854 = vmatpush1.bf16.msra.mxu0 %v23181_v23  ;;  %11651 = vmatprep.subr.bf16.mxu1 %v23186_v50  ;;  %v23249_v23 = vld [vmem:[#allocation7 + $0x2244] ss:$20 sps:$4 sm:$0xff]   ;;  %v23258_v16 = vld [vmem:[#allocation7 + $0x200c] ss:$20 sps:$4 sm:$0xff]  }
 0x62a   : > { %11855 = vmatprep.subr.bf16.mxu0 %v23189_v22  ;;  %v23244_v50 = vld [vmem:[#allocation7 + $0x1fb8] ss:$20 sps:$4 sm:$0xff]   ;;  %v23247_v22 = vld [vmem:[#allocation7 + $0x2240] ss:$20 sps:$4 sm:$0xff]  }
 0x62c   : > { %11652 = vmatpush1.bf16.msra.mxu1 %v23184_v63  ;;  %v23252_v63 = vld [vmem:[#allocation7 + $0x1fe4] ss:$20 sps:$4 sm:$0xff]  }
 0x62d   : > { %11856 = vmatpush1.bf16.msra.mxu0 %v23187_v56  ;;  %11653 = vmatprep.subr.bf16.mxu1 %v23192_v18  ;;  %v23255_v56 = vld [vmem:[#allocation7 + $0x226c] ss:$20 sps:$4 sm:$0xff]  }
 0x62e   : > { %10012 = vmatmul.mubr.bf16.gmra.mrb[128].mxu1 %v24820_v24  ;;  %11857 = vmatprep.subr.bf16.mxu0 %v23195_v21  ;;  %v23207_v24 = vld [vmem:[#allocation7 + $0x212c] ss:$20 sps:$4 sm:$0xff]   ;;  %v23253_v21 = vld [vmem:[#allocation7 + $0x2268] ss:$20 sps:$4 sm:$0xff]  }
 0x62f   : > { %11845 = vmatmul.mubr.bf16.gmra.mrb[140].mxu0 %v25457_v39  ;;  %11681 = vmatprep.mubr.bf16.mxu1 %v25428_v20  ;;  %v23250_v18 = vld [vmem:[#allocation7 + $0x1fe0] ss:$20 sps:$4 sm:$0xff]  }
 0x630   : > { %11654 = vmatpush1.bf16.msra.mxu1 %v23190_v51  ;;  %11885 = vmatprep.mubr.bf16.mxu0 %v25481_v48  ;;  %v23261_v51 = vld [vmem:[#allocation7 + $0x2294] ss:$20 sps:$4 sm:$0xff]  }
 0x631   : > { %11858 = vmatpush1.bf16.msra.mxu0 %v23193_v25  ;;  %11655 = vmatprep.subr.bf16.mxu1 %v23198_v35  ;;  %v23256_v25 = vld [vmem:[#allocation7 + $0x2008] ss:$20 sps:$4 sm:$0xff]   ;;  %v23259_v35 = vld [vmem:[#allocation7 + $0x2290] ss:$20 sps:$4 sm:$0xff]  }
 0x632   : > { %11859 = vmatprep.subr.bf16.mxu0 %v23201_v8  ;;  %v23264_v8 = vld [vmem:[#allocation7 + $0x2034] ss:$20 sps:$4 sm:$0xff]  }
 0x634   : > { %11656 = vmatpush1.bf16.msra.mxu1 %v23196_v10  ;;  %v23267_v10 = vld [vmem:[#allocation7 + $0x22bc] ss:$20 sps:$4 sm:$0xff]  }
 0x635   : > { %11860 = vmatpush1.bf16.msra.mxu0 %v23199_v12  ;;  %11657 = vmatprep.subr.bf16.mxu1 %v23204_v54  ;;  %v23262_v12 = vld [vmem:[#allocation7 + $0x2030] ss:$20 sps:$4 sm:$0xff]   ;;  %v23265_v54 = vld [vmem:[#allocation7 + $0x22b8] ss:$20 sps:$4 sm:$0xff]  }
 0x636   : > { %11861 = vmatprep.subr.bf16.mxu0 %v23207_v24  ;;  %v23270_v24 = vld [vmem:[#allocation7 + $0x205c] ss:$20 sps:$4 sm:$0xff]  }
 0x638   : > { %11658 = vmatpush1.bf16.msra.mxu1 %v23202_v15  ;;  %v23273_v15 = vld [vmem:[#allocation7 + $0x22e4] ss:$20 sps:$4 sm:$0xff]  }
 0x639   : > { %11862 = vmatpush1.bf16.msra.mxu0 %v23205_v40  ;;  %11659 = vmatprep.subr.bf16.mxu1 %v23210_v17  ;;  %v23268_v17 = vld [vmem:[#allocation7 + $0x2058] ss:$20 sps:$4 sm:$0xff]  }
 0x63a   : > { %11863 = vmatprep.subr.bf16.mxu0 %v23213_v29 }
 0x63c   : > { %11660 = vmatpush1.bf16.msra.mxu1 %v23208_v59  ;;  %v23271_v59 = vld [vmem:[#allocation7 + $0x22e0] ss:$20 sps:$4 sm:$0xff]  }
 0x63d   : > { %11864 = vmatpush1.bf16.msra.mxu0 %v23211_v55  ;;  %11661 = vmatprep.subr.bf16.mxu1 %v23216_v26  ;;  %v23276_v55 = vld [vmem:[#allocation7 + $0x2084] ss:$20 sps:$4 sm:$0xff]  }
 0x63e   : > { %11865 = vmatprep.subr.bf16.mxu0 %v23219_v60  ;;  %v23279_v60 = vld [vmem:[#allocation7 + $0x230c] ss:$20 sps:$4 sm:$0xff]  }
 0x640   : > { %11662 = vmatpush1.bf16.msra.mxu1 %v23214_v41 }
 0x641   : > { %11866 = vmatpush1.bf16.msra.mxu0 %v23217_v46  ;;  %v9865_v53 = vpop.f32.mrb[116].mxu0  ;;  %11663 = vmatprep.subr.bf16.mxu1 %v23222_v43  ;;  %v10377_v46 = vrot.slane %v24786_v47, 2  ;;  %v26251_v43 = vld [vmem:[#allocation32_spill] sm:$0xff]  ;;  %v23280_v47 = vld [vmem:[#allocation7 + $0x20a8] ss:$20 sps:$4 sm:$0xff]  }
 0x642   : > { %v25485_v38 = vadd.f32 %v9865_v53, %v25437_v28  ;;  %v9867_v36 = vpop.f32.mrb[117].mxu0  ;;  %11867 = vmatprep.subr.bf16.mxu0 %v23225_v9  ;;  %v23235_v28 = vld [vmem:[#allocation7 + $0x21f0] ss:$20 sps:$4 sm:$0xff]   ;;  %v25496_v9 = vrot.slane %v26251_v43, 2  ;;  %v23277_v53 = vld [vmem:[#allocation7 + $0x2308] ss:$20 sps:$4 sm:$0xff]  }
 0x643   : > { %v25488_v6 = vadd.f32 %v9867_v36, %v25439_v2  ;;  %v9869_v33 = vpop.f32.mrb[118].mxu0  ;;  %v23238_v2 = vld [vmem:[#allocation7 + $0x1f90] ss:$20 sps:$4 sm:$0xff]   ;;  %v23285_v36 = vld [vmem:[#allocation7 + $0x2334] ss:$20 sps:$4 sm:$0xff]  }
 0x644   : > { %11664 = vmatpush1.bf16.msra.mxu1 %v23220_v42  ;;  %v9870_v7 = vpop.f32.mrb[119].mxu0  ;;  %v23274_v42 = vld [vmem:[#allocation7 + $0x2080] ss:$20 sps:$4 sm:$0xff]  }
 0x645   : > { %11868 = vmatpush1.bf16.msra.mxu0 %v23223_v11  ;;  %11665 = vmatprep.subr.bf16.mxu1 %v23228_v3  ;;  %v23282_v11 = vld [vmem:[#allocation7 + $0x20ac] ss:$20 sps:$4 sm:$0xff]   ;;  %v25501_v3 = vsel %vm622_vm0, %v10377_v46, %v25496_v9  ;;  %v23288_v33 = vld [vmem:[#allocation7 + $0x20d4] ss:$20 sps:$4 sm:$0xff]   ;;  %v23291_v7 = vld [vmem:[#allocation7 + $0x235c] ss:$20 sps:$4 sm:$0xff]  }
 0x646   : > { %11869 = vmatprep.subr.bf16.mxu0 %v23231_v19  ;;  %v23283_v19 = vld [vmem:[#allocation7 + $0x2330] ss:$20 sps:$4 sm:$0xff]  }
 0x648   : > { %11666 = vmatpush1.bf16.msra.mxu1 %v23226_v13  ;;  %v26252_v13 = vld [vmem:[#allocation38_spill] sm:$0xff] }
 0x649   : > { %11870 = vmatpush1.bf16.msra.mxu0 %v23229_v5  ;;  %11667 = vmatprep.subr.bf16.mxu1 %v23234_v32  ;;  %v25507_v5 = vrot.slane %v26252_v13, 2  ;;  %v23286_v32 = vld [vmem:[#allocation7 + $0x20d0] ss:$20 sps:$4 sm:$0xff]  }
 0x64a   : > { %11871 = vmatprep.subr.bf16.mxu0 %v23237_v58  ;;  %v23289_v58 = vld [vmem:[#allocation7 + $0x2358] ss:$20 sps:$4 sm:$0xff]  }
 0x64b   : > { %v23345_v13 = vld [vmem:[#allocation7 + $0x24c4] ss:$20 sps:$4 sm:$0xff]  }
 0x64c   : > { %11668 = vmatpush1.bf16.msra.mxu1 %v23232_v30  ;;  %v26253_v30 = vld [vmem:[#allocation37_spill] sm:$0xff] }
 0x64d   : > { %11872 = vmatpush1.bf16.msra.mxu0 %v23235_v28  ;;  %11669 = vmatprep.subr.bf16.mxu1 %v23240_v52  ;;  %v10386_v28 = vrot.slane %v26253_v30, 2  ;;  %v23294_v52 = vld [vmem:[#allocation7 + $0x20fc] ss:$20 sps:$4 sm:$0xff]   ;;  %v23348_v30 = vld [vmem:[#allocation7 + $0x2264] ss:$20 sps:$4 sm:$0xff]  }
 0x64e   : > { %11873 = vmatprep.subr.bf16.mxu0 %v23243_v45  ;;  %v23297_v45 = vld [vmem:[#allocation7 + $0x2384] ss:$20 sps:$4 sm:$0xff]  }
 0x650   : > { %11670 = vmatpush1.bf16.msra.mxu1 %v23238_v2  ;;  %v25515_v2 = vsel %vm622_vm0, %v10386_v28, %v25507_v5  ;;  %v23351_v28 = vld [vmem:[#allocation7 + $0x24ec] ss:$20 sps:$4 sm:$0xff]  }
 0x651   : > { %11874 = vmatpush1.bf16.msra.mxu0 %v23241_v0  ;;  %11671 = vmatprep.subr.bf16.mxu1 %v23246_v62  ;;  %v23292_v0 = vld [vmem:[#allocation7 + $0x20f8] ss:$20 sps:$4 sm:$0xff]   ;;  %v23295_v62 = vld [vmem:[#allocation7 + $0x2380] ss:$20 sps:$4 sm:$0xff]  }
 0x652   : > { %11875 = vmatprep.subr.bf16.mxu0 %v23249_v23  ;;  %v23300_v23 = vld [vmem:[#allocation7 + $0x2124] ss:$20 sps:$4 sm:$0xff]  }
 0x654   : > { %11672 = vmatpush1.bf16.msra.mxu1 %v23244_v50  ;;  %v23303_v50 = vld [vmem:[#allocation7 + $0x23ac] ss:$20 sps:$4 sm:$0xff]  }
 0x655   : > { %11876 = vmatpush1.bf16.msra.mxu0 %v23247_v22  ;;  %11673 = vmatprep.subr.bf16.mxu1 %v23252_v63  ;;  %v23298_v22 = vld [vmem:[#allocation7 + $0x2120] ss:$20 sps:$4 sm:$0xff]   ;;  %v23301_v63 = vld [vmem:[#allocation7 + $0x23a8] ss:$20 sps:$4 sm:$0xff]  }
 0x656   : > { %11877 = vmatprep.subr.bf16.mxu0 %v23255_v56  ;;  %v23306_v56 = vld [vmem:[#allocation7 + $0x214c] ss:$20 sps:$4 sm:$0xff]  }
 0x658   : > { %11674 = vmatpush1.bf16.msra.mxu1 %v23250_v18  ;;  %v23309_v18 = vld [vmem:[#allocation7 + $0x23d4] ss:$20 sps:$4 sm:$0xff]  }
 0x659   : > { %11878 = vmatpush1.bf16.msra.mxu0 %v23253_v21  ;;  %11675 = vmatprep.subr.bf16.mxu1 %v23258_v16  ;;  %v23304_v21 = vld [vmem:[#allocation7 + $0x2148] ss:$20 sps:$4 sm:$0xff]   ;;  %v23307_v16 = vld [vmem:[#allocation7 + $0x23d0] ss:$20 sps:$4 sm:$0xff]  }
 0x65a   : > { %11879 = vmatprep.subr.bf16.mxu0 %v23261_v51  ;;  %v23312_v51 = vld [vmem:[#allocation7 + $0x2174] ss:$20 sps:$4 sm:$0xff]  }
 0x65c   : > { %11676 = vmatpush1.bf16.msra.mxu1 %v23256_v25  ;;  %v23315_v25 = vld [vmem:[#allocation7 + $0x23fc] ss:$20 sps:$4 sm:$0xff]  }
 0x65d   : > { %11880 = vmatpush1.bf16.msra.mxu0 %v23259_v35  ;;  %11677 = vmatprep.subr.bf16.mxu1 %v23264_v8  ;;  %v23310_v35 = vld [vmem:[#allocation7 + $0x2170] ss:$20 sps:$4 sm:$0xff]   ;;  %v23313_v8 = vld [vmem:[#allocation7 + $0x23f8] ss:$20 sps:$4 sm:$0xff]  }
 0x65e   : > { %11881 = vmatprep.subr.bf16.mxu0 %v23267_v10  ;;  %v23318_v10 = vld [vmem:[#allocation7 + $0x219c] ss:$20 sps:$4 sm:$0xff]  }
 0x660   : > { %11678 = vmatpush1.bf16.msra.mxu1 %v23262_v12  ;;  %v25490_v40 = vpop.f32.mrb[112].mxu1  ;;  %v23321_v12 = vld [vmem:[#allocation7 + $0x2424] ss:$20 sps:$4 sm:$0xff]  }
 0x661   : > { %11882 = vmatpush1.bf16.msra.mxu0 %v23265_v54  ;;  %v25492_v29 = vpop.f32.mrb[113].mxu1  ;;  %11679 = vmatprep.subr.bf16.mxu1 %v23270_v24  ;;  %v23316_v24 = vld [vmem:[#allocation7 + $0x2198] ss:$20 sps:$4 sm:$0xff]  }
 0x662   : > { %11883 = vmatprep.subr.bf16.mxu0 %v23273_v15  ;;  %v9665_v26 = vpop.f32.mrb[114].mxu1 }
 0x663   : > { %v9666_v41 = vpop.f32.mrb[115].mxu1 }
 0x664   : > { %11680 = vmatpush1.bf16.msra.mxu1 %v23268_v17  ;;  %v23327_v41 = vld [vmem:[#allocation7 + $0x244c] ss:$20 sps:$4 sm:$0xff]  }
 0x665   : > { %11884 = vmatpush1.bf16.msra.mxu0 %v23271_v59  ;;  %11700 = vmatprep.subr.bf16.mxu1 %v23276_v55  ;;  %v23319_v59 = vld [vmem:[#allocation7 + $0x2420] ss:$20 sps:$4 sm:$0xff]   ;;  %v23324_v55 = vld [vmem:[#allocation7 + $0x21c4] ss:$20 sps:$4 sm:$0xff]  }
 0x666   : > { %11904 = vmatprep.subr.bf16.mxu0 %v23279_v60 }
 0x667   : > { %11682 = vmatmul.mubr.bf16.vlgmr.msra.gmra.mrb[24].mxu1 %v25467_v34 }
 0x668   : > { %11886 = vmatmul.mubr.bf16.vlgmr.msra.gmra.mrb[48].mxu0 %v25501_v3  ;;  %11691 = vmatprep.mubr.bf16.mxu1 %v25422_v37 }
 0x669   : > { %11701 = vmatpush1.bf16.msra.mxu1 %v23274_v42  ;;  %11895 = vmatprep.mubr.bf16.mxu0 %v25474_v61 }
 0x66a   : > { %11905 = vmatpush1.bf16.msra.mxu0 %v23277_v53  ;;  %11702 = vmatprep.subr.bf16.mxu1 %v23282_v11  ;;  %v23322_v53 = vld [vmem:[#allocation7 + $0x21c0] ss:$20 sps:$4 sm:$0xff]  }
 0x66b   : > { %11906 = vmatprep.subr.bf16.mxu0 %v23285_v36  ;;  %v23330_v11 = vld [vmem:[#allocation7 + $0x21ec] ss:$20 sps:$4 sm:$0xff]   ;;  %v23333_v36 = vld [vmem:[#allocation7 + $0x2474] ss:$20 sps:$4 sm:$0xff]  }
 0x66d   : > { %11703 = vmatpush1.bf16.msra.mxu1 %v23280_v47  ;;  %v23331_v47 = vld [vmem:[#allocation7 + $0x2470] ss:$20 sps:$4 sm:$0xff]  }
 0x66e   : > { %11907 = vmatpush1.bf16.msra.mxu0 %v23283_v19  ;;  %11704 = vmatprep.subr.bf16.mxu1 %v23288_v33  ;;  %v23336_v19 = vld [vmem:[#allocation7 + $0x2214] ss:$20 sps:$4 sm:$0xff]   ;;  %v23334_v33 = vld [vmem:[#allocation7 + $0x2210] ss:$20 sps:$4 sm:$0xff]  }
 0x66f   : > { %11692 = vmatmul.mubr.bf16.gmra.mrb[132].mxu1 %v25457_v39  ;;  %11908 = vmatprep.subr.bf16.mxu0 %v23291_v7  ;;  %v23342_v7 = vld [vmem:[#allocation7 + $0x223c] ss:$20 sps:$4 sm:$0xff]  }
 0x670   : > { %11896 = vmatmul.mubr.bf16.gmra.mrb[144].mxu0 %v25496_v9  ;;  %11732 = vmatprep.mubr.bf16.mxu1 %v25481_v48 }
 0x671   : > { %11705 = vmatpush1.bf16.msra.mxu1 %v23286_v32  ;;  %11936 = vmatprep.mubr.bf16.mxu0 %v25515_v2  ;;  %v23340_v32 = vld [vmem:[#allocation7 + $0x2238] ss:$20 sps:$4 sm:$0xff]  }
 0x672   : > { %11909 = vmatpush1.bf16.msra.mxu0 %v23289_v58  ;;  %11706 = vmatprep.subr.bf16.mxu1 %v23294_v52  ;;  %v23343_v58 = vld [vmem:[#allocation7 + $0x24c0] ss:$20 sps:$4 sm:$0xff]  }
 0x673   : > { %11910 = vmatprep.subr.bf16.mxu0 %v23297_v45  ;;  %v23346_v52 = vld [vmem:[#allocation7 + $0x2260] ss:$20 sps:$4 sm:$0xff]   ;;  %v23349_v45 = vld [vmem:[#allocation7 + $0x24e8] ss:$20 sps:$4 sm:$0xff]  }
 0x675   : > { %11707 = vmatpush1.bf16.msra.mxu1 %v23292_v0  ;;  %v23354_v0 = vld [vmem:[#allocation7 + $0x228c] ss:$20 sps:$4 sm:$0xff]  }
 0x676   : > { %11911 = vmatpush1.bf16.msra.mxu0 %v23295_v62  ;;  %11708 = vmatprep.subr.bf16.mxu1 %v23300_v23  ;;  %v23357_v62 = vld [vmem:[#allocation7 + $0x2514] ss:$20 sps:$4 sm:$0xff]  }
 0x677   : > { %11912 = vmatprep.subr.bf16.mxu0 %v23303_v50  ;;  %v23352_v50 = vld [vmem:[#allocation7 + $0x2288] ss:$20 sps:$4 sm:$0xff]  }
 0x679   : > { %11709 = vmatpush1.bf16.msra.mxu1 %v23298_v22 }
 0x67a   : > { %11913 = vmatpush1.bf16.msra.mxu0 %v23301_v63  ;;  %11710 = vmatprep.subr.bf16.mxu1 %v23306_v56  ;;  %v23355_v63 = vld [vmem:[#allocation7 + $0x2510] ss:$20 sps:$4 sm:$0xff]   ;;  %v23360_v56 = vld [vmem:[#allocation7 + $0x22b4] ss:$20 sps:$4 sm:$0xff]  }
 0x67b   : > { %11914 = vmatprep.subr.bf16.mxu0 %v23309_v18 }
 0x67d   : > { %11711 = vmatpush1.bf16.msra.mxu1 %v23304_v21 }
 0x67e   : > { %11915 = vmatpush1.bf16.msra.mxu0 %v23307_v16  ;;  %11712 = vmatprep.subr.bf16.mxu1 %v23312_v51  ;;  %v23363_v16 = vld [vmem:[#allocation7 + $0x253c] ss:$20 sps:$4 sm:$0xff]  }
 0x67f   : > { %11916 = vmatprep.subr.bf16.mxu0 %v23315_v25 }
 0x681   : > { %11713 = vmatpush1.bf16.msra.mxu1 %v23310_v35  ;;  %v9916_v54 = vpop.f32.mrb[120].mxu0  ;;  %v23358_v35 = vld [vmem:[#allocation7 + $0x22b0] ss:$20 sps:$4 sm:$0xff]  }
 0x682   : > { %11917 = vmatpush1.bf16.msra.mxu0 %v23313_v8  ;;  %v9917_v15 = vadd.f32 %v9916_v54, %v25485_v38  ;;  %v9918_v17 = vpop.f32.mrb[121].mxu0  ;;  %11714 = vmatprep.subr.bf16.mxu1 %v23318_v10  ;;  %v23325_v38 = vld [vmem:[#allocation7 + $0x2448] ss:$20 sps:$4 sm:$0xff]   ;;  %v23361_v8 = vld [vmem:[#allocation7 + $0x2538] ss:$20 sps:$4 sm:$0xff]  }
 0x683   : > { %v9919_v26 = vadd.f32 %v9918_v17, %v25488_v6  ;;  %11918 = vmatprep.subr.bf16.mxu0 %v23321_v12  ;;  %v9920_v60 = vpop.f32.mrb[122].mxu0  ;;  %v23328_v6 = vld [vmem:[#allocation7 + $0x21e8] ss:$20 sps:$4 sm:$0xff]   ;;  %v23369_v12 = vld [vmem:[#allocation7 + $0x2564] ss:$20 sps:$4 sm:$0xff]  }
 0x684   : > { %v25521_v46 = vadd.f32 %v9917_v15, %v25381_v4  ;;  %v9921_v43 = vpop.f32.mrb[123].mxu0  ;;  %v23339_v4 = vld [vmem:[#allocation7 + $0x249c] ss:$20 sps:$4 sm:$0xff]   ;;  %v23367_v60 = vld [vmem:[#allocation7 + $0x2560] ss:$20 sps:$4 sm:$0xff]  }
 0x685   : > { %v25524_v42 = vadd.f32 %v9919_v26, %v25384_v49  ;;  %11715 = vmatpush1.bf16.msra.mxu1 %v23316_v24  ;;  %v23337_v49 = vld [vmem:[#allocation7 + $0x2498] ss:$20 sps:$4 sm:$0xff]   ;;  %v23366_v10 = vld [vmem:[#allocation7 + $0x22dc] ss:$20 sps:$4 sm:$0xff]  }
 0x686   : > { %11919 = vmatpush1.bf16.msra.mxu0 %v23319_v59  ;;  %11716 = vmatprep.subr.bf16.mxu1 %v23324_v55  ;;  %v23364_v59 = vld [vmem:[#allocation7 + $0x22d8] ss:$20 sps:$4 sm:$0xff]  }
 0x687   : > { %11920 = vmatprep.subr.bf16.mxu0 %v23327_v41  ;;  %v23372_v43 = vld [vmem:[#allocation7 + $0x2304] ss:$20 sps:$4 sm:$0xff]  }
 0x689   : > { %11717 = vmatpush1.bf16.msra.mxu1 %v23322_v53 }
 0x68a   : > { %11921 = vmatpush1.bf16.msra.mxu0 %v23325_v38  ;;  %11718 = vmatprep.subr.bf16.mxu1 %v23330_v11 }
 0x68b   : > { %11922 = vmatprep.subr.bf16.mxu0 %v23333_v36  ;;  %v23373_v36 = vld [vmem:[#allocation7 + $0x21d0] ss:$20 sps:$4 sm:$0xff]  }
 0x68d   : > { %11719 = vmatpush1.bf16.msra.mxu1 %v23328_v6  ;;  %v25539_v6 = vrot.slane %v24933_v57, 2  ;;  %v23375_v57 = vld [vmem:[#allocation7 + $0x2328] ss:$20 sps:$4 sm:$0xff]  }
 0x68e   : > { %11923 = vmatpush1.bf16.msra.mxu0 %v23331_v47  ;;  %11720 = vmatprep.subr.bf16.mxu1 %v23336_v19  ;;  %v23370_v47 = vld [vmem:[#allocation7 + $0x2300] ss:$20 sps:$4 sm:$0xff]  }
 0x68f   : > { %11924 = vmatprep.subr.bf16.mxu0 %v23339_v4  ;;  %v23374_v4 = vld [vmem:[#allocation7 + $0x2090] ss:$20 sps:$4 sm:$0xff]  }
 0x691   : > { %11721 = vmatpush1.bf16.msra.mxu1 %v23334_v33  ;;  %v23377_v33 = vld [vmem:[#allocation7 + $0x232c] ss:$20 sps:$4 sm:$0xff]  }
 0x692   : > { %11925 = vmatpush1.bf16.msra.mxu0 %v23337_v49  ;;  %11722 = vmatprep.subr.bf16.mxu1 %v23342_v7  ;;  %v23378_v7 = vld [vmem:[#allocation7 + $0x21f8] ss:$20 sps:$4 sm:$0xff]  }
 0x693   : > { %11926 = vmatprep.subr.bf16.mxu0 %v23345_v13  ;;  %v23379_v13 = vld [vmem:[#allocation7 + $0x20b8] ss:$20 sps:$4 sm:$0xff]  }
 0x695   : > { %11723 = vmatpush1.bf16.msra.mxu1 %v23340_v32  ;;  %v23382_v32 = vld [vmem:[#allocation7 + $0x2354] ss:$20 sps:$4 sm:$0xff]  }
 0x696   : > { %11927 = vmatpush1.bf16.msra.mxu0 %v23343_v58  ;;  %11724 = vmatprep.subr.bf16.mxu1 %v23348_v30  ;;  %v23383_v58 = vld [vmem:[#allocation7 + $0x2220] ss:$20 sps:$4 sm:$0xff]   ;;  %v23380_v30 = vld [vmem:[#allocation7 + $0x2350] ss:$20 sps:$4 sm:$0xff]  }
 0x697   : > { %11928 = vmatprep.subr.bf16.mxu0 %v23351_v28  ;;  %v23384_v28 = vld [vmem:[#allocation7 + $0x20e0] ss:$20 sps:$4 sm:$0xff]  }
 0x699   : > { %11725 = vmatpush1.bf16.msra.mxu1 %v23346_v52  ;;  %v20909_v23 = vpop.f32.mrb[124].mxu0  ;;  %v23387_v52 = vld [vmem:[#allocation7 + $0x237c] ss:$20 sps:$4 sm:$0xff]  }
 0x69a   : > { %11929 = vmatpush1.bf16.msra.mxu0 %v23349_v45  ;;  %v20910_v22 = vpop.f32.mrb[125].mxu0  ;;  %11726 = vmatprep.subr.bf16.mxu1 %v23354_v0  ;;  %v23388_v45 = vld [vmem:[#allocation7 + $0x2248] ss:$20 sps:$4 sm:$0xff]   ;;  %v23385_v0 = vld [vmem:[#allocation7 + $0x2378] ss:$20 sps:$4 sm:$0xff]  }
 0x69b   : > { %v25526_v18 = vadd.f32 %v20910_v22, %v20909_v23  ;;  %11930 = vmatprep.subr.bf16.mxu0 %v23357_v62  ;;  %v20912_v21 = vpop.f32.mrb[126].mxu0  ;;  %v23389_v62 = vld [vmem:[#allocation7 + $0x2108] ss:$20 sps:$4 sm:$0xff]   ;;  %v23392_v23 = vld [vmem:[#allocation7 + $0x23a4] ss:$20 sps:$4 sm:$0xff]  }
 0x69c   : > { %v20913_v51 = vpop.f32.mrb[127].mxu0  ;;  %v23390_v22 = vld [vmem:[#allocation7 + $0x23a0] ss:$20 sps:$4 sm:$0xff]  }
 0x69d   : > { %11727 = vmatpush1.bf16.msra.mxu1 %v23352_v50  ;;  %v25528_v25 = vadd.f32 %v20913_v51, %v20912_v21  ;;  %v23393_v50 = vld [vmem:[#allocation7 + $0x2270] ss:$20 sps:$4 sm:$0xff]   ;;  %v23398_v21 = vld [vmem:[#allocation7 + $0x2298] ss:$20 sps:$4 sm:$0xff]   ;;  %v23395_v51 = vld [vmem:[#allocation7 + $0x23c8] ss:$20 sps:$4 sm:$0xff]  }
 0x69e   : > { %11931 = vmatpush1.bf16.msra.mxu0 %v23355_v63  ;;  %11728 = vmatprep.subr.bf16.mxu1 %v23360_v56  ;;  %v23394_v63 = vld [vmem:[#allocation7 + $0x2130] ss:$20 sps:$4 sm:$0xff]   ;;  %v23397_v56 = vld [vmem:[#allocation7 + $0x23cc] ss:$20 sps:$4 sm:$0xff]  }
 0x69f   : > { %11932 = vmatprep.subr.bf16.mxu0 %v23363_v16 }
 0x6a0   : > { %v9712_v54 = vpop.f32.mrb[116].mxu1 }
 0x6a1   : > { %11729 = vmatpush1.bf16.msra.mxu1 %v23358_v35  ;;  %v25531_v24 = vadd.f32 %v9712_v54, %v25490_v40  ;;  %v20915_v15 = vpop.f32.mrb[128].mxu0  ;;  %v9714_v17 = vpop.f32.mrb[117].mxu1  ;;  %v23399_v35 = vld [vmem:[#allocation7 + $0x2158] ss:$20 sps:$4 sm:$0xff]   ;;  %v23403_v54 = vld [vmem:[#allocation7 + $0x22c0] ss:$20 sps:$4 sm:$0xff]  }
 0x6a2   : > { %11933 = vmatpush1.bf16.msra.mxu0 %v23361_v8  ;;  %v25534_v55 = vadd.f32 %v9714_v17, %v25492_v29  ;;  %v20916_v26 = vpop.f32.mrb[129].mxu0  ;;  %11730 = vmatprep.subr.bf16.mxu1 %v23366_v10  ;;  %v9716_v41 = vpop.f32.mrb[118].mxu1  ;;  %v26254_v29 = vld [vmem:[#allocation36_spill] sm:$0xff] }
 0x6a3   : > { %v25536_v53 = vadd.f32 %v20916_v26, %v20915_v15  ;;  %11934 = vmatprep.subr.bf16.mxu0 %v23369_v12  ;;  %v20918_v38 = vpop.f32.mrb[130].mxu0  ;;  %v9717_v11 = vpop.f32.mrb[119].mxu1  ;;  %v10383_v19 = vrot.slane %v26254_v29, 2  ;;  %v23402_v8 = vld [vmem:[#allocation7 + $0x23f4] ss:$20 sps:$4 sm:$0xff]  }
 0x6a4   : > { %v20919_v40 = vpop.f32.mrb[131].mxu0  ;;  %v23404_v26 = vld [vmem:[#allocation7 + $0x2180] ss:$20 sps:$4 sm:$0xff]   ;;  %v23408_v41 = vld [vmem:[#allocation7 + $0x22e8] ss:$20 sps:$4 sm:$0xff]  }
 0x6a5   : > { %11731 = vmatpush1.bf16.msra.mxu1 %v23364_v59  ;;  %v25545_v49 = vsel %vm622_vm0, %v10383_v19, %v25539_v6  ;;  %v23400_v59 = vld [vmem:[#allocation7 + $0x23f0] ss:$20 sps:$4 sm:$0xff]   ;;  %v23405_v38 = vld [vmem:[#allocation7 + $0x2418] ss:$20 sps:$4 sm:$0xff]  }
 0x6a6   : > { %11935 = vmatpush1.bf16.msra.mxu0 %v23367_v60  ;;  %11751 = vmatprep.subr.bf16.mxu1 %v23372_v43  ;;  %v23407_v60 = vld [vmem:[#allocation7 + $0x241c] ss:$20 sps:$4 sm:$0xff]   ;;  %v23412_v40 = vld [vmem:[#allocation7 + $0x2444] ss:$20 sps:$4 sm:$0xff]  }
 0x6a7   : > { %21005 = vmatprep.subr.bf16.mxu0 %v23373_v36  ;;  %v23409_v36 = vld [vmem:[#allocation7 + $0x21a8] ss:$20 sps:$4 sm:$0xff]  }
 0x6a8   : > { %11733 = vmatmul.mubr.bf16.vlgmr.msra.gmra.mrb[24].mxu1 %v25501_v3 }
 0x6a9   : > { %11937 = vmatmul.mubr.bf16.vlgmr.msra.gmra.mrb[48].mxu0 %v25545_v49  ;;  %11742 = vmatprep.mubr.bf16.mxu1 %v25474_v61 }
 0x6aa   : > { %11752 = vmatpush1.bf16.msra.mxu1 %v23370_v47  ;;  %11946 = vmatprep.mubr.bf16.mxu0 %v25507_v5 }
 0x6ab   : > { %21006 = vmatpush3.bf16.msra.mxu0 %v23374_v4  ;;  %11753 = vmatprep.subr.bf16.mxu1 %v23377_v33  ;;  %v23410_v4 = vld [vmem:[#allocation7 + $0x2440] ss:$20 sps:$4 sm:$0xff]  }
 0x6ac   : > { %21007 = vmatprep.subr.bf16.mxu0 %v23378_v7  ;;  %v23415_v33 = vld [vmem:[#allocation7 + $0x246c] ss:$20 sps:$4 sm:$0xff]   ;;  %v23413_v7 = vld [vmem:[#allocation7 + $0x2468] ss:$20 sps:$4 sm:$0xff]  }
 0x6ae   : > { %11754 = vmatpush1.bf16.msra.mxu1 %v23375_v57  ;;  %v23418_v57 = vld [vmem:[#allocation7 + $0x2494] ss:$20 sps:$4 sm:$0xff]  }
 0x6af   : > { %21008 = vmatpush3.bf16.msra.mxu0 %v23379_v13  ;;  %11755 = vmatprep.subr.bf16.mxu1 %v23382_v32  ;;  %v23416_v13 = vld [vmem:[#allocation7 + $0x2490] ss:$20 sps:$4 sm:$0xff]  }
 0x6b0   : > { %11743 = vmatmul.mubr.bf16.gmra.mrb[136].mxu1 %v25496_v9  ;;  %21009 = vmatprep.subr.bf16.mxu0 %v23383_v58  ;;  %v23421_v32 = vld [vmem:[#allocation7 + $0x24bc] ss:$20 sps:$4 sm:$0xff]   ;;  %v23419_v58 = vld [vmem:[#allocation7 + $0x24b8] ss:$20 sps:$4 sm:$0xff]  }
 0x6b1   : > { %11947 = vmatmul.mubr.bf16.gmra.mrb[148].mxu0 %v25539_v6  ;;  %11783 = vmatprep.mubr.bf16.mxu1 %v25515_v2 }
 0x6b2   : > { %11756 = vmatpush1.bf16.msra.mxu1 %v23380_v30  ;;  %12035 = vmatprep.mubr.bf16.mxu0 %v25481_v48  ;;  %v23424_v30 = vld [vmem:[#allocation7 + $0x24e4] ss:$20 sps:$4 sm:$0xff]  }
 0x6b3   : > { %21010 = vmatpush3.bf16.msra.mxu0 %v23384_v28  ;;  %11757 = vmatprep.subr.bf16.mxu1 %v23387_v52  ;;  %v26255_v28 = vmov 0   ;;  %v23427_v52 = vld [vmem:[#allocation7 + $0x250c] ss:$20 sps:$4 sm:$0xff]  }
 0x6b4   : > { %21011 = vmatprep.subr.bf16.mxu0 %v23388_v45  ;;  %v23430_v45 = vld [vmem:[#allocation7 + $0x2534] ss:$20 sps:$4 sm:$0xff]  }
 0x6b6   : > { %11758 = vmatpush1.bf16.msra.mxu1 %v23385_v0  ;;  %v23428_v0 = vld [vmem:[#allocation7 + $0x2530] ss:$20 sps:$4 sm:$0xff]  }
 0x6b7   : > { %21012 = vmatpush3.bf16.msra.mxu0 %v23389_v62  ;;  %11759 = vmatprep.subr.bf16.mxu1 %v23392_v23  ;;  %v23433_v62 = vld [vmem:[#allocation7 + $0x255c] ss:$20 sps:$4 sm:$0xff]  }
 0x6b8   : > { %21013 = vmatprep.subr.bf16.mxu0 %v23393_v50 }
 0x6ba   : > { %11760 = vmatpush1.bf16.msra.mxu1 %v23390_v22  ;;  %v20965_v16 = vpop.f32.mrb[132].mxu0  ;;  %v23431_v22 = vld [vmem:[#allocation7 + $0x2558] ss:$20 sps:$4 sm:$0xff]  }
 0x6bb   : > { %21014 = vmatpush3.bf16.msra.mxu0 %v23394_v63  ;;  %v20966_v48 = vpop.f32.mrb[133].mxu0  ;;  %11761 = vmatprep.subr.bf16.mxu1 %v23397_v56 }
 0x6bc   : > { %v25554_v10 = vadd.f32 %v20966_v48, %v20965_v16  ;;  %21015 = vmatprep.subr.bf16.mxu0 %v23398_v21  ;;  %v20968_v12 = vpop.f32.mrb[134].mxu0  ;;  %v23434_v21 = vld [vmem:[#allocation7 + $0x1f50] ss:$20 sps:$4 sm:$0xff]  }
 0x6bd   : > { %v20969_v15 = vpop.f32.mrb[135].mxu0 }
 0x6be   : > { %11762 = vmatpush1.bf16.msra.mxu1 %v23395_v51  ;;  %v25556_v17 = vadd.f32 %v20969_v15, %v20968_v12  ;;  %v23439_v12 = vld [vmem:[#allocation7 + $0x1e60] ss:$20 sps:$4 sm:$0xff]   ;;  %v23443_v15 = vld [vmem:[#allocation7 + $0x1eb0] ss:$20 sps:$4 sm:$0xff]  }
 0x6bf   : > { %21016 = vmatpush3.bf16.msra.mxu0 %v23399_v35  ;;  %11763 = vmatprep.subr.bf16.mxu1 %v23402_v8  ;;  %v23435_v35 = vld [vmem:[#allocation7 + $0x1e10] ss:$20 sps:$4 sm:$0xff]   ;;  %v23436_v8 = vld [vmem:[#allocation7 + $0x1f78] ss:$20 sps:$4 sm:$0xff]  }
 0x6c0   : > { %21017 = vmatprep.subr.bf16.mxu0 %v23403_v54  ;;  %v23442_v54 = vld [vmem:[#allocation7 + $0x1ff0] ss:$20 sps:$4 sm:$0xff]  }
 0x6c2   : > { %11764 = vmatpush1.bf16.msra.mxu1 %v23400_v59  ;;  %v20971_v43 = vpop.f32.mrb[136].mxu0  ;;  %v23444_v59 = vld [vmem:[#allocation7 + $0x2018] ss:$20 sps:$4 sm:$0xff]  }
 0x6c3   : > { %21018 = vmatpush3.bf16.msra.mxu0 %v23404_v26  ;;  %v20972_v11 = vpop.f32.mrb[137].mxu0  ;;  %11765 = vmatprep.subr.bf16.mxu1 %v23407_v60 }
 0x6c4   : > { %v25558_v47 = vadd.f32 %v20972_v11, %v20971_v43  ;;  %21019 = vmatprep.subr.bf16.mxu0 %v23408_v41  ;;  %v20974_v29 = vpop.f32.mrb[138].mxu0  ;;  %v23445_v41 = vld [vmem:[#allocation7 + $0x1ed8] ss:$20 sps:$4 sm:$0xff]   ;;  %v23446_v11 = vld [vmem:[#allocation7 + $0x2040] ss:$20 sps:$4 sm:$0xff]  }
 0x6c5   : > { %v20975_v19 = vpop.f32.mrb[139].mxu0 }
 0x6c6   : > { %11766 = vmatpush1.bf16.msra.mxu1 %v23405_v38 }
 0x6c7   : > { %21020 = vmatpush3.bf16.msra.mxu0 %v23409_v36  ;;  %11767 = vmatprep.subr.bf16.mxu1 %v23412_v40 }
 0x6ca   : > { %12036 = vmatmul.mubr.bf16.vlgmr.msra.gmra.mrb[152].mxu0 %v25501_v3  ;;  %11768 = vmatpush1.bf16.msra.mxu1 %v23410_v4  ;;  %v23422_v3 = vld [vmem:[#allocation7 + $0x24e0] ss:$20 sps:$4 sm:$0xff]  }
 0x6cb   : > { %12043 = vmatprep.mubr.bf16.mxu0 %v25474_v61  ;;  %11769 = vmatprep.subr.bf16.mxu1 %v23415_v33  ;;  %v23425_v61 = vld [vmem:[#allocation7 + $0x2508] ss:$20 sps:$4 sm:$0xff]  }
 0x6cc   : > { %v23448_v33 = vld [vmem:[#allocation7 + $0x2068] ss:$20 sps:$4 sm:$0xff]  }
 0x6ce   : > { %11770 = vmatpush1.bf16.msra.mxu1 %v23413_v7 }
 0x6cf   : > { %11771 = vmatprep.subr.bf16.mxu1 %v23418_v57 }
 0x6d2   : > { %12044 = vmatmul.mubr.bf16.gmra.mrb[156].mxu0 %v25496_v9  ;;  %11772 = vmatpush1.bf16.msra.mxu1 %v23416_v13 }
 0x6d3   : > { %11773 = vmatprep.subr.bf16.mxu1 %v23421_v32  ;;  %12283 = vmatprep.mubr.bf16.mxu0 %v26255_v28 }
 0x6d6   : > { %11774 = vmatpush1.bf16.msra.mxu1 %v23419_v58 }
 0x6d7   : > { %11775 = vmatprep.subr.bf16.mxu1 %v23424_v30  ;;  %v23449_v30 = vld [vmem:[#allocation7 + $0x1f28] ss:$20 sps:$4 sm:$0xff]  }
 0x6da   : > { %11776 = vmatpush1.bf16.msra.mxu1 %v23422_v3 }
 0x6db   : > { %11777 = vmatprep.subr.bf16.mxu1 %v23427_v52 }
 0x6de   : > { %11778 = vmatpush1.bf16.msra.mxu1 %v23425_v61  ;;  %v23450_v61 = vld [vmem:[#allocation7 + $0x2450] ss:$20 sps:$4 sm:$0xff]  }
 0x6df   : > { %11779 = vmatprep.subr.bf16.mxu1 %v23430_v45 }
 0x6e1   : > { %v9763_v23 = vpop.f32.mrb[120].mxu1 }
 0x6e2   : > { %11780 = vmatpush1.bf16.msra.mxu1 %v23428_v0  ;;  %v9764_v9 = vadd.f32 %v9763_v23, %v25531_v24  ;;  %v9765_v50 = vpop.f32.mrb[121].mxu1  ;;  %v23437_v24 = vld [vmem:[#allocation7 + $0x1e38] ss:$20 sps:$4 sm:$0xff]  }
 0x6e3   : > { %v9766_v63 = vadd.f32 %v9765_v50, %v25534_v55  ;;  %11781 = vmatprep.subr.bf16.mxu1 %v23433_v62  ;;  %v9767_v56 = vpop.f32.mrb[122].mxu1  ;;  %v23438_v55 = vld [vmem:[#allocation7 + $0x1fa0] ss:$20 sps:$4 sm:$0xff]   ;;  %v23452_v23 = vld [vmem:[#allocation7 + $0x2478] ss:$20 sps:$4 sm:$0xff]  }
 0x6e4   : > { %v25567_v16 = vadd.f32 %v9764_v9, %v25414_v14  ;;  %v9768_v51 = vpop.f32.mrb[123].mxu1  ;;  %v23440_v14 = vld [vmem:[#allocation7 + $0x1fc8] ss:$20 sps:$4 sm:$0xff]   ;;  %v23454_v50 = vld [vmem:[#allocation7 + $0x24a0] ss:$20 sps:$4 sm:$0xff]  }
 0x6e5   : > { %v25570_v48 = vadd.f32 %v9766_v63, %v25417_v31  ;;  %v23441_v31 = vld [vmem:[#allocation7 + $0x1e88] ss:$20 sps:$4 sm:$0xff]   ;;  %v23461_v63 = vld [vmem:[#allocation7 + $0x23d8] ss:$20 sps:$4 sm:$0xff]   ;;  %v23462_v56 = vld [vmem:[#allocation7 + $0x2540] ss:$20 sps:$4 sm:$0xff]  }
 0x6e6   : > { %11782 = vmatpush1.bf16.msra.mxu1 %v23431_v22  ;;  %v23456_v22 = vld [vmem:[#allocation7 + $0x24c8] ss:$20 sps:$4 sm:$0xff]  }
 0x6e7   : > { %20977 = vmatprep.subr.bf16.mxu1 %v23434_v21  ;;  %v23463_v21 = vld [vmem:[#allocation7 + $0x2400] ss:$20 sps:$4 sm:$0xff]   ;;  %v23464_v51 = vld [vmem:[#allocation7 + $0x2568] ss:$20 sps:$4 sm:$0xff]  }
 0x6e9   : > { %11784 = vmatmul.mubr.bf16.vlgmr.msra.gmra.mrb[24].mxu1 %v25545_v49 }
 0x6ea   : > { %11793 = vmatprep.mubr.bf16.mxu1 %v25507_v5  ;;  %20978 = vmatpush3.bf16.msra.mxu1 %v23435_v35 }
 0x6eb   : > { %20979 = vmatprep.subr.bf16.mxu1 %v23436_v8 }
 0x6ee   : > { %20980 = vmatpush3.bf16.msra.mxu1 %v23437_v24 }
 0x6ef   : > { %20981 = vmatprep.subr.bf16.mxu1 %v23438_v55 }
 0x6f1   : > { %11794 = vmatmul.mubr.bf16.gmra.mrb[140].mxu1 %v25539_v6 }
 0x6f2   : > { %20982 = vmatpush3.bf16.msra.mxu1 %v23439_v12  ;;  %11987 = vmatprep.mubr.bf16.mxu1 %v25428_v20  ;;  %v23447_v20 = vld [vmem:[#allocation7 + $0x1f00] ss:$20 sps:$4 sm:$0xff]  }
 0x6f3   : > { %20983 = vmatprep.subr.bf16.mxu1 %v23440_v14 }
 0x6f6   : > { %20984 = vmatpush3.bf16.msra.mxu1 %v23441_v31 }
 0x6f7   : > { %20985 = vmatprep.subr.bf16.mxu1 %v23442_v54 }
 0x6f9   : > { %v20937_v26 = vpop.f32.mrb[124].mxu1 }
 0x6fa   : > { %20986 = vmatpush3.bf16.msra.mxu1 %v23443_v15  ;;  %v20938_v60 = vpop.f32.mrb[125].mxu1 }
 0x6fb   : > { %v20939_v43 = vadd.f32 %v20938_v60, %v20937_v26  ;;  %20987 = vmatprep.subr.bf16.mxu1 %v23444_v59  ;;  %v20940_v38 = vpop.f32.mrb[126].mxu1  ;;  %v25598_v59 = vld [vmem:[#allocation8] sm:$0x1f]  ;;  %v26256_v26 = vld [vmem:[#allocation31_spill] sm:$0xff] }
 0x6fc   : > { %v20941_v36 = vpop.f32.mrb[127].mxu1  ;;  %v12131_v60 = vrot.slane %v25598_v59, %v26256_v26 }
 0x6fd   : > { %v10006_v40 = vadd.f32 %v20939_v43, %v25526_v18  ;;  %v20942_v29 = vadd.f32 %v20941_v36, %v20940_v38 }
 0x6fe   : > { %20988 = vmatpush3.bf16.msra.mxu1 %v23445_v41 }
 0x6ff   : > { %v10054_v19 = vadd.f32 %v25554_v10, %v10006_v40  ;;  %v10009_v4 = vadd.f32 %v20942_v29, %v25528_v25  ;;  %20989 = vmatprep.subr.bf16.mxu1 %v23446_v11 }
 0x701   : > { %v10057_v7 = vadd.f32 %v25556_v17, %v10009_v4  ;;  %v20943_v57 = vpop.f32.mrb[128].mxu1  ;;  %v25581_v13 = vadd.f32 %v10054_v19, %v25450_v44  ;;  %v23451_v44 = vld [vmem:[#allocation7 + $0x2310] ss:$20 sps:$4 sm:$0xff]  }
 0x702   : > { %20990 = vmatpush3.bf16.msra.mxu1 %v23447_v20  ;;  %v11846_v32 = vpop.f32.mrb[140].mxu0  ;;  %v20944_v58 = vpop.f32.mrb[129].mxu1 }
 0x703   : > { %v20945_v18 = vadd.f32 %v20944_v58, %v20943_v57  ;;  %v11848_v3 = vpop.f32.mrb[141].mxu0  ;;  %20991 = vmatprep.subr.bf16.mxu1 %v23448_v33  ;;  %v20946_v52 = vpop.f32.mrb[130].mxu1  ;;  %v25584_v10 = vadd.f32 %v10057_v7, %v25454_v27  ;;  %v23453_v27 = vld [vmem:[#allocation7 + $0x2338] ss:$20 sps:$4 sm:$0xff]  }
 0x704   : > { %v11850_v25 = vpop.f32.mrb[142].mxu0  ;;  %v20947_v45 = vpop.f32.mrb[131].mxu1 }
 0x705   : > { %v10014_v17 = vadd.f32 %v20945_v18, %v25536_v53  ;;  %v11851_v0 = vpop.f32.mrb[143].mxu0  ;;  %v23455_v53 = vld [vmem:[#allocation7 + $0x2360] ss:$20 sps:$4 sm:$0xff]  }
 0x706   : > { %20992 = vmatpush3.bf16.msra.mxu1 %v23449_v30 }
 0x707   : > { %v10062_v62 = vadd.f32 %v25558_v47, %v10014_v17  ;;  %21033 = vmatprep.subr.bf16.mxu1 %v23450_v61  ;;  %v23457_v47 = vld [vmem:[#allocation7 + $0x2388] ss:$20 sps:$4 sm:$0xff]  }
 0x709   : > { %11988 = vmatmul.mubr.bf16.vlgmr.msra.gmra.mrb[144].mxu1 %v25467_v34  ;;  %v25590_v9 = vadd.f32 %v10062_v62, %v25462_v1  ;;  %v23458_v34 = vld [vmem:[#allocation7 + $0x24f0] ss:$20 sps:$4 sm:$0xff]  }
 0x70a   : > { %11995 = vmatprep.mubr.bf16.mxu1 %v25422_v37  ;;  %21034 = vmatpush3.bf16.msra.mxu1 %v23451_v44  ;;  %v23459_v1 = vld [vmem:[#allocation7 + $0x23b0] ss:$20 sps:$4 sm:$0xff]   ;;  %v23460_v37 = vld [vmem:[#allocation7 + $0x2518] ss:$20 sps:$4 sm:$0xff]  }
 0x70b   : > { %21035 = vmatprep.subr.bf16.mxu1 %v23452_v23 }
 0x70e   : > { %21036 = vmatpush3.bf16.msra.mxu1 %v23453_v27 }
 0x70f   : > { %21037 = vmatprep.subr.bf16.mxu1 %v23454_v50 }
 0x711   : > { %11996 = vmatmul.mubr.bf16.gmra.mrb[148].mxu1 %v25457_v39  ;;  %v23465_v39 = vld [vmem:[#allocation7 + $0x2428] ss:$20 sps:$4 sm:$0xff]  }
 0x712   : > { %21038 = vmatpush3.bf16.msra.mxu1 %v23455_v53  ;;  %12083 = vmatprep.mubr.bf16.mxu1 %v25515_v2 }
 0x713   : > { %21039 = vmatprep.subr.bf16.mxu1 %v23456_v22 }
 0x716   : > { %21040 = vmatpush3.bf16.msra.mxu1 %v23457_v47 }
 0x717   : > { %21041 = vmatprep.subr.bf16.mxu1 %v23458_v34 }
 0x71a   : > { %21042 = vmatpush3.bf16.msra.mxu1 %v23459_v1 }
 0x71b   : > { %21043 = vmatprep.subr.bf16.mxu1 %v23460_v37 }
 0x71e   : > { %21044 = vmatpush3.bf16.msra.mxu1 %v23461_v63 }
 0x71f   : > { %21045 = vmatprep.subr.bf16.mxu1 %v23462_v56 }
 0x722   : > { %21046 = vmatpush3.bf16.msra.mxu1 %v23463_v21 }
 0x723   : > { %21047 = vmatprep.subr.bf16.mxu1 %v23464_v51 }
 0x726   : > { %21048 = vmatpush3.bf16.msra.mxu1 %v23465_v39 }
 0x729   : > { %12084 = vmatmul.mubr.bf16.vlgmr.msra.gmra.mrb[152].mxu1 %v25545_v49  ;;  %v26257_v49 = vld [vmem:[#allocation30_spill] sm:$0xff] }
 0x72a   : > { %12091 = vmatprep.mubr.bf16.mxu1 %v25507_v5  ;;  %v12127_v5 = vrot.slane %v25598_v59, %v26257_v49 }
 0x731   : > { %12092 = vmatmul.mubr.bf16.gmra.mrb[156].mxu1 %v25539_v6 }
 0x742   : > { %v11693_v2 = vpop.f32.mrb[132].mxu1 }
 0x743   : > { %v11897_v35 = vpop.f32.mrb[144].mxu0  ;;  %v11695_v8 = vpop.f32.mrb[133].mxu1 }
 0x744   : > { %v11898_v24 = vadd.f32 %v11897_v35, %v11846_v32  ;;  %v11899_v55 = vpop.f32.mrb[145].mxu0  ;;  %v11697_v12 = vpop.f32.mrb[134].mxu1 }
 0x745   : > { %v11900_v14 = vadd.f32 %v11899_v55, %v11848_v3  ;;  %v11901_v31 = vpop.f32.mrb[146].mxu0  ;;  %v11698_v54 = vpop.f32.mrb[135].mxu1 }
 0x746   : > { %v11902_v15 = vpop.f32.mrb[147].mxu0 }
 0x77c   : > { %v11938_v41 = vpop.f32.mrb[48].mxu0 }
 0x77d   : > { %v11940_v6 = vpop.f32.mrb[49].mxu0  ;;  %v25606_v11 = vadd.f32 %v12127_v5, %v11938_v41 }
 0x77e   : > { %v25604_v43 = vadd.f32 %v12131_v60, %v11940_v6  ;;  %v11942_v38 = vpop.f32.mrb[50].mxu0 }
 0x77f   : > { %v25608_v36 = vadd.f32 %v12127_v5, %v11942_v38  ;;  %v11944_v40 = vpop.f32.mrb[51].mxu0 }
 0x780   : > { %v25610_v29 = vadd.f32 %v12131_v60, %v11944_v40 }
 0x781   : > { %v21668_v20 = vpack.i.bf16 %v25608_v36, %v25606_v11 }
 0x783   : > { %21669 = vrot.lane.b32.xlu1 %v21668_v20, %s24288_s24  ;;  %v11744_v19 = vpop.f32.mrb[136].mxu1 }
 0x784   : > { %v11745_v4 = vadd.f32 %v11744_v19, %v11693_v2  ;;  %v11948_v33 = vpop.f32.mrb[148].mxu0  ;;  %v11746_v7 = vpop.f32.mrb[137].mxu1 }
 0x785   : > { %v11949_v57 = vadd.f32 %v11948_v33, %v11898_v24  ;;  %v11747_v32 = vadd.f32 %v11746_v7, %v11695_v8  ;;  %v11950_v58 = vpop.f32.mrb[149].mxu0  ;;  %v11748_v30 = vpop.f32.mrb[138].mxu1 }
 0x786   : > { %v11951_v18 = vadd.f32 %v11950_v58, %v11900_v14  ;;  %v11952_v3 = vpop.f32.mrb[150].mxu0  ;;  %v11749_v52 = vpop.f32.mrb[139].mxu1 }
 0x787   : > { %v12111_v61 = vadd.f32 %v11949_v57, %v25521_v46  ;;  %v11953_v25 = vpop.f32.mrb[151].mxu0 }
 0x788   : > { %v12112_v45 = vadd.f32 %v11951_v18, %v25524_v42  ;;  %v26258_v18 = vld [vmem:[#allocation35_spill] sm:$0xff] }
 0x789   : > { %v25617_v17 = vadd.f32 %v12127_v5, %v12111_v61  ;;  %v12135_v3 = vrot.slane %v25598_v59, %v26258_v18 }
 0x78a   : > { %v12154_v0 = vadd.f32 %v12131_v60, %v12112_v45 }
 0x78c   : > { %v21673_v44 = vpack.i.bf16 %v12154_v0, %v25617_v17 }
 0x78e   : > { %21674 = vrot.lane.b32.xlu1 %v21673_v44, %s24288_s24 }
 0x79d   : > { %v21021_v62 = vpop.f32.mrb[152].mxu0 }
 0x79e   : > { %v21022_v23 = vpop.f32.mrb[153].mxu0 }
 0x79f   : > { %v21023_v27 = vadd.f32 %v21022_v23, %v21021_v62  ;;  %v21024_v50 = vpop.f32.mrb[154].mxu0 }
 0x7a0   : > { %v21025_v53 = vpop.f32.mrb[155].mxu0 }
 0x7a1   : > { %v21026_v22 = vadd.f32 %v21025_v53, %v21024_v50 }
 0x7a5   : > { %v21027_v47 = vpop.f32.mrb[156].mxu0 }
 0x7a6   : > { %v21028_v34 = vpop.f32.mrb[157].mxu0 }
 0x7a7   : > { %v21029_v1 = vadd.f32 %v21028_v34, %v21027_v47  ;;  %v21030_v46 = vpop.f32.mrb[158].mxu0 }
 0x7a8   : > { %v21031_v37 = vpop.f32.mrb[159].mxu0  ;;  %v26259_v46 = vld [vmem:[#allocation29_spill] sm:$0xff] }
 0x7a9   : > { %v12210_v37 = vadd.s32 8, %v26259_v46 }
 0x7bc   : > { %v25621_v63 = vpop.f32.mrb[24].mxu1 }
 0x7bd   : > { %v25623_v42 = vpop.f32.mrb[25].mxu1 }
 0x7be   : > { %v25625_v56 = vpop.f32.mrb[26].mxu1 }
 0x7bf   : > { %v25627_v21 = vpop.f32.mrb[27].mxu1 }
 0x7c4   : > { %v11795_v51 = vpop.f32.mrb[140].mxu1 }
 0x7c5   : > { %v11796_v39 = vadd.f32 %v11795_v51, %v11745_v4  ;;  %v11797_v2 = vpop.f32.mrb[141].mxu1  ;;  %v26260_v51 = vld [vmem:[#allocation33_spill] sm:$0xff] }
 0x7c6   : > { %v11798_v35 = vadd.f32 %v11797_v2, %v11747_v32  ;;  %v11799_v8 = vpop.f32.mrb[142].mxu1  ;;  %v26261_v2 = vld [vmem:[#allocation34_spill] sm:$0xff] }
 0x7c7   : > { %v25630_v24 = vadd.f32 %v11796_v39, %v25567_v16  ;;  %v11800_v55 = vpop.f32.mrb[143].mxu1  ;;  %v12119_v39 = vrot.slane %v25598_v59, %v26260_v51 }
 0x7c8   : > { %v25633_v12 = vadd.f32 %v11798_v35, %v25570_v48  ;;  %v12213_v55 = vmul.u32 2, %v26259_v46 }
 0x7dc   : > { %v20993_v14 = vpop.f32.mrb[144].mxu1 }
 0x7dd   : > { %v20994_v31 = vpop.f32.mrb[145].mxu1 }
 0x7de   : > { %v20995_v54 = vadd.f32 %v20994_v31, %v20993_v14  ;;  %v20996_v15 = vpop.f32.mrb[146].mxu1  ;;  %v12214_v14 = vmul.u32 2, %v12210_v37  ;;  %v23468_v37 = vld [vmem:[#allocation10 + $0x1e4] ss:$12 sps:$4 sm:$0xff]  }
 0x7df   : > { %v20997_v60 = vpop.f32.mrb[147].mxu1 }
 0x7e0   : > { %v12038_v5 = vadd.f32 %v21023_v27, %v20995_v54  ;;  %v20998_v41 = vadd.f32 %v20997_v60, %v20996_v15  ;;  %v12141_v15 = vadd.f32 %v12119_v39, %v25621_v63  ;;  %v12222_v60 = vadd.s32 1, %v12213_v55 }
 0x7e2   : > { %v12041_v6 = vadd.f32 %v21026_v22, %v20998_v41  ;;  %v24289_v22 = vmov 0.0  }
 0x7e3   : > { %21298 = vmatprep.subr.bf16.mxu1 %v24289_v22  ;;  %21302 = vmatprep.mubr.msk.bf16.mxu1 %vm24290_vm5, %v24289_v22 }
 0x7e4   : > { %v20999_v38 = vpop.f32.mrb[148].mxu1 }
 0x7e5   : > { %v21000_v40 = vpop.f32.mrb[149].mxu1 }
 0x7e6   : > { %v21001_v20 = vadd.f32 %v21000_v40, %v20999_v38  ;;  %v21002_v19 = vpop.f32.mrb[150].mxu1 }
 0x7e7   : > { %v21003_v4 = vpop.f32.mrb[151].mxu1 }
 0x7e8   : > { %v12046_v33 = vadd.f32 %v21029_v1, %v21001_v20  ;;  %v12151_v20 = vadd.f32 %v12119_v39, %v25630_v24 }
 0x7fc   : > { %v21049_v16 = vpop.f32.mrb[152].mxu1 }
 0x7fd   : > { %v21050_v7 = vpop.f32.mrb[153].mxu1 }
 0x7fe   : > { %v21051_v57 = vadd.f32 %v21050_v7, %v21049_v16  ;;  %v21052_v32 = vpop.f32.mrb[154].mxu1 }
 0x7ff   : > { %v21053_v48 = vpop.f32.mrb[155].mxu1 }
 0x800   : > { %v12086_v58 = vadd.f32 %v21051_v57, %v12038_v5  ;;  %v21054_v30 = vadd.f32 %v21053_v48, %v21052_v32  ;;  %v12223_v5 = vadd.s32 1, %v12214_v14 }
 0x802   : > { %v12103_v52 = vadd.f32 %v12086_v58, %v25581_v13  ;;  %v12089_v61 = vadd.f32 %v21054_v30, %v12041_v6  ;;  %v12146_v6 = vadd.f32 %v12119_v39, %v25625_v56  ;;  %v23466_v39 = vld [vmem:[#allocation10 + $0x1e0] ss:$12 sps:$4 sm:$0xff]  }
 0x804   : > { %v12108_v25 = vadd.f32 %v12089_v61, %v25584_v10  ;;  %v21055_v45 = vpop.f32.mrb[156].mxu1  ;;  %v12145_v0 = vadd.f32 %v12135_v3, %v12103_v52 }
 0x805   : > { %v21056_v44 = vpop.f32.mrb[157].mxu1 }
 0x806   : > { %v21057_v62 = vadd.f32 %v21056_v44, %v21055_v45  ;;  %v21058_v23 = vpop.f32.mrb[158].mxu1  ;;  %v21678_v27 = vpack.i.bf16 %v12145_v0, %v25604_v43  ;;  %v12150_v50 = vadd.f32 %v12135_v3, %v12108_v25  ;;  %v21670_v43 = vpop.permute.xlu1 %21669  ;;  %v23534_v44 = vld [vmem:[#allocation10 + $0x4] ss:$12 sps:$4 sm:$0xff]  }
 0x807   : > { %v21059_v53 = vpop.f32.mrb[159].mxu1  ;;  %v21671_v38 = vunpack.i.l.bf16 %v21670_v43  ;;  %v21672_v19 = vunpack.i.h.bf16 %v21670_v43 }
 0x808   : > { %v12094_v47 = vadd.f32 %v21057_v62, %v12046_v33  ;;  %21679 = vrot.lane.b32.xlu0 %v21678_v27, %s24288_s24  ;;  %v21683_v13 = vpack.i.bf16 %v12150_v50, %v25610_v29  ;;  %v12123_v29 = vrot.slane %v25598_v59, %v26261_v2  ;;  %v26262_v33 = vlaneseq }
 0x80a   : > { %v12113_v34 = vadd.f32 %v12094_v47, %v25590_v9  ;;  %v21675_v1 = vpop.permute.xlu1 %21674  ;;  %v12142_v41 = vadd.f32 %v12123_v29, %v25623_v42  ;;  %v12147_v40 = vadd.f32 %v12123_v29, %v25627_v21  ;;  %v12212_v16 = vand.u32 127, %v26262_v33  ;;  %v23498_v33 = vld [vmem:[#allocation10 + $0x364] ss:$12 sps:$4 sm:$0xff]  }
 0x80b   : > { %v21677_v9 = vunpack.i.h.bf16 %v21675_v1  ;;  %v21676_v35 = vunpack.i.l.bf16 %v21675_v1  ;;  %v12152_v42 = vadd.f32 %v12123_v29, %v25633_v12  ;;  %v23471_v29 = vld [vmem:[#allocation10 + $0x1fc] ss:$12 sps:$4 sm:$0xff]  }
 0x80c   : > { %21684 = vrot.lane.b32.xlu0 %v21683_v13, %s24288_s24  ;;  %v12155_v10 = vadd.f32 %v12135_v3, %v12113_v34  ;;  %vm12224_vm7 = vcmp.eq.s32.totalorder %v12212_v16, %v12222_v60  ;;  %vm12225_vm8 = vcmp.eq.s32.totalorder %v12212_v16, %v12223_v5  ;;  %vm25670_vm9 = vcmp.eq.s32.totalorder %v12212_v16, %v12213_v55  ;;  %v23477_v55 = vld [vmem:[#allocation10 + $0x22c] ss:$12 sps:$4 sm:$0xff]   ;;  %v23486_v5 = vld [vmem:[#allocation10 + $0x274] ss:$12 sps:$4 sm:$0xff]  }
 0x80d   : > { %v12188_v59 = vsel %vm12183_vm6, %v21676_v35, %v21677_v9  ;;  %vm12216_vm10 = vcmp.eq.s32.totalorder %v12212_v16, %v12214_v14  ;;  %v25676_v27 = vsel %vm12224_vm7, 1.0, %v24289_v22  ;;  %v19952_v50 = vsel %vm12225_vm8, 1.0, %v24289_v22  ;;  %v23474_v35 = vld [vmem:[#allocation10 + $0x214] ss:$12 sps:$4 sm:$0xff]   ;;  %v23481_v60 = vld [vmem:[#allocation10 + $0x258] ss:$12 sps:$4 sm:$0xff]  }
 0x80e   : > { %v12205_v56 = vmax.f32 %v12151_v20, %v12188_v59  ;;  %v25685_v13 = vsel %vm25670_vm9, 1.0, %v24289_v22  ;;  %v19950_v34 = vsel %vm12216_vm10, 1.0, %v24289_v22  ;;  %v23475_v14 = vld [vmem:[#allocation10 + $0x228] ss:$12 sps:$4 sm:$0xff]   ;;  %v23492_v59 = vld [vmem:[#allocation10 + $0x2a4] ss:$12 sps:$4 sm:$0xff]  }
 0x80f   : > { %v12221_v1 = vpack.c.bf16 %v19950_v34, %v25685_v13  ;;  %v23493_v20 = vld [vmem:[#allocation10 + $0x2b8] ss:$12 sps:$4 sm:$0xff]   ;;  %v23499_v16 = vld [vmem:[#allocation10 + $0x2d0] ss:$12 sps:$4 sm:$0xff]  }
 0x810   : > { %12181 = vrot.lane.b32.xlu0 %v12155_v10, %s24288_s24  ;;  %v12230_v10 = vpack.c.bf16 %v19952_v50, %v25676_v27 }
 0x87a   : > { %v21680_v8 = vpop.permute.xlu0 %21679 }
 0x87b   : > { %v21682_v31 = vunpack.i.h.bf16 %v21680_v8  ;;  %v21681_v54 = vunpack.i.l.bf16 %v21680_v8  ;;  %v23472_v8 = vld [vmem:[#allocation10 + $0x210] ss:$12 sps:$4 sm:$0xff]  }
 0x87d   : > { %v12184_v7 = vsel %vm12183_vm6, %v21671_v38, %v21681_v54  ;;  %v12185_v63 = vsel %vm12183_vm6, %v21681_v54, %v21682_v31  ;;  %v12201_v48 = vmax.f32 %v25606_v11, %v21682_v31  ;;  %v23480_v31 = vld [vmem:[#allocation10 + $0x244] ss:$12 sps:$4 sm:$0xff]   ;;  %v23478_v54 = vld [vmem:[#allocation10 + $0x240] ss:$12 sps:$4 sm:$0xff]   ;;  %v23487_v38 = vld [vmem:[#allocation10 + $0x288] ss:$12 sps:$4 sm:$0xff]  }
 0x87e   : > { %v21685_v4 = vpop.permute.xlu0 %21684  ;;  %v12199_v30 = vmax.f32 %v12141_v15, %v12184_v7  ;;  %v12200_v61 = vmax.f32 %v12142_v41, %v12185_v63  ;;  %v23483_v15 = vld [vmem:[#allocation10 + $0x25c] ss:$12 sps:$4 sm:$0xff]   ;;  %v23501_v7 = vld [vmem:[#allocation10 + $0x2d4] ss:$12 sps:$4 sm:$0xff]   ;;  %v23502_v63 = vld [vmem:[#allocation10 + $0x378] ss:$12 sps:$4 sm:$0xff]  }
 0x87f   : > { %v21687_v57 = vunpack.i.h.bf16 %v21685_v4  ;;  %v21686_v32 = vunpack.i.l.bf16 %v21685_v4  ;;  %v23484_v41 = vld [vmem:[#allocation10 + $0x270] ss:$12 sps:$4 sm:$0xff]   ;;  %v23496_v4 = vld [vmem:[#allocation10 + $0x360] ss:$12 sps:$4 sm:$0xff]  }
 0x881   : > { %v12204_v21 = vmax.f32 %v25608_v36, %v21687_v57  ;;  %v12186_v24 = vsel %vm12183_vm6, %v21672_v19, %v21686_v32  ;;  %v12187_v58 = vsel %vm12183_vm6, %v21686_v32, %v21687_v57  ;;  %v23495_v19 = vld [vmem:[#allocation10 + $0x2bc] ss:$12 sps:$4 sm:$0xff]  }
 0x882   : > { %v12202_v3 = vmax.f32 %v12146_v6, %v12186_v24  ;;  %v12182_v52 = vpop.permute.xlu0 %12181  ;;  %v12203_v25 = vmax.f32 %v12147_v40, %v12187_v58  ;;  %v23489_v6 = vld [vmem:[#allocation10 + $0x28c] ss:$12 sps:$4 sm:$0xff]   ;;  %v23504_v57 = vld [vmem:[#allocation10 + $0x37c] ss:$12 sps:$4 sm:$0xff]   ;;  %v23513_v24 = vld [vmem:[#allocation10 + $0x304] ss:$12 sps:$4 sm:$0xff]  }
 0x883   : > { %v12233_v45 = vpack.c.bf16 %v12204_v21, %v12201_v48  ;;  %v12189_v0 = vsel %vm12183_vm6, %v21677_v9, %v12182_v52  ;;  %v12207_v12 = vmax.f32 %v25617_v17, %v12182_v52  ;;  %v12234_v17 = vpack.c.bf16 %v12205_v56, %v12205_v56  ;;  %v23469_v9 = vld [vmem:[#allocation10 + $0x1f8] ss:$12 sps:$4 sm:$0xff]   ;;  %v23490_v40 = vld [vmem:[#allocation10 + $0x2a0] ss:$12 sps:$4 sm:$0xff]   ;;  %v23505_v32 = vld [vmem:[#allocation10 + $0x2e8] ss:$12 sps:$4 sm:$0xff]  }
 0x884   : > { %v12206_v11 = vmax.f32 %v12152_v42, %v12189_v0  ;;  %v12232_v36 = vpack.c.bf16 %v12203_v25, %v12200_v61  ;;  %v12231_v62 = vpack.c.bf16 %v12202_v3, %v12199_v30  ;;  %v23507_v42 = vld [vmem:[#allocation10 + $0x2ec] ss:$12 sps:$4 sm:$0xff]   ;;  %v23510_v56 = vld [vmem:[#allocation10 + $0x394] ss:$12 sps:$4 sm:$0xff]   ;;  %v23508_v48 = vld [vmem:[#allocation10 + $0x390] ss:$12 sps:$4 sm:$0xff]  }
 0x885   : > { %v12236_v23 = vpack.c.bf16 %v12207_v12, %v12207_v12  ;;  %21299 = vmatpush3.bf16.msra.mxu1 %v12233_v45  ;;  %v12243_v43 = vsel %vm12241_vm11, %v12234_v17, 0  ;;  %v23511_v21 = vld [vmem:[#allocation10 + $0x300] ss:$12 sps:$4 sm:$0xff]   ;;  %v23514_v58 = vld [vmem:[#allocation10 + $0x3a8] ss:$12 sps:$4 sm:$0xff]  }
 0x886   : > { %v12235_v53 = vpack.c.bf16 %v12206_v11, %v12206_v11  ;;  %12251 = vmatprep.subr.bf16.mxu0 %v12232_v36  ;;  %21300 = vmatprep.subr.bf16.mxu1 %v24289_v22  ;;  %v23516_v30 = vld [vmem:[#allocation10 + $0x3ac] ss:$12 sps:$4 sm:$0xff]   ;;  %v23519_v52 = vld [vmem:[#allocation10 + $0x31c] ss:$12 sps:$4 sm:$0xff]   ;;  %v23524_v25 = vld [vmem:[#allocation10 + $0x334] ss:$12 sps:$4 sm:$0xff]  }
 0x887   : > { %12252 = vmatpush1.bf16.msra.mxu0 %v12231_v62  ;;  %v12249_v47 = vsel %vm12241_vm11, %v12236_v23, 0  ;;  %v23517_v3 = vld [vmem:[#allocation10 + $0x318] ss:$12 sps:$4 sm:$0xff]   ;;  %v23520_v61 = vld [vmem:[#allocation10 + $0x2a8] ss:$12 sps:$4 sm:$0xff]  }
 0x888   : > { %19953 = vmatprep.subr.msk.bf16.mxu0 %vm12241_vm11, %v12235_v53  ;;  %v23529_v0 = vld [vmem:[#allocation10 + $0x34c] ss:$12 sps:$4 sm:$0xff]   ;;  %v23527_v12 = vld [vmem:[#allocation10 + $0x348] ss:$12 sps:$4 sm:$0xff]  }
 0x889   : > { %21301 = vmatpush3.bf16.msra.mxu1 %v12249_v47 }
 0x88a   : > { %12985 = vmatprep.subr.bf16.mxu1 %v23498_v33 }
 0x88b   : > { %12254 = vmatpush1.bf16.msra.mxu0 %v12243_v43 }
 0x88c   : > { %21290 = vmatprep.subr.bf16.mxu0 %v24289_v22  ;;  %21303 = vmatmul.mubr.msk.bf16.vlgmr.msra.gmra.mrb[160].mxu1 %vm12237_vm12, %v12230_v10 }
 0x88d   : > { %13017 = vmatprep.mubr.bf16.mxu1 %v26255_v28  ;;  %12986 = vmatpush1.bf16.msra.mxu1 %v23496_v4 }
 0x88e   : > { %19954 = vmatmul.mubr.msk.bf16.vlgmr.msra.gmra.mrb[160].mxu0 %vm12237_vm12, %v12221_v1  ;;  %12987 = vmatprep.subr.bf16.mxu1 %v23504_v57 }
 0x88f   : > { %21291 = vmatpush3.bf16.msra.mxu0 %v12233_v45  ;;  %21294 = vmatprep.mubr.msk.bf16.mxu0 %vm24290_vm5, %v24289_v22  ;;  %v23522_v45 = vld [vmem:[#allocation10 + $0x330] ss:$12 sps:$4 sm:$0xff]  }
 0x890   : > { %21292 = vmatprep.subr.bf16.mxu0 %v24289_v22 }
 0x891   : > { %12988 = vmatpush1.bf16.msra.mxu1 %v23502_v63 }
 0x892   : > { %12989 = vmatprep.subr.bf16.mxu1 %v23510_v56  ;;  %v23526_v56 = vld [vmem:[#allocation10 + $0x200] ss:$12 sps:$4 sm:$0xff]  }
 0x893   : > { %21293 = vmatpush3.bf16.msra.mxu0 %v12249_v47 }
 0x894   : > { %12338 = vmatprep.subr.bf16.mxu0 %v12232_v36 }
 0x895   : > { %12990 = vmatpush1.bf16.msra.mxu1 %v23508_v48  ;;  %v23530_v48 = vld [vmem:[#allocation10 + $0x2d8] ss:$12 sps:$4 sm:$0xff]  }
 0x896   : > { %21295 = vmatmul.mubr.msk.bf16.vlgmr.msra.gmra.mrb[164].mxu0 %vm12237_vm12, %v12221_v1  ;;  %12991 = vmatprep.subr.bf16.mxu1 %v23516_v30 }
 0x897   : > { %12339 = vmatpush1.bf16.msra.mxu0 %v12231_v62  ;;  %12370 = vmatprep.mubr.bf16.mxu0 %v26255_v28 }
 0x898   : > { %19956 = vmatprep.subr.msk.bf16.mxu0 %vm12241_vm11, %v12235_v53 }
 0x899   : > { %12992 = vmatpush1.bf16.msra.mxu1 %v23514_v58 }
 0x89a   : > { %21067 = vmatprep.subr.bf16.mxu1 %v23520_v61 }
 0x89b   : > { %12341 = vmatpush1.bf16.msra.mxu0 %v12243_v43 }
 0x89c   : > { %12944 = vmatprep.subr.bf16.mxu0 %v23468_v37 }
 0x89e   : > { %19957 = vmatmul.mubr.msk.bf16.vlgmr.msra.gmra.mrb[168].mxu0 %vm12237_vm12, %v12230_v10 }
 0x89f   : > { %12945 = vmatpush1.bf16.msra.mxu0 %v23466_v39 }
 0x8a0   : > { %12946 = vmatprep.subr.bf16.mxu0 %v23471_v29 }
 0x8a3   : > { %12947 = vmatpush1.bf16.msra.mxu0 %v23469_v9 }
 0x8a4   : > { %12948 = vmatprep.subr.bf16.mxu0 %v23474_v35 }
 0x8a7   : > { %12949 = vmatpush1.bf16.msra.mxu0 %v23472_v8 }
 0x8a8   : > { %12950 = vmatprep.subr.bf16.mxu0 %v23477_v55 }
 0x8ab   : > { %12951 = vmatpush1.bf16.msra.mxu0 %v23475_v14 }
 0x8ac   : > { %12952 = vmatprep.subr.bf16.mxu0 %v23480_v31 }
 0x8af   : > { %12953 = vmatpush1.bf16.msra.mxu0 %v23478_v54 }
 0x8b0   : > { %12954 = vmatprep.subr.bf16.mxu0 %v23483_v15 }
 0x8b3   : > { %12955 = vmatpush1.bf16.msra.mxu0 %v23481_v60 }
 0x8b4   : > { %12956 = vmatprep.subr.bf16.mxu0 %v23486_v5 }
 0x8b7   : > { %12957 = vmatpush1.bf16.msra.mxu0 %v23484_v41 }
 0x8b8   : > { %12958 = vmatprep.subr.bf16.mxu0 %v23489_v6 }
 0x8bb   : > { %12959 = vmatpush1.bf16.msra.mxu0 %v23487_v38 }
 0x8bc   : > { %12960 = vmatprep.subr.bf16.mxu0 %v23492_v59 }
 0x8bf   : > { %12961 = vmatpush1.bf16.msra.mxu0 %v23490_v40  ;;  %v23521_v40 = vld [vmem:[#allocation10 + $0x1e8] ss:$12 sps:$4 sm:$0xff]  }
 0x8c0   : > { %12962 = vmatprep.subr.bf16.mxu0 %v23495_v19 }
 0x8c3   : > { %12963 = vmatpush1.bf16.msra.mxu0 %v23493_v20 }
 0x8c4   : > { %12964 = vmatprep.subr.bf16.mxu0 %v23501_v7 }
 0x8c7   : > { %12965 = vmatpush1.bf16.msra.mxu0 %v23499_v16  ;;  %v23525_v16 = vld [vmem:[#allocation10 + $0x2c0] ss:$12 sps:$4 sm:$0xff]  }
 0x8c8   : > { %12966 = vmatprep.subr.bf16.mxu0 %v23507_v42 }
 0x8cb   : > { %12967 = vmatpush1.bf16.msra.mxu0 %v23505_v32 }
 0x8cc   : > { %12968 = vmatprep.subr.bf16.mxu0 %v23513_v24 }
 0x8cf   : > { %12969 = vmatpush1.bf16.msra.mxu0 %v23511_v21 }
 0x8d0   : > { %12970 = vmatprep.subr.bf16.mxu0 %v23519_v52 }
 0x8d3   : > { %12971 = vmatpush1.bf16.msra.mxu0 %v23517_v3 }
 0x8d4   : > { %12972 = vmatprep.subr.bf16.mxu0 %v23524_v25  ;;  %v23531_v25 = vld [vmem:[#allocation10 + $0x218] ss:$12 sps:$4 sm:$0xff]  }
 0x8d7   : > { %12973 = vmatpush1.bf16.msra.mxu0 %v23522_v45 }
 0x8d8   : > { %12974 = vmatprep.subr.bf16.mxu0 %v23529_v0 }
 0x8db   : > { %12975 = vmatpush1.bf16.msra.mxu0 %v23527_v12 }
 0x8dc   : > { %13428 = vmatprep.subr.bf16.mxu0 %v23534_v44 }
 0x95f   : > { %v12415_v11 = vpop.f32.mrb[160].mxu1 }
 0x960   : > { %v21304_v36 = vpop.f32.mrb[161].mxu1 }
 0x961   : > { %v12285_v62 = vpop.f32.mrb[160].mxu0  ;;  %v12418_v23 = vpop.f32.mrb[162].mxu1  ;;  %v23532_v36 = vld [vmem:[#allocation10] ss:$12 sps:$4 sm:$0xff]  }
 0x962   : > { %v12287_v50 = vpop.f32.mrb[161].mxu0  ;;  %v21305_v53 = vpop.f32.mrb[163].mxu1 }
 0x963   : > { %v12289_v17 = vpop.f32.mrb[162].mxu0 }
 0x964   : > { %v12291_v47 = vpop.f32.mrb[163].mxu0 }
 0x969   : > { %v12328_v34 = vpop.f32.mrb[164].mxu0 }
 0x96a   : > { %v12424_v10 = vmax.f32 %v12328_v34, %v12415_v11  ;;  %v21296_v43 = vpop.f32.mrb[165].mxu0  ;;  %v23537_v34 = vld [vmem:[#allocation10 + $0x18] ss:$12 sps:$4 sm:$0xff]  }
 0x96b   : > { %v12331_v1 = vpop.f32.mrb[166].mxu0  ;;  %v23541_v43 = vld [vmem:[#allocation10 + $0x248] ss:$12 sps:$4 sm:$0xff]  }
 0x96c   : > { %v12427_v37 = vmax.f32 %v12331_v1, %v12418_v23  ;;  %v21297_v39 = vpop.f32.mrb[167].mxu0  ;;  %v12430_v29 = vmax.f32 %v12424_v10, 0.0  ;;  %v23544_v10 = vld [vmem:[#allocation10 + $0x34] ss:$12 sps:$4 sm:$0xff]  }
 0x96d   : > { %v23545_v1 = vld [vmem:[#allocation10 + $0x320] ss:$12 sps:$4 sm:$0xff]  }
 0x96e   : > { %v12433_v9 = vmax.f32 %v12427_v37, 0.0  ;;  %v23542_v37 = vld [vmem:[#allocation10 + $0x30] ss:$12 sps:$4 sm:$0xff]   ;;  %v23549_v39 = vld [vmem:[#allocation10 + $0x4c] ss:$12 sps:$4 sm:$0xff]  }
 0x970   : > { %v25703_v35 = vpack.c.bf16 %v12433_v9, %v12430_v29  ;;  %v23546_v29 = vld [vmem:[#allocation10 + $0x260] ss:$12 sps:$4 sm:$0xff]   ;;  %v23550_v9 = vld [vmem:[#allocation10 + $0x338] ss:$12 sps:$4 sm:$0xff]  }
 0x971   : > { %v12372_v8 = vpop.f32.mrb[168].mxu0 }
 0x972   : > { %v12422_v55 = vmax.f32 %v12285_v62, %v12372_v8  ;;  %v12374_v14 = vpop.f32.mrb[169].mxu0  ;;  %v12613_v31 = vshrl.u32 %v25703_v35, 16  ;;  %v12615_v54 = vshll.u32 %v25703_v35, 16  ;;  %v23535_v62 = vld [vmem:[#allocation10 + $0x2f0] ss:$12 sps:$4 sm:$0xff]  }
 0x973   : > { %v12423_v15 = vmax.f32 %v12287_v50, %v12374_v14  ;;  %v12376_v60 = vpop.f32.mrb[170].mxu0  ;;  %v23539_v50 = vld [vmem:[#allocation10 + $0x1c] ss:$12 sps:$4 sm:$0xff]   ;;  %v23551_v14 = vld [vmem:[#allocation10 + $0x278] ss:$12 sps:$4 sm:$0xff]  }
 0x974   : > { %v12425_v5 = vmax.f32 %v12289_v17, %v12376_v60  ;;  %v12378_v41 = vpop.f32.mrb[171].mxu0  ;;  %v12617_v6 = vrot.slane %v12615_v54, 1  ;;  %v14254_v38 = vrot.slane %v12613_v31, 1  ;;  %v14255_v20 = vrot.slane %v12615_v54, 2  ;;  %v23536_v17 = vld [vmem:[#allocation10 + $0x230] ss:$12 sps:$4 sm:$0xff]  }
 0x975   : > { %v12426_v59 = vmax.f32 %v12291_v47, %v12378_v41  ;;  %v12428_v19 = vmax.f32 %v12422_v55, 0.0  ;;  %v12429_v7 = vmax.f32 %v12423_v15, 0.0  ;;  %v23540_v47 = vld [vmem:[#allocation10 + $0x308] ss:$12 sps:$4 sm:$0xff]   ;;  %v23554_v55 = vld [vmem:[#allocation10 + $0x64] ss:$12 sps:$4 sm:$0xff]  }
 0x976   : > { %v12431_v4 = vmax.f32 %v12425_v5, 0.0  ;;  %v25707_v33 = vor.u32 %v12617_v6, %v12613_v31  ;;  %v25709_v57 = vor.u32 %v14255_v20, %v14254_v38  ;;  %v23547_v8 = vld [vmem:[#allocation10 + $0x48] ss:$12 sps:$4 sm:$0xff]   ;;  %v23555_v31 = vld [vmem:[#allocation10 + $0x350] ss:$12 sps:$4 sm:$0xff]  }
 0x977   : > { %v12432_v63 = vmax.f32 %v12426_v59, 0.0  ;;  %v23552_v54 = vld [vmem:[#allocation10 + $0x60] ss:$12 sps:$4 sm:$0xff]   ;;  %v23559_v15 = vld [vmem:[#allocation10 + $0x7c] ss:$12 sps:$4 sm:$0xff]  }
 0x978   : > { %v25711_v32 = vpack.c.bf16 %v12431_v4, %v12428_v19  ;;  %20019 = vmatmul.mubr.msk.bf16.vlgmr.msra.gmra.mrb[164].mxu1 %vm12183_vm6, %v25707_v33  ;;  %v23556_v60 = vld [vmem:[#allocation10 + $0x290] ss:$12 sps:$4 sm:$0xff]   ;;  %v23557_v5 = vld [vmem:[#allocation10 + $0x78] ss:$12 sps:$4 sm:$0xff]   ;;  %v23563_v41 = vld [vmem:[#allocation10 + $0x94] ss:$12 sps:$4 sm:$0xff]  }
 0x979   : > { %v25715_v42 = vpack.c.bf16 %v12432_v63, %v12429_v7  ;;  %21068 = vmatpush3.bf16.msra.mxu1 %v23521_v40  ;;  %v23560_v6 = vld [vmem:[#allocation10 + $0x368] ss:$12 sps:$4 sm:$0xff]   ;;  %v23561_v38 = vld [vmem:[#allocation10 + $0x90] ss:$12 sps:$4 sm:$0xff]   ;;  %v23567_v59 = vld [vmem:[#allocation10 + $0xac] ss:$12 sps:$4 sm:$0xff]  }
 0x97a   : > { %21069 = vmatprep.subr.bf16.mxu1 %v23525_v16  ;;  %v12599_v21 = vshrl.u32 %v25711_v32, 16  ;;  %v12601_v24 = vshll.u32 %v25711_v32, 16  ;;  %v23564_v40 = vld [vmem:[#allocation10 + $0x380] ss:$12 sps:$4 sm:$0xff]   ;;  %v23565_v20 = vld [vmem:[#allocation10 + $0xa8] ss:$12 sps:$4 sm:$0xff]  }
 0x97b   : > { %v12606_v58 = vshrl.u32 %v25715_v42, 16  ;;  %v12608_v30 = vshll.u32 %v25715_v42, 16  ;;  %v23571_v19 = vld [vmem:[#allocation10 + $0xc4] ss:$12 sps:$4 sm:$0xff]   ;;  %v23569_v16 = vld [vmem:[#allocation10 + $0xc0] ss:$12 sps:$4 sm:$0xff]  }
 0x97c   : > { %v12603_v3 = vrot.slane %v12601_v24, 1  ;;  %v14248_v52 = vrot.slane %v12599_v21, 1  ;;  %v14249_v61 = vrot.slane %v12601_v24, 2  ;;  %v23568_v4 = vld [vmem:[#allocation10 + $0x398] ss:$12 sps:$4 sm:$0xff]  }
 0x97d   : > { %21070 = vmatpush3.bf16.msra.mxu1 %v23526_v56  ;;  %v12610_v45 = vrot.slane %v12608_v30, 1  ;;  %v14251_v0 = vrot.slane %v12606_v58, 1  ;;  %v14252_v12 = vrot.slane %v12608_v30, 2  ;;  %v23575_v7 = vld [vmem:[#allocation10 + $0xdc] ss:$12 sps:$4 sm:$0xff]  }
 0x97e   : > { %21071 = vmatprep.subr.bf16.mxu1 %v23530_v48  ;;  %v25721_v44 = vor.u32 %v14249_v61, %v14248_v52  ;;  %v12604_v23 = vor.u32 %v12603_v3, %v12599_v21  ;;  %v23572_v63 = vld [vmem:[#allocation10 + $0x3b0] ss:$12 sps:$4 sm:$0xff]   ;;  %v23573_v48 = vld [vmem:[#allocation10 + $0xd8] ss:$12 sps:$4 sm:$0xff]   ;;  %v23581_v21 = vld [vmem:[#allocation10 + $0xf4] ss:$12 sps:$4 sm:$0xff]  }
 0x97f   : > { %v12611_v11 = vor.u32 %v12610_v45, %v12606_v58  ;;  %v25723_v53 = vor.u32 %v14252_v12, %v14251_v0  ;;  %v23578_v56 = vld [vmem:[#allocation10 + $0x184] ss:$12 sps:$4 sm:$0xff]   ;;  %v23576_v24 = vld [vmem:[#allocation10 + $0x180] ss:$12 sps:$4 sm:$0xff]   ;;  %v23584_v58 = vld [vmem:[#allocation10 + $0x19c] ss:$12 sps:$4 sm:$0xff]  }
 0x980   : > { %v23579_v30 = vld [vmem:[#allocation10 + $0xf0] ss:$12 sps:$4 sm:$0xff]   ;;  %v23587_v3 = vld [vmem:[#allocation10 + $0x10c] ss:$12 sps:$4 sm:$0xff]   ;;  %v23590_v61 = vld [vmem:[#allocation10 + $0x1b4] ss:$12 sps:$4 sm:$0xff]  }
 0x981   : > { %21072 = vmatpush3.bf16.msra.mxu1 %v23531_v25  ;;  %12976 = vmatprep.mubr.bf16.mxu0 %v12611_v11  ;;  %v23582_v52 = vld [vmem:[#allocation10 + $0x198] ss:$12 sps:$4 sm:$0xff]   ;;  %v23585_v25 = vld [vmem:[#allocation10 + $0x108] ss:$12 sps:$4 sm:$0xff]   ;;  %v23588_v0 = vld [vmem:[#allocation10 + $0x1b0] ss:$12 sps:$4 sm:$0xff]  }
 0x982   : > { %13058 = vmatprep.mubr.bf16.mxu1 %v12611_v11  ;;  %12977 = vmatmul.mubr.bf16.vlgmr.msra.gmra.mrb[172].mxu0 %v12604_v23  ;;  %v23593_v45 = vld [vmem:[#allocation10 + $0x124] ss:$12 sps:$4 sm:$0xff]   ;;  %v23596_v12 = vld [vmem:[#allocation10 + $0x1cc] ss:$12 sps:$4 sm:$0xff]  }
 0x983   : > { %13429 = vmatpush1.bf16.msra.mxu0 %v23532_v36  ;;  %21073 = vmatprep.subr.bf16.mxu1 %v23535_v62  ;;  %v23591_v11 = vld [vmem:[#allocation10 + $0x120] ss:$12 sps:$4 sm:$0xff]   ;;  %v23594_v36 = vld [vmem:[#allocation10 + $0x1c8] ss:$12 sps:$4 sm:$0xff]  }
 0x984   : > { %13460 = vmatprep.mubr.bf16.mxu0 %v25715_v42  ;;  %13430 = vmatprep.subr.bf16.mxu0 %v23539_v50  ;;  %v23600_v62 = vld [vmem:[#allocation10 + $0xc8] ss:$12 sps:$4 sm:$0xff]  }
 0x985   : > { %21074 = vmatpush3.bf16.msra.mxu1 %v23536_v17  ;;  %v23604_v50 = vld [vmem:[#allocation10 + $0x154] ss:$12 sps:$4 sm:$0xff]  }
 0x986   : > { %21075 = vmatprep.subr.bf16.mxu1 %v23540_v47  ;;  %v23601_v17 = vld [vmem:[#allocation10 + $0x8] ss:$12 sps:$4 sm:$0xff]   ;;  %v23605_v47 = vld [vmem:[#allocation10 + $0xe0] ss:$12 sps:$4 sm:$0xff]  }
 0x987   : > { %13431 = vmatpush1.bf16.msra.mxu0 %v23537_v34  ;;  %v23602_v34 = vld [vmem:[#allocation10 + $0x150] ss:$12 sps:$4 sm:$0xff]  }
 0x988   : > { %13432 = vmatprep.subr.bf16.mxu0 %v23544_v10  ;;  %v23609_v10 = vld [vmem:[#allocation10 + $0x16c] ss:$12 sps:$4 sm:$0xff]  }
 0x989   : > { %21076 = vmatpush3.bf16.msra.mxu1 %v23541_v43  ;;  %v23606_v43 = vld [vmem:[#allocation10 + $0x20] ss:$12 sps:$4 sm:$0xff]  }
 0x98a   : > { %21077 = vmatprep.subr.bf16.mxu1 %v23545_v1  ;;  %v23610_v1 = vld [vmem:[#allocation10 + $0xf8] ss:$12 sps:$4 sm:$0xff]  }
 0x98b   : > { %13433 = vmatpush1.bf16.msra.mxu0 %v23542_v37  ;;  %v23607_v37 = vld [vmem:[#allocation10 + $0x168] ss:$12 sps:$4 sm:$0xff]  }
 0x98c   : > { %13434 = vmatprep.subr.bf16.mxu0 %v23549_v39  ;;  %v23614_v39 = vld [vmem:[#allocation10 + $0x3c4] ss:$12 sps:$4 sm:$0xff]  }
 0x98d   : > { %21078 = vmatpush3.bf16.msra.mxu1 %v23546_v29  ;;  %v23611_v29 = vld [vmem:[#allocation10 + $0x38] ss:$12 sps:$4 sm:$0xff]  }
 0x98e   : > { %21079 = vmatprep.subr.bf16.mxu1 %v23550_v9  ;;  %v23615_v9 = vld [vmem:[#allocation10 + $0x110] ss:$12 sps:$4 sm:$0xff]  }
 0x98f   : > { %13435 = vmatpush1.bf16.msra.mxu0 %v23547_v8  ;;  %v23612_v8 = vld [vmem:[#allocation10 + $0x3c0] ss:$12 sps:$4 sm:$0xff]  }
 0x990   : > { %13436 = vmatprep.subr.bf16.mxu0 %v23554_v55  ;;  %v23619_v55 = vld [vmem:[#allocation10 + $0x3dc] ss:$12 sps:$4 sm:$0xff]  }
 0x991   : > { %21080 = vmatpush3.bf16.msra.mxu1 %v23551_v14  ;;  %v13675_v14 = vrot.slane %v25715_v42, 1 }
 0x992   : > { %21081 = vmatprep.subr.bf16.mxu1 %v23555_v31  ;;  %v23616_v31 = vld [vmem:[#allocation10 + $0x50] ss:$12 sps:$4 sm:$0xff]  }
 0x993   : > { %13437 = vmatpush1.bf16.msra.mxu0 %v23552_v54  ;;  %v23620_v54 = vld [vmem:[#allocation10 + $0x128] ss:$12 sps:$4 sm:$0xff]  }
 0x994   : > { %13438 = vmatprep.subr.bf16.mxu0 %v23559_v15  ;;  %v23617_v15 = vld [vmem:[#allocation10 + $0x3d8] ss:$12 sps:$4 sm:$0xff]  }
 0x995   : > { %21082 = vmatpush3.bf16.msra.mxu1 %v23556_v60  ;;  %v23624_v60 = vld [vmem:[#allocation10 + $0x3f4] ss:$12 sps:$4 sm:$0xff]  }
 0x996   : > { %21306 = vmatprep.subr.bf16.mxu1 %v24289_v22 }
 0x997   : > { %13439 = vmatpush1.bf16.msra.mxu0 %v23557_v5  ;;  %v23621_v5 = vld [vmem:[#allocation10 + $0x68] ss:$12 sps:$4 sm:$0xff]  }
 0x998   : > { %13059 = vmatmul.mubr.bf16.vlgmr.msra.gmra.mrb[168].mxu1 %v12604_v23  ;;  %13440 = vmatprep.subr.bf16.mxu0 %v23563_v41  ;;  %v23597_v23 = vld [vmem:[#allocation10 + $0x138] ss:$12 sps:$4 sm:$0xff]   ;;  %v23625_v41 = vld [vmem:[#allocation10 + $0x140] ss:$12 sps:$4 sm:$0xff]  }
 0x999   : > { %21307 = vmatpush3.bf16.msra.mxu1 %v23560_v6  ;;  %21314 = vmatprep.mubr.msk.bf16.mxu1 %vm24290_vm5, %v24289_v22  ;;  %v23622_v6 = vld [vmem:[#allocation10 + $0x3f0] ss:$12 sps:$4 sm:$0xff]  }
 0x99a   : > { %21308 = vmatprep.subr.bf16.mxu1 %v24289_v22 }
 0x99b   : > { %13441 = vmatpush1.bf16.msra.mxu0 %v23561_v38  ;;  %v23629_v38 = vld [vmem:[#allocation10 + $0x40c] ss:$12 sps:$4 sm:$0xff]  }
 0x99c   : > { %13442 = vmatprep.subr.bf16.mxu0 %v23567_v59  ;;  %v23626_v59 = vld [vmem:[#allocation10 + $0x80] ss:$12 sps:$4 sm:$0xff]  }
 0x99d   : > { %21309 = vmatpush3.bf16.msra.mxu1 %v23564_v40  ;;  %v23630_v40 = vld [vmem:[#allocation10 + $0x158] ss:$12 sps:$4 sm:$0xff]  }
 0x99e   : > { %21310 = vmatprep.subr.bf16.mxu1 %v24289_v22 }
 0x99f   : > { %13443 = vmatpush1.bf16.msra.mxu0 %v23565_v20  ;;  %v23627_v20 = vld [vmem:[#allocation10 + $0x408] ss:$12 sps:$4 sm:$0xff]  }
 0x9a0   : > { %13444 = vmatprep.subr.bf16.mxu0 %v23571_v19  ;;  %v23634_v19 = vld [vmem:[#allocation10 + $0x424] ss:$12 sps:$4 sm:$0xff]  }
 0x9a1   : > { %21311 = vmatpush3.bf16.msra.mxu1 %v23568_v4  ;;  %v23631_v4 = vld [vmem:[#allocation10 + $0x98] ss:$12 sps:$4 sm:$0xff]  }
 0x9a2   : > { %21312 = vmatprep.subr.bf16.mxu1 %v24289_v22 }
 0x9a3   : > { %13445 = vmatpush1.bf16.msra.mxu0 %v23569_v16  ;;  %v23635_v16 = vld [vmem:[#allocation10 + $0x170] ss:$12 sps:$4 sm:$0xff]  }
 0x9a4   : > { %13446 = vmatprep.subr.bf16.mxu0 %v23575_v7  ;;  %v23632_v7 = vld [vmem:[#allocation10 + $0x420] ss:$12 sps:$4 sm:$0xff]  }
 0x9a5   : > { %21313 = vmatpush3.bf16.msra.mxu1 %v23572_v63  ;;  %v23639_v63 = vld [vmem:[#allocation10 + $0x43c] ss:$12 sps:$4 sm:$0xff]  }
 0x9a6   : > { %13469 = vmatprep.subr.bf16.mxu1 %v23578_v56  ;;  %v23636_v56 = vld [vmem:[#allocation10 + $0xb0] ss:$12 sps:$4 sm:$0xff]  }
 0x9a7   : > { %13447 = vmatpush1.bf16.msra.mxu0 %v23573_v48  ;;  %v23637_v48 = vld [vmem:[#allocation10 + $0x438] ss:$12 sps:$4 sm:$0xff]  }
 0x9a8   : > { %21315 = vmatmul.mubr.msk.bf16.vlgmr.msra.gmra.mrb[172].mxu1 %vm12183_vm6, %v25707_v33  ;;  %13448 = vmatprep.subr.bf16.mxu0 %v23581_v21  ;;  %v23599_v33 = vld [vmem:[#allocation10 + $0x13c] ss:$12 sps:$4 sm:$0xff]   ;;  %v23643_v21 = vld [vmem:[#allocation10 + $0x454] ss:$12 sps:$4 sm:$0xff]  }
 0x9a9   : > { %13470 = vmatpush1.bf16.msra.mxu1 %v23576_v24  ;;  %13501 = vmatprep.mubr.bf16.mxu1 %v26255_v28  ;;  %v23640_v24 = vld [vmem:[#allocation10 + $0x188] ss:$12 sps:$4 sm:$0xff]  }
 0x9aa   : > { %13471 = vmatprep.subr.bf16.mxu1 %v23584_v58  ;;  %v23641_v58 = vld [vmem:[#allocation10 + $0x450] ss:$12 sps:$4 sm:$0xff]  }
 0x9ab   : > { %13449 = vmatpush1.bf16.msra.mxu0 %v23579_v30  ;;  %v23647_v30 = vld [vmem:[#allocation10 + $0x46c] ss:$12 sps:$4 sm:$0xff]  }
 0x9ac   : > { %13450 = vmatprep.subr.bf16.mxu0 %v23587_v3  ;;  %v23644_v3 = vld [vmem:[#allocation10 + $0x1a0] ss:$12 sps:$4 sm:$0xff]  }
 0x9ad   : > { %13472 = vmatpush1.bf16.msra.mxu1 %v23582_v52  ;;  %v23645_v52 = vld [vmem:[#allocation10 + $0x468] ss:$12 sps:$4 sm:$0xff]  }
 0x9ae   : > { %13473 = vmatprep.subr.bf16.mxu1 %v23590_v61  ;;  %v23651_v61 = vld [vmem:[#allocation10 + $0x484] ss:$12 sps:$4 sm:$0xff]  }
 0x9af   : > { %13451 = vmatpush1.bf16.msra.mxu0 %v23585_v25  ;;  %v23648_v25 = vld [vmem:[#allocation10 + $0x1b8] ss:$12 sps:$4 sm:$0xff]  }
 0x9b0   : > { %13452 = vmatprep.subr.bf16.mxu0 %v23593_v45  ;;  %v23649_v45 = vld [vmem:[#allocation10 + $0x480] ss:$12 sps:$4 sm:$0xff]  }
 0x9b1   : > { %13474 = vmatpush1.bf16.msra.mxu1 %v23588_v0  ;;  %v23655_v0 = vld [vmem:[#allocation10 + $0x49c] ss:$12 sps:$4 sm:$0xff]  }
 0x9b2   : > { %13475 = vmatprep.subr.bf16.mxu1 %v23596_v12  ;;  %v23652_v12 = vld [vmem:[#allocation10 + $0x1d0] ss:$12 sps:$4 sm:$0xff]  }
 0x9b3   : > { %13453 = vmatpush1.bf16.msra.mxu0 %v23591_v11  ;;  %v23658_v11 = vld [vmem:[#allocation10 + $0x544] ss:$12 sps:$4 sm:$0xff]  }
 0x9b4   : > { %13454 = vmatprep.subr.bf16.mxu0 %v23599_v33  ;;  %v23653_v33 = vld [vmem:[#allocation10 + $0x498] ss:$12 sps:$4 sm:$0xff]  }
 0x9b5   : > { %13476 = vmatpush1.bf16.msra.mxu1 %v23594_v36  ;;  %v23661_v36 = vld [vmem:[#allocation10 + $0x4b4] ss:$12 sps:$4 sm:$0xff]  }
 0x9b6   : > { %21094 = vmatprep.subr.bf16.mxu1 %v23600_v62  ;;  %v23656_v62 = vld [vmem:[#allocation10 + $0x540] ss:$12 sps:$4 sm:$0xff]  }
 0x9b7   : > { %13455 = vmatpush1.bf16.msra.mxu0 %v23597_v23  ;;  %v23664_v23 = vld [vmem:[#allocation10 + $0x55c] ss:$12 sps:$4 sm:$0xff]  }
 0x9b8   : > { %20081 = vmatmul.mubr.msk.bf16.vlgmr.msra.gmra.mrb[176].mxu1 %vm12183_vm6, %v25703_v35  ;;  %13456 = vmatprep.subr.bf16.mxu0 %v23604_v50  ;;  %v23659_v50 = vld [vmem:[#allocation10 + $0x4b0] ss:$12 sps:$4 sm:$0xff]  }
 0x9b9   : > { %21095 = vmatpush3.bf16.msra.mxu1 %v23601_v17  ;;  %13542 = vmatprep.mubr.bf16.mxu1 %v25715_v42  ;;  %v23667_v17 = vld [vmem:[#allocation10 + $0x4cc] ss:$12 sps:$4 sm:$0xff]  }
 0x9ba   : > { %21096 = vmatprep.subr.bf16.mxu1 %v23605_v47  ;;  %v23662_v47 = vld [vmem:[#allocation10 + $0x558] ss:$12 sps:$4 sm:$0xff]  }
 0x9bb   : > { %13457 = vmatpush1.bf16.msra.mxu0 %v23602_v34  ;;  %v23670_v34 = vld [vmem:[#allocation10 + $0x574] ss:$12 sps:$4 sm:$0xff]  }
 0x9bc   : > { %13458 = vmatprep.subr.bf16.mxu0 %v23609_v10  ;;  %v23665_v10 = vld [vmem:[#allocation10 + $0x4c8] ss:$12 sps:$4 sm:$0xff]  }
 0x9bd   : > { %21097 = vmatpush3.bf16.msra.mxu1 %v23606_v43  ;;  %v23673_v43 = vld [vmem:[#allocation10 + $0x4e4] ss:$12 sps:$4 sm:$0xff]  }
 0x9be   : > { %21098 = vmatprep.subr.bf16.mxu1 %v23610_v1  ;;  %v23668_v1 = vld [vmem:[#allocation10 + $0x570] ss:$12 sps:$4 sm:$0xff]  }
 0x9bf   : > { %13459 = vmatpush1.bf16.msra.mxu0 %v23607_v37  ;;  %v23676_v37 = vld [vmem:[#allocation10 + $0x58c] ss:$12 sps:$4 sm:$0xff]  }
 0x9c0   : > { %14002 = vmatprep.subr.bf16.mxu0 %v23614_v39  ;;  %v23671_v39 = vld [vmem:[#allocation10 + $0x4e0] ss:$12 sps:$4 sm:$0xff]  }
 0x9c1   : > { %21099 = vmatpush3.bf16.msra.mxu1 %v23611_v29  ;;  %v23679_v29 = vld [vmem:[#allocation10 + $0x4fc] ss:$12 sps:$4 sm:$0xff]  }
 0x9c2   : > { %13461 = vmatmul.mubr.bf16.vlgmr.msra.gmra.mrb[176].mxu0 %v25711_v32  ;;  %21100 = vmatprep.subr.bf16.mxu1 %v23615_v9  ;;  %v23674_v9 = vld [vmem:[#allocation10 + $0x588] ss:$12 sps:$4 sm:$0xff]  }
 0x9c3   : > { %14003 = vmatpush1.bf16.msra.mxu0 %v23612_v8  ;;  %14034 = vmatprep.mubr.bf16.mxu0 %v13675_v14  ;;  %v23680_v8 = vld [vmem:[#allocation10 + $0x488] ss:$12 sps:$4 sm:$0xff]  }
 0x9c4   : > { %14004 = vmatprep.subr.bf16.mxu0 %v23619_v55  ;;  %v23677_v55 = vld [vmem:[#allocation10 + $0x4f8] ss:$12 sps:$4 sm:$0xff]  }
 0x9c5   : > { %21101 = vmatpush3.bf16.msra.mxu1 %v23616_v31  ;;  %v23684_v31 = vld [vmem:[#allocation10 + $0x514] ss:$12 sps:$4 sm:$0xff]  }
 0x9c6   : > { %21102 = vmatprep.subr.bf16.mxu1 %v23620_v54  ;;  %v23681_v54 = vld [vmem:[#allocation10 + $0x3c8] ss:$12 sps:$4 sm:$0xff]  }
 0x9c7   : > { %14005 = vmatpush1.bf16.msra.mxu0 %v23617_v15  ;;  %v13676_v15 = vrot.slane %v25703_v35, 1 }
 0x9c8   : > { %14006 = vmatprep.subr.bf16.mxu0 %v23624_v60  ;;  %v23685_v60 = vld [vmem:[#allocation10 + $0x4a0] ss:$12 sps:$4 sm:$0xff]  }
 0x9c9   : > { %21103 = vmatpush3.bf16.msra.mxu1 %v23621_v5  ;;  %v23682_v5 = vld [vmem:[#allocation10 + $0x510] ss:$12 sps:$4 sm:$0xff]  }
 0x9ca   : > { %21104 = vmatprep.subr.bf16.mxu1 %v23625_v41  ;;  %v23689_v41 = vld [vmem:[#allocation10 + $0x52c] ss:$12 sps:$4 sm:$0xff]  }
 0x9cb   : > { %14007 = vmatpush1.bf16.msra.mxu0 %v23622_v6  ;;  %v23686_v6 = vld [vmem:[#allocation10 + $0x3e0] ss:$12 sps:$4 sm:$0xff]  }
 0x9cc   : > { %14008 = vmatprep.subr.bf16.mxu0 %v23629_v38  ;;  %v23690_v38 = vld [vmem:[#allocation10 + $0x4b8] ss:$12 sps:$4 sm:$0xff]  }
 0x9cd   : > { %21105 = vmatpush3.bf16.msra.mxu1 %v23626_v59  ;;  %v23687_v59 = vld [vmem:[#allocation10 + $0x528] ss:$12 sps:$4 sm:$0xff]  }
 0x9ce   : > { %21106 = vmatprep.subr.bf16.mxu1 %v23630_v40  ;;  %v23694_v40 = vld [vmem:[#allocation10 + $0x5a4] ss:$12 sps:$4 sm:$0xff]  }
 0x9cf   : > { %14009 = vmatpush1.bf16.msra.mxu0 %v23627_v20  ;;  %v23691_v20 = vld [vmem:[#allocation10 + $0x3f8] ss:$12 sps:$4 sm:$0xff]  }
 0x9d0   : > { %14010 = vmatprep.subr.bf16.mxu0 %v23634_v19  ;;  %v23695_v19 = vld [vmem:[#allocation10 + $0x4d0] ss:$12 sps:$4 sm:$0xff]  }
 0x9d1   : > { %21107 = vmatpush3.bf16.msra.mxu1 %v23631_v4  ;;  %v23692_v4 = vld [vmem:[#allocation10 + $0x5a0] ss:$12 sps:$4 sm:$0xff]  }
 0x9d2   : > { %21108 = vmatprep.subr.bf16.mxu1 %v23635_v16  ;;  %v13674_v16 = vrot.slane %v25711_v32, 1 }
 0x9d3   : > { %14011 = vmatpush1.bf16.msra.mxu0 %v23632_v7  ;;  %v23699_v7 = vld [vmem:[#allocation10 + $0x5bc] ss:$12 sps:$4 sm:$0xff]  }
 0x9d4   : > { %14012 = vmatprep.subr.bf16.mxu0 %v23639_v63  ;;  %v23696_v63 = vld [vmem:[#allocation10 + $0x410] ss:$12 sps:$4 sm:$0xff]  }
 0x9d5   : > { %21109 = vmatpush3.bf16.msra.mxu1 %v23636_v56  ;;  %v23697_v56 = vld [vmem:[#allocation10 + $0x5b8] ss:$12 sps:$4 sm:$0xff]  }
 0x9d6   : > { %21318 = vmatprep.subr.bf16.mxu1 %v24289_v22 }
 0x9d7   : > { %14013 = vmatpush1.bf16.msra.mxu0 %v23637_v48  ;;  %v23704_v48 = vld [vmem:[#allocation10 + $0x5d4] ss:$12 sps:$4 sm:$0xff]  }
 0x9d8   : > { %13543 = vmatmul.mubr.bf16.vlgmr.msra.gmra.mrb[180].mxu1 %v25711_v32  ;;  %14014 = vmatprep.subr.bf16.mxu0 %v23643_v21  ;;  %v23701_v21 = vld [vmem:[#allocation10 + $0x428] ss:$12 sps:$4 sm:$0xff]  }
 0x9d9   : > { %21319 = vmatpush3.bf16.msra.mxu1 %v23640_v24  ;;  %21326 = vmatprep.mubr.msk.bf16.mxu1 %vm24290_vm5, %v24289_v22  ;;  %v23705_v24 = vld [vmem:[#allocation10 + $0x500] ss:$12 sps:$4 sm:$0xff]  }
 0x9da   : > { %21320 = vmatprep.subr.bf16.mxu1 %v24289_v22 }
 0x9db   : > { %14015 = vmatpush1.bf16.msra.mxu0 %v23641_v58  ;;  %v23702_v58 = vld [vmem:[#allocation10 + $0x5d0] ss:$12 sps:$4 sm:$0xff]  }
 0x9dc   : > { %14016 = vmatprep.subr.bf16.mxu0 %v23647_v30  ;;  %v23709_v30 = vld [vmem:[#allocation10 + $0x5ec] ss:$12 sps:$4 sm:$0xff]  }
 0x9dd   : > { %21321 = vmatpush3.bf16.msra.mxu1 %v23644_v3  ;;  %v23706_v3 = vld [vmem:[#allocation10 + $0x440] ss:$12 sps:$4 sm:$0xff]  }
 0x9de   : > { %21322 = vmatprep.subr.bf16.mxu1 %v24289_v22 }
 0x9df   : > { %14017 = vmatpush1.bf16.msra.mxu0 %v23645_v52  ;;  %v23710_v52 = vld [vmem:[#allocation10 + $0x518] ss:$12 sps:$4 sm:$0xff]  }
 0x9e0   : > { %14018 = vmatprep.subr.bf16.mxu0 %v23651_v61  ;;  %v23707_v61 = vld [vmem:[#allocation10 + $0x5e8] ss:$12 sps:$4 sm:$0xff]  }
 0x9e1   : > { %21323 = vmatpush3.bf16.msra.mxu1 %v23648_v25  ;;  %v23714_v25 = vld [vmem:[#allocation10 + $0x604] ss:$12 sps:$4 sm:$0xff]  }
 0x9e2   : > { %21324 = vmatprep.subr.bf16.mxu1 %v24289_v22 }
 0x9e3   : > { %14019 = vmatpush1.bf16.msra.mxu0 %v23649_v45  ;;  %v23711_v45 = vld [vmem:[#allocation10 + $0x458] ss:$12 sps:$4 sm:$0xff]  }
 0x9e4   : > { %14020 = vmatprep.subr.bf16.mxu0 %v23655_v0  ;;  %v23715_v0 = vld [vmem:[#allocation10 + $0x530] ss:$12 sps:$4 sm:$0xff]  }
 0x9e5   : > { %21325 = vmatpush3.bf16.msra.mxu1 %v23652_v12  ;;  %v23712_v12 = vld [vmem:[#allocation10 + $0x600] ss:$12 sps:$4 sm:$0xff]  }
 0x9e6   : > { %14043 = vmatprep.subr.bf16.mxu1 %v23658_v11  ;;  %v23719_v11 = vld [vmem:[#allocation10 + $0x61c] ss:$12 sps:$4 sm:$0xff]  }
 0x9e7   : > { %14021 = vmatpush1.bf16.msra.mxu0 %v23653_v33  ;;  %v23716_v33 = vld [vmem:[#allocation10 + $0x470] ss:$12 sps:$4 sm:$0xff]  }
 0x9e8   : > { %21327 = vmatmul.mubr.msk.bf16.vlgmr.msra.gmra.mrb[184].mxu1 %vm12183_vm6, %v25703_v35  ;;  %14022 = vmatprep.subr.bf16.mxu0 %v23661_v36  ;;  %v23717_v36 = vld [vmem:[#allocation10 + $0x618] ss:$12 sps:$4 sm:$0xff]  }
 0x9e9   : > { %14044 = vmatpush1.bf16.msra.mxu1 %v23656_v62  ;;  %14075 = vmatprep.mubr.bf16.mxu1 %v26255_v28  ;;  %v23723_v62 = vld [vmem:[#allocation10 + $0x634] ss:$12 sps:$4 sm:$0xff]  }
 0x9ea   : > { %14045 = vmatprep.subr.bf16.mxu1 %v23664_v23  ;;  %v23720_v23 = vld [vmem:[#allocation10 + $0x548] ss:$12 sps:$4 sm:$0xff]  }
 0x9eb   : > { %14023 = vmatpush1.bf16.msra.mxu0 %v23659_v50  ;;  %v23721_v50 = vld [vmem:[#allocation10 + $0x630] ss:$12 sps:$4 sm:$0xff]  }
 0x9ec   : > { %14024 = vmatprep.subr.bf16.mxu0 %v23667_v17  ;;  %v23727_v17 = vld [vmem:[#allocation10 + $0x64c] ss:$12 sps:$4 sm:$0xff]  }
 0x9ed   : > { %14046 = vmatpush1.bf16.msra.mxu1 %v23662_v47  ;;  %v23724_v47 = vld [vmem:[#allocation10 + $0x560] ss:$12 sps:$4 sm:$0xff]  }
 0x9ee   : > { %14047 = vmatprep.subr.bf16.mxu1 %v23670_v34  ;;  %v23725_v34 = vld [vmem:[#allocation10 + $0x648] ss:$12 sps:$4 sm:$0xff]  }
 0x9ef   : > { %14025 = vmatpush1.bf16.msra.mxu0 %v23665_v10  ;;  %v23731_v10 = vld [vmem:[#allocation10 + $0x664] ss:$12 sps:$4 sm:$0xff]  }
 0x9f0   : > { %14026 = vmatprep.subr.bf16.mxu0 %v23673_v43  ;;  %v23728_v43 = vld [vmem:[#allocation10 + $0x578] ss:$12 sps:$4 sm:$0xff]  }
 0x9f1   : > { %14048 = vmatpush1.bf16.msra.mxu1 %v23668_v1  ;;  %v23729_v1 = vld [vmem:[#allocation10 + $0x660] ss:$12 sps:$4 sm:$0xff]  }
 0x9f2   : > { %14049 = vmatprep.subr.bf16.mxu1 %v23676_v37  ;;  %v23735_v37 = vld [vmem:[#allocation10 + $0x67c] ss:$12 sps:$4 sm:$0xff]  }
 0x9f3   : > { %14027 = vmatpush1.bf16.msra.mxu0 %v23671_v39  ;;  %v23732_v39 = vld [vmem:[#allocation10 + $0x590] ss:$12 sps:$4 sm:$0xff]  }
 0x9f4   : > { %14028 = vmatprep.subr.bf16.mxu0 %v23679_v29  ;;  %v23738_v29 = vld [vmem:[#allocation10 + $0x724] ss:$12 sps:$4 sm:$0xff]  }
 0x9f5   : > { %14050 = vmatpush1.bf16.msra.mxu1 %v23674_v9  ;;  %v23733_v9 = vld [vmem:[#allocation10 + $0x678] ss:$12 sps:$4 sm:$0xff]  }
 0x9f6   : > { %21121 = vmatprep.subr.bf16.mxu1 %v23680_v8  ;;  %v23741_v8 = vld [vmem:[#allocation10 + $0x694] ss:$12 sps:$4 sm:$0xff]  }
 0x9f7   : > { %14029 = vmatpush1.bf16.msra.mxu0 %v23677_v55  ;;  %v23736_v55 = vld [vmem:[#allocation10 + $0x720] ss:$12 sps:$4 sm:$0xff]  }
 0x9f8   : > { %20143 = vmatmul.mubr.msk.bf16.vlgmr.msra.gmra.mrb[188].mxu1 %vm12183_vm6, %v13676_v15  ;;  %14030 = vmatprep.subr.bf16.mxu0 %v23684_v31  ;;  %v23744_v31 = vld [vmem:[#allocation10 + $0x73c] ss:$12 sps:$4 sm:$0xff]  }
 0x9f9   : > { %21122 = vmatpush3.bf16.msra.mxu1 %v23681_v54  ;;  %14116 = vmatprep.mubr.bf16.mxu1 %v13675_v14  ;;  %v23700_v14 = vld [vmem:[#allocation10 + $0x4e8] ss:$12 sps:$4 sm:$0xff]   ;;  %v23739_v54 = vld [vmem:[#allocation10 + $0x690] ss:$12 sps:$4 sm:$0xff]  }
 0x9fa   : > { %21123 = vmatprep.subr.bf16.mxu1 %v23685_v60  ;;  %v23747_v60 = vld [vmem:[#allocation10 + $0x6ac] ss:$12 sps:$4 sm:$0xff]  }
 0x9fb   : > { %14031 = vmatpush1.bf16.msra.mxu0 %v23682_v5  ;;  %v23742_v5 = vld [vmem:[#allocation10 + $0x738] ss:$12 sps:$4 sm:$0xff]  }
 0x9fc   : > { %14032 = vmatprep.subr.bf16.mxu0 %v23689_v41  ;;  %v23750_v41 = vld [vmem:[#allocation10 + $0x754] ss:$12 sps:$4 sm:$0xff]  }
 0x9fd   : > { %21124 = vmatpush3.bf16.msra.mxu1 %v23686_v6  ;;  %v23745_v6 = vld [vmem:[#allocation10 + $0x6a8] ss:$12 sps:$4 sm:$0xff]  }
 0x9fe   : > { %21125 = vmatprep.subr.bf16.mxu1 %v23690_v38  ;;  %v23753_v38 = vld [vmem:[#allocation10 + $0x6c4] ss:$12 sps:$4 sm:$0xff]  }
 0x9ff   : > { %14033 = vmatpush1.bf16.msra.mxu0 %v23687_v59  ;;  %v23748_v59 = vld [vmem:[#allocation10 + $0x750] ss:$12 sps:$4 sm:$0xff]  }
 0xa00   : > { %14582 = vmatprep.subr.bf16.mxu0 %v23694_v40  ;;  %v23756_v40 = vld [vmem:[#allocation10 + $0x76c] ss:$12 sps:$4 sm:$0xff]  }
 0xa01   : > { %21126 = vmatpush3.bf16.msra.mxu1 %v23691_v20  ;;  %v23751_v20 = vld [vmem:[#allocation10 + $0x6c0] ss:$12 sps:$4 sm:$0xff]  }
 0xa02   : > { %14035 = vmatmul.mubr.bf16.vlgmr.msra.gmra.mrb[180].mxu0 %v13674_v16  ;;  %21127 = vmatprep.subr.bf16.mxu1 %v23695_v19  ;;  %v23754_v19 = vld [vmem:[#allocation10 + $0x768] ss:$12 sps:$4 sm:$0xff]  }
 0xa03   : > { %14583 = vmatpush1.bf16.msra.mxu0 %v23692_v4  ;;  %14614 = vmatprep.mubr.bf16.mxu0 %v25723_v53  ;;  %v23760_v4 = vld [vmem:[#allocation10 + $0x668] ss:$12 sps:$4 sm:$0xff]  }
 0xa04   : > { %14584 = vmatprep.subr.bf16.mxu0 %v23699_v7  ;;  %v23764_v7 = vld [vmem:[#allocation10 + $0x6f4] ss:$12 sps:$4 sm:$0xff]  }
 0xa05   : > { %21128 = vmatpush3.bf16.msra.mxu1 %v23696_v63  ;;  %v23761_v63 = vld [vmem:[#allocation10 + $0x5a8] ss:$12 sps:$4 sm:$0xff]  }
 0xa06   : > { %21129 = vmatprep.subr.bf16.mxu1 %v23700_v14  ;;  %v23765_v14 = vld [vmem:[#allocation10 + $0x680] ss:$12 sps:$4 sm:$0xff]  }
 0xa07   : > { %14585 = vmatpush1.bf16.msra.mxu0 %v23697_v56  ;;  %v23762_v56 = vld [vmem:[#allocation10 + $0x6f0] ss:$12 sps:$4 sm:$0xff]  }
 0xa08   : > { %14586 = vmatprep.subr.bf16.mxu0 %v23704_v48  ;;  %v23769_v48 = vld [vmem:[#allocation10 + $0x70c] ss:$12 sps:$4 sm:$0xff]  }
 0xa09   : > { %21130 = vmatpush3.bf16.msra.mxu1 %v23701_v21  ;;  %v23766_v21 = vld [vmem:[#allocation10 + $0x5c0] ss:$12 sps:$4 sm:$0xff]  }
 0xa0a   : > { %21131 = vmatprep.subr.bf16.mxu1 %v23705_v24  ;;  %v23770_v24 = vld [vmem:[#allocation10 + $0x698] ss:$12 sps:$4 sm:$0xff]  }
 0xa0b   : > { %14587 = vmatpush1.bf16.msra.mxu0 %v23702_v58  ;;  %v23767_v58 = vld [vmem:[#allocation10 + $0x708] ss:$12 sps:$4 sm:$0xff]  }
 0xa0c   : > { %14588 = vmatprep.subr.bf16.mxu0 %v23709_v30  ;;  %v23774_v30 = vld [vmem:[#allocation10 + $0x784] ss:$12 sps:$4 sm:$0xff]  }
 0xa0d   : > { %21132 = vmatpush3.bf16.msra.mxu1 %v23706_v3  ;;  %v23771_v3 = vld [vmem:[#allocation10 + $0x5d8] ss:$12 sps:$4 sm:$0xff]  }
 0xa0e   : > { %21133 = vmatprep.subr.bf16.mxu1 %v23710_v52  ;;  %v23775_v52 = vld [vmem:[#allocation10 + $0x6b0] ss:$12 sps:$4 sm:$0xff]  }
 0xa0f   : > { %14589 = vmatpush1.bf16.msra.mxu0 %v23707_v61  ;;  %v23772_v61 = vld [vmem:[#allocation10 + $0x780] ss:$12 sps:$4 sm:$0xff]  }
 0xa10   : > { %14590 = vmatprep.subr.bf16.mxu0 %v23714_v25  ;;  %v23779_v25 = vld [vmem:[#allocation10 + $0x79c] ss:$12 sps:$4 sm:$0xff]  }
 0xa11   : > { %21134 = vmatpush3.bf16.msra.mxu1 %v23711_v45  ;;  %v14829_v45 = vrot.slane %v25715_v42, 2  ;;  %v14828_v42 = vrot.slane %v25711_v32, 2  ;;  %v23859_v32 = vld [vmem:[#allocation10 + $0x818] ss:$12 sps:$4 sm:$0xff]  }
 0xa12   : > { %21135 = vmatprep.subr.bf16.mxu1 %v23715_v0  ;;  %v23776_v0 = vld [vmem:[#allocation10 + $0x5f0] ss:$12 sps:$4 sm:$0xff]  }
 0xa13   : > { %14591 = vmatpush1.bf16.msra.mxu0 %v23712_v12  ;;  %v23777_v12 = vld [vmem:[#allocation10 + $0x798] ss:$12 sps:$4 sm:$0xff]  }
 0xa14   : > { %14592 = vmatprep.subr.bf16.mxu0 %v23719_v11  ;;  %v23784_v11 = vld [vmem:[#allocation10 + $0x7b4] ss:$12 sps:$4 sm:$0xff]  }
 0xa15   : > { %21136 = vmatpush3.bf16.msra.mxu1 %v23716_v33  ;;  %v23781_v33 = vld [vmem:[#allocation10 + $0x608] ss:$12 sps:$4 sm:$0xff]  }
 0xa16   : > { %21330 = vmatprep.subr.bf16.mxu1 %v24289_v22 }
 0xa17   : > { %14593 = vmatpush1.bf16.msra.mxu0 %v23717_v36  ;;  %v23785_v36 = vld [vmem:[#allocation10 + $0x6e0] ss:$12 sps:$4 sm:$0xff]  }
 0xa18   : > { %14117 = vmatmul.mubr.bf16.vlgmr.msra.gmra.mrb[192].mxu1 %v13674_v16  ;;  %14594 = vmatprep.subr.bf16.mxu0 %v23723_v62  ;;  %v23757_v16 = vld [vmem:[#allocation10 + $0x6d8] ss:$12 sps:$4 sm:$0xff]   ;;  %v23782_v62 = vld [vmem:[#allocation10 + $0x7b0] ss:$12 sps:$4 sm:$0xff]  }
 0xa19   : > { %21331 = vmatpush3.bf16.msra.mxu1 %v23720_v23  ;;  %21338 = vmatprep.mubr.msk.bf16.mxu1 %vm24290_vm5, %v24289_v22  ;;  %v23789_v23 = vld [vmem:[#allocation10 + $0x7cc] ss:$12 sps:$4 sm:$0xff]  }
 0xa1a   : > { %21332 = vmatprep.subr.bf16.mxu1 %v24289_v22 }
 0xa1b   : > { %14595 = vmatpush1.bf16.msra.mxu0 %v23721_v50  ;;  %v23786_v50 = vld [vmem:[#allocation10 + $0x620] ss:$12 sps:$4 sm:$0xff]  }
 0xa1c   : > { %14596 = vmatprep.subr.bf16.mxu0 %v23727_v17  ;;  %v23790_v17 = vld [vmem:[#allocation10 + $0x6f8] ss:$12 sps:$4 sm:$0xff]  }
 0xa1d   : > { %21333 = vmatpush3.bf16.msra.mxu1 %v23724_v47 }
 0xa1e   : > { %21334 = vmatprep.subr.bf16.mxu1 %v24289_v22 }
 0xa1f   : > { %14597 = vmatpush1.bf16.msra.mxu0 %v23725_v34  ;;  %v23787_v34 = vld [vmem:[#allocation10 + $0x7c8] ss:$12 sps:$4 sm:$0xff]  }
 0xa20   : > { %14598 = vmatprep.subr.bf16.mxu0 %v23731_v10 }
 0xa21   : > { %21335 = vmatpush3.bf16.msra.mxu1 %v23728_v43  ;;  %v23794_v43 = vld [vmem:[#allocation10 + $0x7e4] ss:$12 sps:$4 sm:$0xff]  }
 0xa22   : > { %21336 = vmatprep.subr.bf16.mxu1 %v24289_v22 }
 0xa23   : > { %14599 = vmatpush1.bf16.msra.mxu0 %v23729_v1 }
 0xa24   : > { %14600 = vmatprep.subr.bf16.mxu0 %v23735_v37  ;;  %v23791_v37 = vld [vmem:[#allocation10 + $0x638] ss:$12 sps:$4 sm:$0xff]  }
 0xa25   : > { %21337 = vmatpush3.bf16.msra.mxu1 %v23732_v39 }
 0xa26   : > { %14623 = vmatprep.subr.bf16.mxu1 %v23738_v29  ;;  %v23795_v29 = vld [vmem:[#allocation10 + $0x710] ss:$12 sps:$4 sm:$0xff]  }
 0xa27   : > { %14601 = vmatpush1.bf16.msra.mxu0 %v23733_v9  ;;  %v23792_v9 = vld [vmem:[#allocation10 + $0x7e0] ss:$12 sps:$4 sm:$0xff]  }
 0xa28   : > { %21339 = vmatmul.mubr.msk.bf16.vlgmr.msra.gmra.mrb[196].mxu1 %vm12183_vm6, %v13676_v15  ;;  %14602 = vmatprep.subr.bf16.mxu0 %v23741_v8  ;;  %v23759_v15 = vld [vmem:[#allocation10 + $0x6dc] ss:$12 sps:$4 sm:$0xff]  }
 0xa29   : > { %14624 = vmatpush1.bf16.msra.mxu1 %v23736_v55  ;;  %14655 = vmatprep.mubr.bf16.mxu1 %v26255_v28  ;;  %v23799_v8 = vld [vmem:[#allocation10 + $0x7fc] ss:$12 sps:$4 sm:$0xff]  }
 0xa2a   : > { %14625 = vmatprep.subr.bf16.mxu1 %v23744_v31  ;;  %v23796_v55 = vld [vmem:[#allocation10 + $0x650] ss:$12 sps:$4 sm:$0xff]   ;;  %v23797_v31 = vld [vmem:[#allocation10 + $0x7f8] ss:$12 sps:$4 sm:$0xff]  }
 0xa2b   : > { %14603 = vmatpush1.bf16.msra.mxu0 %v23739_v54  ;;  %v23803_v54 = vld [vmem:[#allocation10 + $0x814] ss:$12 sps:$4 sm:$0xff]  }
 0xa2c   : > { %14604 = vmatprep.subr.bf16.mxu0 %v23747_v60 }
 0xa2d   : > { %14626 = vmatpush1.bf16.msra.mxu1 %v23742_v5  ;;  %v23800_v5 = vld [vmem:[#allocation10 + $0x728] ss:$12 sps:$4 sm:$0xff]  }
 0xa2e   : > { %14627 = vmatprep.subr.bf16.mxu1 %v23750_v41 }
 0xa2f   : > { %14605 = vmatpush1.bf16.msra.mxu0 %v23745_v6 }
 0xa30   : > { %14606 = vmatprep.subr.bf16.mxu0 %v23753_v38 }
 0xa31   : > { %14628 = vmatpush1.bf16.msra.mxu1 %v23748_v59 }
 0xa32   : > { %14629 = vmatprep.subr.bf16.mxu1 %v23756_v40  ;;  %v23801_v40 = vld [vmem:[#allocation10 + $0x810] ss:$12 sps:$4 sm:$0xff]  }
 0xa33   : > { %14607 = vmatpush1.bf16.msra.mxu0 %v23751_v20 }
 0xa34   : > { %14608 = vmatprep.subr.bf16.mxu0 %v23759_v15  ;;  %v23807_v15 = vld [vmem:[#allocation10 + $0x82c] ss:$12 sps:$4 sm:$0xff]  }
 0xa35   : > { %14630 = vmatpush1.bf16.msra.mxu1 %v23754_v19  ;;  %v23804_v19 = vld [vmem:[#allocation10 + $0x740] ss:$12 sps:$4 sm:$0xff]  }
 0xa36   : > { %21148 = vmatprep.subr.bf16.mxu1 %v23760_v4  ;;  %v23805_v4 = vld [vmem:[#allocation10 + $0x828] ss:$12 sps:$4 sm:$0xff]  }
 0xa37   : > { %14609 = vmatpush1.bf16.msra.mxu0 %v23757_v16  ;;  %v23811_v16 = vld [vmem:[#allocation10 + $0x844] ss:$12 sps:$4 sm:$0xff]  }
 0xa38   : > { %20205 = vmatmul.mubr.msk.bf16.vlgmr.msra.gmra.mrb[200].mxu1 %vm12183_vm6, %v25709_v57  ;;  %14610 = vmatprep.subr.bf16.mxu0 %v23764_v7  ;;  %v23808_v7 = vld [vmem:[#allocation10 + $0x758] ss:$12 sps:$4 sm:$0xff]  }
 0xa39   : > { %21149 = vmatpush3.bf16.msra.mxu1 %v23761_v63  ;;  %14696 = vmatprep.mubr.bf16.mxu1 %v25723_v53  ;;  %v23780_v53 = vld [vmem:[#allocation10 + $0x6c8] ss:$12 sps:$4 sm:$0xff]  }
 0xa3a   : > { %21150 = vmatprep.subr.bf16.mxu1 %v23765_v14  ;;  %v23815_v63 = vld [vmem:[#allocation10 + $0x85c] ss:$12 sps:$4 sm:$0xff]  }
 0xa3b   : > { %14611 = vmatpush1.bf16.msra.mxu0 %v23762_v56  ;;  %v23812_v14 = vld [vmem:[#allocation10 + $0x770] ss:$12 sps:$4 sm:$0xff]  }
 0xa3c   : > { %14612 = vmatprep.subr.bf16.mxu0 %v23769_v48  ;;  %v23818_v56 = vld [vmem:[#allocation10 + $0x904] ss:$12 sps:$4 sm:$0xff]  }
 0xa3d   : > { %21151 = vmatpush3.bf16.msra.mxu1 %v23766_v21  ;;  %v23813_v48 = vld [vmem:[#allocation10 + $0x858] ss:$12 sps:$4 sm:$0xff]   ;;  %v23821_v21 = vld [vmem:[#allocation10 + $0x874] ss:$12 sps:$4 sm:$0xff]  }
 0xa3e   : > { %21152 = vmatprep.subr.bf16.mxu1 %v23770_v24  ;;  %v23816_v24 = vld [vmem:[#allocation10 + $0x900] ss:$12 sps:$4 sm:$0xff]  }
 0xa3f   : > { %14613 = vmatpush1.bf16.msra.mxu0 %v23767_v58  ;;  %v23824_v58 = vld [vmem:[#allocation10 + $0x91c] ss:$12 sps:$4 sm:$0xff]  }
 0xa40   : > { %15156 = vmatprep.subr.bf16.mxu0 %v23774_v30  ;;  %v23819_v30 = vld [vmem:[#allocation10 + $0x870] ss:$12 sps:$4 sm:$0xff]  }
 0xa41   : > { %21153 = vmatpush3.bf16.msra.mxu1 %v23771_v3  ;;  %v23827_v3 = vld [vmem:[#allocation10 + $0x88c] ss:$12 sps:$4 sm:$0xff]  }
 0xa42   : > { %14615 = vmatmul.mubr.bf16.vlgmr.msra.gmra.mrb[184].mxu0 %v25721_v44  ;;  %21154 = vmatprep.subr.bf16.mxu1 %v23775_v52  ;;  %v23822_v52 = vld [vmem:[#allocation10 + $0x918] ss:$12 sps:$4 sm:$0xff]  }
 0xa43   : > { %15157 = vmatpush1.bf16.msra.mxu0 %v23772_v61  ;;  %15188 = vmatprep.mubr.bf16.mxu0 %v14829_v45  ;;  %v23830_v61 = vld [vmem:[#allocation10 + $0x934] ss:$12 sps:$4 sm:$0xff]  }
 0xa44   : > { %15158 = vmatprep.subr.bf16.mxu0 %v23779_v25 }
 0xa45   : > { %21155 = vmatpush3.bf16.msra.mxu1 %v23776_v0  ;;  %v23825_v0 = vld [vmem:[#allocation10 + $0x888] ss:$12 sps:$4 sm:$0xff]  }
 0xa46   : > { %21156 = vmatprep.subr.bf16.mxu1 %v23780_v53 }
 0xa47   : > { %15159 = vmatpush1.bf16.msra.mxu0 %v23777_v12  ;;  %v23833_v12 = vld [vmem:[#allocation10 + $0x8a4] ss:$12 sps:$4 sm:$0xff]  }
 0xa48   : > { %15160 = vmatprep.subr.bf16.mxu0 %v23784_v11 }
 0xa49   : > { %21157 = vmatpush3.bf16.msra.mxu1 %v23781_v33 }
 0xa4a   : > { %21158 = vmatprep.subr.bf16.mxu1 %v23785_v36  ;;  %v23828_v36 = vld [vmem:[#allocation10 + $0x930] ss:$12 sps:$4 sm:$0xff]  }
 0xa4b   : > { %15161 = vmatpush1.bf16.msra.mxu0 %v23782_v62  ;;  %v13019_v47 = vpop.f32.mrb[164].mxu1 }
 0xa4c   : > { %v13021_v10 = vpop.f32.mrb[165].mxu1  ;;  %15162 = vmatprep.subr.bf16.mxu0 %v23789_v23  ;;  %v23831_v23 = vld [vmem:[#allocation10 + $0x8a0] ss:$12 sps:$4 sm:$0xff]  }
 0xa4d   : > { %21159 = vmatpush3.bf16.msra.mxu1 %v23786_v50  ;;  %v13023_v1 = vpop.f32.mrb[166].mxu1  ;;  %v23839_v50 = vld [vmem:[#allocation10 + $0x8bc] ss:$12 sps:$4 sm:$0xff]  }
 0xa4e   : > { %v13024_v39 = vpop.f32.mrb[167].mxu1  ;;  %21160 = vmatprep.subr.bf16.mxu1 %v23790_v17  ;;  %v23834_v17 = vld [vmem:[#allocation10 + $0x948] ss:$12 sps:$4 sm:$0xff]   ;;  %v14830_v1 = vrot.slane %v25703_v35, 2 }
 0xa4f   : > { %15163 = vmatpush1.bf16.msra.mxu0 %v23787_v34  ;;  %v23837_v34 = vld [vmem:[#allocation10 + $0x8b8] ss:$12 sps:$4 sm:$0xff]   ;;  %v23842_v39 = vld [vmem:[#allocation10 + $0x8d0] ss:$12 sps:$4 sm:$0xff]  }
 0xa50   : > { %15164 = vmatprep.subr.bf16.mxu0 %v23794_v43  ;;  %v23841_v43 = vld [vmem:[#allocation10 + $0x788] ss:$12 sps:$4 sm:$0xff]  }
 0xa51   : > { %21161 = vmatpush3.bf16.msra.mxu1 %v23791_v37  ;;  %v23845_v37 = vld [vmem:[#allocation10 + $0x860] ss:$12 sps:$4 sm:$0xff]  }
 0xa52   : > { %21162 = vmatprep.subr.bf16.mxu1 %v23795_v29  ;;  %v23849_v29 = vld [vmem:[#allocation10 + $0x8ec] ss:$12 sps:$4 sm:$0xff]  }
 0xa53   : > { %15165 = vmatpush1.bf16.msra.mxu0 %v23792_v9  ;;  %v23846_v9 = vld [vmem:[#allocation10 + $0x7a0] ss:$12 sps:$4 sm:$0xff]  }
 0xa54   : > { %15166 = vmatprep.subr.bf16.mxu0 %v23799_v8  ;;  %v23850_v8 = vld [vmem:[#allocation10 + $0x878] ss:$12 sps:$4 sm:$0xff]  }
 0xa55   : > { %21163 = vmatpush3.bf16.msra.mxu1 %v23796_v55  ;;  %v12978_v60 = vpop.f32.mrb[172].mxu0 }
 0xa56   : > { %v25777_v41 = vadd.f32 %v13019_v47, %v12978_v60  ;;  %v12980_v6 = vpop.f32.mrb[173].mxu0  ;;  %21342 = vmatprep.subr.bf16.mxu1 %v24289_v22  ;;  %v23840_v47 = vld [vmem:[#allocation10 + $0x848] ss:$12 sps:$4 sm:$0xff]  }
 0xa57   : > { %v25780_v38 = vadd.f32 %v13021_v10, %v12980_v6  ;;  %15167 = vmatpush1.bf16.msra.mxu0 %v23797_v31  ;;  %v12982_v59 = vpop.f32.mrb[174].mxu0  ;;  %v23844_v10 = vld [vmem:[#allocation10 + $0x8d4] ss:$12 sps:$4 sm:$0xff]   ;;  %v23851_v6 = vld [vmem:[#allocation10 + $0x7b8] ss:$12 sps:$4 sm:$0xff]  }
 0xa58   : > { %14697 = vmatmul.mubr.bf16.vlgmr.msra.gmra.mrb[204].mxu1 %v25721_v44  ;;  %v12983_v20 = vpop.f32.mrb[175].mxu0  ;;  %15168 = vmatprep.subr.bf16.mxu0 %v23803_v54  ;;  %v23809_v44 = vld [vmem:[#allocation10 + $0x840] ss:$12 sps:$4 sm:$0xff]   ;;  %v23847_v31 = vld [vmem:[#allocation10 + $0x8e8] ss:$12 sps:$4 sm:$0xff]  }
 0xa59   : > { %21343 = vmatpush3.bf16.msra.mxu1 %v23800_v5  ;;  %21350 = vmatprep.mubr.msk.bf16.mxu1 %vm24290_vm5, %v24289_v22  ;;  %v23854_v20 = vld [vmem:[#allocation10 + $0x8a8] ss:$12 sps:$4 sm:$0xff]  }
 0xa5a   : > { %21344 = vmatprep.subr.bf16.mxu1 %v24289_v22 }
 0xa5b   : > { %15169 = vmatpush1.bf16.msra.mxu0 %v23801_v40  ;;  %v23852_v40 = vld [vmem:[#allocation10 + $0x890] ss:$12 sps:$4 sm:$0xff]  }
 0xa5c   : > { %15170 = vmatprep.subr.bf16.mxu0 %v23807_v15  ;;  %v23855_v15 = vld [vmem:[#allocation10 + $0x7e8] ss:$12 sps:$4 sm:$0xff]  }
 0xa5d   : > { %21345 = vmatpush3.bf16.msra.mxu1 %v23804_v19  ;;  %v23856_v19 = vld [vmem:[#allocation10 + $0x8c0] ss:$12 sps:$4 sm:$0xff]  }
 0xa5e   : > { %21346 = vmatprep.subr.bf16.mxu1 %v24289_v22 }
 0xa5f   : > { %15171 = vmatpush1.bf16.msra.mxu0 %v23805_v4  ;;  %v23857_v4 = vld [vmem:[#allocation10 + $0x800] ss:$12 sps:$4 sm:$0xff]  }
 0xa60   : > { %15172 = vmatprep.subr.bf16.mxu0 %v23811_v16  ;;  %v23858_v16 = vld [vmem:[#allocation10 + $0x8d8] ss:$12 sps:$4 sm:$0xff]  }
 0xa61   : > { %21347 = vmatpush3.bf16.msra.mxu1 %v23808_v7 }
 0xa62   : > { %21348 = vmatprep.subr.bf16.mxu1 %v24289_v22 }
 0xa63   : > { %15173 = vmatpush1.bf16.msra.mxu0 %v23809_v44 }
 0xa64   : > { %15174 = vmatprep.subr.bf16.mxu0 %v23815_v63 }
 0xa65   : > { %21349 = vmatpush3.bf16.msra.mxu1 %v23812_v14 }
 0xa66   : > { %15197 = vmatprep.subr.bf16.mxu1 %v23818_v56  ;;  %v23860_v56 = vld [vmem:[#allocation10 + $0x8f0] ss:$12 sps:$4 sm:$0xff]  }
 0xa67   : > { %15175 = vmatpush1.bf16.msra.mxu0 %v23813_v48  ;;  %v23861_v48 = vld [vmem:[#allocation10 + $0x830] ss:$12 sps:$4 sm:$0xff]  }
 0xa68   : > { %21351 = vmatmul.mubr.msk.bf16.vlgmr.msra.gmra.mrb[208].mxu1 %vm12183_vm6, %v25709_v57  ;;  %15176 = vmatprep.subr.bf16.mxu0 %v23821_v21  ;;  %v23836_v57 = vld [vmem:[#allocation10 + $0x94c] ss:$12 sps:$4 sm:$0xff]  }
 0xa69   : > { %15198 = vmatpush1.bf16.msra.mxu1 %v23816_v24  ;;  %15229 = vmatprep.mubr.bf16.mxu1 %v26255_v28  ;;  %v23862_v24 = vld [vmem:[#allocation10 + $0x908] ss:$12 sps:$4 sm:$0xff]  }
 0xa6a   : > { %15199 = vmatprep.subr.bf16.mxu1 %v23824_v58 }
 0xa6b   : > { %v21083_v25 = vpop.f32.mrb[168].mxu1  ;;  %15177 = vmatpush1.bf16.msra.mxu0 %v23819_v30 }
 0xa6c   : > { %v21084_v53 = vpop.f32.mrb[169].mxu1  ;;  %15178 = vmatprep.subr.bf16.mxu0 %v23827_v3 }
 0xa6d   : > { %v21085_v11 = vadd.f32 %v21084_v53, %v21083_v25  ;;  %v21086_v33 = vpop.f32.mrb[170].mxu1  ;;  %15200 = vmatpush1.bf16.msra.mxu1 %v23822_v52  ;;  %v23863_v53 = vld [vmem:[#allocation10 + $0x920] ss:$12 sps:$4 sm:$0xff]  }
 0xa6e   : > { %v21087_v62 = vpop.f32.mrb[171].mxu1  ;;  %15201 = vmatprep.subr.bf16.mxu1 %v23830_v61 }
 0xa6f   : > { %15179 = vmatpush1.bf16.msra.mxu0 %v23825_v0 }
 0xa70   : > { %15180 = vmatprep.subr.bf16.mxu0 %v23833_v12  ;;  %v23864_v12 = vld [vmem:[#allocation10 + $0x938] ss:$12 sps:$4 sm:$0xff]  }
 0xa71   : > { %15202 = vmatpush1.bf16.msra.mxu1 %v23828_v36 }
 0xa72   : > { %15203 = vmatprep.subr.bf16.mxu1 %v23836_v57 }
 0xa73   : > { %15181 = vmatpush1.bf16.msra.mxu0 %v23831_v23 }
 0xa74   : > { %15182 = vmatprep.subr.bf16.mxu0 %v23839_v50 }
 0xa75   : > { %15204 = vmatpush1.bf16.msra.mxu1 %v23834_v17 }
 0xa76   : > { %21175 = vmatprep.subr.bf16.mxu1 %v23840_v47 }
 0xa77   : > { %15183 = vmatpush1.bf16.msra.mxu0 %v23837_v34 }
 0xa78   : > { %20267 = vmatmul.mubr.msk.bf16.vlgmr.msra.gmra.mrb[212].mxu1 %vm12183_vm6, %v14830_v1  ;;  %15184 = vmatprep.subr.bf16.mxu0 %v23844_v10 }
 0xa79   : > { %21176 = vmatpush3.bf16.msra.mxu1 %v23841_v43  ;;  %15270 = vmatprep.mubr.bf16.mxu1 %v14829_v45  ;;  %v23853_v45 = vld [vmem:[#allocation10 + $0x7d0] ss:$12 sps:$4 sm:$0xff]  }
 0xa7a   : > { %21177 = vmatprep.subr.bf16.mxu1 %v23845_v37 }
 0xa7b   : > { %v13100_v55 = vpop.f32.mrb[172].mxu1  ;;  %15185 = vmatpush1.bf16.msra.mxu0 %v23842_v39 }
 0xa7c   : > { %v25797_v54 = vadd.f32 %v21085_v11, %v13100_v55  ;;  %v21316_v60 = vpop.f32.mrb[173].mxu1  ;;  %15186 = vmatprep.subr.bf16.mxu0 %v23849_v29 }
 0xa7d   : > { %v13103_v5 = vpop.f32.mrb[174].mxu1  ;;  %21178 = vmatpush3.bf16.msra.mxu1 %v23846_v9 }
 0xa7e   : > { %v21317_v59 = vpop.f32.mrb[175].mxu1  ;;  %21179 = vmatprep.subr.bf16.mxu1 %v23850_v8 }
 0xa7f   : > { %15187 = vmatpush1.bf16.msra.mxu0 %v23847_v31 }
 0xa81   : > { %21180 = vmatpush3.bf16.msra.mxu1 %v23851_v6 }
 0xa82   : > { %15189 = vmatmul.mubr.bf16.vlgmr.msra.gmra.mrb[188].mxu0 %v14828_v42  ;;  %21181 = vmatprep.subr.bf16.mxu1 %v23852_v40 }
 0xa83   : > { %15399 = vmatprep.mubr.bf16.mxu0 %v26255_v28 }
 0xa85   : > { %21182 = vmatpush3.bf16.msra.mxu1 %v23853_v45 }
 0xa86   : > { %21183 = vmatprep.subr.bf16.mxu1 %v23854_v20 }
 0xa89   : > { %21184 = vmatpush3.bf16.msra.mxu1 %v23855_v15 }
 0xa8a   : > { %21185 = vmatprep.subr.bf16.mxu1 %v23856_v19 }
 0xa8b   : > { %v13503_v7 = vpop.f32.mrb[176].mxu1 }
 0xa8c   : > { %v13505_v44 = vpop.f32.mrb[177].mxu1 }
 0xa8d   : > { %v13507_v63 = vpop.f32.mrb[178].mxu1  ;;  %21186 = vmatpush3.bf16.msra.mxu1 %v23857_v4 }
 0xa8e   : > { %v13508_v14 = vpop.f32.mrb[179].mxu1  ;;  %21187 = vmatprep.subr.bf16.mxu1 %v23858_v16 }
 0xa91   : > { %21188 = vmatpush3.bf16.msra.mxu1 %v23859_v32 }
 0xa92   : > { %21189 = vmatprep.subr.bf16.mxu1 %v23860_v56 }
 0xa95   : > { %v13462_v21 = vpop.f32.mrb[176].mxu0  ;;  %21190 = vmatpush3.bf16.msra.mxu1 %v23861_v48 }
 0xa96   : > { %v13463_v58 = vadd.f32 %v13462_v21, %v25777_v41  ;;  %v13464_v30 = vpop.f32.mrb[177].mxu0  ;;  %21354 = vmatprep.subr.bf16.mxu1 %v24289_v22  ;;  %v23865_v41 = vld [vmem:[#allocation10 + $0x950] ss:$12 sps:$4 sm:$0xff]  }
 0xa97   : > { %v13465_v3 = vadd.f32 %v13464_v30, %v25780_v38  ;;  %v13466_v52 = vpop.f32.mrb[178].mxu0 }
 0xa98   : > { %v13504_v61 = vadd.f32 %v13503_v7, %v13463_v58  ;;  %v13467_v25 = vpop.f32.mrb[179].mxu0  ;;  %15271 = vmatmul.mubr.bf16.vlgmr.msra.gmra.mrb[216].mxu1 %v14828_v42 }
 0xa99   : > { %v13506_v0 = vadd.f32 %v13505_v44, %v13465_v3  ;;  %21355 = vmatpush3.bf16.msra.mxu1 %v23862_v24  ;;  %21362 = vmatprep.mubr.msk.bf16.mxu1 %vm24290_vm5, %v24289_v22 }
 0xa9a   : > { %21356 = vmatprep.subr.bf16.mxu1 %v24289_v22 }
 0xa9d   : > { %21357 = vmatpush3.bf16.msra.mxu1 %v23863_v53 }
 0xa9e   : > { %21358 = vmatprep.subr.bf16.mxu1 %v24289_v22 }
 0xaa1   : > { %21359 = vmatpush3.bf16.msra.mxu1 %v23864_v12 }
 0xaa2   : > { %21360 = vmatprep.subr.bf16.mxu1 %v24289_v22 }
 0xaa5   : > { %21361 = vmatpush3.bf16.msra.mxu1 %v23865_v41 }
 0xaa8   : > { %21363 = vmatmul.mubr.msk.bf16.vlgmr.msra.gmra.mrb[220].mxu1 %vm12183_vm6, %v14830_v1 }
 0xaa9   : > { %15443 = vmatprep.mubr.bf16.mxu1 %v26255_v28 }
 0xaab   : > { %v21110_v38 = vpop.f32.mrb[180].mxu1 }
 0xaac   : > { %v21111_v11 = vpop.f32.mrb[181].mxu1 }
 0xaad   : > { %v21112_v33 = vadd.f32 %v21111_v11, %v21110_v38  ;;  %v21113_v36 = vpop.f32.mrb[182].mxu1 }
 0xaae   : > { %v21114_v62 = vpop.f32.mrb[183].mxu1 }
 0xaaf   : > { %v13545_v57 = vadd.f32 %v21112_v33, %v25797_v54 }
 0xabb   : > { %v13584_v23 = vpop.f32.mrb[184].mxu1 }
 0xabc   : > { %v13585_v50 = vadd.f32 %v13584_v23, %v13545_v57  ;;  %v21328_v17 = vpop.f32.mrb[185].mxu1  ;;  %v15321_v57 = vld [vmem:[#allocation11] sm:$0x7] }
 0xabd   : > { %v13587_v47 = vpop.f32.mrb[186].mxu1  ;;  %v15326_v17 = vrot.slane %v15321_v57, %v26260_v51 }
 0xabe   : > { %v21329_v34 = vpop.f32.mrb[187].mxu1 }
 0xacb   : > { %v14077_v22 = vpop.f32.mrb[188].mxu1 }
 0xacc   : > { %v14079_v10 = vpop.f32.mrb[189].mxu1 }
 0xacd   : > { %v14081_v43 = vpop.f32.mrb[190].mxu1 }
 0xace   : > { %v14082_v35 = vpop.f32.mrb[191].mxu1 }
 0xad5   : > { %v14036_v37 = vpop.f32.mrb[180].mxu0 }
 0xad6   : > { %v14078_v1 = vadd.f32 %v14077_v22, %v14036_v37  ;;  %v14038_v39 = vpop.f32.mrb[181].mxu0 }
 0xad7   : > { %v14080_v28 = vadd.f32 %v14079_v10, %v14038_v39  ;;  %v14040_v29 = vpop.f32.mrb[182].mxu0 }
 0xad8   : > { %v14164_v9 = vadd.f32 %v14078_v1, %v13504_v61  ;;  %v14041_v8 = vpop.f32.mrb[183].mxu0 }
 0xad9   : > { %v14165_v55 = vadd.f32 %v14080_v28, %v13506_v0 }
 0xaeb   : > { %v21137_v31 = vpop.f32.mrb[192].mxu1 }
 0xaec   : > { %v21138_v60 = vpop.f32.mrb[193].mxu1 }
 0xaed   : > { %v21139_v54 = vadd.f32 %v21138_v60, %v21137_v31  ;;  %v21140_v5 = vpop.f32.mrb[194].mxu1  ;;  %v15334_v60 = vrot.slane %v15321_v57, %v26257_v49 }
 0xaee   : > { %v21141_v6 = vpop.f32.mrb[195].mxu1 }
 0xafb   : > { %v14158_v59 = vpop.f32.mrb[196].mxu1 }
 0xafc   : > { %v14159_v40 = vadd.f32 %v21139_v54, %v14158_v59  ;;  %v21340_v42 = vpop.f32.mrb[197].mxu1 }
 0xafd   : > { %v14161_v45 = vpop.f32.mrb[198].mxu1 }
 0xafe   : > { %v14166_v20 = vadd.f32 %v14159_v40, %v13585_v50  ;;  %v21341_v15 = vpop.f32.mrb[199].mxu1 }
 0xb0b   : > { %v14657_v19 = vpop.f32.mrb[200].mxu1 }
 0xb0c   : > { %v14659_v4 = vpop.f32.mrb[201].mxu1 }
 0xb0d   : > { %v14661_v16 = vpop.f32.mrb[202].mxu1 }
 0xb0e   : > { %v14662_v7 = vpop.f32.mrb[203].mxu1 }
 0xb15   : > { %v14616_v44 = vpop.f32.mrb[184].mxu0 }
 0xb16   : > { %v14658_v63 = vadd.f32 %v14657_v19, %v14616_v44  ;;  %v14618_v32 = vpop.f32.mrb[185].mxu0  ;;  %v15559_v44 = vld [vmem:[#allocation13 + $0x320] sm:$0xff] }
 0xb17   : > { %v14660_v14 = vadd.f32 %v14659_v4, %v14618_v32  ;;  %v14620_v56 = vpop.f32.mrb[186].mxu0  ;;  %v15555_v4 = vld [vmem:[#allocation13 + $0x300] sm:$0xff]  ;;  %v15560_v32 = vld [vmem:[#allocation13 + $0x328] sm:$0xff] }
 0xb18   : > { %v14744_v48 = vadd.f32 %v14658_v63, %v14164_v9  ;;  %v14621_v21 = vpop.f32.mrb[187].mxu0  ;;  %v15556_v63 = vld [vmem:[#allocation13 + $0x308] sm:$0xff] }
 0xb19   : > { %v14745_v24 = vadd.f32 %v14660_v14, %v14165_v55  ;;  %v15330_v55 = vrot.slane %v15321_v57, %v26261_v2  ;;  %v20274_v21 = vcombine.high %v15555_v4, %v15559_v44 }
 0xb2b   : > { %v21164_v58 = vpop.f32.mrb[204].mxu1 }
 0xb2c   : > { %v21165_v30 = vpop.f32.mrb[205].mxu1 }
 0xb2d   : > { %v21166_v3 = vadd.f32 %v21165_v30, %v21164_v58  ;;  %v21167_v52 = vpop.f32.mrb[206].mxu1  ;;  %v15563_v58 = vld [vmem:[#allocation13 + $0x340] sm:$0xff] }
 0xb2e   : > { %v21168_v61 = vpop.f32.mrb[207].mxu1  ;;  %v15567_v30 = vld [vmem:[#allocation13 + $0x360] sm:$0xff]  ;;  %v15568_v52 = vld [vmem:[#allocation13 + $0x368] sm:$0xff] }
 0xb3b   : > { %v14738_v25 = vpop.f32.mrb[208].mxu1 }
 0xb3c   : > { %v14739_v0 = vadd.f32 %v21166_v3, %v14738_v25  ;;  %v21352_v53 = vpop.f32.mrb[209].mxu1  ;;  %v15564_v3 = vld [vmem:[#allocation13 + $0x348] sm:$0xff]  ;;  %v15352_v25 = vpack.c.bf16 %v25685_v13, %v25685_v13  ;;  %v20281_v13 = vcombine.low %v15563_v58, %v15567_v30 }
 0xb3d   : > { %v14741_v12 = vpop.f32.mrb[210].mxu1  ;;  %v20273_v53 = vcombine.low %v15555_v4, %v15559_v44  ;;  %v20283_v57 = vcombine.low %v15564_v3, %v15568_v52 }
 0xb3e   : > { %v14746_v41 = vadd.f32 %v14739_v0, %v14166_v20  ;;  %v21353_v38 = vpop.f32.mrb[211].mxu1  ;;  %v15353_v0 = vpack.c.bf16 %v25676_v27, %v25676_v27  ;;  %v20275_v12 = vcombine.low %v15556_v63, %v15560_v32 }
 0xb3f   : > { %v20284_v38 = vcombine.high %v15564_v3, %v15568_v52  ;;  %v15623_v3 = vld [vmem:[#allocation13 + $0x520] sm:$0xff]  ;;  %v15620_v52 = vld [vmem:[#allocation13 + $0x508] sm:$0xff] }
 0xb4b   : > { %v15231_v11 = vpop.f32.mrb[212].mxu1 }
 0xb4c   : > { %v15233_v33 = vpop.f32.mrb[213].mxu1 }
 0xb4d   : > { %v15235_v36 = vpop.f32.mrb[214].mxu1 }
 0xb4e   : > { %v15236_v62 = vpop.f32.mrb[215].mxu1  ;;  %v15572_v36 = vld [vmem:[#allocation13 + $0x388] sm:$0xff] }
 0xb4f   : > { %v15576_v62 = vld [vmem:[#allocation13 + $0x3a8] sm:$0xff] }
 0xb55   : > { %v15190_v23 = vpop.f32.mrb[188].mxu0 }
 0xb56   : > { %v15232_v50 = vadd.f32 %v15231_v11, %v15190_v23  ;;  %v15192_v47 = vpop.f32.mrb[189].mxu0  ;;  %v15571_v11 = vld [vmem:[#allocation13 + $0x380] sm:$0xff]  ;;  %v20292_v23 = vcombine.high %v15572_v36, %v15576_v62 }
 0xb57   : > { %v15234_v34 = vadd.f32 %v15233_v33, %v15192_v47  ;;  %v15194_v22 = vpop.f32.mrb[190].mxu0  ;;  %v15575_v33 = vld [vmem:[#allocation13 + $0x3a0] sm:$0xff]  ;;  %v15580_v47 = vld [vmem:[#allocation13 + $0x3c8] sm:$0xff] }
 0xb58   : > { %v15318_v10 = vadd.f32 %v15232_v50, %v14744_v48  ;;  %v15195_v43 = vpop.f32.mrb[191].mxu0  ;;  %v20290_v27 = vcombine.high %v15571_v11, %v15575_v33  ;;  %v15579_v50 = vld [vmem:[#allocation13 + $0x3c0] sm:$0xff]  ;;  %v20289_v22 = vcombine.low %v15571_v11, %v15575_v33  ;;  %v15628_v11 = vld [vmem:[#allocation13 + $0x548] sm:$0xff] }
 0xb59   : > { %v15319_v35 = vadd.f32 %v15234_v34, %v14745_v24  ;;  %v20276_v24 = vcombine.high %v15556_v63, %v15560_v32  ;;  %v15584_v34 = vld [vmem:[#allocation13 + $0x3e8] sm:$0xff]  ;;  %v15611_v63 = vld [vmem:[#allocation13 + $0x4c0] sm:$0xff] }
 0xb5a   : > { %v15338_v37 = vadd.f32 %v15326_v17, %v15318_v10  ;;  %v15583_v17 = vld [vmem:[#allocation13 + $0x3e0] sm:$0xff]  ;;  %v20291_v10 = vcombine.low %v15572_v36, %v15576_v62  ;;  %v15632_v33 = vld [vmem:[#allocation13 + $0x568] sm:$0xff] }
 0xb5b   : > { %v15339_v40 = vadd.f32 %v15330_v55, %v15319_v35  ;;  %v20298_v43 = vcombine.high %v15579_v50, %v15583_v17  ;;  %v20300_v35 = vcombine.high %v15580_v47, %v15584_v34  ;;  %v15615_v32 = vld [vmem:[#allocation13 + $0x4e0] sm:$0xff] }
 0xb6b   : > { %v21191_v1 = vpop.f32.mrb[216].mxu1 }
 0xb6c   : > { %v21192_v39 = vpop.f32.mrb[217].mxu1 }
 0xb6d   : > { %v21193_v28 = vadd.f32 %v21192_v39, %v21191_v1  ;;  %v21194_v29 = vpop.f32.mrb[218].mxu1  ;;  %v15591_v1 = vld [vmem:[#allocation13 + $0x420] sm:$0xff]  ;;  %v15588_v39 = vld [vmem:[#allocation13 + $0x408] sm:$0xff] }
 0xb6e   : > { %v21195_v9 = vpop.f32.mrb[219].mxu1  ;;  %v20297_v29 = vcombine.low %v15579_v50, %v15583_v17  ;;  %v15635_v50 = vld [vmem:[#allocation13 + $0x580] sm:$0xff] }
 0xb6f   : > { %v20299_v9 = vcombine.low %v15580_v47, %v15584_v34  ;;  %v15639_v17 = vld [vmem:[#allocation13 + $0x5a0] sm:$0xff]  ;;  %v15636_v47 = vld [vmem:[#allocation13 + $0x588] sm:$0xff] }
 0xb70   : > { %v20353_v34 = vcombine.low %v15635_v50, %v15639_v17 }
 0xb7b   : > { %v15312_v8 = vpop.f32.mrb[220].mxu1 }
 0xb7c   : > { %v15313_v31 = vadd.f32 %v21193_v28, %v15312_v8  ;;  %v21364_v54 = vpop.f32.mrb[221].mxu1  ;;  %v15592_v28 = vld [vmem:[#allocation13 + $0x428] sm:$0xff] }
 0xb7d   : > { %v15315_v5 = vpop.f32.mrb[222].mxu1  ;;  %v20308_v55 = vcombine.high %v15588_v39, %v15592_v28  ;;  %v15596_v54 = vld [vmem:[#allocation13 + $0x448] sm:$0xff] }
 0xb7e   : > { %v15320_v6 = vadd.f32 %v15313_v31, %v14746_v41  ;;  %v21365_v59 = vpop.f32.mrb[223].mxu1  ;;  %v20282_v41 = vcombine.high %v15563_v58, %v15567_v30  ;;  %v15595_v31 = vld [vmem:[#allocation13 + $0x440] sm:$0xff]  ;;  %v15600_v5 = vld [vmem:[#allocation13 + $0x468] sm:$0xff] }
 0xb7f   : > { %v20307_v59 = vcombine.low %v15588_v39, %v15592_v28  ;;  %v15619_v30 = vld [vmem:[#allocation13 + $0x500] sm:$0xff]  ;;  %v15644_v28 = vld [vmem:[#allocation13 + $0x5c8] sm:$0xff] }
 0xb80   : > { %v15340_v42 = vadd.f32 %v15334_v60, %v15320_v6  ;;  %v15599_v60 = vld [vmem:[#allocation13 + $0x460] sm:$0xff]  ;;  %v20337_v36 = vcombine.low %v15619_v30, %v15623_v3 }
 0xb81   : > { %v20313_v4 = vcombine.low %v15595_v31, %v15599_v60 }
 0xb82   : > { %v21688_v45 = vpack.i.bf16 %v15340_v42, %v15339_v40  ;;  %v20316_v42 = vcombine.high %v15596_v54, %v15600_v5 }
 0xb84   : > { %21689 = vrot.lane.b32.xlu1 %v21688_v45, %s24288_s24  ;;  %v15603_v45 = vld [vmem:[#allocation13 + $0x480] sm:$0xff]  ;;  %s18462_s24 = scalar_lea.sflag [#allocation4], %s498_s22 }
 0xbf6   : > { %v21690_v20 = vpop.permute.xlu1 %21689 }
 0xbf7   : > { %v21692_v15 = vunpack.i.h.bf16 %v21690_v20  ;;  %v21691_v19 = vunpack.i.l.bf16 %v21690_v20  ;;  %v15607_v20 = vld [vmem:[#allocation13 + $0x4a0] sm:$0xff] }
 0xbf9   : > { %v15351_v16 = vmax.f32 %v15339_v40, %v21692_v15  ;;  %v15347_v7 = vsel %vm12183_vm6, %v21691_v19, %v21692_v15  ;;  %v20314_v40 = vcombine.high %v15595_v31, %v15599_v60  ;;  %v15604_v15 = vld [vmem:[#allocation13 + $0x488] sm:$0xff]  ;;  %v15561_v31 = vld [vmem:[#allocation13 + $0x330] sm:$0xff]  ;;  %v15558_v60 = vld [vmem:[#allocation13 + $0x318] sm:$0xff] }
 0xbfa   : > { %v15350_v14 = vmax.f32 %v15338_v37, %v15347_v7  ;;  %v15587_v37 = vld [vmem:[#allocation13 + $0x400] sm:$0xff]  ;;  %v15608_v19 = vld [vmem:[#allocation13 + $0x4a8] sm:$0xff]  ;;  %v20322_v7 = vcombine.high %v15603_v45, %v15607_v20 }
 0xbfb   : > { %v15355_v56 = vpack.c.bf16 %v15351_v16, %v15351_v16  ;;  %v20306_v8 = vcombine.high %v15587_v37, %v15591_v1  ;;  %v20305_v6 = vcombine.low %v15587_v37, %v15591_v1  ;;  %v20315_v16 = vcombine.low %v15596_v54, %v15600_v5 }
 0xbfc   : > { %v15354_v48 = vpack.c.bf16 %v15350_v14, %v15350_v14  ;;  %v20324_v44 = vcombine.high %v15604_v15, %v15608_v19  ;;  %v15612_v14 = vld [vmem:[#allocation13 + $0x4c8] sm:$0xff] }
 0xbfd   : > { %20269 = vmatprep.subr.msk.bf16.mxu0 %vm15360_vm13, %v15355_v56  ;;  %20271 = vmatprep.subr.msk.bf16.mxu1 %vm15360_vm13, %v15355_v56  ;;  %v15616_v56 = vld [vmem:[#allocation13 + $0x4e8] sm:$0xff] }
 0xbfe   : > { %v15362_v61 = vsel %vm15360_vm13, %v15354_v48, 0  ;;  %v20321_v48 = vcombine.low %v15603_v45, %v15607_v20  ;;  %v20332_v58 = vcombine.high %v15612_v14, %v15616_v56 }
 0xbff   : > { %15368 = vmatpush1.bf16.msra.mxu0 %v15362_v61  ;;  %15412 = vmatpush1.bf16.msra.mxu1 %v15362_v61  ;;  %v15624_v61 = vld [vmem:[#allocation13 + $0x528] sm:$0xff] }
 0xc00   : > { %16141 = vmatprep.subr.bf16.mxu0 %v20274_v21  ;;  %16182 = vmatprep.subr.bf16.mxu1 %v20276_v24  ;;  %v20323_v21 = vcombine.low %v15604_v15, %v15608_v19  ;;  %v20330_v24 = vcombine.high %v15611_v63, %v15615_v32  ;;  %v20339_v62 = vcombine.low %v15620_v52, %v15624_v61 }
 0xc02   : > { %20270 = vmatmul.mubr.msk.bf16.vlgmr.msra.gmra.mrb[192].mxu0 %vm15356_vm14, %v15352_v25  ;;  %20272 = vmatmul.mubr.msk.bf16.vlgmr.msra.gmra.mrb[224].mxu1 %vm15356_vm14, %v15353_v0  ;;  %v20329_v25 = vcombine.low %v15611_v63, %v15615_v32  ;;  %v20331_v0 = vcombine.low %v15612_v14, %v15616_v56 }
 0xc03   : > { %16142 = vmatpush1.bf16.msra.mxu0 %v20273_v53  ;;  %16183 = vmatpush1.bf16.msra.mxu1 %v20275_v12  ;;  %v20338_v53 = vcombine.high %v15619_v30, %v15623_v3  ;;  %v20340_v12 = vcombine.high %v15620_v52, %v15624_v61  ;;  %v15566_v30 = vld [vmem:[#allocation13 + $0x358] sm:$0xff] }
 0xc04   : > { %16143 = vmatprep.subr.bf16.mxu0 %v20282_v41  ;;  %16184 = vmatprep.subr.bf16.mxu1 %v20284_v38  ;;  %v15627_v41 = vld [vmem:[#allocation13 + $0x540] sm:$0xff]  ;;  %v15570_v3 = vld [vmem:[#allocation13 + $0x378] sm:$0xff] }
 0xc05   : > { %v15631_v38 = vld [vmem:[#allocation13 + $0x560] sm:$0xff] }
 0xc07   : > { %16144 = vmatpush1.bf16.msra.mxu0 %v20281_v13  ;;  %16185 = vmatpush1.bf16.msra.mxu1 %v20283_v57  ;;  %v20346_v13 = vcombine.high %v15627_v41, %v15631_v38  ;;  %v20348_v57 = vcombine.high %v15628_v11, %v15632_v33 }
 0xc08   : > { %16145 = vmatprep.subr.bf16.mxu0 %v20290_v27  ;;  %16186 = vmatprep.subr.bf16.mxu1 %v20292_v23  ;;  %v20345_v27 = vcombine.low %v15627_v41, %v15631_v38  ;;  %v20347_v23 = vcombine.low %v15628_v11, %v15632_v33  ;;  %v15574_v41 = vld [vmem:[#allocation13 + $0x398] sm:$0xff]  ;;  %v20287_v33 = vcombine.low %v15566_v30, %v15570_v3 }
 0xc09   : > { %v15578_v38 = vld [vmem:[#allocation13 + $0x3b8] sm:$0xff] }
 0xc0b   : > { %16146 = vmatpush1.bf16.msra.mxu0 %v20289_v22  ;;  %16187 = vmatpush1.bf16.msra.mxu1 %v20291_v10  ;;  %v20354_v22 = vcombine.high %v15635_v50, %v15639_v17  ;;  %v15640_v10 = vld [vmem:[#allocation13 + $0x5a8] sm:$0xff]  ;;  %v20295_v17 = vcombine.low %v15574_v41, %v15578_v38 }
 0xc0c   : > { %16147 = vmatprep.subr.bf16.mxu0 %v20298_v43  ;;  %16188 = vmatprep.subr.bf16.mxu1 %v20300_v35  ;;  %v15643_v43 = vld [vmem:[#allocation13 + $0x5c0] sm:$0xff]  ;;  %v20355_v37 = vcombine.low %v15636_v47, %v15640_v10  ;;  %v20356_v1 = vcombine.high %v15636_v47, %v15640_v10  ;;  %v15593_v10 = vld [vmem:[#allocation13 + $0x430] sm:$0xff] }
 0xc0d   : > { %v15647_v35 = vld [vmem:[#allocation13 + $0x5e0] sm:$0xff] }
 0xc0e   : > { %v20362_v39 = vcombine.high %v15643_v43, %v15647_v35 }
 0xc0f   : > { %16148 = vmatpush1.bf16.msra.mxu0 %v20297_v29  ;;  %16189 = vmatpush1.bf16.msra.mxu1 %v20299_v9  ;;  %v15648_v29 = vld [vmem:[#allocation13 + $0x5e8] sm:$0xff] }
 0xc10   : > { %16149 = vmatprep.subr.bf16.mxu0 %v20306_v8  ;;  %16190 = vmatprep.subr.bf16.mxu1 %v20308_v55  ;;  %v20364_v9 = vcombine.high %v15644_v28, %v15648_v29  ;;  %v20361_v8 = vcombine.low %v15643_v43, %v15647_v35  ;;  %v15557_v55 = vld [vmem:[#allocation13 + $0x310] sm:$0xff]  ;;  %v20363_v54 = vcombine.low %v15644_v28, %v15648_v29  ;;  %v15590_v43 = vld [vmem:[#allocation13 + $0x418] sm:$0xff] }
 0xc11   : > { %v20277_v5 = vcombine.low %v15557_v55, %v15561_v31  ;;  %v15594_v35 = vld [vmem:[#allocation13 + $0x438] sm:$0xff]  ;;  %v15597_v29 = vld [vmem:[#allocation13 + $0x450] sm:$0xff] }
 0xc12   : > { %v20312_v28 = vcombine.high %v15590_v43, %v15594_v35 }
 0xc13   : > { %16150 = vmatpush1.bf16.msra.mxu0 %v20305_v6  ;;  %16191 = vmatpush1.bf16.msra.mxu1 %v20307_v59  ;;  %v20278_v6 = vcombine.high %v15557_v55, %v15561_v31  ;;  %v15562_v59 = vld [vmem:[#allocation13 + $0x338] sm:$0xff] }
 0xc14   : > { %16151 = vmatprep.subr.bf16.mxu0 %v20314_v40  ;;  %16192 = vmatprep.subr.bf16.mxu1 %v20316_v42  ;;  %v20279_v40 = vcombine.low %v15558_v60, %v15562_v59  ;;  %v20280_v42 = vcombine.high %v15558_v60, %v15562_v59  ;;  %v15602_v55 = vld [vmem:[#allocation13 + $0x478] sm:$0xff]  ;;  %v20311_v60 = vcombine.low %v15590_v43, %v15594_v35  ;;  %v15609_v59 = vld [vmem:[#allocation13 + $0x4b0] sm:$0xff] }
 0xc15   : > { %v15649_v43 = vld [vmem:[#allocation13 + $0x5f0] sm:$0xff]  ;;  %v15646_v35 = vld [vmem:[#allocation13 + $0x5d8] sm:$0xff] }
 0xc17   : > { %16152 = vmatpush1.bf16.msra.mxu0 %v20313_v4  ;;  %16193 = vmatpush1.bf16.msra.mxu1 %v20315_v16 }
 0xc18   : > { %16153 = vmatprep.subr.bf16.mxu0 %v20322_v7  ;;  %16194 = vmatprep.subr.bf16.mxu1 %v20324_v44 }
 0xc1b   : > { %16154 = vmatpush1.bf16.msra.mxu0 %v20321_v48  ;;  %16195 = vmatpush1.bf16.msra.mxu1 %v20323_v21  ;;  %v15565_v21 = vld [vmem:[#allocation13 + $0x350] sm:$0xff] }
 0xc1c   : > { %16155 = vmatprep.subr.bf16.mxu0 %v20330_v24  ;;  %16196 = vmatprep.subr.bf16.mxu1 %v20332_v58  ;;  %v15569_v58 = vld [vmem:[#allocation13 + $0x370] sm:$0xff] }
 0xc1d   : > { %v20285_v11 = vcombine.low %v15565_v21, %v15569_v58 }
 0xc1f   : > { %16156 = vmatpush1.bf16.msra.mxu0 %v20329_v25  ;;  %16197 = vmatpush1.bf16.msra.mxu1 %v20331_v0  ;;  %v20286_v25 = vcombine.high %v15565_v21, %v15569_v58  ;;  %v20288_v0 = vcombine.high %v15566_v30, %v15570_v3  ;;  %v15621_v21 = vld [vmem:[#allocation13 + $0x510] sm:$0xff]  ;;  %v15622_v30 = vld [vmem:[#allocation13 + $0x518] sm:$0xff] }
 0xc20   : > { %16157 = vmatprep.subr.bf16.mxu0 %v20338_v53  ;;  %16198 = vmatprep.subr.bf16.mxu1 %v20340_v12  ;;  %v15573_v53 = vld [vmem:[#allocation13 + $0x390] sm:$0xff]  ;;  %v15626_v3 = vld [vmem:[#allocation13 + $0x538] sm:$0xff] }
 0xc21   : > { %v15577_v12 = vld [vmem:[#allocation13 + $0x3b0] sm:$0xff] }
 0xc22   : > { %v20293_v50 = vcombine.low %v15573_v53, %v15577_v12  ;;  %v15625_v58 = vld [vmem:[#allocation13 + $0x530] sm:$0xff] }
 0xc23   : > { %16158 = vmatpush1.bf16.msra.mxu0 %v20337_v36  ;;  %16199 = vmatpush1.bf16.msra.mxu1 %v20339_v62  ;;  %v20294_v36 = vcombine.high %v15573_v53, %v15577_v12  ;;  %v20296_v62 = vcombine.high %v15574_v41, %v15578_v38  ;;  %v20344_v53 = vcombine.high %v15622_v30, %v15626_v3  ;;  %v15629_v12 = vld [vmem:[#allocation13 + $0x550] sm:$0xff]  ;;  %v15630_v38 = vld [vmem:[#allocation13 + $0x558] sm:$0xff] }
 0xc24   : > { %16159 = vmatprep.subr.bf16.mxu0 %v20346_v13  ;;  %16200 = vmatprep.subr.bf16.mxu1 %v20348_v57  ;;  %v15581_v13 = vld [vmem:[#allocation13 + $0x3d0] sm:$0xff] }
 0xc25   : > { %v15585_v57 = vld [vmem:[#allocation13 + $0x3f0] sm:$0xff] }
 0xc26   : > { %v20302_v47 = vcombine.high %v15581_v13, %v15585_v57  ;;  %v15633_v41 = vld [vmem:[#allocation13 + $0x570] sm:$0xff] }
 0xc27   : > { %16160 = vmatpush1.bf16.msra.mxu0 %v20345_v27  ;;  %16201 = vmatpush1.bf16.msra.mxu1 %v20347_v23  ;;  %v15582_v27 = vld [vmem:[#allocation13 + $0x3d8] sm:$0xff] }
 0xc28   : > { %16161 = vmatprep.subr.bf16.mxu0 %v20354_v22  ;;  %16202 = vmatprep.subr.bf16.mxu1 %v20356_v1  ;;  %v15586_v23 = vld [vmem:[#allocation13 + $0x3f8] sm:$0xff]  ;;  %v15589_v22 = vld [vmem:[#allocation13 + $0x410] sm:$0xff] }
 0xc29   : > { %v20303_v1 = vcombine.low %v15582_v27, %v15586_v23  ;;  %v20309_v31 = vcombine.low %v15589_v22, %v15593_v10 }
 0xc2b   : > { %16162 = vmatpush1.bf16.msra.mxu0 %v20353_v34  ;;  %16203 = vmatpush1.bf16.msra.mxu1 %v20355_v37  ;;  %v20304_v34 = vcombine.high %v15582_v27, %v15586_v23  ;;  %v20301_v37 = vcombine.low %v15581_v13, %v15585_v57  ;;  %v15637_v57 = vld [vmem:[#allocation13 + $0x590] sm:$0xff]  ;;  %v15638_v23 = vld [vmem:[#allocation13 + $0x598] sm:$0xff] }
 0xc2c   : > { %16163 = vmatprep.subr.bf16.mxu0 %v20362_v39  ;;  %16204 = vmatprep.subr.bf16.mxu1 %v20364_v9  ;;  %v20310_v39 = vcombine.high %v15589_v22, %v15593_v10  ;;  %v15601_v9 = vld [vmem:[#allocation13 + $0x470] sm:$0xff] }
 0xc2d   : > { %v15641_v27 = vld [vmem:[#allocation13 + $0x5b0] sm:$0xff] }
 0xc2e   : > { %v15645_v10 = vld [vmem:[#allocation13 + $0x5d0] sm:$0xff] }
 0xc2f   : > { %16164 = vmatpush1.bf16.msra.mxu0 %v20361_v8  ;;  %16205 = vmatpush1.bf16.msra.mxu1 %v20363_v54  ;;  %v15598_v8 = vld [vmem:[#allocation13 + $0x458] sm:$0xff]  ;;  %v20318_v54 = vcombine.high %v15597_v29, %v15601_v9 }
 0xc30   : > { %16223 = vmatprep.subr.bf16.mxu0 %v20278_v6  ;;  %16264 = vmatprep.subr.bf16.mxu1 %v20280_v42  ;;  %v15605_v6 = vld [vmem:[#allocation13 + $0x490] sm:$0xff]  ;;  %v15610_v42 = vld [vmem:[#allocation13 + $0x4b8] sm:$0xff] }
 0xcd5   : > { %v15401_v45 = vpop.f32.mrb[192].mxu0  ;;  %v15445_v20 = vpop.f32.mrb[224].mxu1 }
 0xcd6   : > { %v15452_v15 = vmax.f32 %v15401_v45, %v15445_v20  ;;  %v15403_v19 = vpop.f32.mrb[193].mxu0  ;;  %v15447_v4 = vpop.f32.mrb[225].mxu1  ;;  %v20317_v45 = vcombine.low %v15597_v29, %v15601_v9  ;;  %v20319_v20 = vcombine.low %v15598_v8, %v15602_v55  ;;  %v15458_v9 = vld [vmem:[#allocation13] sm:$0xff] }
 0xcd7   : > { %v15453_v16 = vmax.f32 %v15403_v19, %v15447_v4  ;;  %v15405_v7 = vpop.f32.mrb[194].mxu0  ;;  %v15449_v44 = vpop.f32.mrb[226].mxu1  ;;  %v15613_v4 = vld [vmem:[#allocation13 + $0x4d0] sm:$0xff] }
 0xcd8   : > { %v15454_v63 = vmax.f32 %v15452_v15, 0.0  ;;  %v15406_v32 = vpop.f32.mrb[195].mxu0  ;;  %v15450_v14 = vpop.f32.mrb[227].mxu1  ;;  %v20326_v15 = vcombine.high %v15605_v6, %v15609_v59  ;;  %v15614_v7 = vld [vmem:[#allocation13 + $0x4d8] sm:$0xff] }
 0xcd9   : > { %v15455_v56 = vmax.f32 %v15453_v16, 0.0  ;;  %v15617_v16 = vld [vmem:[#allocation13 + $0x4f0] sm:$0xff]  ;;  %v15618_v44 = vld [vmem:[#allocation13 + $0x4f8] sm:$0xff] }
 0xcda   : > { %v25823_v48 = vpack.c.bf16 %v15454_v63, %v15454_v63  ;;  %v20325_v63 = vcombine.low %v15605_v6, %v15609_v59  ;;  %v20334_v14 = vcombine.high %v15613_v4, %v15617_v16  ;;  %v15466_v59 = vld [vmem:[#allocation13 + $0x40] sm:$0xff] }
 0xcdb   : > { %v25825_v24 = vpack.c.bf16 %v15455_v56, %v15455_v56  ;;  %v20336_v56 = vcombine.high %v15614_v7, %v15618_v44 }
 0xcdc   : > { %v25829_v61 = vshrl.u32 %v25823_v48, 16 }
 0xcdd   : > { %v15655_v52 = vshrl.u32 %v25825_v24, 16 }
 0xcdf   : > { %20369 = vmatprep.mubr.msk.bf16.mxu0 %vm12183_vm6, %v15655_v52  ;;  %20370 = vmatprep.mubr.msk.bf16.mxu1 %vm12183_vm6, %v15655_v52 }
 0xce0   : > { %16174 = vmatmul.mubr.bf16.vlgmr.msra.gmra.mrb[196].mxu0 %v25829_v61  ;;  %16215 = vmatmul.mubr.bf16.vlgmr.msra.gmra.mrb[228].mxu1 %v25829_v61 }
 0xce1   : > { %16224 = vmatpush1.bf16.msra.mxu0 %v20277_v5  ;;  %16265 = vmatpush1.bf16.msra.mxu1 %v20279_v40  ;;  %v20320_v5 = vcombine.high %v15598_v8, %v15602_v55  ;;  %v15606_v40 = vld [vmem:[#allocation13 + $0x498] sm:$0xff]  ;;  %v15462_v8 = vld [vmem:[#allocation13 + $0x20] sm:$0xff]  ;;  %v15459_v55 = vld [vmem:[#allocation13 + $0x8] sm:$0xff] }
 0xce2   : > { %16225 = vmatprep.subr.bf16.mxu0 %v20286_v25  ;;  %16266 = vmatprep.subr.bf16.mxu1 %v20288_v0  ;;  %v20328_v19 = vcombine.high %v15606_v40, %v15610_v42  ;;  %v20327_v32 = vcombine.low %v15606_v40, %v15610_v42  ;;  %v20335_v25 = vcombine.low %v15614_v7, %v15618_v44  ;;  %v15470_v40 = vld [vmem:[#allocation13 + $0x60] sm:$0xff]  ;;  %v15467_v42 = vld [vmem:[#allocation13 + $0x48] sm:$0xff] }
 0xce3   : > { %20371 = vmatprep.mubr.msk.bf16.mxu0 %vm12183_vm6, %v15655_v52  ;;  %20372 = vmatprep.mubr.msk.bf16.mxu1 %vm12183_vm6, %v15655_v52  ;;  %v20333_v52 = vcombine.low %v15613_v4, %v15617_v16  ;;  %v20342_v0 = vcombine.high %v15621_v21, %v15625_v58  ;;  %v15474_v16 = vld [vmem:[#allocation13 + $0x80] sm:$0xff]  ;;  %v15475_v44 = vld [vmem:[#allocation13 + $0x88] sm:$0xff] }
 0xce4   : > { %v15478_v7 = vld [vmem:[#allocation13 + $0xa0] sm:$0xff] }
 0xce5   : > { %16226 = vmatpush1.bf16.msra.mxu0 %v20285_v11  ;;  %16267 = vmatpush1.bf16.msra.mxu1 %v20287_v33  ;;  %v15634_v11 = vld [vmem:[#allocation13 + $0x578] sm:$0xff]  ;;  %v20341_v33 = vcombine.low %v15621_v21, %v15625_v58  ;;  %v15482_v58 = vld [vmem:[#allocation13 + $0xc0] sm:$0xff] }
 0xce6   : > { %16227 = vmatprep.subr.bf16.mxu0 %v20294_v36  ;;  %16268 = vmatprep.subr.bf16.mxu1 %v20296_v62  ;;  %v20343_v36 = vcombine.low %v15622_v30, %v15626_v3  ;;  %v20350_v62 = vcombine.high %v15629_v12, %v15633_v41  ;;  %v20352_v13 = vcombine.high %v15630_v38, %v15634_v11  ;;  %v15486_v30 = vld [vmem:[#allocation13 + $0xe0] sm:$0xff]  ;;  %v15483_v3 = vld [vmem:[#allocation13 + $0xc8] sm:$0xff] }
 0xce9   : > { %16228 = vmatpush1.bf16.msra.mxu0 %v20293_v50  ;;  %16269 = vmatpush1.bf16.msra.mxu1 %v20295_v17  ;;  %v15642_v50 = vld [vmem:[#allocation13 + $0x5b8] sm:$0xff]  ;;  %v20349_v17 = vcombine.low %v15629_v12, %v15633_v41  ;;  %v15490_v12 = vld [vmem:[#allocation13 + $0x100] sm:$0xff] }
 0xcea   : > { %16229 = vmatprep.subr.bf16.mxu0 %v20302_v47  ;;  %16270 = vmatprep.subr.bf16.mxu1 %v20304_v34  ;;  %v20351_v47 = vcombine.low %v15630_v38, %v15634_v11  ;;  %v20358_v34 = vcombine.high %v15637_v57, %v15641_v27  ;;  %v20360_v22 = vcombine.high %v15638_v23, %v15642_v50  ;;  %v15494_v41 = vld [vmem:[#allocation13 + $0x120] sm:$0xff]  ;;  %v15491_v38 = vld [vmem:[#allocation13 + $0x108] sm:$0xff] }
 0xceb   : > { %v15495_v11 = vld [vmem:[#allocation13 + $0x128] sm:$0xff] }
 0xced   : > { %16230 = vmatpush1.bf16.msra.mxu0 %v20301_v37  ;;  %16271 = vmatpush1.bf16.msra.mxu1 %v20303_v1  ;;  %v15650_v37 = vld [vmem:[#allocation13 + $0x5f8] sm:$0xff]  ;;  %v20357_v1 = vcombine.low %v15637_v57, %v15641_v27  ;;  %v15498_v57 = vld [vmem:[#allocation13 + $0x140] sm:$0xff] }
 0xcee   : > { %16231 = vmatprep.subr.bf16.mxu0 %v20310_v39  ;;  %16272 = vmatprep.subr.bf16.mxu1 %v20312_v28  ;;  %v20359_v39 = vcombine.low %v15638_v23, %v15642_v50  ;;  %v20366_v28 = vcombine.high %v15645_v10, %v15649_v43  ;;  %v20368_v29 = vcombine.high %v15646_v35, %v15650_v37  ;;  %v15502_v27 = vld [vmem:[#allocation13 + $0x160] sm:$0xff]  ;;  %v15499_v23 = vld [vmem:[#allocation13 + $0x148] sm:$0xff] }
 0xcef   : > { %v15503_v50 = vld [vmem:[#allocation13 + $0x168] sm:$0xff] }
 0xcf1   : > { %16232 = vmatpush1.bf16.msra.mxu0 %v20309_v31  ;;  %16273 = vmatpush1.bf16.msra.mxu1 %v20311_v60  ;;  %v15463_v31 = vld [vmem:[#allocation13 + $0x28] sm:$0xff]  ;;  %v20365_v60 = vcombine.low %v15645_v10, %v15649_v43  ;;  %v15506_v10 = vld [vmem:[#allocation13 + $0x180] sm:$0xff] }
 0xcf2   : > { %16233 = vmatprep.subr.bf16.mxu0 %v20318_v54  ;;  %16274 = vmatprep.subr.bf16.mxu1 %v20320_v5  ;;  %v20367_v54 = vcombine.low %v15646_v35, %v15650_v37  ;;  %v20374_v5 = vcombine.high %v15458_v9, %v15462_v8  ;;  %v20376_v6 = vcombine.high %v15459_v55, %v15463_v31  ;;  %v15510_v43 = vld [vmem:[#allocation13 + $0x1a0] sm:$0xff]  ;;  %v15507_v35 = vld [vmem:[#allocation13 + $0x188] sm:$0xff] }
 0xcf3   : > { %v15511_v37 = vld [vmem:[#allocation13 + $0x1a8] sm:$0xff] }
 0xcf5   : > { %16234 = vmatpush1.bf16.msra.mxu0 %v20317_v45  ;;  %16275 = vmatpush1.bf16.msra.mxu1 %v20319_v20  ;;  %v15471_v45 = vld [vmem:[#allocation13 + $0x68] sm:$0xff]  ;;  %v20373_v20 = vcombine.low %v15458_v9, %v15462_v8  ;;  %v15514_v9 = vld [vmem:[#allocation13 + $0x1c0] sm:$0xff] }
 0xcf6   : > { %16235 = vmatprep.subr.bf16.mxu0 %v20326_v15  ;;  %16276 = vmatprep.subr.bf16.mxu1 %v20328_v19  ;;  %v20375_v15 = vcombine.low %v15459_v55, %v15463_v31  ;;  %v20382_v19 = vcombine.high %v15466_v59, %v15470_v40  ;;  %v20384_v4 = vcombine.high %v15467_v42, %v15471_v45  ;;  %v15518_v8 = vld [vmem:[#allocation13 + $0x1e0] sm:$0xff]  ;;  %v15515_v55 = vld [vmem:[#allocation13 + $0x1c8] sm:$0xff] }
 0xcf7   : > { %v15519_v31 = vld [vmem:[#allocation13 + $0x1e8] sm:$0xff] }
 0xcf9   : > { %16236 = vmatpush1.bf16.msra.mxu0 %v20325_v63  ;;  %16277 = vmatpush1.bf16.msra.mxu1 %v20327_v32  ;;  %v15479_v63 = vld [vmem:[#allocation13 + $0xa8] sm:$0xff]  ;;  %v20381_v32 = vcombine.low %v15466_v59, %v15470_v40  ;;  %v15522_v59 = vld [vmem:[#allocation13 + $0x200] sm:$0xff] }
 0xcfa   : > { %16237 = vmatprep.subr.bf16.mxu0 %v20334_v14  ;;  %16278 = vmatprep.subr.bf16.mxu1 %v20336_v56  ;;  %v20383_v14 = vcombine.low %v15467_v42, %v15471_v45  ;;  %v20390_v56 = vcombine.high %v15474_v16, %v15478_v7  ;;  %v20392_v21 = vcombine.high %v15475_v44, %v15479_v63  ;;  %v15526_v40 = vld [vmem:[#allocation13 + $0x220] sm:$0xff]  ;;  %v15523_v42 = vld [vmem:[#allocation13 + $0x208] sm:$0xff] }
 0xcfb   : > { %v15527_v45 = vld [vmem:[#allocation13 + $0x228] sm:$0xff] }
 0xcfd   : > { %16238 = vmatpush1.bf16.msra.mxu0 %v20333_v52  ;;  %16279 = vmatpush1.bf16.msra.mxu1 %v20335_v25  ;;  %v20389_v52 = vcombine.low %v15474_v16, %v15478_v7  ;;  %v20391_v25 = vcombine.low %v15475_v44, %v15479_v63  ;;  %v15530_v16 = vld [vmem:[#allocation13 + $0x240] sm:$0xff]  ;;  %v15531_v44 = vld [vmem:[#allocation13 + $0x248] sm:$0xff] }
 0xcfe   : > { %16239 = vmatprep.subr.bf16.mxu0 %v20342_v0  ;;  %16280 = vmatprep.subr.bf16.mxu1 %v20344_v53  ;;  %v20398_v0 = vcombine.high %v15482_v58, %v15486_v30  ;;  %v15534_v7 = vld [vmem:[#allocation13 + $0x260] sm:$0xff]  ;;  %v15535_v63 = vld [vmem:[#allocation13 + $0x268] sm:$0xff] }
 0xd01   : > { %16240 = vmatpush1.bf16.msra.mxu0 %v20341_v33  ;;  %16281 = vmatpush1.bf16.msra.mxu1 %v20343_v36  ;;  %v20397_v33 = vcombine.low %v15482_v58, %v15486_v30  ;;  %v15538_v58 = vld [vmem:[#allocation13 + $0x280] sm:$0xff] }
 0xd02   : > { %16241 = vmatprep.subr.bf16.mxu0 %v20350_v62  ;;  %16282 = vmatprep.subr.bf16.mxu1 %v20352_v13  ;;  %v20406_v62 = vcombine.high %v15490_v12, %v15494_v41  ;;  %v20408_v13 = vcombine.high %v15491_v38, %v15495_v11  ;;  %v15542_v30 = vld [vmem:[#allocation13 + $0x2a0] sm:$0xff] }
 0xd05   : > { %16242 = vmatpush1.bf16.msra.mxu0 %v20349_v17  ;;  %16283 = vmatpush1.bf16.msra.mxu1 %v20351_v47  ;;  %v20405_v17 = vcombine.low %v15490_v12, %v15494_v41  ;;  %v20407_v47 = vcombine.low %v15491_v38, %v15495_v11  ;;  %v15546_v12 = vld [vmem:[#allocation13 + $0x2c0] sm:$0xff]  ;;  %v15547_v38 = vld [vmem:[#allocation13 + $0x2c8] sm:$0xff] }
 0xd06   : > { %16243 = vmatprep.subr.bf16.mxu0 %v20358_v34  ;;  %16284 = vmatprep.subr.bf16.mxu1 %v20360_v22  ;;  %v20414_v34 = vcombine.high %v15498_v57, %v15502_v27  ;;  %v20416_v22 = vcombine.high %v15499_v23, %v15503_v50  ;;  %v15550_v41 = vld [vmem:[#allocation13 + $0x2e0] sm:$0xff]  ;;  %v15551_v11 = vld [vmem:[#allocation13 + $0x2e8] sm:$0xff] }
 0xd09   : > { %16244 = vmatpush1.bf16.msra.mxu0 %v20357_v1  ;;  %16285 = vmatpush1.bf16.msra.mxu1 %v20359_v39  ;;  %v20413_v1 = vcombine.low %v15498_v57, %v15502_v27  ;;  %v20415_v39 = vcombine.low %v15499_v23, %v15503_v50  ;;  %v15460_v57 = vld [vmem:[#allocation13 + $0x10] sm:$0xff]  ;;  %v15461_v23 = vld [vmem:[#allocation13 + $0x18] sm:$0xff] }
 0xd0a   : > { %16245 = vmatprep.subr.bf16.mxu0 %v20366_v28  ;;  %16286 = vmatprep.subr.bf16.mxu1 %v20368_v29  ;;  %v20422_v28 = vcombine.high %v15506_v10, %v15510_v43  ;;  %v20424_v29 = vcombine.high %v15507_v35, %v15511_v37  ;;  %v15464_v27 = vld [vmem:[#allocation13 + $0x30] sm:$0xff]  ;;  %v15465_v50 = vld [vmem:[#allocation13 + $0x38] sm:$0xff] }
 0xd0d   : > { %16246 = vmatpush1.bf16.msra.mxu0 %v20365_v60  ;;  %16287 = vmatpush1.bf16.msra.mxu1 %v20367_v54  ;;  %v20421_v60 = vcombine.low %v15506_v10, %v15510_v43  ;;  %v20423_v54 = vcombine.low %v15507_v35, %v15511_v37  ;;  %v15468_v10 = vld [vmem:[#allocation13 + $0x50] sm:$0xff]  ;;  %v20377_v35 = vcombine.low %v15460_v57, %v15464_v27  ;;  %v15469_v37 = vld [vmem:[#allocation13 + $0x58] sm:$0xff] }
 0xd0e   : > { %16787 = vmatprep.subr.bf16.mxu0 %v20374_v5  ;;  %16828 = vmatprep.subr.bf16.mxu1 %v20376_v6  ;;  %v20430_v5 = vcombine.high %v15514_v9, %v15518_v8  ;;  %v20432_v6 = vcombine.high %v15515_v55, %v15519_v31  ;;  %v15472_v43 = vld [vmem:[#allocation13 + $0x70] sm:$0xff] }
 0xd10   : > { %16256 = vmatmul.mubr.bf16.vlgmr.msra.gmra.mrb[200].mxu0 %v25829_v61  ;;  %16297 = vmatmul.mubr.bf16.vlgmr.msra.gmra.mrb[232].mxu1 %v25829_v61  ;;  %v15487_v61 = vld [vmem:[#allocation13 + $0xe8] sm:$0xff] }
 0xd11   : > { %16788 = vmatpush1.bf16.msra.mxu0 %v20373_v20  ;;  %20469 = vmatprep.mubr.msk.bf16.mxu0 %vm12183_vm6, %v25825_v24  ;;  %v20400_v53 = vcombine.high %v15483_v3, %v15487_v61  ;;  %v20399_v36 = vcombine.low %v15483_v3, %v15487_v61  ;;  %v20429_v20 = vcombine.low %v15514_v9, %v15518_v8  ;;  %v15539_v3 = vld [vmem:[#allocation13 + $0x288] sm:$0xff]  ;;  %v15480_v9 = vld [vmem:[#allocation13 + $0xb0] sm:$0xff] }
 0xd12   : > { %16829 = vmatpush1.bf16.msra.mxu1 %v20375_v15  ;;  %20470 = vmatprep.mubr.msk.bf16.mxu1 %vm12183_vm6, %v25825_v24  ;;  %v20431_v15 = vcombine.low %v15515_v55, %v15519_v31  ;;  %v15543_v61 = vld [vmem:[#allocation13 + $0x2a8] sm:$0xff]  ;;  %v15477_v55 = vld [vmem:[#allocation13 + $0x98] sm:$0xff] }
 0xd13   : > { %16789 = vmatprep.subr.bf16.mxu0 %v20382_v19  ;;  %16830 = vmatprep.subr.bf16.mxu1 %v20384_v4  ;;  %v20438_v19 = vcombine.high %v15522_v59, %v15526_v40  ;;  %v20440_v4 = vcombine.high %v15523_v42, %v15527_v45  ;;  %v15481_v31 = vld [vmem:[#allocation13 + $0xb8] sm:$0xff] }
 0xd15   : > { %16790 = vmatpush1.bf16.msra.mxu0 %v20381_v32  ;;  %v20437_v32 = vcombine.low %v15522_v59, %v15526_v40  ;;  %v15484_v59 = vld [vmem:[#allocation13 + $0xd0] sm:$0xff] }
 0xd16   : > { %16831 = vmatpush1.bf16.msra.mxu1 %v20383_v14  ;;  %16791 = vmatprep.subr.bf16.mxu0 %v20390_v56  ;;  %v20439_v14 = vcombine.low %v15523_v42, %v15527_v45  ;;  %v20446_v56 = vcombine.high %v15530_v16, %v15534_v7  ;;  %v15488_v40 = vld [vmem:[#allocation13 + $0xf0] sm:$0xff]  ;;  %v15485_v42 = vld [vmem:[#allocation13 + $0xd8] sm:$0xff] }
 0xd17   : > { %16832 = vmatprep.subr.bf16.mxu1 %v20392_v21  ;;  %v20448_v21 = vcombine.high %v15531_v44, %v15535_v63  ;;  %v15489_v45 = vld [vmem:[#allocation13 + $0xf8] sm:$0xff] }
 0xd19   : > { %16792 = vmatpush1.bf16.msra.mxu0 %v20389_v52  ;;  %v20445_v52 = vcombine.low %v15530_v16, %v15534_v7  ;;  %v15492_v16 = vld [vmem:[#allocation13 + $0x110] sm:$0xff] }
 0xd1a   : > { %16833 = vmatpush1.bf16.msra.mxu1 %v20391_v25  ;;  %16793 = vmatprep.subr.bf16.mxu0 %v20398_v0  ;;  %v20447_v25 = vcombine.low %v15531_v44, %v15535_v63  ;;  %v20454_v0 = vcombine.high %v15538_v58, %v15542_v30  ;;  %v15496_v7 = vld [vmem:[#allocation13 + $0x130] sm:$0xff]  ;;  %v15493_v44 = vld [vmem:[#allocation13 + $0x118] sm:$0xff] }
 0xd1b   : > { %16834 = vmatprep.subr.bf16.mxu1 %v20400_v53  ;;  %v20456_v53 = vcombine.high %v15539_v3, %v15543_v61  ;;  %v15497_v63 = vld [vmem:[#allocation13 + $0x138] sm:$0xff] }
 0xd1d   : > { %16794 = vmatpush1.bf16.msra.mxu0 %v20397_v33  ;;  %v20453_v33 = vcombine.low %v15538_v58, %v15542_v30  ;;  %v15500_v58 = vld [vmem:[#allocation13 + $0x150] sm:$0xff] }
 0xd1e   : > { %16835 = vmatpush1.bf16.msra.mxu1 %v20399_v36  ;;  %16795 = vmatprep.subr.bf16.mxu0 %v20406_v62  ;;  %v20455_v36 = vcombine.low %v15539_v3, %v15543_v61  ;;  %v20462_v62 = vcombine.high %v15546_v12, %v15550_v41  ;;  %v15504_v30 = vld [vmem:[#allocation13 + $0x170] sm:$0xff]  ;;  %v15501_v3 = vld [vmem:[#allocation13 + $0x158] sm:$0xff] }
 0xd1f   : > { %16836 = vmatprep.subr.bf16.mxu1 %v20408_v13  ;;  %v20464_v13 = vcombine.high %v15547_v38, %v15551_v11  ;;  %v15505_v61 = vld [vmem:[#allocation13 + $0x178] sm:$0xff] }
 0xd21   : > { %16796 = vmatpush1.bf16.msra.mxu0 %v20405_v17  ;;  %v20461_v17 = vcombine.low %v15546_v12, %v15550_v41  ;;  %v15508_v12 = vld [vmem:[#allocation13 + $0x190] sm:$0xff] }
 0xd22   : > { %16837 = vmatpush1.bf16.msra.mxu1 %v20407_v47  ;;  %16797 = vmatprep.subr.bf16.mxu0 %v20414_v34  ;;  %v20463_v47 = vcombine.low %v15547_v38, %v15551_v11  ;;  %v20378_v34 = vcombine.high %v15460_v57, %v15464_v27  ;;  %v15512_v41 = vld [vmem:[#allocation13 + $0x1b0] sm:$0xff]  ;;  %v15509_v38 = vld [vmem:[#allocation13 + $0x198] sm:$0xff] }
 0xd23   : > { %16838 = vmatprep.subr.bf16.mxu1 %v20416_v22  ;;  %v20380_v22 = vcombine.high %v15461_v23, %v15465_v50  ;;  %v15513_v11 = vld [vmem:[#allocation13 + $0x1b8] sm:$0xff]  ;;  %v15516_v57 = vld [vmem:[#allocation13 + $0x1d0] sm:$0xff] }
 0xd24   : > { %v15520_v27 = vld [vmem:[#allocation13 + $0x1f0] sm:$0xff] }
 0xd25   : > { %16798 = vmatpush1.bf16.msra.mxu0 %v20413_v1  ;;  %v15473_v1 = vld [vmem:[#allocation13 + $0x78] sm:$0xff] }
 0xd26   : > { %16839 = vmatpush1.bf16.msra.mxu1 %v20415_v39  ;;  %16799 = vmatprep.subr.bf16.mxu0 %v20422_v28  ;;  %v20379_v39 = vcombine.low %v15461_v23, %v15465_v50  ;;  %v20386_v28 = vcombine.high %v15468_v10, %v15472_v43  ;;  %v20388_v8 = vcombine.high %v15469_v37, %v15473_v1  ;;  %v15517_v23 = vld [vmem:[#allocation13 + $0x1d8] sm:$0xff] }
 0xd27   : > { %16840 = vmatprep.subr.bf16.mxu1 %v20424_v29  ;;  %v15476_v29 = vld [vmem:[#allocation13 + $0x90] sm:$0xff]  ;;  %v15521_v50 = vld [vmem:[#allocation13 + $0x1f8] sm:$0xff] }
 0xd29   : > { %16800 = vmatpush1.bf16.msra.mxu0 %v20421_v60  ;;  %v20385_v60 = vcombine.low %v15468_v10, %v15472_v43  ;;  %v15524_v10 = vld [vmem:[#allocation13 + $0x210] sm:$0xff] }
 0xd2a   : > { %16841 = vmatpush1.bf16.msra.mxu1 %v20423_v54  ;;  %16801 = vmatprep.subr.bf16.mxu0 %v20430_v5  ;;  %v20387_v54 = vcombine.low %v15469_v37, %v15473_v1  ;;  %v20394_v5 = vcombine.high %v15476_v29, %v15480_v9  ;;  %v15528_v43 = vld [vmem:[#allocation13 + $0x230] sm:$0xff]  ;;  %v15529_v37 = vld [vmem:[#allocation13 + $0x238] sm:$0xff]  ;;  %v20433_v1 = vcombine.low %v15516_v57, %v15520_v27 }
 0xd2b   : > { %16842 = vmatprep.subr.bf16.mxu1 %v20432_v6  ;;  %v20396_v6 = vcombine.high %v15477_v55, %v15481_v31 }
 0xd2d   : > { %16802 = vmatpush1.bf16.msra.mxu0 %v20429_v20  ;;  %v20393_v20 = vcombine.low %v15476_v29, %v15480_v9  ;;  %v15532_v9 = vld [vmem:[#allocation13 + $0x250] sm:$0xff] }
 0xd2e   : > { %16843 = vmatpush1.bf16.msra.mxu1 %v20431_v15  ;;  %16803 = vmatprep.subr.bf16.mxu0 %v20438_v19  ;;  %v20395_v15 = vcombine.low %v15477_v55, %v15481_v31  ;;  %v20402_v19 = vcombine.high %v15484_v59, %v15488_v40  ;;  %v15533_v55 = vld [vmem:[#allocation13 + $0x258] sm:$0xff] }
 0xd2f   : > { %16844 = vmatprep.subr.bf16.mxu1 %v20440_v4  ;;  %v20404_v4 = vcombine.high %v15485_v42, %v15489_v45  ;;  %v15537_v31 = vld [vmem:[#allocation13 + $0x278] sm:$0xff] }
 0xd31   : > { %16804 = vmatpush1.bf16.msra.mxu0 %v20437_v32  ;;  %v20401_v32 = vcombine.low %v15484_v59, %v15488_v40  ;;  %v15540_v59 = vld [vmem:[#allocation13 + $0x290] sm:$0xff] }
 0xd32   : > { %16845 = vmatpush1.bf16.msra.mxu1 %v20439_v14  ;;  %16805 = vmatprep.subr.bf16.mxu0 %v20446_v56  ;;  %v20403_v14 = vcombine.low %v15485_v42, %v15489_v45  ;;  %v20410_v56 = vcombine.high %v15492_v16, %v15496_v7  ;;  %v15544_v40 = vld [vmem:[#allocation13 + $0x2b0] sm:$0xff]  ;;  %v15541_v42 = vld [vmem:[#allocation13 + $0x298] sm:$0xff] }
 0xd33   : > { %16846 = vmatprep.subr.bf16.mxu1 %v20448_v21  ;;  %v20412_v21 = vcombine.high %v15493_v44, %v15497_v63  ;;  %v15545_v45 = vld [vmem:[#allocation13 + $0x2b8] sm:$0xff] }
 0xd35   : > { %16806 = vmatpush1.bf16.msra.mxu0 %v20445_v52  ;;  %v20409_v52 = vcombine.low %v15492_v16, %v15496_v7  ;;  %v15548_v16 = vld [vmem:[#allocation13 + $0x2d0] sm:$0xff] }
 0xd36   : > { %16847 = vmatpush1.bf16.msra.mxu1 %v20447_v25  ;;  %16807 = vmatprep.subr.bf16.mxu0 %v20454_v0  ;;  %v20411_v25 = vcombine.low %v15493_v44, %v15497_v63  ;;  %v20418_v0 = vcombine.high %v15500_v58, %v15504_v30  ;;  %v15552_v7 = vld [vmem:[#allocation13 + $0x2f0] sm:$0xff]  ;;  %v15549_v44 = vld [vmem:[#allocation13 + $0x2d8] sm:$0xff] }
 0xd37   : > { %16848 = vmatprep.subr.bf16.mxu1 %v20456_v53  ;;  %v20420_v53 = vcombine.high %v15501_v3, %v15505_v61  ;;  %v15553_v63 = vld [vmem:[#allocation13 + $0x2f8] sm:$0xff] }
 0xd39   : > { %16808 = vmatpush1.bf16.msra.mxu0 %v20453_v33  ;;  %v20417_v33 = vcombine.low %v15500_v58, %v15504_v30  ;;  %v16952_v58 = vld [vmem:[#allocation13 + $0x600] sm:$0xff] }
 0xd3a   : > { %16849 = vmatpush1.bf16.msra.mxu1 %v20455_v36  ;;  %16809 = vmatprep.subr.bf16.mxu0 %v20462_v62  ;;  %v20419_v36 = vcombine.low %v15501_v3, %v15505_v61  ;;  %v20426_v62 = vcombine.high %v15508_v12, %v15512_v41  ;;  %v16956_v30 = vld [vmem:[#allocation13 + $0x620] sm:$0xff]  ;;  %v16953_v3 = vld [vmem:[#allocation13 + $0x608] sm:$0xff] }
 0xd3b   : > { %16850 = vmatprep.subr.bf16.mxu1 %v20464_v13  ;;  %v20428_v13 = vcombine.high %v15509_v38, %v15513_v11  ;;  %v16957_v61 = vld [vmem:[#allocation13 + $0x628] sm:$0xff] }
 0xd3d   : > { %16810 = vmatpush1.bf16.msra.mxu0 %v20461_v17  ;;  %v20425_v17 = vcombine.low %v15508_v12, %v15512_v41  ;;  %v16960_v12 = vld [vmem:[#allocation13 + $0x640] sm:$0xff] }
 0xd3e   : > { %16851 = vmatpush1.bf16.msra.mxu1 %v20463_v47  ;;  %16869 = vmatprep.subr.bf16.mxu0 %v20378_v34  ;;  %v20427_v47 = vcombine.low %v15509_v38, %v15513_v11  ;;  %v20434_v34 = vcombine.high %v15516_v57, %v15520_v27  ;;  %v16964_v41 = vld [vmem:[#allocation13 + $0x660] sm:$0xff]  ;;  %v20473_v38 = vcombine.low %v16952_v58, %v16956_v30  ;;  %v16961_v11 = vld [vmem:[#allocation13 + $0x648] sm:$0xff]  ;;  %v25851_v27 = vrot.slane %v25825_v24, 1 }
 0xd3f   : > { %16910 = vmatprep.subr.bf16.mxu1 %v20380_v22  ;;  %v20436_v22 = vcombine.high %v15517_v23, %v15521_v50  ;;  %v16972_v57 = vld [vmem:[#allocation13 + $0x6a0] sm:$0xff] }
 0xd40   : > { %16820 = vmatmul.mubr.bf16.vlgmr.msra.gmra.mrb[204].mxu0 %v25823_v48 }
 0xd41   : > { %16861 = vmatmul.mubr.bf16.vlgmr.msra.gmra.mrb[236].mxu1 %v25823_v48  ;;  %16870 = vmatpush1.bf16.msra.mxu0 %v20377_v35  ;;  %v15525_v35 = vld [vmem:[#allocation13 + $0x218] sm:$0xff] }
 0xd42   : > { %20471 = vmatprep.mubr.msk.bf16.mxu0 %vm12183_vm6, %v25825_v24  ;;  %16911 = vmatpush1.bf16.msra.mxu1 %v20379_v39  ;;  %v20435_v39 = vcombine.low %v15517_v23, %v15521_v50  ;;  %v20444_v29 = vcombine.high %v15525_v35, %v15529_v37  ;;  %v16969_v50 = vld [vmem:[#allocation13 + $0x688] sm:$0xff] }
 0xd43   : > { %20472 = vmatprep.mubr.msk.bf16.mxu1 %vm12183_vm6, %v25825_v24  ;;  %16871 = vmatprep.subr.bf16.mxu0 %v20386_v28  ;;  %v20442_v28 = vcombine.high %v15524_v10, %v15528_v43  ;;  %v16976_v24 = vld [vmem:[#allocation13 + $0x6c0] sm:$0xff] }
 0xd44   : > { %16912 = vmatprep.subr.bf16.mxu1 %v20388_v8  ;;  %v15536_v8 = vld [vmem:[#allocation13 + $0x270] sm:$0xff] }
 0xd45   : > { %16872 = vmatpush1.bf16.msra.mxu0 %v20385_v60  ;;  %v20441_v60 = vcombine.low %v15524_v10, %v15528_v43  ;;  %v16980_v43 = vld [vmem:[#allocation13 + $0x6e0] sm:$0xff] }
 0xd46   : > { %16913 = vmatpush1.bf16.msra.mxu1 %v20387_v54  ;;  %16873 = vmatprep.subr.bf16.mxu0 %v20394_v5  ;;  %v20443_v54 = vcombine.low %v15525_v35, %v15529_v37  ;;  %v20450_v5 = vcombine.high %v15532_v9, %v15536_v8  ;;  %v16977_v35 = vld [vmem:[#allocation13 + $0x6c8] sm:$0xff] }
 0xd47   : > { %16914 = vmatprep.subr.bf16.mxu1 %v20396_v6  ;;  %v20452_v6 = vcombine.high %v15533_v55, %v15537_v31  ;;  %v16981_v37 = vld [vmem:[#allocation13 + $0x6e8] sm:$0xff] }
 0xd49   : > { %16874 = vmatpush1.bf16.msra.mxu0 %v20393_v20  ;;  %v20449_v20 = vcombine.low %v15532_v9, %v15536_v8  ;;  %v16984_v9 = vld [vmem:[#allocation13 + $0x700] sm:$0xff] }
 0xd4a   : > { %16915 = vmatpush1.bf16.msra.mxu1 %v20395_v15  ;;  %16875 = vmatprep.subr.bf16.mxu0 %v20402_v19  ;;  %v20451_v15 = vcombine.low %v15533_v55, %v15537_v31  ;;  %v20458_v19 = vcombine.high %v15540_v59, %v15544_v40  ;;  %v16988_v8 = vld [vmem:[#allocation13 + $0x720] sm:$0xff]  ;;  %v16985_v55 = vld [vmem:[#allocation13 + $0x708] sm:$0xff] }
 0xd4b   : > { %16916 = vmatprep.subr.bf16.mxu1 %v20404_v4  ;;  %v20460_v4 = vcombine.high %v15541_v42, %v15545_v45  ;;  %v16989_v31 = vld [vmem:[#allocation13 + $0x728] sm:$0xff] }
 0xd4d   : > { %16876 = vmatpush1.bf16.msra.mxu0 %v20401_v32  ;;  %v20457_v32 = vcombine.low %v15540_v59, %v15544_v40  ;;  %v16992_v59 = vld [vmem:[#allocation13 + $0x740] sm:$0xff] }
 0xd4e   : > { %16917 = vmatpush1.bf16.msra.mxu1 %v20403_v14  ;;  %16877 = vmatprep.subr.bf16.mxu0 %v20410_v56  ;;  %v20459_v14 = vcombine.low %v15541_v42, %v15545_v45  ;;  %v20466_v56 = vcombine.high %v15548_v16, %v15552_v7  ;;  %v16996_v40 = vld [vmem:[#allocation13 + $0x760] sm:$0xff]  ;;  %v16993_v42 = vld [vmem:[#allocation13 + $0x748] sm:$0xff] }
 0xd4f   : > { %16918 = vmatprep.subr.bf16.mxu1 %v20412_v21  ;;  %v20468_v21 = vcombine.high %v15549_v44, %v15553_v63  ;;  %v16997_v45 = vld [vmem:[#allocation13 + $0x768] sm:$0xff] }
 0xd51   : > { %16878 = vmatpush1.bf16.msra.mxu0 %v20409_v52  ;;  %v20465_v52 = vcombine.low %v15548_v16, %v15552_v7  ;;  %v17000_v16 = vld [vmem:[#allocation13 + $0x780] sm:$0xff] }
 0xd52   : > { %16919 = vmatpush1.bf16.msra.mxu1 %v20411_v25  ;;  %16879 = vmatprep.subr.bf16.mxu0 %v20418_v0  ;;  %v20467_v25 = vcombine.low %v15549_v44, %v15553_v63  ;;  %v20474_v0 = vcombine.high %v16952_v58, %v16956_v30  ;;  %v17004_v7 = vld [vmem:[#allocation13 + $0x7a0] sm:$0xff]  ;;  %v17001_v44 = vld [vmem:[#allocation13 + $0x788] sm:$0xff] }
 0xd53   : > { %16920 = vmatprep.subr.bf16.mxu1 %v20420_v53  ;;  %v20476_v53 = vcombine.high %v16953_v3, %v16957_v61  ;;  %v17005_v63 = vld [vmem:[#allocation13 + $0x7a8] sm:$0xff]  ;;  %v17008_v58 = vld [vmem:[#allocation13 + $0x7c0] sm:$0xff] }
 0xd54   : > { %v17012_v30 = vld [vmem:[#allocation13 + $0x7e0] sm:$0xff] }
 0xd55   : > { %16880 = vmatpush1.bf16.msra.mxu0 %v20417_v33  ;;  %v16965_v33 = vld [vmem:[#allocation13 + $0x668] sm:$0xff] }
 0xd56   : > { %16921 = vmatpush1.bf16.msra.mxu1 %v20419_v36  ;;  %16881 = vmatprep.subr.bf16.mxu0 %v20426_v62  ;;  %v20475_v36 = vcombine.low %v16953_v3, %v16957_v61  ;;  %v20482_v62 = vcombine.high %v16960_v12, %v16964_v41  ;;  %v20484_v23 = vcombine.high %v16961_v11, %v16965_v33  ;;  %v17009_v3 = vld [vmem:[#allocation13 + $0x7c8] sm:$0xff] }
 0xd57   : > { %16922 = vmatprep.subr.bf16.mxu1 %v20428_v13  ;;  %v16968_v13 = vld [vmem:[#allocation13 + $0x680] sm:$0xff]  ;;  %v17013_v61 = vld [vmem:[#allocation13 + $0x7e8] sm:$0xff] }
 0xd59   : > { %16882 = vmatpush1.bf16.msra.mxu0 %v20425_v17  ;;  %v16973_v17 = vld [vmem:[#allocation13 + $0x6a8] sm:$0xff] }
 0xd5a   : > { %16923 = vmatpush1.bf16.msra.mxu1 %v20427_v47  ;;  %16883 = vmatprep.subr.bf16.mxu0 %v20434_v34  ;;  %v20481_v47 = vcombine.low %v16960_v12, %v16964_v41  ;;  %v20483_v34 = vcombine.low %v16961_v11, %v16965_v33  ;;  %v20492_v10 = vcombine.high %v16969_v50, %v16973_v17  ;;  %v17016_v12 = vld [vmem:[#allocation13 + $0x800] sm:$0xff]  ;;  %v17021_v11 = vld [vmem:[#allocation13 + $0x828] sm:$0xff] }
 0xd5b   : > { %16924 = vmatprep.subr.bf16.mxu1 %v20436_v22  ;;  %v20490_v22 = vcombine.high %v16968_v13, %v16972_v57  ;;  %v17020_v41 = vld [vmem:[#allocation13 + $0x820] sm:$0xff]  ;;  %v20529_v33 = vcombine.low %v17008_v58, %v17012_v30 }
 0xd5d   : > { %16884 = vmatpush1.bf16.msra.mxu0 %v20433_v1  ;;  %v20489_v1 = vcombine.low %v16968_v13, %v16972_v57  ;;  %v17024_v57 = vld [vmem:[#allocation13 + $0x840] sm:$0xff] }
 0xd5e   : > { %16925 = vmatpush1.bf16.msra.mxu1 %v20435_v39  ;;  %16885 = vmatprep.subr.bf16.mxu0 %v20442_v28  ;;  %v20491_v39 = vcombine.low %v16969_v50, %v16973_v17  ;;  %v20498_v28 = vcombine.high %v16976_v24, %v16980_v43  ;;  %v17025_v50 = vld [vmem:[#allocation13 + $0x848] sm:$0xff] }
 0xd5f   : > { %16926 = vmatprep.subr.bf16.mxu1 %v20444_v29  ;;  %v20500_v29 = vcombine.high %v16977_v35, %v16981_v37  ;;  %v17029_v17 = vld [vmem:[#allocation13 + $0x868] sm:$0xff] }
 0xd61   : > { %16886 = vmatpush1.bf16.msra.mxu0 %v20441_v60  ;;  %v20497_v60 = vcombine.low %v16976_v24, %v16980_v43  ;;  %v17032_v24 = vld [vmem:[#allocation13 + $0x880] sm:$0xff] }
 0xd62   : > { %16927 = vmatpush1.bf16.msra.mxu1 %v20443_v54  ;;  %16887 = vmatprep.subr.bf16.mxu0 %v20450_v5  ;;  %v20499_v54 = vcombine.low %v16977_v35, %v16981_v37  ;;  %v20506_v5 = vcombine.high %v16984_v9, %v16988_v8  ;;  %v17036_v43 = vld [vmem:[#allocation13 + $0x8a0] sm:$0xff]  ;;  %v17033_v35 = vld [vmem:[#allocation13 + $0x888] sm:$0xff] }
 0xd63   : > { %16928 = vmatprep.subr.bf16.mxu1 %v20452_v6  ;;  %v20508_v6 = vcombine.high %v16985_v55, %v16989_v31  ;;  %v17037_v37 = vld [vmem:[#allocation13 + $0x8a8] sm:$0xff] }
 0xd65   : > { %16888 = vmatpush1.bf16.msra.mxu0 %v20449_v20  ;;  %v20505_v20 = vcombine.low %v16984_v9, %v16988_v8  ;;  %v17040_v9 = vld [vmem:[#allocation13 + $0x8c0] sm:$0xff] }
 0xd66   : > { %16929 = vmatpush1.bf16.msra.mxu1 %v20451_v15  ;;  %16889 = vmatprep.subr.bf16.mxu0 %v20458_v19  ;;  %v20507_v15 = vcombine.low %v16985_v55, %v16989_v31  ;;  %v20514_v19 = vcombine.high %v16992_v59, %v16996_v40  ;;  %v17044_v8 = vld [vmem:[#allocation13 + $0x8e0] sm:$0xff]  ;;  %v17041_v55 = vld [vmem:[#allocation13 + $0x8c8] sm:$0xff] }
 0xd67   : > { %16930 = vmatprep.subr.bf16.mxu1 %v20460_v4  ;;  %v20516_v4 = vcombine.high %v16993_v42, %v16997_v45  ;;  %v17045_v31 = vld [vmem:[#allocation13 + $0x8e8] sm:$0xff] }
 0xd69   : > { %16890 = vmatpush1.bf16.msra.mxu0 %v20457_v32  ;;  %v20513_v32 = vcombine.low %v16992_v59, %v16996_v40  ;;  %v16954_v59 = vld [vmem:[#allocation13 + $0x610] sm:$0xff] }
 0xd6a   : > { %16931 = vmatpush1.bf16.msra.mxu1 %v20459_v14  ;;  %16891 = vmatprep.subr.bf16.mxu0 %v20466_v56  ;;  %v20515_v14 = vcombine.low %v16993_v42, %v16997_v45  ;;  %v20522_v56 = vcombine.high %v17000_v16, %v17004_v7  ;;  %v16958_v40 = vld [vmem:[#allocation13 + $0x630] sm:$0xff]  ;;  %v16955_v42 = vld [vmem:[#allocation13 + $0x618] sm:$0xff] }
 0xd6b   : > { %16932 = vmatprep.subr.bf16.mxu1 %v20468_v21  ;;  %v20524_v21 = vcombine.high %v17001_v44, %v17005_v63  ;;  %v16959_v45 = vld [vmem:[#allocation13 + $0x638] sm:$0xff] }
 0xd6d   : > { %16892 = vmatpush1.bf16.msra.mxu0 %v20465_v52  ;;  %v20521_v52 = vcombine.low %v17000_v16, %v17004_v7  ;;  %v16962_v16 = vld [vmem:[#allocation13 + $0x650] sm:$0xff] }
 0xd6e   : > { %16933 = vmatpush1.bf16.msra.mxu1 %v20467_v25  ;;  %17536 = vmatprep.subr.bf16.mxu0 %v20474_v0  ;;  %v20523_v25 = vcombine.low %v17001_v44, %v17005_v63  ;;  %v20530_v0 = vcombine.high %v17008_v58, %v17012_v30  ;;  %v16966_v7 = vld [vmem:[#allocation13 + $0x670] sm:$0xff]  ;;  %v20477_v44 = vcombine.low %v16954_v59, %v16958_v40  ;;  %v16963_v63 = vld [vmem:[#allocation13 + $0x658] sm:$0xff] }
 0xd6f   : > { %17577 = vmatprep.subr.bf16.mxu1 %v20476_v53  ;;  %v20532_v53 = vcombine.high %v17009_v3, %v17013_v61  ;;  %v16970_v58 = vld [vmem:[#allocation13 + $0x690] sm:$0xff] }
 0xd70   : > { %16902 = vmatmul.mubr.bf16.vlgmr.msra.gmra.mrb[208].mxu0 %v25823_v48  ;;  %v16974_v30 = vld [vmem:[#allocation13 + $0x6b0] sm:$0xff] }
 0xd71   : > { %16943 = vmatmul.mubr.bf16.vlgmr.msra.gmra.mrb[240].mxu1 %v25823_v48  ;;  %17537 = vmatpush1.bf16.msra.mxu0 %v20473_v38  ;;  %v17017_v38 = vld [vmem:[#allocation13 + $0x808] sm:$0xff] }
 0xd72   : > { %20569 = vmatprep.mubr.msk.bf16.mxu0 %vm12183_vm6, %v25851_v27  ;;  %17578 = vmatpush1.bf16.msra.mxu1 %v20475_v36  ;;  %v20531_v36 = vcombine.low %v17009_v3, %v17013_v61  ;;  %v20540_v13 = vcombine.high %v17017_v38, %v17021_v11  ;;  %v16971_v61 = vld [vmem:[#allocation13 + $0x698] sm:$0xff] }
 0xd73   : > { %20570 = vmatprep.mubr.msk.bf16.mxu1 %vm12183_vm6, %v25851_v27  ;;  %17538 = vmatprep.subr.bf16.mxu0 %v20482_v62  ;;  %v20538_v62 = vcombine.high %v17016_v12, %v17020_v41 }
 0xd74   : > { %17579 = vmatprep.subr.bf16.mxu1 %v20484_v23  ;;  %v17028_v23 = vld [vmem:[#allocation13 + $0x860] sm:$0xff] }
 0xd75   : > { %17539 = vmatpush1.bf16.msra.mxu0 %v20481_v47  ;;  %v20537_v47 = vcombine.low %v17016_v12, %v17020_v41  ;;  %v16978_v12 = vld [vmem:[#allocation13 + $0x6d0] sm:$0xff] }
 0xd76   : > { %17580 = vmatpush1.bf16.msra.mxu1 %v20483_v34  ;;  %17540 = vmatprep.subr.bf16.mxu0 %v20490_v22  ;;  %v20539_v34 = vcombine.low %v17017_v38, %v17021_v11  ;;  %v20546_v22 = vcombine.high %v17024_v57, %v17028_v23  ;;  %v16982_v41 = vld [vmem:[#allocation13 + $0x6f0] sm:$0xff]  ;;  %v16979_v38 = vld [vmem:[#allocation13 + $0x6d8] sm:$0xff] }
 0xd77   : > { %17581 = vmatprep.subr.bf16.mxu1 %v20492_v10  ;;  %v20548_v10 = vcombine.high %v17025_v50, %v17029_v17  ;;  %v16983_v11 = vld [vmem:[#allocation13 + $0x6f8] sm:$0xff] }
 0xd79   : > { %17541 = vmatpush1.bf16.msra.mxu0 %v20489_v1  ;;  %v20545_v1 = vcombine.low %v17024_v57, %v17028_v23  ;;  %v16986_v57 = vld [vmem:[#allocation13 + $0x710] sm:$0xff] }
 0xd7a   : > { %17582 = vmatpush1.bf16.msra.mxu1 %v20491_v39  ;;  %17542 = vmatprep.subr.bf16.mxu0 %v20498_v28  ;;  %v20547_v39 = vcombine.low %v17025_v50, %v17029_v17  ;;  %v20554_v28 = vcombine.high %v17032_v24, %v17036_v43  ;;  %v16990_v23 = vld [vmem:[#allocation13 + $0x730] sm:$0xff]  ;;  %v16987_v50 = vld [vmem:[#allocation13 + $0x718] sm:$0xff] }
 0xd7b   : > { %17583 = vmatprep.subr.bf16.mxu1 %v20500_v29  ;;  %v20556_v29 = vcombine.high %v17033_v35, %v17037_v37  ;;  %v16991_v17 = vld [vmem:[#allocation13 + $0x738] sm:$0xff] }
 0xd7d   : > { %17543 = vmatpush1.bf16.msra.mxu0 %v20497_v60  ;;  %v20553_v60 = vcombine.low %v17032_v24, %v17036_v43  ;;  %v16998_v24 = vld [vmem:[#allocation13 + $0x770] sm:$0xff]  ;;  %v16995_v43 = vld [vmem:[#allocation13 + $0x758] sm:$0xff] }
 0xd7e   : > { %17584 = vmatpush1.bf16.msra.mxu1 %v20499_v54  ;;  %17544 = vmatprep.subr.bf16.mxu0 %v20506_v5  ;;  %v20555_v54 = vcombine.low %v17033_v35, %v17037_v37  ;;  %v20562_v5 = vcombine.high %v17040_v9, %v17044_v8  ;;  %v16999_v35 = vld [vmem:[#allocation13 + $0x778] sm:$0xff]  ;;  %v20509_v37 = vcombine.low %v16986_v57, %v16990_v23 }
 0xd7f   : > { %17585 = vmatprep.subr.bf16.mxu1 %v20508_v6  ;;  %v20564_v6 = vcombine.high %v17041_v55, %v17045_v31 }
 0xd81   : > { %17545 = vmatpush1.bf16.msra.mxu0 %v20505_v20  ;;  %v20561_v20 = vcombine.low %v17040_v9, %v17044_v8  ;;  %v17006_v9 = vld [vmem:[#allocation13 + $0x7b0] sm:$0xff]  ;;  %v17003_v8 = vld [vmem:[#allocation13 + $0x798] sm:$0xff] }
 0xd82   : > { %17586 = vmatpush1.bf16.msra.mxu1 %v20507_v15  ;;  %17546 = vmatprep.subr.bf16.mxu0 %v20514_v19  ;;  %v20563_v15 = vcombine.low %v17041_v55, %v17045_v31  ;;  %v20478_v19 = vcombine.high %v16954_v59, %v16958_v40  ;;  %v17007_v55 = vld [vmem:[#allocation13 + $0x7b8] sm:$0xff]  ;;  %v17010_v40 = vld [vmem:[#allocation13 + $0x7d0] sm:$0xff] }
 0xd83   : > { %17587 = vmatprep.subr.bf16.mxu1 %v20516_v4  ;;  %v20480_v4 = vcombine.high %v16955_v42, %v16959_v45  ;;  %v20528_v59 = vcombine.high %v17003_v8, %v17007_v55 }
 0xd85   : > { %17547 = vmatpush1.bf16.msra.mxu0 %v20513_v32  ;;  %v16967_v32 = vld [vmem:[#allocation13 + $0x678] sm:$0xff] }
 0xd86   : > { %17588 = vmatpush1.bf16.msra.mxu1 %v20515_v14  ;;  %17548 = vmatprep.subr.bf16.mxu0 %v20522_v56  ;;  %v25859_v14 = vrot.slane %v25823_v48, 1  ;;  %v20479_v56 = vcombine.low %v16955_v42, %v16959_v45  ;;  %v20488_v3 = vcombine.high %v16963_v63, %v16967_v32  ;;  %v20487_v48 = vcombine.low %v16963_v63, %v16967_v32  ;;  %v17014_v42 = vld [vmem:[#allocation13 + $0x7f0] sm:$0xff] }
 0xd87   : > { %17589 = vmatprep.subr.bf16.mxu1 %v20524_v21  ;;  %v20486_v21 = vcombine.high %v16962_v16, %v16966_v7 }
 0xd89   : > { %17549 = vmatpush1.bf16.msra.mxu0 %v20521_v52  ;;  %v16975_v52 = vld [vmem:[#allocation13 + $0x6b8] sm:$0xff] }
 0xd8a   : > { %17590 = vmatpush1.bf16.msra.mxu1 %v20523_v25  ;;  %17550 = vmatprep.subr.bf16.mxu0 %v20530_v0  ;;  %v20485_v25 = vcombine.low %v16962_v16, %v16966_v7  ;;  %v20494_v0 = vcombine.high %v16970_v58, %v16974_v30 }
 0xd8b   : > { %17591 = vmatprep.subr.bf16.mxu1 %v20532_v53  ;;  %v20496_v53 = vcombine.high %v16971_v61, %v16975_v52 }
 0xd8d   : > { %17551 = vmatpush1.bf16.msra.mxu0 %v20529_v33  ;;  %v20493_v33 = vcombine.low %v16970_v58, %v16974_v30  ;;  %v17018_v58 = vld [vmem:[#allocation13 + $0x810] sm:$0xff] }
 0xd8e   : > { %17592 = vmatpush1.bf16.msra.mxu1 %v20531_v36  ;;  %17552 = vmatprep.subr.bf16.mxu0 %v20538_v62  ;;  %v20495_v36 = vcombine.low %v16971_v61, %v16975_v52  ;;  %v20502_v62 = vcombine.high %v16978_v12, %v16982_v41  ;;  %v17022_v30 = vld [vmem:[#allocation13 + $0x830] sm:$0xff]  ;;  %v17023_v61 = vld [vmem:[#allocation13 + $0x838] sm:$0xff]  ;;  %v20533_v52 = vcombine.low %v17010_v40, %v17014_v42 }
 0xd8f   : > { %17593 = vmatprep.subr.bf16.mxu1 %v20540_v13  ;;  %v20504_v13 = vcombine.high %v16979_v38, %v16983_v11 }
 0xd91   : > { %17553 = vmatpush1.bf16.msra.mxu0 %v20537_v47  ;;  %v20503_v47 = vcombine.low %v16979_v38, %v16983_v11  ;;  %v17031_v38 = vld [vmem:[#allocation13 + $0x878] sm:$0xff]  ;;  %v20541_v11 = vcombine.low %v17018_v58, %v17022_v30 }
 0xd92   : > { %17594 = vmatpush1.bf16.msra.mxu1 %v20539_v34  ;;  %17554 = vmatprep.subr.bf16.mxu0 %v20546_v22  ;;  %v20510_v34 = vcombine.high %v16986_v57, %v16990_v23  ;;  %v20512_v22 = vcombine.high %v16987_v50, %v16991_v17  ;;  %v17038_v57 = vld [vmem:[#allocation13 + $0x8b0] sm:$0xff]  ;;  %v17035_v23 = vld [vmem:[#allocation13 + $0x898] sm:$0xff] }
 0xd93   : > { %17595 = vmatprep.subr.bf16.mxu1 %v20548_v10  ;;  %v16994_v10 = vld [vmem:[#allocation13 + $0x750] sm:$0xff] }
 0xd94   : > { %v20517_v31 = vcombine.low %v16994_v10, %v16998_v24 }
 0xd95   : > { %17555 = vmatpush1.bf16.msra.mxu0 %v20545_v1  ;;  %v20511_v1 = vcombine.low %v16987_v50, %v16991_v17  ;;  %v17039_v50 = vld [vmem:[#allocation13 + $0x8b8] sm:$0xff] }
 0xd96   : > { %17596 = vmatpush1.bf16.msra.mxu1 %v20547_v39  ;;  %17556 = vmatprep.subr.bf16.mxu0 %v20554_v28  ;;  %v20518_v39 = vcombine.high %v16994_v10, %v16998_v24  ;;  %v20520_v28 = vcombine.high %v16995_v43, %v16999_v35  ;;  %v17046_v10 = vld [vmem:[#allocation13 + $0x8f0] sm:$0xff]  ;;  %v17043_v24 = vld [vmem:[#allocation13 + $0x8d8] sm:$0xff] }
 0xd97   : > { %17597 = vmatprep.subr.bf16.mxu1 %v20556_v29  ;;  %v17002_v29 = vld [vmem:[#allocation13 + $0x790] sm:$0xff] }
 0xd99   : > { %17557 = vmatpush1.bf16.msra.mxu0 %v20553_v60  ;;  %v20519_v60 = vcombine.low %v16995_v43, %v16999_v35  ;;  %v17047_v43 = vld [vmem:[#allocation13 + $0x8f8] sm:$0xff] }
 0xd9a   : > { %17598 = vmatpush1.bf16.msra.mxu1 %v20555_v54  ;;  %17558 = vmatprep.subr.bf16.mxu0 %v20562_v5  ;;  %v20526_v54 = vcombine.high %v17002_v29, %v17006_v9 }
 0xd9b   : > { %17599 = vmatprep.subr.bf16.mxu1 %v20564_v6 }
 0xd9d   : > { %17559 = vmatpush1.bf16.msra.mxu0 %v20561_v20 }
 0xd9e   : > { %17600 = vmatpush1.bf16.msra.mxu1 %v20563_v15  ;;  %17618 = vmatprep.subr.bf16.mxu0 %v20478_v19  ;;  %v17011_v15 = vld [vmem:[#allocation13 + $0x7d8] sm:$0xff] }
 0xd9f   : > { %17659 = vmatprep.subr.bf16.mxu1 %v20480_v4  ;;  %v17015_v19 = vld [vmem:[#allocation13 + $0x7f8] sm:$0xff]  ;;  %v20525_v4 = vcombine.low %v17002_v29, %v17006_v9  ;;  %v20567_v29 = vcombine.low %v17043_v24, %v17047_v43  ;;  %v23866_v9 = vld [vmem:[%s26163_s9 + $0x40] sm:$0xff]  }
 0xda0   : > { %17569 = vmatmul.mubr.bf16.vlgmr.msra.gmra.mrb[212].mxu0 %v25859_v14 }
 0xda1   : > { %17610 = vmatmul.mubr.bf16.vlgmr.msra.gmra.mrb[244].mxu1 %v25859_v14  ;;  %17619 = vmatpush1.bf16.msra.mxu0 %v20477_v44  ;;  %v20527_v44 = vcombine.low %v17003_v8, %v17007_v55  ;;  %v23867_v8 = vld [vmem:[%s26163_s9 + $0xc0] sm:$0xff]  }
 0xda2   : > { %20571 = vmatprep.mubr.msk.bf16.mxu0 %vm12183_vm6, %v25851_v27  ;;  %17660 = vmatpush1.bf16.msra.mxu1 %v20479_v56  ;;  %v20534_v56 = vcombine.high %v17010_v40, %v17014_v42  ;;  %v23868_v55 = vld [vmem:[%s26163_s9] sm:$0xff]   ;;  %v23873_v40 = vld [vmem:[%s26163_s9 + $0x88] sm:$0xff]   ;;  %v23874_v42 = vld [vmem:[%s26163_s9 + $0x50] sm:$0xff]  }
 0xda3   : > { %20572 = vmatprep.mubr.msk.bf16.mxu1 %vm12183_vm6, %v25851_v27  ;;  %17620 = vmatprep.subr.bf16.mxu0 %v20486_v21  ;;  %v20501_v27 = vcombine.low %v16978_v12, %v16982_v41  ;;  %v20536_v21 = vcombine.high %v17011_v15, %v17015_v19  ;;  %v17030_v12 = vld [vmem:[#allocation13 + $0x870] sm:$0xff]  ;;  %v17027_v41 = vld [vmem:[#allocation13 + $0x858] sm:$0xff] }
 0xda4   : > { %17661 = vmatprep.subr.bf16.mxu1 %v20488_v3  ;;  %v17019_v3 = vld [vmem:[#allocation13 + $0x818] sm:$0xff] }
 0xda5   : > { %17621 = vmatpush1.bf16.msra.mxu0 %v20485_v25  ;;  %v20535_v25 = vcombine.low %v17011_v15, %v17015_v19  ;;  %v23876_v15 = vld [vmem:[%s26163_s9 + $0x10] sm:$0xff]  }
 0xda6   : > { %17662 = vmatpush1.bf16.msra.mxu1 %v20487_v48  ;;  %17622 = vmatprep.subr.bf16.mxu0 %v20494_v0  ;;  %v20542_v48 = vcombine.high %v17018_v58, %v17022_v30  ;;  %v20544_v0 = vcombine.high %v17019_v3, %v17023_v61  ;;  %v23877_v19 = vld [vmem:[%s26163_s9 + $0x90] sm:$0xff]   ;;  %v23886_v58 = vld [vmem:[%s26163_s9 + $0x68] sm:$0xff]  }
 0xda7   : > { %17663 = vmatprep.subr.bf16.mxu1 %v20496_v53  ;;  %v17026_v53 = vld [vmem:[#allocation13 + $0x850] sm:$0xff]  ;;  %v23887_v30 = vld [vmem:[%s26163_s9 + $0xe8] sm:$0xff]  }
 0xda8   : > { %v20549_v17 = vcombine.low %v17026_v53, %v17030_v12 }
 0xda9   : > { %17623 = vmatpush1.bf16.msra.mxu0 %v20493_v33  ;;  %v20543_v33 = vcombine.low %v17019_v3, %v17023_v61 }
 0xdaa   : > { %17664 = vmatpush1.bf16.msra.mxu1 %v20495_v36  ;;  %17624 = vmatprep.subr.bf16.mxu0 %v20502_v62  ;;  %v20550_v36 = vcombine.high %v17026_v53, %v17030_v12  ;;  %v20552_v62 = vcombine.high %v17027_v41, %v17031_v38 }
 0xdab   : > { %17665 = vmatprep.subr.bf16.mxu1 %v20504_v13  ;;  %v17034_v13 = vld [vmem:[#allocation13 + $0x890] sm:$0xff] }
 0xdac   : > { %v20557_v35 = vcombine.low %v17034_v13, %v17038_v57 }
 0xdad   : > { %17625 = vmatpush1.bf16.msra.mxu0 %v20501_v27  ;;  %v20551_v27 = vcombine.low %v17027_v41, %v17031_v38  ;;  %v23888_v41 = vld [vmem:[%s26163_s9 + $0x28] sm:$0xff]  }
 0xdae   : > { %17666 = vmatpush1.bf16.msra.mxu1 %v20503_v47  ;;  %17626 = vmatprep.subr.bf16.mxu0 %v20510_v34  ;;  %v20558_v47 = vcombine.high %v17034_v13, %v17038_v57  ;;  %v20560_v34 = vcombine.high %v17035_v23, %v17039_v50  ;;  %v23889_v38 = vld [vmem:[%s26163_s9 + $0xa8] sm:$0xff]   ;;  %v23894_v13 = vld [vmem:[%s26163_s9 + $0x78] sm:$0xff]  }
 0xdaf   : > { %17667 = vmatprep.subr.bf16.mxu1 %v20512_v22  ;;  %v17042_v22 = vld [vmem:[#allocation13 + $0x8d0] sm:$0xff]  ;;  %v23895_v57 = vld [vmem:[%s26163_s9 + $0xf8] sm:$0xff]  }
 0xdb1   : > { %17627 = vmatpush1.bf16.msra.mxu0 %v20509_v37  ;;  %v20559_v37 = vcombine.low %v17035_v23, %v17039_v50  ;;  %v23896_v23 = vld [vmem:[%s26163_s9 + $0x38] sm:$0xff]  }
 0xdb2   : > { %17668 = vmatpush1.bf16.msra.mxu1 %v20511_v1  ;;  %17628 = vmatprep.subr.bf16.mxu0 %v20518_v39  ;;  %v20566_v1 = vcombine.high %v17042_v22, %v17046_v10  ;;  %v20568_v39 = vcombine.high %v17043_v24, %v17047_v43  ;;  %v23897_v50 = vld [vmem:[%s26163_s9 + $0xb8] sm:$0xff]  }
 0xdb3   : > { %17669 = vmatprep.subr.bf16.mxu1 %v20520_v28  ;;  %v25867_v5 = vpop.f32.mrb[196].mxu0  ;;  %v25869_v6 = vpop.f32.mrb[228].mxu1  ;;  %v20565_v28 = vcombine.low %v17042_v22, %v17046_v10 }
 0xdb4   : > { %v25871_v45 = vpop.f32.mrb[197].mxu0  ;;  %v25873_v20 = vpop.f32.mrb[229].mxu1 }
 0xdb5   : > { %17629 = vmatpush1.bf16.msra.mxu0 %v20517_v31  ;;  %v16179_v16 = vpop.f32.mrb[198].mxu0  ;;  %v16220_v7 = vpop.f32.mrb[230].mxu1  ;;  %v23869_v31 = vld [vmem:[%s26163_s9 + $0x80] sm:$0xff]  }
 0xdb6   : > { %17670 = vmatpush1.bf16.msra.mxu1 %v20519_v60  ;;  %17630 = vmatprep.subr.bf16.mxu0 %v20526_v54  ;;  %v16180_v63 = vpop.f32.mrb[199].mxu0  ;;  %v16221_v32 = vpop.f32.mrb[231].mxu1  ;;  %v23870_v60 = vld [vmem:[%s26163_s9 + $0x48] sm:$0xff]   ;;  %v23879_v16 = vld [vmem:[%s26163_s9 + $0xd8] sm:$0xff]  }
 0xdb7   : > { %17671 = vmatprep.subr.bf16.mxu1 %v20528_v59  ;;  %v23871_v54 = vld [vmem:[%s26163_s9 + $0xc8] sm:$0xff]   ;;  %v23880_v7 = vld [vmem:[%s26163_s9 + $0x18] sm:$0xff]   ;;  %v23882_v63 = vld [vmem:[%s26163_s9 + $0x60] sm:$0xff]  }
 0xdb8   : > { %v23872_v59 = vld [vmem:[%s26163_s9 + $0x8] sm:$0xff]   ;;  %v23883_v32 = vld [vmem:[%s26163_s9 + $0xe0] sm:$0xff]  }
 0xdb9   : > { %17631 = vmatpush1.bf16.msra.mxu0 %v20525_v4  ;;  %v23878_v4 = vld [vmem:[%s26163_s9 + $0x58] sm:$0xff]  }
 0xdba   : > { %17672 = vmatpush1.bf16.msra.mxu1 %v20527_v44  ;;  %17632 = vmatprep.subr.bf16.mxu0 %v20534_v56  ;;  %v23881_v44 = vld [vmem:[%s26163_s9 + $0x98] sm:$0xff]   ;;  %v23884_v56 = vld [vmem:[%s26163_s9 + $0x20] sm:$0xff]  }
 0xdbb   : > { %17673 = vmatprep.subr.bf16.mxu1 %v20536_v21  ;;  %v23885_v21 = vld [vmem:[%s26163_s9 + $0xa0] sm:$0xff]  }
 0xdbd   : > { %17633 = vmatpush1.bf16.msra.mxu0 %v20533_v52 }
 0xdbe   : > { %17674 = vmatpush1.bf16.msra.mxu1 %v20535_v25  ;;  %17634 = vmatprep.subr.bf16.mxu0 %v20542_v48 }
 0xdbf   : > { %17675 = vmatprep.subr.bf16.mxu1 %v20544_v0 }
 0xdc1   : > { %17635 = vmatpush1.bf16.msra.mxu0 %v20541_v11  ;;  %v23890_v11 = vld [vmem:[%s26163_s9 + $0x70] sm:$0xff]  }
 0xdc2   : > { %17676 = vmatpush1.bf16.msra.mxu1 %v20543_v33  ;;  %17636 = vmatprep.subr.bf16.mxu0 %v20550_v36  ;;  %v23891_v33 = vld [vmem:[%s26163_s9 + $0xf0] sm:$0xff]  }
 0xdc3   : > { %17677 = vmatprep.subr.bf16.mxu1 %v20552_v62  ;;  %v23892_v36 = vld [vmem:[%s26163_s9 + $0x30] sm:$0xff]  }
 0xdc4   : > { %v23893_v62 = vld [vmem:[%s26163_s9 + $0xb0] sm:$0xff]  }
 0xdc5   : > { %17637 = vmatpush1.bf16.msra.mxu0 %v20549_v17  ;;  %v23898_v17 = vld [vmem:[%s26163_s9 + $0x140] sm:$0xff]  }
 0xdc6   : > { %17678 = vmatpush1.bf16.msra.mxu1 %v20551_v27  ;;  %17638 = vmatprep.subr.bf16.mxu0 %v20558_v47  ;;  %v23899_v27 = vld [vmem:[%s26163_s9 + $0x1c0] sm:$0xff]  }
 0xdc7   : > { %17679 = vmatprep.subr.bf16.mxu1 %v20560_v34 }
 0xdc9   : > { %17639 = vmatpush1.bf16.msra.mxu0 %v20557_v35 }
 0xdca   : > { %17680 = vmatpush1.bf16.msra.mxu1 %v20559_v37  ;;  %17640 = vmatprep.subr.bf16.mxu0 %v20566_v1 }
 0xdcb   : > { %17681 = vmatprep.subr.bf16.mxu1 %v20568_v39 }
 0xdcd   : > { %17641 = vmatpush1.bf16.msra.mxu0 %v20565_v28 }
 0xdce   : > { %17682 = vmatpush1.bf16.msra.mxu1 %v20567_v29  ;;  %21202 = vmatprep.subr.bf16.mxu0 %v23866_v9 }
 0xdcf   : > { %21224 = vmatprep.subr.bf16.mxu1 %v23867_v8 }
 0xdd0   : > { %17651 = vmatmul.mubr.bf16.vlgmr.msra.gmra.mrb[216].mxu0 %v25859_v14 }
 0xdd1   : > { %17692 = vmatmul.mubr.bf16.vlgmr.msra.gmra.mrb[248].mxu1 %v25859_v14  ;;  %21203 = vmatpush3.bf16.msra.mxu0 %v23868_v55  ;;  %v23875_v14 = vld [vmem:[%s26163_s9 + $0xd0] sm:$0xff]  }
 0xdd2   : > { %21225 = vmatpush3.bf16.msra.mxu1 %v23869_v31  ;;  %21204 = vmatprep.subr.bf16.mxu0 %v23870_v60 }
 0xdd3   : > { %21226 = vmatprep.subr.bf16.mxu1 %v23871_v54 }
 0xdd5   : > { %21205 = vmatpush3.bf16.msra.mxu0 %v23872_v59 }
 0xdd6   : > { %21227 = vmatpush3.bf16.msra.mxu1 %v23873_v40  ;;  %21206 = vmatprep.subr.bf16.mxu0 %v23874_v42 }
 0xdd7   : > { %21228 = vmatprep.subr.bf16.mxu1 %v23875_v14 }
 0xdd9   : > { %21207 = vmatpush3.bf16.msra.mxu0 %v23876_v15 }
 0xdda   : > { %21229 = vmatpush3.bf16.msra.mxu1 %v23877_v19  ;;  %21208 = vmatprep.subr.bf16.mxu0 %v23878_v4 }
 0xddb   : > { %21230 = vmatprep.subr.bf16.mxu1 %v23879_v16 }
 0xddd   : > { %21209 = vmatpush3.bf16.msra.mxu0 %v23880_v7 }
 0xdde   : > { %21231 = vmatpush3.bf16.msra.mxu1 %v23881_v44  ;;  %21210 = vmatprep.subr.bf16.mxu0 %v23882_v63 }
 0xddf   : > { %21232 = vmatprep.subr.bf16.mxu1 %v23883_v32 }
 0xde1   : > { %21211 = vmatpush3.bf16.msra.mxu0 %v23884_v56 }
 0xde2   : > { %21233 = vmatpush3.bf16.msra.mxu1 %v23885_v21  ;;  %21212 = vmatprep.subr.bf16.mxu0 %v23886_v58 }
 0xde3   : > { %v16257_v3 = vpop.f32.mrb[200].mxu0  ;;  %v16298_v61 = vpop.f32.mrb[232].mxu1  ;;  %21234 = vmatprep.subr.bf16.mxu1 %v23887_v30 }
 0xde4   : > { %v16259_v52 = vpop.f32.mrb[201].mxu0  ;;  %v16300_v25 = vpop.f32.mrb[233].mxu1 }
 0xde5   : > { %v16261_v48 = vpop.f32.mrb[202].mxu0  ;;  %v16302_v0 = vpop.f32.mrb[234].mxu1  ;;  %21213 = vmatpush3.bf16.msra.mxu0 %v23888_v41 }
 0xde6   : > { %v16262_v53 = vpop.f32.mrb[203].mxu0  ;;  %v16303_v12 = vpop.f32.mrb[235].mxu1  ;;  %21235 = vmatpush3.bf16.msra.mxu1 %v23889_v38  ;;  %21214 = vmatprep.subr.bf16.mxu0 %v23890_v11 }
 0xde7   : > { %21236 = vmatprep.subr.bf16.mxu1 %v23891_v33  ;;  %v23901_v33 = vld [vmem:[%s26163_s9 + $0x180] sm:$0xff]  }
 0xde9   : > { %21215 = vmatpush3.bf16.msra.mxu0 %v23892_v36  ;;  %v23902_v36 = vld [vmem:[%s26163_s9 + $0x148] sm:$0xff]  }
 0xdea   : > { %21237 = vmatpush3.bf16.msra.mxu1 %v23893_v62  ;;  %21216 = vmatprep.subr.bf16.mxu0 %v23894_v13  ;;  %v23903_v13 = vld [vmem:[%s26163_s9 + $0x1c8] sm:$0xff]  }
 0xdeb   : > { %21238 = vmatprep.subr.bf16.mxu1 %v23895_v57  ;;  %v23904_v57 = vld [vmem:[%s26163_s9 + $0x108] sm:$0xff]  }
 0xded   : > { %21217 = vmatpush3.bf16.msra.mxu0 %v23896_v23  ;;  %v23905_v23 = vld [vmem:[%s26163_s9 + $0x188] sm:$0xff]  }
 0xdee   : > { %21239 = vmatpush3.bf16.msra.mxu1 %v23897_v50  ;;  %21246 = vmatprep.subr.bf16.mxu0 %v23898_v17  ;;  %v23906_v50 = vld [vmem:[%s26163_s9 + $0x150] sm:$0xff]  }
 0xdef   : > { %21268 = vmatprep.subr.bf16.mxu1 %v23899_v27  ;;  %v23907_v17 = vld [vmem:[%s26163_s9 + $0x1d0] sm:$0xff]  }
 0xdf0   : > { %v23908_v27 = vld [vmem:[%s26163_s9 + $0x110] sm:$0xff]  }
 0xe13   : > { %v16821_v47 = vpop.f32.mrb[204].mxu0 }
 0xe14   : > { %v16822_v34 = vadd.f32 %v16821_v47, %v25867_v5  ;;  %v16862_v22 = vpop.f32.mrb[236].mxu1  ;;  %v16823_v10 = vpop.f32.mrb[205].mxu0  ;;  %v23909_v47 = vld [vmem:[%s26163_s9 + $0x190] sm:$0xff]  }
 0xe15   : > { %v16863_v24 = vadd.f32 %v16862_v22, %v25869_v6  ;;  %v16824_v43 = vadd.f32 %v16823_v10, %v25871_v45  ;;  %v16864_v35 = vpop.f32.mrb[237].mxu1  ;;  %v16825_v37 = vpop.f32.mrb[206].mxu0  ;;  %v23911_v22 = vld [vmem:[%s26163_s9 + $0x1d8] sm:$0xff]  }
 0xe16   : > { %v16865_v1 = vadd.f32 %v16864_v35, %v25873_v20  ;;  %v16866_v39 = vpop.f32.mrb[238].mxu1  ;;  %v16826_v28 = vpop.f32.mrb[207].mxu0  ;;  %v25991_v20 = vld [vmem:[#allocation14] sm:$0xff]  ;;  %v23912_v10 = vld [vmem:[%s26163_s9 + $0x118] sm:$0xff]   ;;  %v23915_v35 = vld [vmem:[%s26163_s9 + $0x1e0] sm:$0xff]  }
 0xe17   : > { %v16867_v29 = vpop.f32.mrb[239].mxu1  ;;  %v17713_v14 = vrot.slane %v25991_v20, %v26260_v51  ;;  %v17721_v19 = vrot.slane %v25991_v20, %v26257_v49  ;;  %v17717_v4 = vrot.slane %v25991_v20, %v26261_v2  ;;  %v17725_v63 = vrot.slane %v25991_v20, %v26256_v26  ;;  %v23900_v26 = vld [vmem:[%s26163_s9 + $0x100] sm:$0xff]   ;;  %v23918_v39 = vld [vmem:[%s26163_s9 + $0x168] sm:$0xff]  }
 0xe18   : > { %v23916_v37 = vld [vmem:[%s26163_s9 + $0x120] sm:$0xff]   ;;  %v23919_v28 = vld [vmem:[%s26163_s9 + $0x1e8] sm:$0xff]  }
 0xe19   : > { %v23920_v29 = vld [vmem:[%s26163_s9 + $0x128] sm:$0xff]  }
 0xe43   : > { %v16903_v9 = vpop.f32.mrb[208].mxu0 }
 0xe44   : > { %v25983_v8 = vadd.f32 %v16903_v9, %v16257_v3  ;;  %v16944_v55 = vpop.f32.mrb[240].mxu1  ;;  %v16905_v31 = vpop.f32.mrb[209].mxu0  ;;  %v23921_v9 = vld [vmem:[%s26163_s9 + $0x1a8] sm:$0xff]  }
 0xe45   : > { %v25985_v60 = vadd.f32 %v16944_v55, %v16298_v61  ;;  %v25987_v5 = vadd.f32 %v16905_v31, %v16259_v52  ;;  %v16946_v54 = vpop.f32.mrb[241].mxu1  ;;  %v16907_v6 = vpop.f32.mrb[210].mxu0  ;;  %v23922_v55 = vld [vmem:[%s26163_s9 + $0x170] sm:$0xff]  }
 0xe46   : > { %v25989_v59 = vadd.f32 %v16946_v54, %v16300_v25  ;;  %v16948_v45 = vpop.f32.mrb[242].mxu1  ;;  %v16908_v40 = vpop.f32.mrb[211].mxu0  ;;  %v23923_v31 = vld [vmem:[%s26163_s9 + $0x1f0] sm:$0xff]  }
 0xe47   : > { %v16949_v42 = vpop.f32.mrb[243].mxu1  ;;  %v23924_v54 = vld [vmem:[%s26163_s9 + $0x130] sm:$0xff]   ;;  %v23926_v45 = vld [vmem:[%s26163_s9 + $0x178] sm:$0xff]  }
 0xe48   : > { %v23925_v6 = vld [vmem:[%s26163_s9 + $0x1b0] sm:$0xff]   ;;  %v23927_v40 = vld [vmem:[%s26163_s9 + $0x1f8] sm:$0xff]  }
 0xe49   : > { %v23928_v42 = vld [vmem:[%s26163_s9 + $0x138] sm:$0xff]  }
 0xe73   : > { %v17570_v15 = vpop.f32.mrb[212].mxu0 }
 0xe74   : > { %v17700_v16 = vadd.f32 %v17570_v15, %v16822_v34  ;;  %v17611_v7 = vpop.f32.mrb[244].mxu1  ;;  %v17572_v44 = vpop.f32.mrb[213].mxu0  ;;  %v23910_v34 = vld [vmem:[%s26163_s9 + $0x158] sm:$0xff]   ;;  %v17736_v15 = vsub.s32 6, %v26259_v46 }
 0xe75   : > { %v17702_v32 = vadd.f32 %v17611_v7, %v16863_v24  ;;  %v17701_v56 = vadd.f32 %v17572_v44, %v16824_v43  ;;  %v17613_v21 = vpop.f32.mrb[245].mxu1  ;;  %v17574_v58 = vpop.f32.mrb[214].mxu0  ;;  %v23913_v24 = vld [vmem:[%s26163_s9 + $0x198] sm:$0xff]   ;;  %v23914_v43 = vld [vmem:[%s26163_s9 + $0x160] sm:$0xff]   ;;  %v26265_v44 = vsub.s32 5, %v26259_v46 }
 0xe76   : > { %v17750_v30 = vadd.f32 %v17713_v14, %v17700_v16  ;;  %v17703_v3 = vadd.f32 %v17613_v21, %v16865_v1  ;;  %v17615_v51 = vpop.f32.mrb[246].mxu1  ;;  %v17575_v61 = vpop.f32.mrb[215].mxu0  ;;  %v23917_v1 = vld [vmem:[%s26163_s9 + $0x1a0] sm:$0xff]   ;;  %v23929_v14 = vld [vmem:[%s26163_s9 + $0x1b8] sm:$0xff]   ;;  %v17737_v7 = vrot.slane %v25991_v20, %v17736_v15 }
 0xe77   : > { %v17752_v52 = vadd.f32 %v17721_v19, %v17702_v32  ;;  %v17751_v25 = vadd.f32 %v17717_v4, %v17701_v56  ;;  %v17616_v49 = vpop.f32.mrb[247].mxu1  ;;  %v17740_v19 = vsub.s32 7, %v26259_v46  ;;  %v17729_v4 = vrot.slane %v25991_v20, %v26258_v18 }
 0xe78   : > { %v17758_v48 = vmax.f32 %v17750_v30, 0.0  ;;  %v17753_v0 = vadd.f32 %v17725_v63, %v17703_v3  ;;  %v17733_v63 = vrot.slane %v25991_v20, %v26265_v44 }
 0xe79   : > { %v17760_v2 = vmax.f32 %v17752_v52, 0.0  ;;  %v17759_v53 = vmax.f32 %v17751_v25, 0.0  ;;  %v17741_v58 = vrot.slane %v25991_v20, %v17740_v19 }
 0xe7a   : > { %v17761_v12 = vmax.f32 %v17753_v0, 0.0  ;;  %v17766_v38 = vpack.c.bf16 %v17758_v48, %v17758_v48 }
 0xe7b   : > { %v17767_v41 = vpack.c.bf16 %v17759_v53, %v17759_v53  ;;  %v17768_v62 = vpack.c.bf16 %v17760_v2, %v17760_v2 }
 0xe7c   : > { %v17769_v11 = vpack.c.bf16 %v17761_v12, %v17761_v12 }
 0xe7d   : > { %18319 = vmatprep.mubr.bf16.mxu0 %v17767_v41 }
 0xe7e   : > { %18359 = vmatprep.mubr.bf16.mxu1 %v17769_v11  ;;  %18320 = vmatmul.mubr.bf16.vlgmr.msra.gmra.mrb[220].mxu0 %v17766_v38  ;;  %v17902_v11 = vld [vmem:[#allocation16] sm:$0x1] }
 0xe7f   : > { %18360 = vmatmul.mubr.bf16.vlgmr.msra.gmra.mrb[252].mxu1 %v17768_v62  ;;  %21247 = vmatpush3.bf16.msra.mxu0 %v23900_v26 }
 0xe80   : > { %21269 = vmatpush3.bf16.msra.mxu1 %v23901_v33  ;;  %21248 = vmatprep.subr.bf16.mxu0 %v23902_v36 }
 0xe81   : > { %21270 = vmatprep.subr.bf16.mxu1 %v23903_v13 }
 0xe83   : > { %21249 = vmatpush3.bf16.msra.mxu0 %v23904_v57 }
 0xe84   : > { %21271 = vmatpush3.bf16.msra.mxu1 %v23905_v23  ;;  %21250 = vmatprep.subr.bf16.mxu0 %v23906_v50 }
 0xe85   : > { %21272 = vmatprep.subr.bf16.mxu1 %v23907_v17 }
 0xe87   : > { %21251 = vmatpush3.bf16.msra.mxu0 %v23908_v27 }
 0xe88   : > { %21273 = vmatpush3.bf16.msra.mxu1 %v23909_v47  ;;  %21252 = vmatprep.subr.bf16.mxu0 %v23910_v34 }
 0xe89   : > { %21274 = vmatprep.subr.bf16.mxu1 %v23911_v22 }
 0xe8b   : > { %21253 = vmatpush3.bf16.msra.mxu0 %v23912_v10 }
 0xe8c   : > { %21275 = vmatpush3.bf16.msra.mxu1 %v23913_v24  ;;  %21254 = vmatprep.subr.bf16.mxu0 %v23914_v43 }
 0xe8d   : > { %21276 = vmatprep.subr.bf16.mxu1 %v23915_v35 }
 0xe8f   : > { %21255 = vmatpush3.bf16.msra.mxu0 %v23916_v37 }
 0xe90   : > { %21277 = vmatpush3.bf16.msra.mxu1 %v23917_v1  ;;  %21256 = vmatprep.subr.bf16.mxu0 %v23918_v39 }
 0xe91   : > { %21278 = vmatprep.subr.bf16.mxu1 %v23919_v28 }
 0xe93   : > { %21257 = vmatpush3.bf16.msra.mxu0 %v23920_v29 }
 0xe94   : > { %21279 = vmatpush3.bf16.msra.mxu1 %v23921_v9  ;;  %21258 = vmatprep.subr.bf16.mxu0 %v23922_v55 }
 0xe95   : > { %21280 = vmatprep.subr.bf16.mxu1 %v23923_v31 }
 0xe97   : > { %21259 = vmatpush3.bf16.msra.mxu0 %v23924_v54 }
 0xe98   : > { %21281 = vmatpush3.bf16.msra.mxu1 %v23925_v6  ;;  %21260 = vmatprep.subr.bf16.mxu0 %v23926_v45 }
 0xe99   : > { %21282 = vmatprep.subr.bf16.mxu1 %v23927_v40 }
 0xe9b   : > { %21261 = vmatpush3.bf16.msra.mxu0 %v23928_v42 }
 0xe9c   : > { %21283 = vmatpush3.bf16.msra.mxu1 %v23929_v14 }
 0xea3   : > { %v17652_v16 = vpop.f32.mrb[216].mxu0 }
 0xea4   : > { %v17704_v32 = vadd.f32 %v17652_v16, %v25983_v8  ;;  %v17693_v56 = vpop.f32.mrb[248].mxu1  ;;  %v17654_v21 = vpop.f32.mrb[217].mxu0 }
 0xea5   : > { %v17706_v30 = vadd.f32 %v17693_v56, %v25985_v60  ;;  %v17705_v3 = vadd.f32 %v17654_v21, %v25987_v5  ;;  %v17695_v51 = vpop.f32.mrb[249].mxu1  ;;  %v17656_v61 = vpop.f32.mrb[218].mxu0 }
 0xea6   : > { %v17754_v18 = vadd.f32 %v17729_v4, %v17704_v32  ;;  %v17707_v52 = vadd.f32 %v17695_v51, %v25989_v59  ;;  %v17697_v25 = vpop.f32.mrb[250].mxu1  ;;  %v17657_v49 = vpop.f32.mrb[219].mxu0 }
 0xea7   : > { %v17756_v46 = vadd.f32 %v17737_v7, %v17706_v30  ;;  %v17755_v48 = vadd.f32 %v17733_v63, %v17705_v3  ;;  %v17698_v0 = vpop.f32.mrb[251].mxu1 }
 0xea8   : > { %v17762_v2 = vmax.f32 %v17754_v18, 0.0  ;;  %v17757_v8 = vadd.f32 %v17741_v58, %v17707_v52 }
 0xea9   : > { %v17764_v53 = vmax.f32 %v17756_v46, 0.0  ;;  %v17763_v12 = vmax.f32 %v17755_v48, 0.0 }
 0xeaa   : > { %v17765_v41 = vmax.f32 %v17757_v8, 0.0  ;;  %v17770_v26 = vpack.c.bf16 %v17762_v2, %v17762_v2 }
 0xeab   : > { %v17771_v20 = vpack.c.bf16 %v17763_v12, %v17763_v12  ;;  %v17772_v38 = vpack.c.bf16 %v17764_v53, %v17764_v53 }
 0xeac   : > { %v17773_v60 = vpack.c.bf16 %v17765_v41, %v17765_v41 }
 0xead   : > { %18399 = vmatprep.mubr.bf16.mxu0 %v17771_v20 }
 0xeae   : > { %18439 = vmatprep.mubr.bf16.mxu1 %v17773_v60  ;;  %18400 = vmatmul.mubr.bf16.vlgmr.msra.gmra.mrb[224].mxu0 %v17770_v26 }
 0xeaf   : > { %18440 = vmatmul.mubr.bf16.vlgmr.msra.gmra.mrb[4].mxu1 %v17772_v38 }
 0xf51   : > { %v21218_v5 = vpop.f32.mrb[220].mxu0 }
 0xf52   : > { %v21240_v59 = vpop.f32.mrb[252].mxu1  ;;  %v21219_v33 = vpop.f32.mrb[221].mxu0 }
 0xf53   : > { %v21220_v36 = vadd.f32 %v21219_v33, %v21218_v5  ;;  %v21241_v62 = vpop.f32.mrb[253].mxu1  ;;  %v21221_v13 = vpop.f32.mrb[222].mxu0 }
 0xf54   : > { %v21242_v57 = vadd.f32 %v21241_v62, %v21240_v59  ;;  %v21243_v23 = vpop.f32.mrb[254].mxu1  ;;  %v21222_v50 = vpop.f32.mrb[223].mxu0 }
 0xf55   : > { %v18322_v17 = vadd.f32 %v21220_v36, %v17902_v11  ;;  %v21244_v27 = vpop.f32.mrb[255].mxu1 }
 0xf57   : > { %v18362_v47 = vadd.f32 %v21242_v57, %v18322_v17 }
 0xf81   : > { %v21262_v34 = vpop.f32.mrb[224].mxu0 }
 0xf82   : > { %v21284_v22 = vpop.f32.mrb[4].mxu1  ;;  %v21263_v10 = vpop.f32.mrb[225].mxu0 }
 0xf83   : > { %v21264_v24 = vadd.f32 %v21263_v10, %v21262_v34  ;;  %v21285_v43 = vpop.f32.mrb[5].mxu1  ;;  %v21265_v35 = vpop.f32.mrb[226].mxu0 }
 0xf84   : > { %v21286_v37 = vadd.f32 %v21285_v43, %v21284_v22  ;;  %v21287_v1 = vpop.f32.mrb[6].mxu1  ;;  %v21266_v39 = vpop.f32.mrb[227].mxu0 }
 0xf85   : > { %v18402_v28 = vadd.f32 %v21264_v24, %v18362_v47  ;;  %v21288_v29 = vpop.f32.mrb[7].mxu1 }
 0xf87   : > { %v18442_v9 = vadd.f32 %v21286_v37, %v18402_v28 }
 0xf89   : > { %v18448_v55 = vsel %vm18447_vm15, %v18442_v9, -inf }
 0xf8a   : > { %18449 = vmax.xlane.f32.xlu0 %v18448_v55 }
0x1017   : > { %v18450_v31 = vpop.xlane.xlu0 %18449 }
0x1018   : > { %v18451_v54 = vsub.f32 %v18442_v9, %v18450_v31 }
0x101a   : > { %v18452_v6 = vmul.f32 1.442695, %v18451_v54 }
0x101c   : > { %23930 = vpow2.f32 %v18452_v6 }
0x1026   : > { %v23931_v45 = vpop.eup %23930 }
0x1027   : > { %v18454_v40 = vsel %vm18447_vm15, %v23931_v45, 0.0 }
0x1028   : > { %18455 = vadd.xlane.f32.xlu1 %v18454_v40 }
0x10b5   : > { %v18456_v42 = vpop.xlane.xlu1 %18455 }
0x10b6   : > { %23932 = vlog2.f32 %v18456_v42 }
0x10c0   : > { %v23933_v14 = vpop.eup %23932 }
0x10c1   : > { %v18458_v15 = vmul.f32 0.6931472, %v23933_v14 }
0x10c3   : > { %v18459_v19 = vsub.f32 %v18451_v54, %v18458_v15 }
0x10c5   : > { %18460 = vst.msk [vmem:[%s499_s29] sm:$0x1] %vm18447_vm15, %v18459_v19 }
0x10c6   : > { %24199 = shalt.err (!%p24196_p9)
}
0x10c7   : > { %s24200_s17 = scalar_lea.hbm %s26111_s26, 16  ;;  %s24204_s2 = scalar_lea.hbm %s26165_s11, 32 }
0x10c8   : > { %p24201_p12 = scmp.ne.s32.totalorder %s26111_s26, %s24200_s17  ;;  %p24205_p3 = scmp.lt.u32.totalorder %s26111_s26, %s26165_s11 }
0x10c9   : > { %p24206_p4 = scmp.lt.u32.totalorder %s24204_s2, %s24200_s17  ;;  %p24208_p8 = scmp.lt.u32.totalorder %s24200_s17, %s26111_s26 }
0x10ca   : > { %p24202_p10 = pnand %p24201_p12, %p26266_p11 }
0x10cb   : > { %p24207_p7 = por %p24206_p4, %p24205_p3 }
0x10cc   : > { %p24203_p2 = pneg %p24202_p10 }
0x10cd   : > { %p24209_p13 = por %p24208_p8, %p24207_p7 }
0x10cf   : > { %p24210_p1 = pnand %p24209_p13, %p24203_p2 }
0x10d1   : > { %24213 = shalt.err (!%p24210_p1)
}
0x10d2   : > { %21562 = dma.vmem_to_hbm [thread:$0]  (%p26266_p11), %s26113_s15, 16, %s26111_s26, %s18462_s24  }
0x10d3 PF: > { %s26267_s22 = sld [smem:[#allocation24_spill]]  ;;  %s26268_s4 = sld [smem:[#allocation28_spill]] }
0x10d4   : > { %p21614_p0 = scmp.ge.s32.totalorder %s24268_s20, 2 }
0x10d9   : > { %s18486_s29 = sand.u32 1, %s26267_s22   ;;  %p26269_p6 = scmp.ne.s32.totalorder %s26268_s4, 0 }
0x10da   : > { %s18487_s13 = scalar_lea.sflag [#allocation4], %s18486_s29 }
0x10db   : > { %p21593_p5 = pnand %p21614_p0, %p26269_p6 }
0x10dd   : > { %24251 = dma.done.wait (!%p21593_p5), %s18487_s13, 16  }
0x10de   : > { %24253 = vsyncadd (!%p21593_p5), %s18487_s13, 4294967280  ;;  %s26270_s20 = sld [smem:[#allocation26_spill]]  ;;  %s26271_s19 = sld [smem:[#allocation25_spill]] }
0x10df   : > { %s26272_s12 = sld [smem:[#allocation27_spill]]  ;;  %s26273_s17 = smov %s24260_s18 }
0x10e4   : > { %p26_p9 = scmp.ge.s32.totalorder %s26270_s20, 4   ;;  %s26274_s18 = smov %s26271_s19 }
0x10e5   : > { %s26275_s19 = smov %s26272_s12 }
0x10e6   :  { %28 = sbr.rel (!%p26_p9) target bundleno = 11 (0xb), region = 150 }
0x10ed   :  { %18491 = vsyncpa [#allocation3], 1 }
0x10ee   :  { %18493 = vsyncpa [#allocation3 + $0x1], 1 }
0x10ef   :  { %18494 = vsyncpa [#allocation6], 1 }
0x10f0   :  { %18495 = vsyncpa [#allocation9], 1 }
0x10f1   :  { %18496 = vsyncpa [#allocation12], 1 }
0x10f2   :  { %18497 = vsyncpa [#allocation15], 1 }
0x10f3   :  { %18498 = vsyncpa [#allocation4], 1 }
0x10f4   :  { %18500 = vsyncpa [#allocation4 + $0x1], 1 }

</bundles_post_ra>
